<compile_context>
chip_gen: v6e
topology: v6e:2x2x1
jax: 0.10.0
libtpu: 0.0.40
codegen_flags: <defaults>
</compile_context>

<pallas_src>
import jax
import jax.numpy as jnp
from jax.experimental import pallas as pl
from jax.experimental.pallas import tpu as pltpu

# ----------------------------- model hyper-params -----------------------------
B = 2            # batch
T = 8            # text sequence length
H = 32           # hidden_dim
NH = 4           # attention heads
HD = H // NH     # head dim = 8
FFN = 64         # MLP intermediate dim
IMG = 16         # image spatial size
PCH = 8          # ViT patch size
NP = (IMG // PCH) ** 2      # 4 patches
SI = NP + 1                 # real image tokens (patches + CLS) = 5
SI_P = 8                    # image tokens padded to a sublane multiple
SF_P = T + SI_P             # padded fusion sequence length = 16
PD = 3 * PCH * PCH          # patch vector dim = 192
VOCAB = 50
N_TEXT_LAYERS = 2
N_VIT_LAYERS = 2
N_FUSION_LAYERS = 2
NL = N_TEXT_LAYERS + N_VIT_LAYERS + N_FUSION_LAYERS
LN_EPS = 1e-12
NEG = -10000.0
S_MAX = B * SF_P            # 32 (also the padded bias side length)


# ----------------------------- in-kernel helpers ------------------------------
def _ln(x, g, b, eps=LN_EPS):
    mu = jnp.mean(x, axis=-1, keepdims=True)
    var = jnp.mean(jnp.square(x - mu), axis=-1, keepdims=True)
    return (x - mu) * jax.lax.rsqrt(var + eps) * g + b


def _gelu(x):
    # tanh-approximate GELU (see TODO above)
    c = 0.7978845608028654  # sqrt(2/pi)
    return 0.5 * x * (1.0 + jnp.tanh(c * (x + 0.044715 * x * x * x)))


def _sigmoid(x):
    # numerically stable, EUP-friendly sigmoid
    return 0.5 * (jnp.tanh(0.5 * x) + 1.0)


def _encoder_layer(x, bias, i, refs, *, pre_ln):
    """One transformer block on flattened [S_total, H] f32 activations.

    `bias` is a full [S_total, S_total] additive mask (0 / -1e4) encoding both
    key padding and the block-diagonal batch structure.  QKV is one wide bf16
    matmul; per-head q/k/v are static lane slices; per-head contexts are
    lane-concatenated and hit the un-split output projection in one matmul.
    Score / softmax / LayerNorm math stays in f32.
    """
    (wqkv, bqkv, wo, bo, ln, w1, b1, w2, b2) = refs
    lnp = ln[i]                                    # [4, H]: ln1g, ln1b, ln2g, ln2b
    h_in = _ln(x, lnp[0:1], lnp[1:2]) if pre_ln else x
    scale = 1.0 / (HD ** 0.5)

    # fused QKV: [S, H] x [H, 3H] -> [S, 3H] (f32 accum) + f32 bias
    qkv = jnp.dot(h_in.astype(jnp.bfloat16), wqkv[i],
                  preferred_element_type=jnp.float32) + bqkv[i]

    ctx_heads = []
    for hh in range(NH):                           # unrolled; static lane slices
        qh = qkv[:, hh * HD:(hh + 1) * HD].astype(jnp.bfloat16)
        kh = qkv[:, H + hh * HD:H + (hh + 1) * HD].astype(jnp.bfloat16)
        vh = qkv[:, 2 * H + hh * HD:2 * H + (hh + 1) * HD].astype(jnp.bfloat16)
        s = jax.lax.dot_general(qh, kh, (((1,), (1,)), ((), ())),
                                preferred_element_type=jnp.float32) * scale + bias
        s = s - jnp.max(s, axis=-1, keepdims=True)
        p = jnp.exp(s)
        p = p * pl.reciprocal(jnp.sum(p, axis=-1, keepdims=True), approx=True)
        ctx_heads.append(jnp.dot(p.astype(jnp.bfloat16), vh,
                                 preferred_element_type=jnp.float32))      # [S, HD]
    ctx = jnp.concatenate(ctx_heads, axis=1)        # [S, H]  (lane offsets 0/8/16/24)
    attn = jnp.dot(ctx.astype(jnp.bfloat16), wo[i],
                   preferred_element_type=jnp.float32) + bo[i]

    if pre_ln:   # ViT-style block
        x1 = x + attn
        h2 = _ln(x1, lnp[2:3], lnp[3:4])
        ff = jnp.dot(
            _gelu(jnp.dot(h2.astype(jnp.bfloat16), w1[i],
                          preferred_element_type=jnp.float32) + b1[i]).astype(jnp.bfloat16),
            w2[i], preferred_element_type=jnp.float32) + b2[i]
        return x1 + ff
    # BERT-style (post-LN) block
    x1 = _ln(x + attn, lnp[0:1], lnp[1:2])
    ff = jnp.dot(
        _gelu(jnp.dot(x1.astype(jnp.bfloat16), w1[i],
                      preferred_element_type=jnp.float32) + b1[i]).astype(jnp.bfloat16),
        w2[i], preferred_element_type=jnp.float32) + b2[i]
    return _ln(x1 + ff, lnp[2:3], lnp[3:4])


# ------------------------------ the fused kernel -------------------------------
def bert_vit_fused_kernel(
    # runtime activations / masks
    emb_ref, patch_ref, bias_ref, norm_ref,
    # embedding params
    pw_ref, vbase_ref,
    # stacked transformer layer params (text 0..1, vit 2..3, fusion 4..5)
    wqkv_ref, bqkv_ref, wo_ref, bo_ref, ln_ref, w1_ref, b1_ref, w2_ref, b2_ref,
    # prediction head
    hw1_ref, hsmall_ref,
    # output
    out_ref,
):
    layer_refs = (wqkv_ref, bqkv_ref, wo_ref, bo_ref, ln_ref,
                  w1_ref, b1_ref, w2_ref, b2_ref)

    bias_all = bias_ref[...]                               # [3, 32, 32] f32
    tbias = bias_all[0, :B * T, :B * T]                    # [16, 16]
    vbias = bias_all[1, :B * SI_P, :B * SI_P]              # [16, 16]
    fbias = bias_all[2]                                    # [32, 32]
    norms = norm_ref[...]                                  # [4, H]

    # ----- text encoder (mode='text'): embedding LN + BERT post-LN blocks -----
    x = _ln(emb_ref[...], norms[0:1], norms[1:2])          # [B*T, H]
    for l in range(N_TEXT_LAYERS):
        x = _encoder_layer(x, tbias, l, layer_refs, pre_ln=False)

    # ----- ViT encoder: patch projection (+CLS/pos folded into vbase) -----
    v = jnp.dot(patch_ref[...].astype(jnp.bfloat16), pw_ref[...],
                preferred_element_type=jnp.float32) + vbase_ref[...]   # [B*SI_P, H]
    for l in range(N_VIT_LAYERS):
        v = _encoder_layer(v, vbias, N_TEXT_LAYERS + l, layer_refs, pre_ln=True)
    v = _ln(v, norms[2:3], norms[3:4])

    # ----- fusion sequence: per batch [8 text rows | 8 image rows], 8-aligned -----
    chunks = []
    for b in range(B):
        chunks.append(x[b * T:(b + 1) * T, :])
        chunks.append(v[b * SI_P:(b + 1) * SI_P, :])
    f = jnp.concatenate(chunks, axis=0)                    # [B*SF_P, H]
    for l in range(N_FUSION_LAYERS):
        f = _encoder_layer(f, fbias, N_TEXT_LAYERS + N_VIT_LAYERS + l,
                           layer_refs, pre_ln=False)

    # ----- prediction head on CLS rows only: Linear -> Tanh -> Linear -> sigmoid -----
    cls = jnp.concatenate([f[b * SF_P:b * SF_P + 1, :] for b in range(B)], axis=0)  # [B, H]
    hs = hsmall_ref[...]                                   # [3, H//2]: b1, w2-row, [b2,0..]
    h1 = jnp.tanh(jnp.dot(cls.astype(jnp.bfloat16), hw1_ref[...],
                          preferred_element_type=jnp.float32) + hs[0:1, :])  # [B, H//2]
    logits = jnp.sum(h1 * hs[1:2, :], axis=-1, keepdims=True) + hs[2:3, 0:1]  # [B, 1]
    out_ref[...] = _sigmoid(logits)


# -------------------------------- wrappers ------------------------------------
def _full_spec(shape):
    zeros = (0,) * len(shape)
    return pl.BlockSpec(shape, lambda *_: zeros)


def _block_bias(key_valid, batch_ids):
    """Additive attention bias over flattened rows: 0 if the key is a valid
    token of the SAME batch element as the query, else -1e4."""
    same = batch_ids[:, None] == batch_ids[None, :]
    ok = same & (key_valid[None, :] > 0)
    return jnp.where(ok, 0.0, NEG).astype(jnp.float32)


def _make_cost_estimate(bytes_accessed):
    def layer(s):
        fl = 2 * s * H * 3 * H                 # fused QKV
        fl += NH * 2 * (2 * s * s * HD)        # scores + ctx
        fl += 2 * s * H * H                    # out projection
        fl += 4 * s * H * FFN                  # FFN
        tr = NH * s * s + s * FFN              # exp + gelu tanh
        return fl, tr
    flops, trans = 0, 0
    for s in (B * T,) * N_TEXT_LAYERS + (B * SI_P,) * N_VIT_LAYERS + (B * SF_P,) * N_FUSION_LAYERS:
        fl, tr = layer(s)
        flops += fl
        trans += tr
    flops += 2 * (B * SI_P) * PD * H                       # patch projection
    flops += 2 * B * H * (H // 2) + 2 * B * (H // 2)       # prediction head
    trans += B * (H // 2) + B                              # head tanh + sigmoid
    return pl.CostEstimate(flops=flops, transcendentals=trans,
                           bytes_accessed=bytes_accessed)


# ------------------------------ parameter init --------------------------------
def _init_layer(key):
    ks = jax.random.split(key, 6)

    def w(k, din, dout):
        return jax.random.normal(k, (din, dout), jnp.float32) * 0.02

    def zb(d):
        return jnp.zeros((1, d), jnp.float32)

    return dict(
        wq=w(ks[0], H, H), bq=zb(H),
        wk=w(ks[1], H, H), bk=zb(H),
        wv=w(ks[2], H, H), bv=zb(H),
        wo=w(ks[3], H, H), bo=zb(H),
        ln1g=jnp.ones((1, H), jnp.float32), ln1b=jnp.zeros((1, H), jnp.float32),
        w1=w(ks[4], H, FFN), b1=zb(FFN),
        w2=w(ks[5], FFN, H), b2=zb(H),
        ln2g=jnp.ones((1, H), jnp.float32), ln2b=jnp.zeros((1, H), jnp.float32),
    )


def init_params(key):
    ks = jax.random.split(key, 12)
    n = lambda k, shape: jax.random.normal(k, shape, jnp.float32) * 0.02
    return {
        # BERT embeddings
        "word_emb": n(ks[0], (VOCAB, H)),
        "pos_emb": n(ks[1], (T, H)),
        "type_emb": n(ks[2], (2, H)),
        "emb_ln_g": jnp.ones((1, H), jnp.float32),
        "emb_ln_b": jnp.zeros((1, H), jnp.float32),
        # ViT embeddings
        "patch_w": n(ks[3], (PD, H)),
        "patch_b": jnp.zeros((1, H), jnp.float32),
        "cls": n(ks[4], (1, 1, H)),
        "vit_pos": n(ks[5], (1, SI, H)),
        "vit_ln_g": jnp.ones((1, H), jnp.float32),
        "vit_ln_b": jnp.zeros((1, H), jnp.float32),
        # transformer stacks
        "text_layers": [_init_layer(k) for k in jax.random.split(ks[6], N_TEXT_LAYERS)],
        "vit_layers": [_init_layer(k) for k in jax.random.split(ks[7], N_VIT_LAYERS)],
        "fusion_layers": [_init_layer(k) for k in jax.random.split(ks[8], N_FUSION_LAYERS)],
        # prediction head: Linear(H, H//2) -> Tanh -> Linear(H//2, 1)
        "head_w1": n(ks[9], (H, H // 2)),
        "head_b1": jnp.zeros((1, H // 2), jnp.float32),
        "head_w2": n(ks[10], (H // 2, 1)),
        "head_b2": jnp.zeros((1, 1), jnp.float32),
    }


def pack_params(params):
    """ONE-TIME packing (outside jit): stack all 6 layers, fuse QKV weights,
    cast matmul weights to bf16, fold ViT CLS/pos/bias into a per-row base."""
    layers = params["text_layers"] + params["vit_layers"] + params["fusion_layers"]
    st = lambda f: jnp.stack([f(lp) for lp in layers], axis=0)

    wqkv = st(lambda lp: jnp.concatenate([lp["wq"], lp["wk"], lp["wv"]], axis=1))  # [L,H,3H]
    bqkv = st(lambda lp: jnp.concatenate([lp["bq"], lp["bk"], lp["bv"]], axis=1))  # [L,1,3H]
    wo = st(lambda lp: lp["wo"])                                                    # [L,H,H]
    bo = st(lambda lp: lp["bo"])                                                    # [L,1,H]
    ln = st(lambda lp: jnp.concatenate(
        [lp["ln1g"], lp["ln1b"], lp["ln2g"], lp["ln2b"]], axis=0))                  # [L,4,H]
    w1 = st(lambda lp: lp["w1"])                                                    # [L,H,FFN]
    b1 = st(lambda lp: lp["b1"])                                                    # [L,1,FFN]
    w2 = st(lambda lp: lp["w2"])                                                    # [L,FFN,H]
    b2 = st(lambda lp: lp["b2"])                                                    # [L,1,H]

    norms = jnp.concatenate([params["emb_ln_g"], params["emb_ln_b"],
                             params["vit_ln_g"], params["vit_ln_b"]], axis=0)       # [4,H]

    # per-row additive base for the ViT input: CLS / patch bias + pos emb, padded to SI_P
    vit_pos = params["vit_pos"][0]                       # [SI, H]
    cls_row = params["cls"].reshape(1, H)
    base_one = jnp.concatenate(
        [cls_row + vit_pos[0:1],
         params["patch_b"] + vit_pos[1:SI],
         jnp.zeros((SI_P - SI, H), jnp.float32)], axis=0)        # [SI_P, H]
    vbase = jnp.tile(base_one, (B, 1))                   # [B*SI_P, H]

    # fold token-type-0 embedding into the positional base for the text embedding
    pos_base = params["pos_emb"] + params["type_emb"][0][None, :]          # [T, H]

    # small head params packed into one [3, H//2] ref: b1 row, w2 row, [b2, 0...]
    hsmall = jnp.concatenate(
        [params["head_b1"],
         params["head_w2"].reshape(1, H // 2),
         jnp.concatenate([params["head_b2"],
                          jnp.zeros((1, H // 2 - 1), jnp.float32)], axis=1)],
        axis=0)

    return dict(
        word_emb=params["word_emb"], pos_base=pos_base, norms=norms,
        patch_w=params["patch_w"].astype(jnp.bfloat16), vbase=vbase,
        wqkv=wqkv.astype(jnp.bfloat16), bqkv=bqkv,
        wo=wo.astype(jnp.bfloat16), bo=bo, ln=ln,
        w1=w1.astype(jnp.bfloat16), b1=b1, w2=w2.astype(jnp.bfloat16), b2=b2,
        hw1=params["head_w1"].astype(jnp.bfloat16), hsmall=hsmall,
    )


# --------------------------------- forward ------------------------------------
def forward(packed, input_ids, attention_mask, image):
    # ---------- plain-JAX glue: gathers, patch layout, masks (all tiny) ----------
    emb = packed["word_emb"][input_ids] + packed["pos_base"][None, :, :]
    emb_flat = emb.reshape(B * T, H)

    # patch extraction: NCHW -> row-major (c, ph, pw) patch vectors, equivalent
    # to Conv2d(3, H, kernel=P, stride=P). Zero rows for CLS and for padding so
    # the in-kernel patch matmul directly produces the padded ViT input.
    x = image.astype(jnp.float32)
    x = x.reshape(B, 3, IMG // PCH, PCH, IMG // PCH, PCH)
    x = x.transpose(0, 2, 4, 1, 3, 5)                    # [B, gh, gw, c, ph, pw]
    patches = x.reshape(B, NP, PD)
    patches_padded = jnp.concatenate(
        [jnp.zeros((B, 1, PD), jnp.float32), patches,
         jnp.zeros((B, SI_P - SI, PD), jnp.float32)], axis=1).reshape(B * SI_P, PD)

    # block-diagonal (per batch element) + key-padding additive masks, packed
    # into one zero-padded [3, 32, 32] array (padded rows are masked as keys).
    am = attention_mask.astype(jnp.int32)
    tbias = _block_bias(am.reshape(-1),
                        jnp.repeat(jnp.arange(B, dtype=jnp.int32), T))
    img_valid = (jnp.arange(SI_P) < SI).astype(jnp.int32)
    vbias = _block_bias(jnp.tile(img_valid, (B,)),
                        jnp.repeat(jnp.arange(B, dtype=jnp.int32), SI_P))
    fvalid = jnp.concatenate(
        [am, jnp.broadcast_to(img_valid[None, :], (B, SI_P))], axis=1).reshape(-1)
    fbias = _block_bias(fvalid, jnp.repeat(jnp.arange(B, dtype=jnp.int32), SF_P))

    bias_all = jnp.zeros((3, S_MAX, S_MAX), jnp.float32)
    bias_all = bias_all.at[0, :B * T, :B * T].set(tbias)
    bias_all = bias_all.at[1, :B * SI_P, :B * SI_P].set(vbias)
    bias_all = bias_all.at[2].set(fbias)

    args = (emb_flat, patches_padded, bias_all, packed["norms"],
            packed["patch_w"], packed["vbase"],
            packed["wqkv"], packed["bqkv"], packed["wo"], packed["bo"], packed["ln"],
            packed["w1"], packed["b1"], packed["w2"], packed["b2"],
            packed["hw1"], packed["hsmall"])

    bytes_accessed = sum(int(a.size) * a.dtype.itemsize for a in args) + B * 4

    # ---------- single fused Pallas kernel for the whole forward ----------
    out = pl.pallas_call(
        bert_vit_fused_kernel,
        out_shape=jax.ShapeDtypeStruct((B, 1), jnp.float32),
        grid=(1,),
        in_specs=[_full_spec(a.shape) for a in args],
        out_specs=_full_spec((B, 1)),
        compiler_params=pltpu.CompilerParams(dimension_semantics=("arbitrary",)),
        cost_estimate=_make_cost_estimate(bytes_accessed),
    )(*args)

    return out[:, 0]                                     # [B] sigmoid probabilities


# ---------------------------------- main ---------------------------------------
if __name__ == "__main__":
    key = jax.random.PRNGKey(0)
    k_par, k_ids, k_img = jax.random.split(key, 3)

    params = init_params(k_par)
    packed = pack_params(params)          # one-time weight packing (outside jit)

    input_ids = jax.random.randint(k_ids, (B, T), 0, VOCAB, dtype=jnp.int32)
    # make the mask non-trivial: second sample has 2 padded positions
    valid_lens = jnp.array([[T], [T - 2]], dtype=jnp.int32)
    attention_mask = (jnp.arange(T)[None, :] < valid_lens).astype(jnp.int32)
    image = jax.random.normal(k_img, (B, 3, IMG, IMG), jnp.float32)

    fwd = jax.jit(forward)
    out = fwd(packed, input_ids, attention_mask, image)
    jax.block_until_ready(out)

    assert out.shape == (B,)
    assert bool(jnp.all(jnp.isfinite(out)))
    assert bool(jnp.all((out >= 0.0) & (out <= 1.0)))
    print("KERNEL_OK")
</pallas_src>

<mosaic_0001>
module attributes {stable_mosaic.version = 11 : i64} {
  func.func @bert_vit_fused_kernel(%arg0: i32, %arg1: memref<16x32xf32, #tpu.memory_space<vmem>>, %arg2: memref<16x192xf32, #tpu.memory_space<vmem>>, %arg3: memref<3x32x32xf32, #tpu.memory_space<vmem>>, %arg4: memref<4x32xf32, #tpu.memory_space<vmem>>, %arg5: memref<192x32xbf16, #tpu.memory_space<vmem>>, %arg6: memref<16x32xf32, #tpu.memory_space<vmem>>, %arg7: memref<6x32x96xbf16, #tpu.memory_space<vmem>>, %arg8: memref<6x1x96xf32, #tpu.memory_space<vmem>>, %arg9: memref<6x32x32xbf16, #tpu.memory_space<vmem>>, %arg10: memref<6x1x32xf32, #tpu.memory_space<vmem>>, %arg11: memref<6x4x32xf32, #tpu.memory_space<vmem>>, %arg12: memref<6x32x64xbf16, #tpu.memory_space<vmem>>, %arg13: memref<6x1x64xf32, #tpu.memory_space<vmem>>, %arg14: memref<6x64x32xbf16, #tpu.memory_space<vmem>>, %arg15: memref<6x1x32xf32, #tpu.memory_space<vmem>>, %arg16: memref<32x16xbf16, #tpu.memory_space<vmem>>, %arg17: memref<3x16xf32, #tpu.memory_space<vmem>>, %arg18: memref<2x1xf32, #tpu.memory_space<vmem>>) attributes {dimension_semantics = [#tpu.dimension_semantics<arbitrary>], iteration_bounds = array<i64: 1>, scalar_prefetch = 0 : i64, scratch_operands = 0 : i64, tpu.core_type = #tpu.core_type<tc>, window_params = [{pipeline_mode = #tpu.pipeline_mode<synchronous>, transform_indices = @transform_0, window_bounds = array<i64: 16, 32>}, {pipeline_mode = #tpu.pipeline_mode<synchronous>, transform_indices = @transform_1, window_bounds = array<i64: 16, 192>}, {pipeline_mode = #tpu.pipeline_mode<synchronous>, transform_indices = @transform_2, window_bounds = array<i64: 3, 32, 32>}, {pipeline_mode = #tpu.pipeline_mode<synchronous>, transform_indices = @transform_3, window_bounds = array<i64: 4, 32>}, {pipeline_mode = #tpu.pipeline_mode<synchronous>, transform_indices = @transform_4, window_bounds = array<i64: 192, 32>}, {pipeline_mode = #tpu.pipeline_mode<synchronous>, transform_indices = @transform_5, window_bounds = array<i64: 16, 32>}, {pipeline_mode = #tpu.pipeline_mode<synchronous>, transform_indices = @transform_6, window_bounds = array<i64: 6, 32, 96>}, {pipeline_mode = #tpu.pipeline_mode<synchronous>, transform_indices = @transform_7, window_bounds = array<i64: 6, 1, 96>}, {pipeline_mode = #tpu.pipeline_mode<synchronous>, transform_indices = @transform_8, window_bounds = array<i64: 6, 32, 32>}, {pipeline_mode = #tpu.pipeline_mode<synchronous>, transform_indices = @transform_9, window_bounds = array<i64: 6, 1, 32>}, {pipeline_mode = #tpu.pipeline_mode<synchronous>, transform_indices = @transform_10, window_bounds = array<i64: 6, 4, 32>}, {pipeline_mode = #tpu.pipeline_mode<synchronous>, transform_indices = @transform_11, window_bounds = array<i64: 6, 32, 64>}, {pipeline_mode = #tpu.pipeline_mode<synchronous>, transform_indices = @transform_12, window_bounds = array<i64: 6, 1, 64>}, {pipeline_mode = #tpu.pipeline_mode<synchronous>, transform_indices = @transform_13, window_bounds = array<i64: 6, 64, 32>}, {pipeline_mode = #tpu.pipeline_mode<synchronous>, transform_indices = @transform_14, window_bounds = array<i64: 6, 1, 32>}, {pipeline_mode = #tpu.pipeline_mode<synchronous>, transform_indices = @transform_15, window_bounds = array<i64: 32, 16>}, {pipeline_mode = #tpu.pipeline_mode<synchronous>, transform_indices = @transform_16, window_bounds = array<i64: 3, 16>}, {pipeline_mode = #tpu.pipeline_mode<synchronous>, transform_indices = @transform_17, window_bounds = array<i64: 2, 1>}]} {
    %c0 = arith.constant 0 : index
    %c0_0 = arith.constant 0 : index
    %c0_1 = arith.constant 0 : index
    %0 = vector.load %arg3[%c0, %c0_0, %c0_1] : memref<3x32x32xf32, #tpu.memory_space<vmem>>, vector<3x32x32xf32>
    %1 = vector.extract_strided_slice %0 {offsets = [0, 0, 0], sizes = [1, 16, 16], strides = [1, 1, 1]} : vector<3x32x32xf32> to vector<1x16x16xf32>
    %2 = vector.shape_cast %1 : vector<1x16x16xf32> to vector<16x16xf32>
    %3 = vector.extract_strided_slice %0 {offsets = [1, 0, 0], sizes = [1, 16, 16], strides = [1, 1, 1]} : vector<3x32x32xf32> to vector<1x16x16xf32>
    %4 = vector.shape_cast %3 : vector<1x16x16xf32> to vector<16x16xf32>
    %5 = vector.extract_strided_slice %0 {offsets = [2, 0, 0], sizes = [1, 32, 32], strides = [1, 1, 1]} : vector<3x32x32xf32> to vector<1x32x32xf32>
    %6 = vector.shape_cast %5 : vector<1x32x32xf32> to vector<32x32xf32>
    %c0_2 = arith.constant 0 : index
    %c0_3 = arith.constant 0 : index
    %7 = vector.load %arg4[%c0_2, %c0_3] : memref<4x32xf32, #tpu.memory_space<vmem>>, vector<4x32xf32>
    %c0_4 = arith.constant 0 : index
    %c0_5 = arith.constant 0 : index
    %8 = vector.load %arg1[%c0_4, %c0_5] : memref<16x32xf32, #tpu.memory_space<vmem>>, vector<16x32xf32>
    %9 = vector.extract_strided_slice %7 {offsets = [0, 0], sizes = [1, 32], strides = [1, 1]} : vector<4x32xf32> to vector<1x32xf32>
    %10 = vector.extract_strided_slice %7 {offsets = [1, 0], sizes = [1, 32], strides = [1, 1]} : vector<4x32xf32> to vector<1x32xf32>
    %cst = arith.constant dense<0.000000e+00> : vector<16xf32>
    %11 = vector.multi_reduction <add>, %8, %cst [1] : vector<16x32xf32> to vector<16xf32>
    %12 = vector.shape_cast %11 : vector<16xf32> to vector<16x1xf32>
    %cst_6 = arith.constant 3.200000e+01 : f32
    %13 = vector.broadcast %cst_6 : f32 to vector<16x1xf32>
    %14 = arith.divf %12, %13 : vector<16x1xf32>
    %15 = vector.broadcast %14 : vector<16x1xf32> to vector<16x32xf32>
    %16 = arith.subf %8, %15 : vector<16x32xf32>
    %17 = arith.mulf %16, %16 : vector<16x32xf32>
    %cst_7 = arith.constant dense<0.000000e+00> : vector<16xf32>
    %18 = vector.multi_reduction <add>, %17, %cst_7 [1] : vector<16x32xf32> to vector<16xf32>
    %19 = vector.shape_cast %18 : vector<16xf32> to vector<16x1xf32>
    %cst_8 = arith.constant 3.200000e+01 : f32
    %20 = vector.broadcast %cst_8 : f32 to vector<16x1xf32>
    %21 = arith.divf %19, %20 : vector<16x1xf32>
    %22 = vector.broadcast %14 : vector<16x1xf32> to vector<16x32xf32>
    %23 = arith.subf %8, %22 : vector<16x32xf32>
    %cst_9 = arith.constant 9.99999996E-13 : f32
    %24 = vector.broadcast %cst_9 : f32 to vector<16x1xf32>
    %25 = arith.addf %21, %24 : vector<16x1xf32>
    %26 = math.rsqrt %25 : vector<16x1xf32>
    %27 = vector.broadcast %26 : vector<16x1xf32> to vector<16x32xf32>
    %28 = arith.mulf %23, %27 : vector<16x32xf32>
    %29 = vector.broadcast %9 : vector<1x32xf32> to vector<16x32xf32>
    %30 = arith.mulf %28, %29 : vector<16x32xf32>
    %31 = vector.broadcast %10 : vector<1x32xf32> to vector<16x32xf32>
    %32 = arith.addf %30, %31 : vector<16x32xf32>
    %c0_10 = arith.constant 0 : index
    %c0_11 = arith.constant 0 : index
    %c0_12 = arith.constant 0 : index
    %33 = vector.load %arg11[%c0_10, %c0_11, %c0_12] : memref<6x4x32xf32, #tpu.memory_space<vmem>>, vector<1x4x32xf32>
    %34 = vector.shape_cast %33 : vector<1x4x32xf32> to vector<4x32xf32>
    %35 = arith.truncf %32 : vector<16x32xf32> to vector<16x32xbf16>
    %c0_13 = arith.constant 0 : index
    %c0_14 = arith.constant 0 : index
    %c0_15 = arith.constant 0 : index
    %36 = vector.load %arg7[%c0_13, %c0_14, %c0_15] : memref<6x32x96xbf16, #tpu.memory_space<vmem>>, vector<1x32x96xbf16>
    %37 = vector.shape_cast %36 : vector<1x32x96xbf16> to vector<32x96xbf16>
    %cst_16 = arith.constant dense<0.000000e+00> : vector<16x96xf32>
    %38 = tpu.matmul %35, %37, %cst_16 {dimension_numbers = #tpu.dot_dimension_numbers<[1], [0], [0], [1], [0, 0, 1, 1], [], []>} : vector<16x32xbf16>, vector<32x96xbf16>, vector<16x96xf32> -> vector<16x96xf32>
    %c0_17 = arith.constant 0 : index
    %c0_18 = arith.constant 0 : index
    %c0_19 = arith.constant 0 : index
    %39 = vector.load %arg8[%c0_17, %c0_18, %c0_19] : memref<6x1x96xf32, #tpu.memory_space<vmem>>, vector<1x1x96xf32>
    %40 = vector.shape_cast %39 : vector<1x1x96xf32> to vector<1x96xf32>
    %41 = vector.broadcast %40 : vector<1x96xf32> to vector<16x96xf32>
    %42 = arith.addf %38, %41 : vector<16x96xf32>
    %43 = vector.extract_strided_slice %42 {offsets = [0, 0], sizes = [16, 8], strides = [1, 1]} : vector<16x96xf32> to vector<16x8xf32>
    %44 = arith.truncf %43 : vector<16x8xf32> to vector<16x8xbf16>
    %45 = vector.extract_strided_slice %42 {offsets = [0, 32], sizes = [16, 8], strides = [1, 1]} : vector<16x96xf32> to vector<16x8xf32>
    %46 = arith.truncf %45 : vector<16x8xf32> to vector<16x8xbf16>
    %47 = vector.extract_strided_slice %42 {offsets = [0, 64], sizes = [16, 8], strides = [1, 1]} : vector<16x96xf32> to vector<16x8xf32>
    %48 = arith.truncf %47 : vector<16x8xf32> to vector<16x8xbf16>
    %cst_20 = arith.constant dense<0.000000e+00> : vector<16x16xf32>
    %49 = tpu.matmul %44, %46, %cst_20 {dimension_numbers = #tpu.dot_dimension_numbers<[1], [1], [0], [0], [0, 0, 1, 0], [], []>} : vector<16x8xbf16>, vector<16x8xbf16>, vector<16x16xf32> -> vector<16x16xf32>
    %cst_21 = arith.constant 0.353553385 : f32
    %50 = vector.broadcast %cst_21 : f32 to vector<16x16xf32>
    %51 = arith.mulf %49, %50 : vector<16x16xf32>
    %52 = arith.addf %51, %2 : vector<16x16xf32>
    %cst_22 = arith.constant dense<0xFF800000> : vector<16xf32>
    %53 = vector.multi_reduction <maximumf>, %52, %cst_22 [1] : vector<16x16xf32> to vector<16xf32>
    %54 = vector.shape_cast %53 : vector<16xf32> to vector<16x1xf32>
    %55 = vector.broadcast %54 : vector<16x1xf32> to vector<16x16xf32>
    %56 = arith.subf %52, %55 : vector<16x16xf32>
    %57 = math.exp %56 : vector<16x16xf32>
    %cst_23 = arith.constant dense<0.000000e+00> : vector<16xf32>
    %58 = vector.multi_reduction <add>, %57, %cst_23 [1] : vector<16x16xf32> to vector<16xf32>
    %59 = vector.shape_cast %58 : vector<16xf32> to vector<16x1xf32>
    %60 = tpu.reciprocal %59 {approx = true} : vector<16x1xf32> -> vector<16x1xf32>
    %61 = vector.broadcast %60 : vector<16x1xf32> to vector<16x16xf32>
    %62 = arith.mulf %57, %61 : vector<16x16xf32>
    %63 = arith.truncf %62 : vector<16x16xf32> to vector<16x16xbf16>
    %cst_24 = arith.constant dense<0.000000e+00> : vector<16x8xf32>
    %64 = tpu.matmul %63, %48, %cst_24 {dimension_numbers = #tpu.dot_dimension_numbers<[1], [0], [0], [1], [0, 0, 1, 1], [], []>} : vector<16x16xbf16>, vector<16x8xbf16>, vector<16x8xf32> -> vector<16x8xf32>
    %65 = vector.extract_strided_slice %42 {offsets = [0, 8], sizes = [16, 8], strides = [1, 1]} : vector<16x96xf32> to vector<16x8xf32>
    %66 = arith.truncf %65 : vector<16x8xf32> to vector<16x8xbf16>
    %67 = vector.extract_strided_slice %42 {offsets = [0, 40], sizes = [16, 8], strides = [1, 1]} : vector<16x96xf32> to vector<16x8xf32>
    %68 = arith.truncf %67 : vector<16x8xf32> to vector<16x8xbf16>
    %69 = vector.extract_strided_slice %42 {offsets = [0, 72], sizes = [16, 8], strides = [1, 1]} : vector<16x96xf32> to vector<16x8xf32>
    %70 = arith.truncf %69 : vector<16x8xf32> to vector<16x8xbf16>
    %cst_25 = arith.constant dense<0.000000e+00> : vector<16x16xf32>
    %71 = tpu.matmul %66, %68, %cst_25 {dimension_numbers = #tpu.dot_dimension_numbers<[1], [1], [0], [0], [0, 0, 1, 0], [], []>} : vector<16x8xbf16>, vector<16x8xbf16>, vector<16x16xf32> -> vector<16x16xf32>
    %cst_26 = arith.constant 0.353553385 : f32
    %72 = vector.broadcast %cst_26 : f32 to vector<16x16xf32>
    %73 = arith.mulf %71, %72 : vector<16x16xf32>
    %74 = arith.addf %73, %2 : vector<16x16xf32>
    %cst_27 = arith.constant dense<0xFF800000> : vector<16xf32>
    %75 = vector.multi_reduction <maximumf>, %74, %cst_27 [1] : vector<16x16xf32> to vector<16xf32>
    %76 = vector.shape_cast %75 : vector<16xf32> to vector<16x1xf32>
    %77 = vector.broadcast %76 : vector<16x1xf32> to vector<16x16xf32>
    %78 = arith.subf %74, %77 : vector<16x16xf32>
    %79 = math.exp %78 : vector<16x16xf32>
    %cst_28 = arith.constant dense<0.000000e+00> : vector<16xf32>
    %80 = vector.multi_reduction <add>, %79, %cst_28 [1] : vector<16x16xf32> to vector<16xf32>
    %81 = vector.shape_cast %80 : vector<16xf32> to vector<16x1xf32>
    %82 = tpu.reciprocal %81 {approx = true} : vector<16x1xf32> -> vector<16x1xf32>
    %83 = vector.broadcast %82 : vector<16x1xf32> to vector<16x16xf32>
    %84 = arith.mulf %79, %83 : vector<16x16xf32>
    %85 = arith.truncf %84 : vector<16x16xf32> to vector<16x16xbf16>
    %cst_29 = arith.constant dense<0.000000e+00> : vector<16x8xf32>
    %86 = tpu.matmul %85, %70, %cst_29 {dimension_numbers = #tpu.dot_dimension_numbers<[1], [0], [0], [1], [0, 0, 1, 1], [], []>} : vector<16x16xbf16>, vector<16x8xbf16>, vector<16x8xf32> -> vector<16x8xf32>
    %87 = vector.extract_strided_slice %42 {offsets = [0, 16], sizes = [16, 8], strides = [1, 1]} : vector<16x96xf32> to vector<16x8xf32>
    %88 = arith.truncf %87 : vector<16x8xf32> to vector<16x8xbf16>
    %89 = vector.extract_strided_slice %42 {offsets = [0, 48], sizes = [16, 8], strides = [1, 1]} : vector<16x96xf32> to vector<16x8xf32>
    %90 = arith.truncf %89 : vector<16x8xf32> to vector<16x8xbf16>
    %91 = vector.extract_strided_slice %42 {offsets = [0, 80], sizes = [16, 8], strides = [1, 1]} : vector<16x96xf32> to vector<16x8xf32>
    %92 = arith.truncf %91 : vector<16x8xf32> to vector<16x8xbf16>
    %cst_30 = arith.constant dense<0.000000e+00> : vector<16x16xf32>
    %93 = tpu.matmul %88, %90, %cst_30 {dimension_numbers = #tpu.dot_dimension_numbers<[1], [1], [0], [0], [0, 0, 1, 0], [], []>} : vector<16x8xbf16>, vector<16x8xbf16>, vector<16x16xf32> -> vector<16x16xf32>
    %cst_31 = arith.constant 0.353553385 : f32
    %94 = vector.broadcast %cst_31 : f32 to vector<16x16xf32>
    %95 = arith.mulf %93, %94 : vector<16x16xf32>
    %96 = arith.addf %95, %2 : vector<16x16xf32>
    %cst_32 = arith.constant dense<0xFF800000> : vector<16xf32>
    %97 = vector.multi_reduction <maximumf>, %96, %cst_32 [1] : vector<16x16xf32> to vector<16xf32>
    %98 = vector.shape_cast %97 : vector<16xf32> to vector<16x1xf32>
    %99 = vector.broadcast %98 : vector<16x1xf32> to vector<16x16xf32>
    %100 = arith.subf %96, %99 : vector<16x16xf32>
    %101 = math.exp %100 : vector<16x16xf32>
    %cst_33 = arith.constant dense<0.000000e+00> : vector<16xf32>
    %102 = vector.multi_reduction <add>, %101, %cst_33 [1] : vector<16x16xf32> to vector<16xf32>
    %103 = vector.shape_cast %102 : vector<16xf32> to vector<16x1xf32>
    %104 = tpu.reciprocal %103 {approx = true} : vector<16x1xf32> -> vector<16x1xf32>
    %105 = vector.broadcast %104 : vector<16x1xf32> to vector<16x16xf32>
    %106 = arith.mulf %101, %105 : vector<16x16xf32>
    %107 = arith.truncf %106 : vector<16x16xf32> to vector<16x16xbf16>
    %cst_34 = arith.constant dense<0.000000e+00> : vector<16x8xf32>
    %108 = tpu.matmul %107, %92, %cst_34 {dimension_numbers = #tpu.dot_dimension_numbers<[1], [0], [0], [1], [0, 0, 1, 1], [], []>} : vector<16x16xbf16>, vector<16x8xbf16>, vector<16x8xf32> -> vector<16x8xf32>
    %109 = vector.extract_strided_slice %42 {offsets = [0, 24], sizes = [16, 8], strides = [1, 1]} : vector<16x96xf32> to vector<16x8xf32>
    %110 = arith.truncf %109 : vector<16x8xf32> to vector<16x8xbf16>
    %111 = vector.extract_strided_slice %42 {offsets = [0, 56], sizes = [16, 8], strides = [1, 1]} : vector<16x96xf32> to vector<16x8xf32>
    %112 = arith.truncf %111 : vector<16x8xf32> to vector<16x8xbf16>
    %113 = vector.extract_strided_slice %42 {offsets = [0, 88], sizes = [16, 8], strides = [1, 1]} : vector<16x96xf32> to vector<16x8xf32>
    %114 = arith.truncf %113 : vector<16x8xf32> to vector<16x8xbf16>
    %cst_35 = arith.constant dense<0.000000e+00> : vector<16x16xf32>
    %115 = tpu.matmul %110, %112, %cst_35 {dimension_numbers = #tpu.dot_dimension_numbers<[1], [1], [0], [0], [0, 0, 1, 0], [], []>} : vector<16x8xbf16>, vector<16x8xbf16>, vector<16x16xf32> -> vector<16x16xf32>
    %cst_36 = arith.constant 0.353553385 : f32
    %116 = vector.broadcast %cst_36 : f32 to vector<16x16xf32>
    %117 = arith.mulf %115, %116 : vector<16x16xf32>
    %118 = arith.addf %117, %2 : vector<16x16xf32>
    %cst_37 = arith.constant dense<0xFF800000> : vector<16xf32>
    %119 = vector.multi_reduction <maximumf>, %118, %cst_37 [1] : vector<16x16xf32> to vector<16xf32>
    %120 = vector.shape_cast %119 : vector<16xf32> to vector<16x1xf32>
    %121 = vector.broadcast %120 : vector<16x1xf32> to vector<16x16xf32>
    %122 = arith.subf %118, %121 : vector<16x16xf32>
    %123 = math.exp %122 : vector<16x16xf32>
    %cst_38 = arith.constant dense<0.000000e+00> : vector<16xf32>
    %124 = vector.multi_reduction <add>, %123, %cst_38 [1] : vector<16x16xf32> to vector<16xf32>
    %125 = vector.shape_cast %124 : vector<16xf32> to vector<16x1xf32>
    %126 = tpu.reciprocal %125 {approx = true} : vector<16x1xf32> -> vector<16x1xf32>
    %127 = vector.broadcast %126 : vector<16x1xf32> to vector<16x16xf32>
    %128 = arith.mulf %123, %127 : vector<16x16xf32>
    %129 = arith.truncf %128 : vector<16x16xf32> to vector<16x16xbf16>
    %cst_39 = arith.constant dense<0.000000e+00> : vector<16x8xf32>
    %130 = tpu.matmul %129, %114, %cst_39 {dimension_numbers = #tpu.dot_dimension_numbers<[1], [0], [0], [1], [0, 0, 1, 1], [], []>} : vector<16x16xbf16>, vector<16x8xbf16>, vector<16x8xf32> -> vector<16x8xf32>
    %131 = tpu.concatenate %64, %86, %108, %130 in 1 : vector<16x8xf32>, vector<16x8xf32>, vector<16x8xf32>, vector<16x8xf32> -> vector<16x32xf32>
    %132 = arith.truncf %131 : vector<16x32xf32> to vector<16x32xbf16>
    %c0_40 = arith.constant 0 : index
    %c0_41 = arith.constant 0 : index
    %c0_42 = arith.constant 0 : index
    %133 = vector.load %arg9[%c0_40, %c0_41, %c0_42] : memref<6x32x32xbf16, #tpu.memory_space<vmem>>, vector<1x32x32xbf16>
    %134 = vector.shape_cast %133 : vector<1x32x32xbf16> to vector<32x32xbf16>
    %cst_43 = arith.constant dense<0.000000e+00> : vector<16x32xf32>
    %135 = tpu.matmul %132, %134, %cst_43 {dimension_numbers = #tpu.dot_dimension_numbers<[1], [0], [0], [1], [0, 0, 1, 1], [], []>} : vector<16x32xbf16>, vector<32x32xbf16>, vector<16x32xf32> -> vector<16x32xf32>
    %c0_44 = arith.constant 0 : index
    %c0_45 = arith.constant 0 : index
    %c0_46 = arith.constant 0 : index
    %136 = vector.load %arg10[%c0_44, %c0_45, %c0_46] : memref<6x1x32xf32, #tpu.memory_space<vmem>>, vector<1x1x32xf32>
    %137 = vector.shape_cast %136 : vector<1x1x32xf32> to vector<1x32xf32>
    %138 = vector.broadcast %137 : vector<1x32xf32> to vector<16x32xf32>
    %139 = arith.addf %135, %138 : vector<16x32xf32>
    %140 = arith.addf %32, %139 : vector<16x32xf32>
    %141 = vector.extract_strided_slice %34 {offsets = [0, 0], sizes = [1, 32], strides = [1, 1]} : vector<4x32xf32> to vector<1x32xf32>
    %142 = vector.extract_strided_slice %34 {offsets = [1, 0], sizes = [1, 32], strides = [1, 1]} : vector<4x32xf32> to vector<1x32xf32>
    %cst_47 = arith.constant dense<0.000000e+00> : vector<16xf32>
    %143 = vector.multi_reduction <add>, %140, %cst_47 [1] : vector<16x32xf32> to vector<16xf32>
    %144 = vector.shape_cast %143 : vector<16xf32> to vector<16x1xf32>
    %cst_48 = arith.constant 3.200000e+01 : f32
    %145 = vector.broadcast %cst_48 : f32 to vector<16x1xf32>
    %146 = arith.divf %144, %145 : vector<16x1xf32>
    %147 = vector.broadcast %146 : vector<16x1xf32> to vector<16x32xf32>
    %148 = arith.subf %140, %147 : vector<16x32xf32>
    %149 = arith.mulf %148, %148 : vector<16x32xf32>
    %cst_49 = arith.constant dense<0.000000e+00> : vector<16xf32>
    %150 = vector.multi_reduction <add>, %149, %cst_49 [1] : vector<16x32xf32> to vector<16xf32>
    %151 = vector.shape_cast %150 : vector<16xf32> to vector<16x1xf32>
    %cst_50 = arith.constant 3.200000e+01 : f32
    %152 = vector.broadcast %cst_50 : f32 to vector<16x1xf32>
    %153 = arith.divf %151, %152 : vector<16x1xf32>
    %154 = vector.broadcast %146 : vector<16x1xf32> to vector<16x32xf32>
    %155 = arith.subf %140, %154 : vector<16x32xf32>
    %cst_51 = arith.constant 9.99999996E-13 : f32
    %156 = vector.broadcast %cst_51 : f32 to vector<16x1xf32>
    %157 = arith.addf %153, %156 : vector<16x1xf32>
    %158 = math.rsqrt %157 : vector<16x1xf32>
    %159 = vector.broadcast %158 : vector<16x1xf32> to vector<16x32xf32>
    %160 = arith.mulf %155, %159 : vector<16x32xf32>
    %161 = vector.broadcast %141 : vector<1x32xf32> to vector<16x32xf32>
    %162 = arith.mulf %160, %161 : vector<16x32xf32>
    %163 = vector.broadcast %142 : vector<1x32xf32> to vector<16x32xf32>
    %164 = arith.addf %162, %163 : vector<16x32xf32>
    %165 = arith.truncf %164 : vector<16x32xf32> to vector<16x32xbf16>
    %c0_52 = arith.constant 0 : index
    %c0_53 = arith.constant 0 : index
    %c0_54 = arith.constant 0 : index
    %166 = vector.load %arg12[%c0_52, %c0_53, %c0_54] : memref<6x32x64xbf16, #tpu.memory_space<vmem>>, vector<1x32x64xbf16>
    %167 = vector.shape_cast %166 : vector<1x32x64xbf16> to vector<32x64xbf16>
    %cst_55 = arith.constant dense<0.000000e+00> : vector<16x64xf32>
    %168 = tpu.matmul %165, %167, %cst_55 {dimension_numbers = #tpu.dot_dimension_numbers<[1], [0], [0], [1], [0, 0, 1, 1], [], []>} : vector<16x32xbf16>, vector<32x64xbf16>, vector<16x64xf32> -> vector<16x64xf32>
    %c0_56 = arith.constant 0 : index
    %c0_57 = arith.constant 0 : index
    %c0_58 = arith.constant 0 : index
    %169 = vector.load %arg13[%c0_56, %c0_57, %c0_58] : memref<6x1x64xf32, #tpu.memory_space<vmem>>, vector<1x1x64xf32>
    %170 = vector.shape_cast %169 : vector<1x1x64xf32> to vector<1x64xf32>
    %171 = vector.broadcast %170 : vector<1x64xf32> to vector<16x64xf32>
    %172 = arith.addf %168, %171 : vector<16x64xf32>
    %cst_59 = arith.constant 5.000000e-01 : f32
    %173 = vector.broadcast %cst_59 : f32 to vector<16x64xf32>
    %174 = arith.mulf %173, %172 : vector<16x64xf32>
    %cst_60 = arith.constant 4.471500e-02 : f32
    %175 = vector.broadcast %cst_60 : f32 to vector<16x64xf32>
    %176 = arith.mulf %175, %172 : vector<16x64xf32>
    %177 = arith.mulf %176, %172 : vector<16x64xf32>
    %178 = arith.mulf %177, %172 : vector<16x64xf32>
    %179 = arith.addf %172, %178 : vector<16x64xf32>
    %cst_61 = arith.constant 0.797884583 : f32
    %180 = vector.broadcast %cst_61 : f32 to vector<16x64xf32>
    %181 = arith.mulf %180, %179 : vector<16x64xf32>
    %182 = math.tanh %181 : vector<16x64xf32>
    %cst_62 = arith.constant 1.000000e+00 : f32
    %183 = vector.broadcast %cst_62 : f32 to vector<16x64xf32>
    %184 = arith.addf %183, %182 : vector<16x64xf32>
    %185 = arith.mulf %174, %184 : vector<16x64xf32>
    %186 = arith.truncf %185 : vector<16x64xf32> to vector<16x64xbf16>
    %c0_63 = arith.constant 0 : index
    %c0_64 = arith.constant 0 : index
    %c0_65 = arith.constant 0 : index
    %187 = vector.load %arg14[%c0_63, %c0_64, %c0_65] : memref<6x64x32xbf16, #tpu.memory_space<vmem>>, vector<1x64x32xbf16>
    %188 = vector.shape_cast %187 : vector<1x64x32xbf16> to vector<64x32xbf16>
    %cst_66 = arith.constant dense<0.000000e+00> : vector<16x32xf32>
    %189 = tpu.matmul %186, %188, %cst_66 {dimension_numbers = #tpu.dot_dimension_numbers<[1], [0], [0], [1], [0, 0, 1, 1], [], []>} : vector<16x64xbf16>, vector<64x32xbf16>, vector<16x32xf32> -> vector<16x32xf32>
    %c0_67 = arith.constant 0 : index
    %c0_68 = arith.constant 0 : index
    %c0_69 = arith.constant 0 : index
    %190 = vector.load %arg15[%c0_67, %c0_68, %c0_69] : memref<6x1x32xf32, #tpu.memory_space<vmem>>, vector<1x1x32xf32>
    %191 = vector.shape_cast %190 : vector<1x1x32xf32> to vector<1x32xf32>
    %192 = vector.broadcast %191 : vector<1x32xf32> to vector<16x32xf32>
    %193 = arith.addf %189, %192 : vector<16x32xf32>
    %194 = arith.addf %164, %193 : vector<16x32xf32>
    %195 = vector.extract_strided_slice %34 {offsets = [2, 0], sizes = [1, 32], strides = [1, 1]} : vector<4x32xf32> to vector<1x32xf32>
    %196 = vector.extract_strided_slice %34 {offsets = [3, 0], sizes = [1, 32], strides = [1, 1]} : vector<4x32xf32> to vector<1x32xf32>
    %cst_70 = arith.constant dense<0.000000e+00> : vector<16xf32>
    %197 = vector.multi_reduction <add>, %194, %cst_70 [1] : vector<16x32xf32> to vector<16xf32>
    %198 = vector.shape_cast %197 : vector<16xf32> to vector<16x1xf32>
    %cst_71 = arith.constant 3.200000e+01 : f32
    %199 = vector.broadcast %cst_71 : f32 to vector<16x1xf32>
    %200 = arith.divf %198, %199 : vector<16x1xf32>
    %201 = vector.broadcast %200 : vector<16x1xf32> to vector<16x32xf32>
    %202 = arith.subf %194, %201 : vector<16x32xf32>
    %203 = arith.mulf %202, %202 : vector<16x32xf32>
    %cst_72 = arith.constant dense<0.000000e+00> : vector<16xf32>
    %204 = vector.multi_reduction <add>, %203, %cst_72 [1] : vector<16x32xf32> to vector<16xf32>
    %205 = vector.shape_cast %204 : vector<16xf32> to vector<16x1xf32>
    %cst_73 = arith.constant 3.200000e+01 : f32
    %206 = vector.broadcast %cst_73 : f32 to vector<16x1xf32>
    %207 = arith.divf %205, %206 : vector<16x1xf32>
    %208 = vector.broadcast %200 : vector<16x1xf32> to vector<16x32xf32>
    %209 = arith.subf %194, %208 : vector<16x32xf32>
    %cst_74 = arith.constant 9.99999996E-13 : f32
    %210 = vector.broadcast %cst_74 : f32 to vector<16x1xf32>
    %211 = arith.addf %207, %210 : vector<16x1xf32>
    %212 = math.rsqrt %211 : vector<16x1xf32>
    %213 = vector.broadcast %212 : vector<16x1xf32> to vector<16x32xf32>
    %214 = arith.mulf %209, %213 : vector<16x32xf32>
    %215 = vector.broadcast %195 : vector<1x32xf32> to vector<16x32xf32>
    %216 = arith.mulf %214, %215 : vector<16x32xf32>
    %217 = vector.broadcast %196 : vector<1x32xf32> to vector<16x32xf32>
    %218 = arith.addf %216, %217 : vector<16x32xf32>
    %c1 = arith.constant 1 : index
    %c0_75 = arith.constant 0 : index
    %c0_76 = arith.constant 0 : index
    %219 = vector.load %arg11[%c1, %c0_75, %c0_76] : memref<6x4x32xf32, #tpu.memory_space<vmem>>, vector<1x4x32xf32>
    %220 = vector.shape_cast %219 : vector<1x4x32xf32> to vector<4x32xf32>
    %221 = arith.truncf %218 : vector<16x32xf32> to vector<16x32xbf16>
    %c1_77 = arith.constant 1 : index
    %c0_78 = arith.constant 0 : index
    %c0_79 = arith.constant 0 : index
    %222 = vector.load %arg7[%c1_77, %c0_78, %c0_79] : memref<6x32x96xbf16, #tpu.memory_space<vmem>>, vector<1x32x96xbf16>
    %223 = vector.shape_cast %222 : vector<1x32x96xbf16> to vector<32x96xbf16>
    %cst_80 = arith.constant dense<0.000000e+00> : vector<16x96xf32>
    %224 = tpu.matmul %221, %223, %cst_80 {dimension_numbers = #tpu.dot_dimension_numbers<[1], [0], [0], [1], [0, 0, 1, 1], [], []>} : vector<16x32xbf16>, vector<32x96xbf16>, vector<16x96xf32> -> vector<16x96xf32>
    %c1_81 = arith.constant 1 : index
    %c0_82 = arith.constant 0 : index
    %c0_83 = arith.constant 0 : index
    %225 = vector.load %arg8[%c1_81, %c0_82, %c0_83] : memref<6x1x96xf32, #tpu.memory_space<vmem>>, vector<1x1x96xf32>
    %226 = vector.shape_cast %225 : vector<1x1x96xf32> to vector<1x96xf32>
    %227 = vector.broadcast %226 : vector<1x96xf32> to vector<16x96xf32>
    %228 = arith.addf %224, %227 : vector<16x96xf32>
    %229 = vector.extract_strided_slice %228 {offsets = [0, 0], sizes = [16, 8], strides = [1, 1]} : vector<16x96xf32> to vector<16x8xf32>
    %230 = arith.truncf %229 : vector<16x8xf32> to vector<16x8xbf16>
    %231 = vector.extract_strided_slice %228 {offsets = [0, 32], sizes = [16, 8], strides = [1, 1]} : vector<16x96xf32> to vector<16x8xf32>
    %232 = arith.truncf %231 : vector<16x8xf32> to vector<16x8xbf16>
    %233 = vector.extract_strided_slice %228 {offsets = [0, 64], sizes = [16, 8], strides = [1, 1]} : vector<16x96xf32> to vector<16x8xf32>
    %234 = arith.truncf %233 : vector<16x8xf32> to vector<16x8xbf16>
    %cst_84 = arith.constant dense<0.000000e+00> : vector<16x16xf32>
    %235 = tpu.matmul %230, %232, %cst_84 {dimension_numbers = #tpu.dot_dimension_numbers<[1], [1], [0], [0], [0, 0, 1, 0], [], []>} : vector<16x8xbf16>, vector<16x8xbf16>, vector<16x16xf32> -> vector<16x16xf32>
    %cst_85 = arith.constant 0.353553385 : f32
    %236 = vector.broadcast %cst_85 : f32 to vector<16x16xf32>
    %237 = arith.mulf %235, %236 : vector<16x16xf32>
    %238 = arith.addf %237, %2 : vector<16x16xf32>
    %cst_86 = arith.constant dense<0xFF800000> : vector<16xf32>
    %239 = vector.multi_reduction <maximumf>, %238, %cst_86 [1] : vector<16x16xf32> to vector<16xf32>
    %240 = vector.shape_cast %239 : vector<16xf32> to vector<16x1xf32>
    %241 = vector.broadcast %240 : vector<16x1xf32> to vector<16x16xf32>
    %242 = arith.subf %238, %241 : vector<16x16xf32>
    %243 = math.exp %242 : vector<16x16xf32>
    %cst_87 = arith.constant dense<0.000000e+00> : vector<16xf32>
    %244 = vector.multi_reduction <add>, %243, %cst_87 [1] : vector<16x16xf32> to vector<16xf32>
    %245 = vector.shape_cast %244 : vector<16xf32> to vector<16x1xf32>
    %246 = tpu.reciprocal %245 {approx = true} : vector<16x1xf32> -> vector<16x1xf32>
    %247 = vector.broadcast %246 : vector<16x1xf32> to vector<16x16xf32>
    %248 = arith.mulf %243, %247 : vector<16x16xf32>
    %249 = arith.truncf %248 : vector<16x16xf32> to vector<16x16xbf16>
    %cst_88 = arith.constant dense<0.000000e+00> : vector<16x8xf32>
    %250 = tpu.matmul %249, %234, %cst_88 {dimension_numbers = #tpu.dot_dimension_numbers<[1], [0], [0], [1], [0, 0, 1, 1], [], []>} : vector<16x16xbf16>, vector<16x8xbf16>, vector<16x8xf32> -> vector<16x8xf32>
    %251 = vector.extract_strided_slice %228 {offsets = [0, 8], sizes = [16, 8], strides = [1, 1]} : vector<16x96xf32> to vector<16x8xf32>
    %252 = arith.truncf %251 : vector<16x8xf32> to vector<16x8xbf16>
    %253 = vector.extract_strided_slice %228 {offsets = [0, 40], sizes = [16, 8], strides = [1, 1]} : vector<16x96xf32> to vector<16x8xf32>
    %254 = arith.truncf %253 : vector<16x8xf32> to vector<16x8xbf16>
    %255 = vector.extract_strided_slice %228 {offsets = [0, 72], sizes = [16, 8], strides = [1, 1]} : vector<16x96xf32> to vector<16x8xf32>
    %256 = arith.truncf %255 : vector<16x8xf32> to vector<16x8xbf16>
    %cst_89 = arith.constant dense<0.000000e+00> : vector<16x16xf32>
    %257 = tpu.matmul %252, %254, %cst_89 {dimension_numbers = #tpu.dot_dimension_numbers<[1], [1], [0], [0], [0, 0, 1, 0], [], []>} : vector<16x8xbf16>, vector<16x8xbf16>, vector<16x16xf32> -> vector<16x16xf32>
    %cst_90 = arith.constant 0.353553385 : f32
    %258 = vector.broadcast %cst_90 : f32 to vector<16x16xf32>
    %259 = arith.mulf %257, %258 : vector<16x16xf32>
    %260 = arith.addf %259, %2 : vector<16x16xf32>
    %cst_91 = arith.constant dense<0xFF800000> : vector<16xf32>
    %261 = vector.multi_reduction <maximumf>, %260, %cst_91 [1] : vector<16x16xf32> to vector<16xf32>
    %262 = vector.shape_cast %261 : vector<16xf32> to vector<16x1xf32>
    %263 = vector.broadcast %262 : vector<16x1xf32> to vector<16x16xf32>
    %264 = arith.subf %260, %263 : vector<16x16xf32>
    %265 = math.exp %264 : vector<16x16xf32>
    %cst_92 = arith.constant dense<0.000000e+00> : vector<16xf32>
    %266 = vector.multi_reduction <add>, %265, %cst_92 [1] : vector<16x16xf32> to vector<16xf32>
    %267 = vector.shape_cast %266 : vector<16xf32> to vector<16x1xf32>
    %268 = tpu.reciprocal %267 {approx = true} : vector<16x1xf32> -> vector<16x1xf32>
    %269 = vector.broadcast %268 : vector<16x1xf32> to vector<16x16xf32>
    %270 = arith.mulf %265, %269 : vector<16x16xf32>
    %271 = arith.truncf %270 : vector<16x16xf32> to vector<16x16xbf16>
    %cst_93 = arith.constant dense<0.000000e+00> : vector<16x8xf32>
    %272 = tpu.matmul %271, %256, %cst_93 {dimension_numbers = #tpu.dot_dimension_numbers<[1], [0], [0], [1], [0, 0, 1, 1], [], []>} : vector<16x16xbf16>, vector<16x8xbf16>, vector<16x8xf32> -> vector<16x8xf32>
    %273 = vector.extract_strided_slice %228 {offsets = [0, 16], sizes = [16, 8], strides = [1, 1]} : vector<16x96xf32> to vector<16x8xf32>
    %274 = arith.truncf %273 : vector<16x8xf32> to vector<16x8xbf16>
    %275 = vector.extract_strided_slice %228 {offsets = [0, 48], sizes = [16, 8], strides = [1, 1]} : vector<16x96xf32> to vector<16x8xf32>
    %276 = arith.truncf %275 : vector<16x8xf32> to vector<16x8xbf16>
    %277 = vector.extract_strided_slice %228 {offsets = [0, 80], sizes = [16, 8], strides = [1, 1]} : vector<16x96xf32> to vector<16x8xf32>
    %278 = arith.truncf %277 : vector<16x8xf32> to vector<16x8xbf16>
    %cst_94 = arith.constant dense<0.000000e+00> : vector<16x16xf32>
    %279 = tpu.matmul %274, %276, %cst_94 {dimension_numbers = #tpu.dot_dimension_numbers<[1], [1], [0], [0], [0, 0, 1, 0], [], []>} : vector<16x8xbf16>, vector<16x8xbf16>, vector<16x16xf32> -> vector<16x16xf32>
    %cst_95 = arith.constant 0.353553385 : f32
    %280 = vector.broadcast %cst_95 : f32 to vector<16x16xf32>
    %281 = arith.mulf %279, %280 : vector<16x16xf32>
    %282 = arith.addf %281, %2 : vector<16x16xf32>
    %cst_96 = arith.constant dense<0xFF800000> : vector<16xf32>
    %283 = vector.multi_reduction <maximumf>, %282, %cst_96 [1] : vector<16x16xf32> to vector<16xf32>
    %284 = vector.shape_cast %283 : vector<16xf32> to vector<16x1xf32>
    %285 = vector.broadcast %284 : vector<16x1xf32> to vector<16x16xf32>
    %286 = arith.subf %282, %285 : vector<16x16xf32>
    %287 = math.exp %286 : vector<16x16xf32>
    %cst_97 = arith.constant dense<0.000000e+00> : vector<16xf32>
    %288 = vector.multi_reduction <add>, %287, %cst_97 [1] : vector<16x16xf32> to vector<16xf32>
    %289 = vector.shape_cast %288 : vector<16xf32> to vector<16x1xf32>
    %290 = tpu.reciprocal %289 {approx = true} : vector<16x1xf32> -> vector<16x1xf32>
    %291 = vector.broadcast %290 : vector<16x1xf32> to vector<16x16xf32>
    %292 = arith.mulf %287, %291 : vector<16x16xf32>
    %293 = arith.truncf %292 : vector<16x16xf32> to vector<16x16xbf16>
    %cst_98 = arith.constant dense<0.000000e+00> : vector<16x8xf32>
    %294 = tpu.matmul %293, %278, %cst_98 {dimension_numbers = #tpu.dot_dimension_numbers<[1], [0], [0], [1], [0, 0, 1, 1], [], []>} : vector<16x16xbf16>, vector<16x8xbf16>, vector<16x8xf32> -> vector<16x8xf32>
    %295 = vector.extract_strided_slice %228 {offsets = [0, 24], sizes = [16, 8], strides = [1, 1]} : vector<16x96xf32> to vector<16x8xf32>
    %296 = arith.truncf %295 : vector<16x8xf32> to vector<16x8xbf16>
    %297 = vector.extract_strided_slice %228 {offsets = [0, 56], sizes = [16, 8], strides = [1, 1]} : vector<16x96xf32> to vector<16x8xf32>
    %298 = arith.truncf %297 : vector<16x8xf32> to vector<16x8xbf16>
    %299 = vector.extract_strided_slice %228 {offsets = [0, 88], sizes = [16, 8], strides = [1, 1]} : vector<16x96xf32> to vector<16x8xf32>
    %300 = arith.truncf %299 : vector<16x8xf32> to vector<16x8xbf16>
    %cst_99 = arith.constant dense<0.000000e+00> : vector<16x16xf32>
    %301 = tpu.matmul %296, %298, %cst_99 {dimension_numbers = #tpu.dot_dimension_numbers<[1], [1], [0], [0], [0, 0, 1, 0], [], []>} : vector<16x8xbf16>, vector<16x8xbf16>, vector<16x16xf32> -> vector<16x16xf32>
    %cst_100 = arith.constant 0.353553385 : f32
    %302 = vector.broadcast %cst_100 : f32 to vector<16x16xf32>
    %303 = arith.mulf %301, %302 : vector<16x16xf32>
    %304 = arith.addf %303, %2 : vector<16x16xf32>
    %cst_101 = arith.constant dense<0xFF800000> : vector<16xf32>
    %305 = vector.multi_reduction <maximumf>, %304, %cst_101 [1] : vector<16x16xf32> to vector<16xf32>
    %306 = vector.shape_cast %305 : vector<16xf32> to vector<16x1xf32>
    %307 = vector.broadcast %306 : vector<16x1xf32> to vector<16x16xf32>
    %308 = arith.subf %304, %307 : vector<16x16xf32>
    %309 = math.exp %308 : vector<16x16xf32>
    %cst_102 = arith.constant dense<0.000000e+00> : vector<16xf32>
    %310 = vector.multi_reduction <add>, %309, %cst_102 [1] : vector<16x16xf32> to vector<16xf32>
    %311 = vector.shape_cast %310 : vector<16xf32> to vector<16x1xf32>
    %312 = tpu.reciprocal %311 {approx = true} : vector<16x1xf32> -> vector<16x1xf32>
    %313 = vector.broadcast %312 : vector<16x1xf32> to vector<16x16xf32>
    %314 = arith.mulf %309, %313 : vector<16x16xf32>
    %315 = arith.truncf %314 : vector<16x16xf32> to vector<16x16xbf16>
    %cst_103 = arith.constant dense<0.000000e+00> : vector<16x8xf32>
    %316 = tpu.matmul %315, %300, %cst_103 {dimension_numbers = #tpu.dot_dimension_numbers<[1], [0], [0], [1], [0, 0, 1, 1], [], []>} : vector<16x16xbf16>, vector<16x8xbf16>, vector<16x8xf32> -> vector<16x8xf32>
    %317 = tpu.concatenate %250, %272, %294, %316 in 1 : vector<16x8xf32>, vector<16x8xf32>, vector<16x8xf32>, vector<16x8xf32> -> vector<16x32xf32>
    %318 = arith.truncf %317 : vector<16x32xf32> to vector<16x32xbf16>
    %c1_104 = arith.constant 1 : index
    %c0_105 = arith.constant 0 : index
    %c0_106 = arith.constant 0 : index
    %319 = vector.load %arg9[%c1_104, %c0_105, %c0_106] : memref<6x32x32xbf16, #tpu.memory_space<vmem>>, vector<1x32x32xbf16>
    %320 = vector.shape_cast %319 : vector<1x32x32xbf16> to vector<32x32xbf16>
    %cst_107 = arith.constant dense<0.000000e+00> : vector<16x32xf32>
    %321 = tpu.matmul %318, %320, %cst_107 {dimension_numbers = #tpu.dot_dimension_numbers<[1], [0], [0], [1], [0, 0, 1, 1], [], []>} : vector<16x32xbf16>, vector<32x32xbf16>, vector<16x32xf32> -> vector<16x32xf32>
    %c1_108 = arith.constant 1 : index
    %c0_109 = arith.constant 0 : index
    %c0_110 = arith.constant 0 : index
    %322 = vector.load %arg10[%c1_108, %c0_109, %c0_110] : memref<6x1x32xf32, #tpu.memory_space<vmem>>, vector<1x1x32xf32>
    %323 = vector.shape_cast %322 : vector<1x1x32xf32> to vector<1x32xf32>
    %324 = vector.broadcast %323 : vector<1x32xf32> to vector<16x32xf32>
    %325 = arith.addf %321, %324 : vector<16x32xf32>
    %326 = arith.addf %218, %325 : vector<16x32xf32>
    %327 = vector.extract_strided_slice %220 {offsets = [0, 0], sizes = [1, 32], strides = [1, 1]} : vector<4x32xf32> to vector<1x32xf32>
    %328 = vector.extract_strided_slice %220 {offsets = [1, 0], sizes = [1, 32], strides = [1, 1]} : vector<4x32xf32> to vector<1x32xf32>
    %cst_111 = arith.constant dense<0.000000e+00> : vector<16xf32>
    %329 = vector.multi_reduction <add>, %326, %cst_111 [1] : vector<16x32xf32> to vector<16xf32>
    %330 = vector.shape_cast %329 : vector<16xf32> to vector<16x1xf32>
    %cst_112 = arith.constant 3.200000e+01 : f32
    %331 = vector.broadcast %cst_112 : f32 to vector<16x1xf32>
    %332 = arith.divf %330, %331 : vector<16x1xf32>
    %333 = vector.broadcast %332 : vector<16x1xf32> to vector<16x32xf32>
    %334 = arith.subf %326, %333 : vector<16x32xf32>
    %335 = arith.mulf %334, %334 : vector<16x32xf32>
    %cst_113 = arith.constant dense<0.000000e+00> : vector<16xf32>
    %336 = vector.multi_reduction <add>, %335, %cst_113 [1] : vector<16x32xf32> to vector<16xf32>
    %337 = vector.shape_cast %336 : vector<16xf32> to vector<16x1xf32>
    %cst_114 = arith.constant 3.200000e+01 : f32
    %338 = vector.broadcast %cst_114 : f32 to vector<16x1xf32>
    %339 = arith.divf %337, %338 : vector<16x1xf32>
    %340 = vector.broadcast %332 : vector<16x1xf32> to vector<16x32xf32>
    %341 = arith.subf %326, %340 : vector<16x32xf32>
    %cst_115 = arith.constant 9.99999996E-13 : f32
    %342 = vector.broadcast %cst_115 : f32 to vector<16x1xf32>
    %343 = arith.addf %339, %342 : vector<16x1xf32>
    %344 = math.rsqrt %343 : vector<16x1xf32>
    %345 = vector.broadcast %344 : vector<16x1xf32> to vector<16x32xf32>
    %346 = arith.mulf %341, %345 : vector<16x32xf32>
    %347 = vector.broadcast %327 : vector<1x32xf32> to vector<16x32xf32>
    %348 = arith.mulf %346, %347 : vector<16x32xf32>
    %349 = vector.broadcast %328 : vector<1x32xf32> to vector<16x32xf32>
    %350 = arith.addf %348, %349 : vector<16x32xf32>
    %351 = arith.truncf %350 : vector<16x32xf32> to vector<16x32xbf16>
    %c1_116 = arith.constant 1 : index
    %c0_117 = arith.constant 0 : index
    %c0_118 = arith.constant 0 : index
    %352 = vector.load %arg12[%c1_116, %c0_117, %c0_118] : memref<6x32x64xbf16, #tpu.memory_space<vmem>>, vector<1x32x64xbf16>
    %353 = vector.shape_cast %352 : vector<1x32x64xbf16> to vector<32x64xbf16>
    %cst_119 = arith.constant dense<0.000000e+00> : vector<16x64xf32>
    %354 = tpu.matmul %351, %353, %cst_119 {dimension_numbers = #tpu.dot_dimension_numbers<[1], [0], [0], [1], [0, 0, 1, 1], [], []>} : vector<16x32xbf16>, vector<32x64xbf16>, vector<16x64xf32> -> vector<16x64xf32>
    %c1_120 = arith.constant 1 : index
    %c0_121 = arith.constant 0 : index
    %c0_122 = arith.constant 0 : index
    %355 = vector.load %arg13[%c1_120, %c0_121, %c0_122] : memref<6x1x64xf32, #tpu.memory_space<vmem>>, vector<1x1x64xf32>
    %356 = vector.shape_cast %355 : vector<1x1x64xf32> to vector<1x64xf32>
    %357 = vector.broadcast %356 : vector<1x64xf32> to vector<16x64xf32>
    %358 = arith.addf %354, %357 : vector<16x64xf32>
    %cst_123 = arith.constant 5.000000e-01 : f32
    %359 = vector.broadcast %cst_123 : f32 to vector<16x64xf32>
    %360 = arith.mulf %359, %358 : vector<16x64xf32>
    %cst_124 = arith.constant 4.471500e-02 : f32
    %361 = vector.broadcast %cst_124 : f32 to vector<16x64xf32>
    %362 = arith.mulf %361, %358 : vector<16x64xf32>
    %363 = arith.mulf %362, %358 : vector<16x64xf32>
    %364 = arith.mulf %363, %358 : vector<16x64xf32>
    %365 = arith.addf %358, %364 : vector<16x64xf32>
    %cst_125 = arith.constant 0.797884583 : f32
    %366 = vector.broadcast %cst_125 : f32 to vector<16x64xf32>
    %367 = arith.mulf %366, %365 : vector<16x64xf32>
    %368 = math.tanh %367 : vector<16x64xf32>
    %cst_126 = arith.constant 1.000000e+00 : f32
    %369 = vector.broadcast %cst_126 : f32 to vector<16x64xf32>
    %370 = arith.addf %369, %368 : vector<16x64xf32>
    %371 = arith.mulf %360, %370 : vector<16x64xf32>
    %372 = arith.truncf %371 : vector<16x64xf32> to vector<16x64xbf16>
    %c1_127 = arith.constant 1 : index
    %c0_128 = arith.constant 0 : index
    %c0_129 = arith.constant 0 : index
    %373 = vector.load %arg14[%c1_127, %c0_128, %c0_129] : memref<6x64x32xbf16, #tpu.memory_space<vmem>>, vector<1x64x32xbf16>
    %374 = vector.shape_cast %373 : vector<1x64x32xbf16> to vector<64x32xbf16>
    %cst_130 = arith.constant dense<0.000000e+00> : vector<16x32xf32>
    %375 = tpu.matmul %372, %374, %cst_130 {dimension_numbers = #tpu.dot_dimension_numbers<[1], [0], [0], [1], [0, 0, 1, 1], [], []>} : vector<16x64xbf16>, vector<64x32xbf16>, vector<16x32xf32> -> vector<16x32xf32>
    %c1_131 = arith.constant 1 : index
    %c0_132 = arith.constant 0 : index
    %c0_133 = arith.constant 0 : index
    %376 = vector.load %arg15[%c1_131, %c0_132, %c0_133] : memref<6x1x32xf32, #tpu.memory_space<vmem>>, vector<1x1x32xf32>
    %377 = vector.shape_cast %376 : vector<1x1x32xf32> to vector<1x32xf32>
    %378 = vector.broadcast %377 : vector<1x32xf32> to vector<16x32xf32>
    %379 = arith.addf %375, %378 : vector<16x32xf32>
    %380 = arith.addf %350, %379 : vector<16x32xf32>
    %381 = vector.extract_strided_slice %220 {offsets = [2, 0], sizes = [1, 32], strides = [1, 1]} : vector<4x32xf32> to vector<1x32xf32>
    %382 = vector.extract_strided_slice %220 {offsets = [3, 0], sizes = [1, 32], strides = [1, 1]} : vector<4x32xf32> to vector<1x32xf32>
    %cst_134 = arith.constant dense<0.000000e+00> : vector<16xf32>
    %383 = vector.multi_reduction <add>, %380, %cst_134 [1] : vector<16x32xf32> to vector<16xf32>
    %384 = vector.shape_cast %383 : vector<16xf32> to vector<16x1xf32>
    %cst_135 = arith.constant 3.200000e+01 : f32
    %385 = vector.broadcast %cst_135 : f32 to vector<16x1xf32>
    %386 = arith.divf %384, %385 : vector<16x1xf32>
    %387 = vector.broadcast %386 : vector<16x1xf32> to vector<16x32xf32>
    %388 = arith.subf %380, %387 : vector<16x32xf32>
    %389 = arith.mulf %388, %388 : vector<16x32xf32>
    %cst_136 = arith.constant dense<0.000000e+00> : vector<16xf32>
    %390 = vector.multi_reduction <add>, %389, %cst_136 [1] : vector<16x32xf32> to vector<16xf32>
    %391 = vector.shape_cast %390 : vector<16xf32> to vector<16x1xf32>
    %cst_137 = arith.constant 3.200000e+01 : f32
    %392 = vector.broadcast %cst_137 : f32 to vector<16x1xf32>
    %393 = arith.divf %391, %392 : vector<16x1xf32>
    %394 = vector.broadcast %386 : vector<16x1xf32> to vector<16x32xf32>
    %395 = arith.subf %380, %394 : vector<16x32xf32>
    %cst_138 = arith.constant 9.99999996E-13 : f32
    %396 = vector.broadcast %cst_138 : f32 to vector<16x1xf32>
    %397 = arith.addf %393, %396 : vector<16x1xf32>
    %398 = math.rsqrt %397 : vector<16x1xf32>
    %399 = vector.broadcast %398 : vector<16x1xf32> to vector<16x32xf32>
    %400 = arith.mulf %395, %399 : vector<16x32xf32>
    %401 = vector.broadcast %381 : vector<1x32xf32> to vector<16x32xf32>
    %402 = arith.mulf %400, %401 : vector<16x32xf32>
    %403 = vector.broadcast %382 : vector<1x32xf32> to vector<16x32xf32>
    %404 = arith.addf %402, %403 : vector<16x32xf32>
    %c0_139 = arith.constant 0 : index
    %c0_140 = arith.constant 0 : index
    %405 = vector.load %arg2[%c0_139, %c0_140] : memref<16x192xf32, #tpu.memory_space<vmem>>, vector<16x192xf32>
    %406 = arith.truncf %405 : vector<16x192xf32> to vector<16x192xbf16>
    %c0_141 = arith.constant 0 : index
    %c0_142 = arith.constant 0 : index
    %407 = vector.load %arg5[%c0_141, %c0_142] : memref<192x32xbf16, #tpu.memory_space<vmem>>, vector<192x32xbf16>
    %cst_143 = arith.constant dense<0.000000e+00> : vector<16x32xf32>
    %408 = tpu.matmul %406, %407, %cst_143 {dimension_numbers = #tpu.dot_dimension_numbers<[1], [0], [0], [1], [0, 0, 1, 1], [], []>} : vector<16x192xbf16>, vector<192x32xbf16>, vector<16x32xf32> -> vector<16x32xf32>
    %c0_144 = arith.constant 0 : index
    %c0_145 = arith.constant 0 : index
    %409 = vector.load %arg6[%c0_144, %c0_145] : memref<16x32xf32, #tpu.memory_space<vmem>>, vector<16x32xf32>
    %410 = arith.addf %408, %409 : vector<16x32xf32>
    %c2 = arith.constant 2 : index
    %c0_146 = arith.constant 0 : index
    %c0_147 = arith.constant 0 : index
    %411 = vector.load %arg11[%c2, %c0_146, %c0_147] : memref<6x4x32xf32, #tpu.memory_space<vmem>>, vector<1x4x32xf32>
    %412 = vector.shape_cast %411 : vector<1x4x32xf32> to vector<4x32xf32>
    %413 = vector.extract_strided_slice %412 {offsets = [0, 0], sizes = [1, 32], strides = [1, 1]} : vector<4x32xf32> to vector<1x32xf32>
    %414 = vector.extract_strided_slice %412 {offsets = [1, 0], sizes = [1, 32], strides = [1, 1]} : vector<4x32xf32> to vector<1x32xf32>
    %cst_148 = arith.constant dense<0.000000e+00> : vector<16xf32>
    %415 = vector.multi_reduction <add>, %410, %cst_148 [1] : vector<16x32xf32> to vector<16xf32>
    %416 = vector.shape_cast %415 : vector<16xf32> to vector<16x1xf32>
    %cst_149 = arith.constant 3.200000e+01 : f32
    %417 = vector.broadcast %cst_149 : f32 to vector<16x1xf32>
    %418 = arith.divf %416, %417 : vector<16x1xf32>
    %419 = vector.broadcast %418 : vector<16x1xf32> to vector<16x32xf32>
    %420 = arith.subf %410, %419 : vector<16x32xf32>
    %421 = arith.mulf %420, %420 : vector<16x32xf32>
    %cst_150 = arith.constant dense<0.000000e+00> : vector<16xf32>
    %422 = vector.multi_reduction <add>, %421, %cst_150 [1] : vector<16x32xf32> to vector<16xf32>
    %423 = vector.shape_cast %422 : vector<16xf32> to vector<16x1xf32>
    %cst_151 = arith.constant 3.200000e+01 : f32
    %424 = vector.broadcast %cst_151 : f32 to vector<16x1xf32>
    %425 = arith.divf %423, %424 : vector<16x1xf32>
    %426 = vector.broadcast %418 : vector<16x1xf32> to vector<16x32xf32>
    %427 = arith.subf %410, %426 : vector<16x32xf32>
    %cst_152 = arith.constant 9.99999996E-13 : f32
    %428 = vector.broadcast %cst_152 : f32 to vector<16x1xf32>
    %429 = arith.addf %425, %428 : vector<16x1xf32>
    %430 = math.rsqrt %429 : vector<16x1xf32>
    %431 = vector.broadcast %430 : vector<16x1xf32> to vector<16x32xf32>
    %432 = arith.mulf %427, %431 : vector<16x32xf32>
    %433 = vector.broadcast %413 : vector<1x32xf32> to vector<16x32xf32>
    %434 = arith.mulf %432, %433 : vector<16x32xf32>
    %435 = vector.broadcast %414 : vector<1x32xf32> to vector<16x32xf32>
    %436 = arith.addf %434, %435 : vector<16x32xf32>
    %437 = arith.truncf %436 : vector<16x32xf32> to vector<16x32xbf16>
    %c2_153 = arith.constant 2 : index
    %c0_154 = arith.constant 0 : index
    %c0_155 = arith.constant 0 : index
    %438 = vector.load %arg7[%c2_153, %c0_154, %c0_155] : memref<6x32x96xbf16, #tpu.memory_space<vmem>>, vector<1x32x96xbf16>
    %439 = vector.shape_cast %438 : vector<1x32x96xbf16> to vector<32x96xbf16>
    %cst_156 = arith.constant dense<0.000000e+00> : vector<16x96xf32>
    %440 = tpu.matmul %437, %439, %cst_156 {dimension_numbers = #tpu.dot_dimension_numbers<[1], [0], [0], [1], [0, 0, 1, 1], [], []>} : vector<16x32xbf16>, vector<32x96xbf16>, vector<16x96xf32> -> vector<16x96xf32>
    %c2_157 = arith.constant 2 : index
    %c0_158 = arith.constant 0 : index
    %c0_159 = arith.constant 0 : index
    %441 = vector.load %arg8[%c2_157, %c0_158, %c0_159] : memref<6x1x96xf32, #tpu.memory_space<vmem>>, vector<1x1x96xf32>
    %442 = vector.shape_cast %441 : vector<1x1x96xf32> to vector<1x96xf32>
    %443 = vector.broadcast %442 : vector<1x96xf32> to vector<16x96xf32>
    %444 = arith.addf %440, %443 : vector<16x96xf32>
    %445 = vector.extract_strided_slice %444 {offsets = [0, 0], sizes = [16, 8], strides = [1, 1]} : vector<16x96xf32> to vector<16x8xf32>
    %446 = arith.truncf %445 : vector<16x8xf32> to vector<16x8xbf16>
    %447 = vector.extract_strided_slice %444 {offsets = [0, 32], sizes = [16, 8], strides = [1, 1]} : vector<16x96xf32> to vector<16x8xf32>
    %448 = arith.truncf %447 : vector<16x8xf32> to vector<16x8xbf16>
    %449 = vector.extract_strided_slice %444 {offsets = [0, 64], sizes = [16, 8], strides = [1, 1]} : vector<16x96xf32> to vector<16x8xf32>
    %450 = arith.truncf %449 : vector<16x8xf32> to vector<16x8xbf16>
    %cst_160 = arith.constant dense<0.000000e+00> : vector<16x16xf32>
    %451 = tpu.matmul %446, %448, %cst_160 {dimension_numbers = #tpu.dot_dimension_numbers<[1], [1], [0], [0], [0, 0, 1, 0], [], []>} : vector<16x8xbf16>, vector<16x8xbf16>, vector<16x16xf32> -> vector<16x16xf32>
    %cst_161 = arith.constant 0.353553385 : f32
    %452 = vector.broadcast %cst_161 : f32 to vector<16x16xf32>
    %453 = arith.mulf %451, %452 : vector<16x16xf32>
    %454 = arith.addf %453, %4 : vector<16x16xf32>
    %cst_162 = arith.constant dense<0xFF800000> : vector<16xf32>
    %455 = vector.multi_reduction <maximumf>, %454, %cst_162 [1] : vector<16x16xf32> to vector<16xf32>
    %456 = vector.shape_cast %455 : vector<16xf32> to vector<16x1xf32>
    %457 = vector.broadcast %456 : vector<16x1xf32> to vector<16x16xf32>
    %458 = arith.subf %454, %457 : vector<16x16xf32>
    %459 = math.exp %458 : vector<16x16xf32>
    %cst_163 = arith.constant dense<0.000000e+00> : vector<16xf32>
    %460 = vector.multi_reduction <add>, %459, %cst_163 [1] : vector<16x16xf32> to vector<16xf32>
    %461 = vector.shape_cast %460 : vector<16xf32> to vector<16x1xf32>
    %462 = tpu.reciprocal %461 {approx = true} : vector<16x1xf32> -> vector<16x1xf32>
    %463 = vector.broadcast %462 : vector<16x1xf32> to vector<16x16xf32>
    %464 = arith.mulf %459, %463 : vector<16x16xf32>
    %465 = arith.truncf %464 : vector<16x16xf32> to vector<16x16xbf16>
    %cst_164 = arith.constant dense<0.000000e+00> : vector<16x8xf32>
    %466 = tpu.matmul %465, %450, %cst_164 {dimension_numbers = #tpu.dot_dimension_numbers<[1], [0], [0], [1], [0, 0, 1, 1], [], []>} : vector<16x16xbf16>, vector<16x8xbf16>, vector<16x8xf32> -> vector<16x8xf32>
    %467 = vector.extract_strided_slice %444 {offsets = [0, 8], sizes = [16, 8], strides = [1, 1]} : vector<16x96xf32> to vector<16x8xf32>
    %468 = arith.truncf %467 : vector<16x8xf32> to vector<16x8xbf16>
    %469 = vector.extract_strided_slice %444 {offsets = [0, 40], sizes = [16, 8], strides = [1, 1]} : vector<16x96xf32> to vector<16x8xf32>
    %470 = arith.truncf %469 : vector<16x8xf32> to vector<16x8xbf16>
    %471 = vector.extract_strided_slice %444 {offsets = [0, 72], sizes = [16, 8], strides = [1, 1]} : vector<16x96xf32> to vector<16x8xf32>
    %472 = arith.truncf %471 : vector<16x8xf32> to vector<16x8xbf16>
    %cst_165 = arith.constant dense<0.000000e+00> : vector<16x16xf32>
    %473 = tpu.matmul %468, %470, %cst_165 {dimension_numbers = #tpu.dot_dimension_numbers<[1], [1], [0], [0], [0, 0, 1, 0], [], []>} : vector<16x8xbf16>, vector<16x8xbf16>, vector<16x16xf32> -> vector<16x16xf32>
    %cst_166 = arith.constant 0.353553385 : f32
    %474 = vector.broadcast %cst_166 : f32 to vector<16x16xf32>
    %475 = arith.mulf %473, %474 : vector<16x16xf32>
    %476 = arith.addf %475, %4 : vector<16x16xf32>
    %cst_167 = arith.constant dense<0xFF800000> : vector<16xf32>
    %477 = vector.multi_reduction <maximumf>, %476, %cst_167 [1] : vector<16x16xf32> to vector<16xf32>
    %478 = vector.shape_cast %477 : vector<16xf32> to vector<16x1xf32>
    %479 = vector.broadcast %478 : vector<16x1xf32> to vector<16x16xf32>
    %480 = arith.subf %476, %479 : vector<16x16xf32>
    %481 = math.exp %480 : vector<16x16xf32>
    %cst_168 = arith.constant dense<0.000000e+00> : vector<16xf32>
    %482 = vector.multi_reduction <add>, %481, %cst_168 [1] : vector<16x16xf32> to vector<16xf32>
    %483 = vector.shape_cast %482 : vector<16xf32> to vector<16x1xf32>
    %484 = tpu.reciprocal %483 {approx = true} : vector<16x1xf32> -> vector<16x1xf32>
    %485 = vector.broadcast %484 : vector<16x1xf32> to vector<16x16xf32>
    %486 = arith.mulf %481, %485 : vector<16x16xf32>
    %487 = arith.truncf %486 : vector<16x16xf32> to vector<16x16xbf16>
    %cst_169 = arith.constant dense<0.000000e+00> : vector<16x8xf32>
    %488 = tpu.matmul %487, %472, %cst_169 {dimension_numbers = #tpu.dot_dimension_numbers<[1], [0], [0], [1], [0, 0, 1, 1], [], []>} : vector<16x16xbf16>, vector<16x8xbf16>, vector<16x8xf32> -> vector<16x8xf32>
    %489 = vector.extract_strided_slice %444 {offsets = [0, 16], sizes = [16, 8], strides = [1, 1]} : vector<16x96xf32> to vector<16x8xf32>
    %490 = arith.truncf %489 : vector<16x8xf32> to vector<16x8xbf16>
    %491 = vector.extract_strided_slice %444 {offsets = [0, 48], sizes = [16, 8], strides = [1, 1]} : vector<16x96xf32> to vector<16x8xf32>
    %492 = arith.truncf %491 : vector<16x8xf32> to vector<16x8xbf16>
    %493 = vector.extract_strided_slice %444 {offsets = [0, 80], sizes = [16, 8], strides = [1, 1]} : vector<16x96xf32> to vector<16x8xf32>
    %494 = arith.truncf %493 : vector<16x8xf32> to vector<16x8xbf16>
    %cst_170 = arith.constant dense<0.000000e+00> : vector<16x16xf32>
    %495 = tpu.matmul %490, %492, %cst_170 {dimension_numbers = #tpu.dot_dimension_numbers<[1], [1], [0], [0], [0, 0, 1, 0], [], []>} : vector<16x8xbf16>, vector<16x8xbf16>, vector<16x16xf32> -> vector<16x16xf32>
    %cst_171 = arith.constant 0.353553385 : f32
    %496 = vector.broadcast %cst_171 : f32 to vector<16x16xf32>
    %497 = arith.mulf %495, %496 : vector<16x16xf32>
    %498 = arith.addf %497, %4 : vector<16x16xf32>
    %cst_172 = arith.constant dense<0xFF800000> : vector<16xf32>
    %499 = vector.multi_reduction <maximumf>, %498, %cst_172 [1] : vector<16x16xf32> to vector<16xf32>
    %500 = vector.shape_cast %499 : vector<16xf32> to vector<16x1xf32>
    %501 = vector.broadcast %500 : vector<16x1xf32> to vector<16x16xf32>
    %502 = arith.subf %498, %501 : vector<16x16xf32>
    %503 = math.exp %502 : vector<16x16xf32>
    %cst_173 = arith.constant dense<0.000000e+00> : vector<16xf32>
    %504 = vector.multi_reduction <add>, %503, %cst_173 [1] : vector<16x16xf32> to vector<16xf32>
    %505 = vector.shape_cast %504 : vector<16xf32> to vector<16x1xf32>
    %506 = tpu.reciprocal %505 {approx = true} : vector<16x1xf32> -> vector<16x1xf32>
    %507 = vector.broadcast %506 : vector<16x1xf32> to vector<16x16xf32>
    %508 = arith.mulf %503, %507 : vector<16x16xf32>
    %509 = arith.truncf %508 : vector<16x16xf32> to vector<16x16xbf16>
    %cst_174 = arith.constant dense<0.000000e+00> : vector<16x8xf32>
    %510 = tpu.matmul %509, %494, %cst_174 {dimension_numbers = #tpu.dot_dimension_numbers<[1], [0], [0], [1], [0, 0, 1, 1], [], []>} : vector<16x16xbf16>, vector<16x8xbf16>, vector<16x8xf32> -> vector<16x8xf32>
    %511 = vector.extract_strided_slice %444 {offsets = [0, 24], sizes = [16, 8], strides = [1, 1]} : vector<16x96xf32> to vector<16x8xf32>
    %512 = arith.truncf %511 : vector<16x8xf32> to vector<16x8xbf16>
    %513 = vector.extract_strided_slice %444 {offsets = [0, 56], sizes = [16, 8], strides = [1, 1]} : vector<16x96xf32> to vector<16x8xf32>
    %514 = arith.truncf %513 : vector<16x8xf32> to vector<16x8xbf16>
    %515 = vector.extract_strided_slice %444 {offsets = [0, 88], sizes = [16, 8], strides = [1, 1]} : vector<16x96xf32> to vector<16x8xf32>
    %516 = arith.truncf %515 : vector<16x8xf32> to vector<16x8xbf16>
    %cst_175 = arith.constant dense<0.000000e+00> : vector<16x16xf32>
    %517 = tpu.matmul %512, %514, %cst_175 {dimension_numbers = #tpu.dot_dimension_numbers<[1], [1], [0], [0], [0, 0, 1, 0], [], []>} : vector<16x8xbf16>, vector<16x8xbf16>, vector<16x16xf32> -> vector<16x16xf32>
    %cst_176 = arith.constant 0.353553385 : f32
    %518 = vector.broadcast %cst_176 : f32 to vector<16x16xf32>
    %519 = arith.mulf %517, %518 : vector<16x16xf32>
    %520 = arith.addf %519, %4 : vector<16x16xf32>
    %cst_177 = arith.constant dense<0xFF800000> : vector<16xf32>
    %521 = vector.multi_reduction <maximumf>, %520, %cst_177 [1] : vector<16x16xf32> to vector<16xf32>
    %522 = vector.shape_cast %521 : vector<16xf32> to vector<16x1xf32>
    %523 = vector.broadcast %522 : vector<16x1xf32> to vector<16x16xf32>
    %524 = arith.subf %520, %523 : vector<16x16xf32>
    %525 = math.exp %524 : vector<16x16xf32>
    %cst_178 = arith.constant dense<0.000000e+00> : vector<16xf32>
    %526 = vector.multi_reduction <add>, %525, %cst_178 [1] : vector<16x16xf32> to vector<16xf32>
    %527 = vector.shape_cast %526 : vector<16xf32> to vector<16x1xf32>
    %528 = tpu.reciprocal %527 {approx = true} : vector<16x1xf32> -> vector<16x1xf32>
    %529 = vector.broadcast %528 : vector<16x1xf32> to vector<16x16xf32>
    %530 = arith.mulf %525, %529 : vector<16x16xf32>
    %531 = arith.truncf %530 : vector<16x16xf32> to vector<16x16xbf16>
    %cst_179 = arith.constant dense<0.000000e+00> : vector<16x8xf32>
    %532 = tpu.matmul %531, %516, %cst_179 {dimension_numbers = #tpu.dot_dimension_numbers<[1], [0], [0], [1], [0, 0, 1, 1], [], []>} : vector<16x16xbf16>, vector<16x8xbf16>, vector<16x8xf32> -> vector<16x8xf32>
    %533 = tpu.concatenate %466, %488, %510, %532 in 1 : vector<16x8xf32>, vector<16x8xf32>, vector<16x8xf32>, vector<16x8xf32> -> vector<16x32xf32>
    %534 = arith.truncf %533 : vector<16x32xf32> to vector<16x32xbf16>
    %c2_180 = arith.constant 2 : index
    %c0_181 = arith.constant 0 : index
    %c0_182 = arith.constant 0 : index
    %535 = vector.load %arg9[%c2_180, %c0_181, %c0_182] : memref<6x32x32xbf16, #tpu.memory_space<vmem>>, vector<1x32x32xbf16>
    %536 = vector.shape_cast %535 : vector<1x32x32xbf16> to vector<32x32xbf16>
    %cst_183 = arith.constant dense<0.000000e+00> : vector<16x32xf32>
    %537 = tpu.matmul %534, %536, %cst_183 {dimension_numbers = #tpu.dot_dimension_numbers<[1], [0], [0], [1], [0, 0, 1, 1], [], []>} : vector<16x32xbf16>, vector<32x32xbf16>, vector<16x32xf32> -> vector<16x32xf32>
    %c2_184 = arith.constant 2 : index
    %c0_185 = arith.constant 0 : index
    %c0_186 = arith.constant 0 : index
    %538 = vector.load %arg10[%c2_184, %c0_185, %c0_186] : memref<6x1x32xf32, #tpu.memory_space<vmem>>, vector<1x1x32xf32>
    %539 = vector.shape_cast %538 : vector<1x1x32xf32> to vector<1x32xf32>
    %540 = vector.broadcast %539 : vector<1x32xf32> to vector<16x32xf32>
    %541 = arith.addf %537, %540 : vector<16x32xf32>
    %542 = arith.addf %410, %541 : vector<16x32xf32>
    %543 = vector.extract_strided_slice %412 {offsets = [2, 0], sizes = [1, 32], strides = [1, 1]} : vector<4x32xf32> to vector<1x32xf32>
    %544 = vector.extract_strided_slice %412 {offsets = [3, 0], sizes = [1, 32], strides = [1, 1]} : vector<4x32xf32> to vector<1x32xf32>
    %cst_187 = arith.constant dense<0.000000e+00> : vector<16xf32>
    %545 = vector.multi_reduction <add>, %542, %cst_187 [1] : vector<16x32xf32> to vector<16xf32>
    %546 = vector.shape_cast %545 : vector<16xf32> to vector<16x1xf32>
    %cst_188 = arith.constant 3.200000e+01 : f32
    %547 = vector.broadcast %cst_188 : f32 to vector<16x1xf32>
    %548 = arith.divf %546, %547 : vector<16x1xf32>
    %549 = vector.broadcast %548 : vector<16x1xf32> to vector<16x32xf32>
    %550 = arith.subf %542, %549 : vector<16x32xf32>
    %551 = arith.mulf %550, %550 : vector<16x32xf32>
    %cst_189 = arith.constant dense<0.000000e+00> : vector<16xf32>
    %552 = vector.multi_reduction <add>, %551, %cst_189 [1] : vector<16x32xf32> to vector<16xf32>
    %553 = vector.shape_cast %552 : vector<16xf32> to vector<16x1xf32>
    %cst_190 = arith.constant 3.200000e+01 : f32
    %554 = vector.broadcast %cst_190 : f32 to vector<16x1xf32>
    %555 = arith.divf %553, %554 : vector<16x1xf32>
    %556 = vector.broadcast %548 : vector<16x1xf32> to vector<16x32xf32>
    %557 = arith.subf %542, %556 : vector<16x32xf32>
    %cst_191 = arith.constant 9.99999996E-13 : f32
    %558 = vector.broadcast %cst_191 : f32 to vector<16x1xf32>
    %559 = arith.addf %555, %558 : vector<16x1xf32>
    %560 = math.rsqrt %559 : vector<16x1xf32>
    %561 = vector.broadcast %560 : vector<16x1xf32> to vector<16x32xf32>
    %562 = arith.mulf %557, %561 : vector<16x32xf32>
    %563 = vector.broadcast %543 : vector<1x32xf32> to vector<16x32xf32>
    %564 = arith.mulf %562, %563 : vector<16x32xf32>
    %565 = vector.broadcast %544 : vector<1x32xf32> to vector<16x32xf32>
    %566 = arith.addf %564, %565 : vector<16x32xf32>
    %567 = arith.truncf %566 : vector<16x32xf32> to vector<16x32xbf16>
    %c2_192 = arith.constant 2 : index
    %c0_193 = arith.constant 0 : index
    %c0_194 = arith.constant 0 : index
    %568 = vector.load %arg12[%c2_192, %c0_193, %c0_194] : memref<6x32x64xbf16, #tpu.memory_space<vmem>>, vector<1x32x64xbf16>
    %569 = vector.shape_cast %568 : vector<1x32x64xbf16> to vector<32x64xbf16>
    %cst_195 = arith.constant dense<0.000000e+00> : vector<16x64xf32>
    %570 = tpu.matmul %567, %569, %cst_195 {dimension_numbers = #tpu.dot_dimension_numbers<[1], [0], [0], [1], [0, 0, 1, 1], [], []>} : vector<16x32xbf16>, vector<32x64xbf16>, vector<16x64xf32> -> vector<16x64xf32>
    %c2_196 = arith.constant 2 : index
    %c0_197 = arith.constant 0 : index
    %c0_198 = arith.constant 0 : index
    %571 = vector.load %arg13[%c2_196, %c0_197, %c0_198] : memref<6x1x64xf32, #tpu.memory_space<vmem>>, vector<1x1x64xf32>
    %572 = vector.shape_cast %571 : vector<1x1x64xf32> to vector<1x64xf32>
    %573 = vector.broadcast %572 : vector<1x64xf32> to vector<16x64xf32>
    %574 = arith.addf %570, %573 : vector<16x64xf32>
    %cst_199 = arith.constant 5.000000e-01 : f32
    %575 = vector.broadcast %cst_199 : f32 to vector<16x64xf32>
    %576 = arith.mulf %575, %574 : vector<16x64xf32>
    %cst_200 = arith.constant 4.471500e-02 : f32
    %577 = vector.broadcast %cst_200 : f32 to vector<16x64xf32>
    %578 = arith.mulf %577, %574 : vector<16x64xf32>
    %579 = arith.mulf %578, %574 : vector<16x64xf32>
    %580 = arith.mulf %579, %574 : vector<16x64xf32>
    %581 = arith.addf %574, %580 : vector<16x64xf32>
    %cst_201 = arith.constant 0.797884583 : f32
    %582 = vector.broadcast %cst_201 : f32 to vector<16x64xf32>
    %583 = arith.mulf %582, %581 : vector<16x64xf32>
    %584 = math.tanh %583 : vector<16x64xf32>
    %cst_202 = arith.constant 1.000000e+00 : f32
    %585 = vector.broadcast %cst_202 : f32 to vector<16x64xf32>
    %586 = arith.addf %585, %584 : vector<16x64xf32>
    %587 = arith.mulf %576, %586 : vector<16x64xf32>
    %588 = arith.truncf %587 : vector<16x64xf32> to vector<16x64xbf16>
    %c2_203 = arith.constant 2 : index
    %c0_204 = arith.constant 0 : index
    %c0_205 = arith.constant 0 : index
    %589 = vector.load %arg14[%c2_203, %c0_204, %c0_205] : memref<6x64x32xbf16, #tpu.memory_space<vmem>>, vector<1x64x32xbf16>
    %590 = vector.shape_cast %589 : vector<1x64x32xbf16> to vector<64x32xbf16>
    %cst_206 = arith.constant dense<0.000000e+00> : vector<16x32xf32>
    %591 = tpu.matmul %588, %590, %cst_206 {dimension_numbers = #tpu.dot_dimension_numbers<[1], [0], [0], [1], [0, 0, 1, 1], [], []>} : vector<16x64xbf16>, vector<64x32xbf16>, vector<16x32xf32> -> vector<16x32xf32>
    %c2_207 = arith.constant 2 : index
    %c0_208 = arith.constant 0 : index
    %c0_209 = arith.constant 0 : index
    %592 = vector.load %arg15[%c2_207, %c0_208, %c0_209] : memref<6x1x32xf32, #tpu.memory_space<vmem>>, vector<1x1x32xf32>
    %593 = vector.shape_cast %592 : vector<1x1x32xf32> to vector<1x32xf32>
    %594 = vector.broadcast %593 : vector<1x32xf32> to vector<16x32xf32>
    %595 = arith.addf %591, %594 : vector<16x32xf32>
    %596 = arith.addf %542, %595 : vector<16x32xf32>
    %c3 = arith.constant 3 : index
    %c0_210 = arith.constant 0 : index
    %c0_211 = arith.constant 0 : index
    %597 = vector.load %arg11[%c3, %c0_210, %c0_211] : memref<6x4x32xf32, #tpu.memory_space<vmem>>, vector<1x4x32xf32>
    %598 = vector.shape_cast %597 : vector<1x4x32xf32> to vector<4x32xf32>
    %599 = vector.extract_strided_slice %598 {offsets = [0, 0], sizes = [1, 32], strides = [1, 1]} : vector<4x32xf32> to vector<1x32xf32>
    %600 = vector.extract_strided_slice %598 {offsets = [1, 0], sizes = [1, 32], strides = [1, 1]} : vector<4x32xf32> to vector<1x32xf32>
    %cst_212 = arith.constant dense<0.000000e+00> : vector<16xf32>
    %601 = vector.multi_reduction <add>, %596, %cst_212 [1] : vector<16x32xf32> to vector<16xf32>
    %602 = vector.shape_cast %601 : vector<16xf32> to vector<16x1xf32>
    %cst_213 = arith.constant 3.200000e+01 : f32
    %603 = vector.broadcast %cst_213 : f32 to vector<16x1xf32>
    %604 = arith.divf %602, %603 : vector<16x1xf32>
    %605 = vector.broadcast %604 : vector<16x1xf32> to vector<16x32xf32>
    %606 = arith.subf %596, %605 : vector<16x32xf32>
    %607 = arith.mulf %606, %606 : vector<16x32xf32>
    %cst_214 = arith.constant dense<0.000000e+00> : vector<16xf32>
    %608 = vector.multi_reduction <add>, %607, %cst_214 [1] : vector<16x32xf32> to vector<16xf32>
    %609 = vector.shape_cast %608 : vector<16xf32> to vector<16x1xf32>
    %cst_215 = arith.constant 3.200000e+01 : f32
    %610 = vector.broadcast %cst_215 : f32 to vector<16x1xf32>
    %611 = arith.divf %609, %610 : vector<16x1xf32>
    %612 = vector.broadcast %604 : vector<16x1xf32> to vector<16x32xf32>
    %613 = arith.subf %596, %612 : vector<16x32xf32>
    %cst_216 = arith.constant 9.99999996E-13 : f32
    %614 = vector.broadcast %cst_216 : f32 to vector<16x1xf32>
    %615 = arith.addf %611, %614 : vector<16x1xf32>
    %616 = math.rsqrt %615 : vector<16x1xf32>
    %617 = vector.broadcast %616 : vector<16x1xf32> to vector<16x32xf32>
    %618 = arith.mulf %613, %617 : vector<16x32xf32>
    %619 = vector.broadcast %599 : vector<1x32xf32> to vector<16x32xf32>
    %620 = arith.mulf %618, %619 : vector<16x32xf32>
    %621 = vector.broadcast %600 : vector<1x32xf32> to vector<16x32xf32>
    %622 = arith.addf %620, %621 : vector<16x32xf32>
    %623 = arith.truncf %622 : vector<16x32xf32> to vector<16x32xbf16>
    %c3_217 = arith.constant 3 : index
    %c0_218 = arith.constant 0 : index
    %c0_219 = arith.constant 0 : index
    %624 = vector.load %arg7[%c3_217, %c0_218, %c0_219] : memref<6x32x96xbf16, #tpu.memory_space<vmem>>, vector<1x32x96xbf16>
    %625 = vector.shape_cast %624 : vector<1x32x96xbf16> to vector<32x96xbf16>
    %cst_220 = arith.constant dense<0.000000e+00> : vector<16x96xf32>
    %626 = tpu.matmul %623, %625, %cst_220 {dimension_numbers = #tpu.dot_dimension_numbers<[1], [0], [0], [1], [0, 0, 1, 1], [], []>} : vector<16x32xbf16>, vector<32x96xbf16>, vector<16x96xf32> -> vector<16x96xf32>
    %c3_221 = arith.constant 3 : index
    %c0_222 = arith.constant 0 : index
    %c0_223 = arith.constant 0 : index
    %627 = vector.load %arg8[%c3_221, %c0_222, %c0_223] : memref<6x1x96xf32, #tpu.memory_space<vmem>>, vector<1x1x96xf32>
    %628 = vector.shape_cast %627 : vector<1x1x96xf32> to vector<1x96xf32>
    %629 = vector.broadcast %628 : vector<1x96xf32> to vector<16x96xf32>
    %630 = arith.addf %626, %629 : vector<16x96xf32>
    %631 = vector.extract_strided_slice %630 {offsets = [0, 0], sizes = [16, 8], strides = [1, 1]} : vector<16x96xf32> to vector<16x8xf32>
    %632 = arith.truncf %631 : vector<16x8xf32> to vector<16x8xbf16>
    %633 = vector.extract_strided_slice %630 {offsets = [0, 32], sizes = [16, 8], strides = [1, 1]} : vector<16x96xf32> to vector<16x8xf32>
    %634 = arith.truncf %633 : vector<16x8xf32> to vector<16x8xbf16>
    %635 = vector.extract_strided_slice %630 {offsets = [0, 64], sizes = [16, 8], strides = [1, 1]} : vector<16x96xf32> to vector<16x8xf32>
    %636 = arith.truncf %635 : vector<16x8xf32> to vector<16x8xbf16>
    %cst_224 = arith.constant dense<0.000000e+00> : vector<16x16xf32>
    %637 = tpu.matmul %632, %634, %cst_224 {dimension_numbers = #tpu.dot_dimension_numbers<[1], [1], [0], [0], [0, 0, 1, 0], [], []>} : vector<16x8xbf16>, vector<16x8xbf16>, vector<16x16xf32> -> vector<16x16xf32>
    %cst_225 = arith.constant 0.353553385 : f32
    %638 = vector.broadcast %cst_225 : f32 to vector<16x16xf32>
    %639 = arith.mulf %637, %638 : vector<16x16xf32>
    %640 = arith.addf %639, %4 : vector<16x16xf32>
    %cst_226 = arith.constant dense<0xFF800000> : vector<16xf32>
    %641 = vector.multi_reduction <maximumf>, %640, %cst_226 [1] : vector<16x16xf32> to vector<16xf32>
    %642 = vector.shape_cast %641 : vector<16xf32> to vector<16x1xf32>
    %643 = vector.broadcast %642 : vector<16x1xf32> to vector<16x16xf32>
    %644 = arith.subf %640, %643 : vector<16x16xf32>
    %645 = math.exp %644 : vector<16x16xf32>
    %cst_227 = arith.constant dense<0.000000e+00> : vector<16xf32>
    %646 = vector.multi_reduction <add>, %645, %cst_227 [1] : vector<16x16xf32> to vector<16xf32>
    %647 = vector.shape_cast %646 : vector<16xf32> to vector<16x1xf32>
    %648 = tpu.reciprocal %647 {approx = true} : vector<16x1xf32> -> vector<16x1xf32>
    %649 = vector.broadcast %648 : vector<16x1xf32> to vector<16x16xf32>
    %650 = arith.mulf %645, %649 : vector<16x16xf32>
    %651 = arith.truncf %650 : vector<16x16xf32> to vector<16x16xbf16>
    %cst_228 = arith.constant dense<0.000000e+00> : vector<16x8xf32>
    %652 = tpu.matmul %651, %636, %cst_228 {dimension_numbers = #tpu.dot_dimension_numbers<[1], [0], [0], [1], [0, 0, 1, 1], [], []>} : vector<16x16xbf16>, vector<16x8xbf16>, vector<16x8xf32> -> vector<16x8xf32>
    %653 = vector.extract_strided_slice %630 {offsets = [0, 8], sizes = [16, 8], strides = [1, 1]} : vector<16x96xf32> to vector<16x8xf32>
    %654 = arith.truncf %653 : vector<16x8xf32> to vector<16x8xbf16>
    %655 = vector.extract_strided_slice %630 {offsets = [0, 40], sizes = [16, 8], strides = [1, 1]} : vector<16x96xf32> to vector<16x8xf32>
    %656 = arith.truncf %655 : vector<16x8xf32> to vector<16x8xbf16>
    %657 = vector.extract_strided_slice %630 {offsets = [0, 72], sizes = [16, 8], strides = [1, 1]} : vector<16x96xf32> to vector<16x8xf32>
    %658 = arith.truncf %657 : vector<16x8xf32> to vector<16x8xbf16>
    %cst_229 = arith.constant dense<0.000000e+00> : vector<16x16xf32>
    %659 = tpu.matmul %654, %656, %cst_229 {dimension_numbers = #tpu.dot_dimension_numbers<[1], [1], [0], [0], [0, 0, 1, 0], [], []>} : vector<16x8xbf16>, vector<16x8xbf16>, vector<16x16xf32> -> vector<16x16xf32>
    %cst_230 = arith.constant 0.353553385 : f32
    %660 = vector.broadcast %cst_230 : f32 to vector<16x16xf32>
    %661 = arith.mulf %659, %660 : vector<16x16xf32>
    %662 = arith.addf %661, %4 : vector<16x16xf32>
    %cst_231 = arith.constant dense<0xFF800000> : vector<16xf32>
    %663 = vector.multi_reduction <maximumf>, %662, %cst_231 [1] : vector<16x16xf32> to vector<16xf32>
    %664 = vector.shape_cast %663 : vector<16xf32> to vector<16x1xf32>
    %665 = vector.broadcast %664 : vector<16x1xf32> to vector<16x16xf32>
    %666 = arith.subf %662, %665 : vector<16x16xf32>
    %667 = math.exp %666 : vector<16x16xf32>
    %cst_232 = arith.constant dense<0.000000e+00> : vector<16xf32>
    %668 = vector.multi_reduction <add>, %667, %cst_232 [1] : vector<16x16xf32> to vector<16xf32>
    %669 = vector.shape_cast %668 : vector<16xf32> to vector<16x1xf32>
    %670 = tpu.reciprocal %669 {approx = true} : vector<16x1xf32> -> vector<16x1xf32>
    %671 = vector.broadcast %670 : vector<16x1xf32> to vector<16x16xf32>
    %672 = arith.mulf %667, %671 : vector<16x16xf32>
    %673 = arith.truncf %672 : vector<16x16xf32> to vector<16x16xbf16>
    %cst_233 = arith.constant dense<0.000000e+00> : vector<16x8xf32>
    %674 = tpu.matmul %673, %658, %cst_233 {dimension_numbers = #tpu.dot_dimension_numbers<[1], [0], [0], [1], [0, 0, 1, 1], [], []>} : vector<16x16xbf16>, vector<16x8xbf16>, vector<16x8xf32> -> vector<16x8xf32>
    %675 = vector.extract_strided_slice %630 {offsets = [0, 16], sizes = [16, 8], strides = [1, 1]} : vector<16x96xf32> to vector<16x8xf32>
    %676 = arith.truncf %675 : vector<16x8xf32> to vector<16x8xbf16>
    %677 = vector.extract_strided_slice %630 {offsets = [0, 48], sizes = [16, 8], strides = [1, 1]} : vector<16x96xf32> to vector<16x8xf32>
    %678 = arith.truncf %677 : vector<16x8xf32> to vector<16x8xbf16>
    %679 = vector.extract_strided_slice %630 {offsets = [0, 80], sizes = [16, 8], strides = [1, 1]} : vector<16x96xf32> to vector<16x8xf32>
    %680 = arith.truncf %679 : vector<16x8xf32> to vector<16x8xbf16>
    %cst_234 = arith.constant dense<0.000000e+00> : vector<16x16xf32>
    %681 = tpu.matmul %676, %678, %cst_234 {dimension_numbers = #tpu.dot_dimension_numbers<[1], [1], [0], [0], [0, 0, 1, 0], [], []>} : vector<16x8xbf16>, vector<16x8xbf16>, vector<16x16xf32> -> vector<16x16xf32>
    %cst_235 = arith.constant 0.353553385 : f32
    %682 = vector.broadcast %cst_235 : f32 to vector<16x16xf32>
    %683 = arith.mulf %681, %682 : vector<16x16xf32>
    %684 = arith.addf %683, %4 : vector<16x16xf32>
    %cst_236 = arith.constant dense<0xFF800000> : vector<16xf32>
    %685 = vector.multi_reduction <maximumf>, %684, %cst_236 [1] : vector<16x16xf32> to vector<16xf32>
    %686 = vector.shape_cast %685 : vector<16xf32> to vector<16x1xf32>
    %687 = vector.broadcast %686 : vector<16x1xf32> to vector<16x16xf32>
    %688 = arith.subf %684, %687 : vector<16x16xf32>
    %689 = math.exp %688 : vector<16x16xf32>
    %cst_237 = arith.constant dense<0.000000e+00> : vector<16xf32>
    %690 = vector.multi_reduction <add>, %689, %cst_237 [1] : vector<16x16xf32> to vector<16xf32>
    %691 = vector.shape_cast %690 : vector<16xf32> to vector<16x1xf32>
    %692 = tpu.reciprocal %691 {approx = true} : vector<16x1xf32> -> vector<16x1xf32>
    %693 = vector.broadcast %692 : vector<16x1xf32> to vector<16x16xf32>
    %694 = arith.mulf %689, %693 : vector<16x16xf32>
    %695 = arith.truncf %694 : vector<16x16xf32> to vector<16x16xbf16>
    %cst_238 = arith.constant dense<0.000000e+00> : vector<16x8xf32>
    %696 = tpu.matmul %695, %680, %cst_238 {dimension_numbers = #tpu.dot_dimension_numbers<[1], [0], [0], [1], [0, 0, 1, 1], [], []>} : vector<16x16xbf16>, vector<16x8xbf16>, vector<16x8xf32> -> vector<16x8xf32>
    %697 = vector.extract_strided_slice %630 {offsets = [0, 24], sizes = [16, 8], strides = [1, 1]} : vector<16x96xf32> to vector<16x8xf32>
    %698 = arith.truncf %697 : vector<16x8xf32> to vector<16x8xbf16>
    %699 = vector.extract_strided_slice %630 {offsets = [0, 56], sizes = [16, 8], strides = [1, 1]} : vector<16x96xf32> to vector<16x8xf32>
    %700 = arith.truncf %699 : vector<16x8xf32> to vector<16x8xbf16>
    %701 = vector.extract_strided_slice %630 {offsets = [0, 88], sizes = [16, 8], strides = [1, 1]} : vector<16x96xf32> to vector<16x8xf32>
    %702 = arith.truncf %701 : vector<16x8xf32> to vector<16x8xbf16>
    %cst_239 = arith.constant dense<0.000000e+00> : vector<16x16xf32>
    %703 = tpu.matmul %698, %700, %cst_239 {dimension_numbers = #tpu.dot_dimension_numbers<[1], [1], [0], [0], [0, 0, 1, 0], [], []>} : vector<16x8xbf16>, vector<16x8xbf16>, vector<16x16xf32> -> vector<16x16xf32>
    %cst_240 = arith.constant 0.353553385 : f32
    %704 = vector.broadcast %cst_240 : f32 to vector<16x16xf32>
    %705 = arith.mulf %703, %704 : vector<16x16xf32>
    %706 = arith.addf %705, %4 : vector<16x16xf32>
    %cst_241 = arith.constant dense<0xFF800000> : vector<16xf32>
    %707 = vector.multi_reduction <maximumf>, %706, %cst_241 [1] : vector<16x16xf32> to vector<16xf32>
    %708 = vector.shape_cast %707 : vector<16xf32> to vector<16x1xf32>
    %709 = vector.broadcast %708 : vector<16x1xf32> to vector<16x16xf32>
    %710 = arith.subf %706, %709 : vector<16x16xf32>
    %711 = math.exp %710 : vector<16x16xf32>
    %cst_242 = arith.constant dense<0.000000e+00> : vector<16xf32>
    %712 = vector.multi_reduction <add>, %711, %cst_242 [1] : vector<16x16xf32> to vector<16xf32>
    %713 = vector.shape_cast %712 : vector<16xf32> to vector<16x1xf32>
    %714 = tpu.reciprocal %713 {approx = true} : vector<16x1xf32> -> vector<16x1xf32>
    %715 = vector.broadcast %714 : vector<16x1xf32> to vector<16x16xf32>
    %716 = arith.mulf %711, %715 : vector<16x16xf32>
    %717 = arith.truncf %716 : vector<16x16xf32> to vector<16x16xbf16>
    %cst_243 = arith.constant dense<0.000000e+00> : vector<16x8xf32>
    %718 = tpu.matmul %717, %702, %cst_243 {dimension_numbers = #tpu.dot_dimension_numbers<[1], [0], [0], [1], [0, 0, 1, 1], [], []>} : vector<16x16xbf16>, vector<16x8xbf16>, vector<16x8xf32> -> vector<16x8xf32>
    %719 = tpu.concatenate %652, %674, %696, %718 in 1 : vector<16x8xf32>, vector<16x8xf32>, vector<16x8xf32>, vector<16x8xf32> -> vector<16x32xf32>
    %720 = arith.truncf %719 : vector<16x32xf32> to vector<16x32xbf16>
    %c3_244 = arith.constant 3 : index
    %c0_245 = arith.constant 0 : index
    %c0_246 = arith.constant 0 : index
    %721 = vector.load %arg9[%c3_244, %c0_245, %c0_246] : memref<6x32x32xbf16, #tpu.memory_space<vmem>>, vector<1x32x32xbf16>
    %722 = vector.shape_cast %721 : vector<1x32x32xbf16> to vector<32x32xbf16>
    %cst_247 = arith.constant dense<0.000000e+00> : vector<16x32xf32>
    %723 = tpu.matmul %720, %722, %cst_247 {dimension_numbers = #tpu.dot_dimension_numbers<[1], [0], [0], [1], [0, 0, 1, 1], [], []>} : vector<16x32xbf16>, vector<32x32xbf16>, vector<16x32xf32> -> vector<16x32xf32>
    %c3_248 = arith.constant 3 : index
    %c0_249 = arith.constant 0 : index
    %c0_250 = arith.constant 0 : index
    %724 = vector.load %arg10[%c3_248, %c0_249, %c0_250] : memref<6x1x32xf32, #tpu.memory_space<vmem>>, vector<1x1x32xf32>
    %725 = vector.shape_cast %724 : vector<1x1x32xf32> to vector<1x32xf32>
    %726 = vector.broadcast %725 : vector<1x32xf32> to vector<16x32xf32>
    %727 = arith.addf %723, %726 : vector<16x32xf32>
    %728 = arith.addf %596, %727 : vector<16x32xf32>
    %729 = vector.extract_strided_slice %598 {offsets = [2, 0], sizes = [1, 32], strides = [1, 1]} : vector<4x32xf32> to vector<1x32xf32>
    %730 = vector.extract_strided_slice %598 {offsets = [3, 0], sizes = [1, 32], strides = [1, 1]} : vector<4x32xf32> to vector<1x32xf32>
    %cst_251 = arith.constant dense<0.000000e+00> : vector<16xf32>
    %731 = vector.multi_reduction <add>, %728, %cst_251 [1] : vector<16x32xf32> to vector<16xf32>
    %732 = vector.shape_cast %731 : vector<16xf32> to vector<16x1xf32>
    %cst_252 = arith.constant 3.200000e+01 : f32
    %733 = vector.broadcast %cst_252 : f32 to vector<16x1xf32>
    %734 = arith.divf %732, %733 : vector<16x1xf32>
    %735 = vector.broadcast %734 : vector<16x1xf32> to vector<16x32xf32>
    %736 = arith.subf %728, %735 : vector<16x32xf32>
    %737 = arith.mulf %736, %736 : vector<16x32xf32>
    %cst_253 = arith.constant dense<0.000000e+00> : vector<16xf32>
    %738 = vector.multi_reduction <add>, %737, %cst_253 [1] : vector<16x32xf32> to vector<16xf32>
    %739 = vector.shape_cast %738 : vector<16xf32> to vector<16x1xf32>
    %cst_254 = arith.constant 3.200000e+01 : f32
    %740 = vector.broadcast %cst_254 : f32 to vector<16x1xf32>
    %741 = arith.divf %739, %740 : vector<16x1xf32>
    %742 = vector.broadcast %734 : vector<16x1xf32> to vector<16x32xf32>
    %743 = arith.subf %728, %742 : vector<16x32xf32>
    %cst_255 = arith.constant 9.99999996E-13 : f32
    %744 = vector.broadcast %cst_255 : f32 to vector<16x1xf32>
    %745 = arith.addf %741, %744 : vector<16x1xf32>
    %746 = math.rsqrt %745 : vector<16x1xf32>
    %747 = vector.broadcast %746 : vector<16x1xf32> to vector<16x32xf32>
    %748 = arith.mulf %743, %747 : vector<16x32xf32>
    %749 = vector.broadcast %729 : vector<1x32xf32> to vector<16x32xf32>
    %750 = arith.mulf %748, %749 : vector<16x32xf32>
    %751 = vector.broadcast %730 : vector<1x32xf32> to vector<16x32xf32>
    %752 = arith.addf %750, %751 : vector<16x32xf32>
    %753 = arith.truncf %752 : vector<16x32xf32> to vector<16x32xbf16>
    %c3_256 = arith.constant 3 : index
    %c0_257 = arith.constant 0 : index
    %c0_258 = arith.constant 0 : index
    %754 = vector.load %arg12[%c3_256, %c0_257, %c0_258] : memref<6x32x64xbf16, #tpu.memory_space<vmem>>, vector<1x32x64xbf16>
    %755 = vector.shape_cast %754 : vector<1x32x64xbf16> to vector<32x64xbf16>
    %cst_259 = arith.constant dense<0.000000e+00> : vector<16x64xf32>
    %756 = tpu.matmul %753, %755, %cst_259 {dimension_numbers = #tpu.dot_dimension_numbers<[1], [0], [0], [1], [0, 0, 1, 1], [], []>} : vector<16x32xbf16>, vector<32x64xbf16>, vector<16x64xf32> -> vector<16x64xf32>
    %c3_260 = arith.constant 3 : index
    %c0_261 = arith.constant 0 : index
    %c0_262 = arith.constant 0 : index
    %757 = vector.load %arg13[%c3_260, %c0_261, %c0_262] : memref<6x1x64xf32, #tpu.memory_space<vmem>>, vector<1x1x64xf32>
    %758 = vector.shape_cast %757 : vector<1x1x64xf32> to vector<1x64xf32>
    %759 = vector.broadcast %758 : vector<1x64xf32> to vector<16x64xf32>
    %760 = arith.addf %756, %759 : vector<16x64xf32>
    %cst_263 = arith.constant 5.000000e-01 : f32
    %761 = vector.broadcast %cst_263 : f32 to vector<16x64xf32>
    %762 = arith.mulf %761, %760 : vector<16x64xf32>
    %cst_264 = arith.constant 4.471500e-02 : f32
    %763 = vector.broadcast %cst_264 : f32 to vector<16x64xf32>
    %764 = arith.mulf %763, %760 : vector<16x64xf32>
    %765 = arith.mulf %764, %760 : vector<16x64xf32>
    %766 = arith.mulf %765, %760 : vector<16x64xf32>
    %767 = arith.addf %760, %766 : vector<16x64xf32>
    %cst_265 = arith.constant 0.797884583 : f32
    %768 = vector.broadcast %cst_265 : f32 to vector<16x64xf32>
    %769 = arith.mulf %768, %767 : vector<16x64xf32>
    %770 = math.tanh %769 : vector<16x64xf32>
    %cst_266 = arith.constant 1.000000e+00 : f32
    %771 = vector.broadcast %cst_266 : f32 to vector<16x64xf32>
    %772 = arith.addf %771, %770 : vector<16x64xf32>
    %773 = arith.mulf %762, %772 : vector<16x64xf32>
    %774 = arith.truncf %773 : vector<16x64xf32> to vector<16x64xbf16>
    %c3_267 = arith.constant 3 : index
    %c0_268 = arith.constant 0 : index
    %c0_269 = arith.constant 0 : index
    %775 = vector.load %arg14[%c3_267, %c0_268, %c0_269] : memref<6x64x32xbf16, #tpu.memory_space<vmem>>, vector<1x64x32xbf16>
    %776 = vector.shape_cast %775 : vector<1x64x32xbf16> to vector<64x32xbf16>
    %cst_270 = arith.constant dense<0.000000e+00> : vector<16x32xf32>
    %777 = tpu.matmul %774, %776, %cst_270 {dimension_numbers = #tpu.dot_dimension_numbers<[1], [0], [0], [1], [0, 0, 1, 1], [], []>} : vector<16x64xbf16>, vector<64x32xbf16>, vector<16x32xf32> -> vector<16x32xf32>
    %c3_271 = arith.constant 3 : index
    %c0_272 = arith.constant 0 : index
    %c0_273 = arith.constant 0 : index
    %778 = vector.load %arg15[%c3_271, %c0_272, %c0_273] : memref<6x1x32xf32, #tpu.memory_space<vmem>>, vector<1x1x32xf32>
    %779 = vector.shape_cast %778 : vector<1x1x32xf32> to vector<1x32xf32>
    %780 = vector.broadcast %779 : vector<1x32xf32> to vector<16x32xf32>
    %781 = arith.addf %777, %780 : vector<16x32xf32>
    %782 = arith.addf %728, %781 : vector<16x32xf32>
    %783 = vector.extract_strided_slice %7 {offsets = [2, 0], sizes = [1, 32], strides = [1, 1]} : vector<4x32xf32> to vector<1x32xf32>
    %784 = vector.extract_strided_slice %7 {offsets = [3, 0], sizes = [1, 32], strides = [1, 1]} : vector<4x32xf32> to vector<1x32xf32>
    %cst_274 = arith.constant dense<0.000000e+00> : vector<16xf32>
    %785 = vector.multi_reduction <add>, %782, %cst_274 [1] : vector<16x32xf32> to vector<16xf32>
    %786 = vector.shape_cast %785 : vector<16xf32> to vector<16x1xf32>
    %cst_275 = arith.constant 3.200000e+01 : f32
    %787 = vector.broadcast %cst_275 : f32 to vector<16x1xf32>
    %788 = arith.divf %786, %787 : vector<16x1xf32>
    %789 = vector.broadcast %788 : vector<16x1xf32> to vector<16x32xf32>
    %790 = arith.subf %782, %789 : vector<16x32xf32>
    %791 = arith.mulf %790, %790 : vector<16x32xf32>
    %cst_276 = arith.constant dense<0.000000e+00> : vector<16xf32>
    %792 = vector.multi_reduction <add>, %791, %cst_276 [1] : vector<16x32xf32> to vector<16xf32>
    %793 = vector.shape_cast %792 : vector<16xf32> to vector<16x1xf32>
    %cst_277 = arith.constant 3.200000e+01 : f32
    %794 = vector.broadcast %cst_277 : f32 to vector<16x1xf32>
    %795 = arith.divf %793, %794 : vector<16x1xf32>
    %796 = vector.broadcast %788 : vector<16x1xf32> to vector<16x32xf32>
    %797 = arith.subf %782, %796 : vector<16x32xf32>
    %cst_278 = arith.constant 9.99999996E-13 : f32
    %798 = vector.broadcast %cst_278 : f32 to vector<16x1xf32>
    %799 = arith.addf %795, %798 : vector<16x1xf32>
    %800 = math.rsqrt %799 : vector<16x1xf32>
    %801 = vector.broadcast %800 : vector<16x1xf32> to vector<16x32xf32>
    %802 = arith.mulf %797, %801 : vector<16x32xf32>
    %803 = vector.broadcast %783 : vector<1x32xf32> to vector<16x32xf32>
    %804 = arith.mulf %802, %803 : vector<16x32xf32>
    %805 = vector.broadcast %784 : vector<1x32xf32> to vector<16x32xf32>
    %806 = arith.addf %804, %805 : vector<16x32xf32>
    %807 = vector.extract_strided_slice %404 {offsets = [0, 0], sizes = [8, 32], strides = [1, 1]} : vector<16x32xf32> to vector<8x32xf32>
    %808 = vector.extract_strided_slice %806 {offsets = [0, 0], sizes = [8, 32], strides = [1, 1]} : vector<16x32xf32> to vector<8x32xf32>
    %809 = vector.extract_strided_slice %404 {offsets = [8, 0], sizes = [8, 32], strides = [1, 1]} : vector<16x32xf32> to vector<8x32xf32>
    %810 = vector.extract_strided_slice %806 {offsets = [8, 0], sizes = [8, 32], strides = [1, 1]} : vector<16x32xf32> to vector<8x32xf32>
    %811 = tpu.concatenate %807, %808, %809, %810 in 0 : vector<8x32xf32>, vector<8x32xf32>, vector<8x32xf32>, vector<8x32xf32> -> vector<32x32xf32>
    %c4 = arith.constant 4 : index
    %c0_279 = arith.constant 0 : index
    %c0_280 = arith.constant 0 : index
    %812 = vector.load %arg11[%c4, %c0_279, %c0_280] : memref<6x4x32xf32, #tpu.memory_space<vmem>>, vector<1x4x32xf32>
    %813 = vector.shape_cast %812 : vector<1x4x32xf32> to vector<4x32xf32>
    %814 = arith.truncf %811 : vector<32x32xf32> to vector<32x32xbf16>
    %c4_281 = arith.constant 4 : index
    %c0_282 = arith.constant 0 : index
    %c0_283 = arith.constant 0 : index
    %815 = vector.load %arg7[%c4_281, %c0_282, %c0_283] : memref<6x32x96xbf16, #tpu.memory_space<vmem>>, vector<1x32x96xbf16>
    %816 = vector.shape_cast %815 : vector<1x32x96xbf16> to vector<32x96xbf16>
    %cst_284 = arith.constant dense<0.000000e+00> : vector<32x96xf32>
    %817 = tpu.matmul %814, %816, %cst_284 {dimension_numbers = #tpu.dot_dimension_numbers<[1], [0], [0], [1], [0, 0, 1, 1], [], []>} : vector<32x32xbf16>, vector<32x96xbf16>, vector<32x96xf32> -> vector<32x96xf32>
    %c4_285 = arith.constant 4 : index
    %c0_286 = arith.constant 0 : index
    %c0_287 = arith.constant 0 : index
    %818 = vector.load %arg8[%c4_285, %c0_286, %c0_287] : memref<6x1x96xf32, #tpu.memory_space<vmem>>, vector<1x1x96xf32>
    %819 = vector.shape_cast %818 : vector<1x1x96xf32> to vector<1x96xf32>
    %820 = vector.broadcast %819 : vector<1x96xf32> to vector<32x96xf32>
    %821 = arith.addf %817, %820 : vector<32x96xf32>
    %822 = vector.extract_strided_slice %821 {offsets = [0, 0], sizes = [32, 8], strides = [1, 1]} : vector<32x96xf32> to vector<32x8xf32>
    %823 = arith.truncf %822 : vector<32x8xf32> to vector<32x8xbf16>
    %824 = vector.extract_strided_slice %821 {offsets = [0, 32], sizes = [32, 8], strides = [1, 1]} : vector<32x96xf32> to vector<32x8xf32>
    %825 = arith.truncf %824 : vector<32x8xf32> to vector<32x8xbf16>
    %826 = vector.extract_strided_slice %821 {offsets = [0, 64], sizes = [32, 8], strides = [1, 1]} : vector<32x96xf32> to vector<32x8xf32>
    %827 = arith.truncf %826 : vector<32x8xf32> to vector<32x8xbf16>
    %cst_288 = arith.constant dense<0.000000e+00> : vector<32x32xf32>
    %828 = tpu.matmul %823, %825, %cst_288 {dimension_numbers = #tpu.dot_dimension_numbers<[1], [1], [0], [0], [0, 0, 1, 0], [], []>} : vector<32x8xbf16>, vector<32x8xbf16>, vector<32x32xf32> -> vector<32x32xf32>
    %cst_289 = arith.constant 0.353553385 : f32
    %829 = vector.broadcast %cst_289 : f32 to vector<32x32xf32>
    %830 = arith.mulf %828, %829 : vector<32x32xf32>
    %831 = arith.addf %830, %6 : vector<32x32xf32>
    %cst_290 = arith.constant dense<0xFF800000> : vector<32xf32>
    %832 = vector.multi_reduction <maximumf>, %831, %cst_290 [1] : vector<32x32xf32> to vector<32xf32>
    %833 = vector.shape_cast %832 : vector<32xf32> to vector<32x1xf32>
    %834 = vector.broadcast %833 : vector<32x1xf32> to vector<32x32xf32>
    %835 = arith.subf %831, %834 : vector<32x32xf32>
    %836 = math.exp %835 : vector<32x32xf32>
    %cst_291 = arith.constant dense<0.000000e+00> : vector<32xf32>
    %837 = vector.multi_reduction <add>, %836, %cst_291 [1] : vector<32x32xf32> to vector<32xf32>
    %838 = vector.shape_cast %837 : vector<32xf32> to vector<32x1xf32>
    %839 = tpu.reciprocal %838 {approx = true} : vector<32x1xf32> -> vector<32x1xf32>
    %840 = vector.broadcast %839 : vector<32x1xf32> to vector<32x32xf32>
    %841 = arith.mulf %836, %840 : vector<32x32xf32>
    %842 = arith.truncf %841 : vector<32x32xf32> to vector<32x32xbf16>
    %cst_292 = arith.constant dense<0.000000e+00> : vector<32x8xf32>
    %843 = tpu.matmul %842, %827, %cst_292 {dimension_numbers = #tpu.dot_dimension_numbers<[1], [0], [0], [1], [0, 0, 1, 1], [], []>} : vector<32x32xbf16>, vector<32x8xbf16>, vector<32x8xf32> -> vector<32x8xf32>
    %844 = vector.extract_strided_slice %821 {offsets = [0, 8], sizes = [32, 8], strides = [1, 1]} : vector<32x96xf32> to vector<32x8xf32>
    %845 = arith.truncf %844 : vector<32x8xf32> to vector<32x8xbf16>
    %846 = vector.extract_strided_slice %821 {offsets = [0, 40], sizes = [32, 8], strides = [1, 1]} : vector<32x96xf32> to vector<32x8xf32>
    %847 = arith.truncf %846 : vector<32x8xf32> to vector<32x8xbf16>
    %848 = vector.extract_strided_slice %821 {offsets = [0, 72], sizes = [32, 8], strides = [1, 1]} : vector<32x96xf32> to vector<32x8xf32>
    %849 = arith.truncf %848 : vector<32x8xf32> to vector<32x8xbf16>
    %cst_293 = arith.constant dense<0.000000e+00> : vector<32x32xf32>
    %850 = tpu.matmul %845, %847, %cst_293 {dimension_numbers = #tpu.dot_dimension_numbers<[1], [1], [0], [0], [0, 0, 1, 0], [], []>} : vector<32x8xbf16>, vector<32x8xbf16>, vector<32x32xf32> -> vector<32x32xf32>
    %cst_294 = arith.constant 0.353553385 : f32
    %851 = vector.broadcast %cst_294 : f32 to vector<32x32xf32>
    %852 = arith.mulf %850, %851 : vector<32x32xf32>
    %853 = arith.addf %852, %6 : vector<32x32xf32>
    %cst_295 = arith.constant dense<0xFF800000> : vector<32xf32>
    %854 = vector.multi_reduction <maximumf>, %853, %cst_295 [1] : vector<32x32xf32> to vector<32xf32>
    %855 = vector.shape_cast %854 : vector<32xf32> to vector<32x1xf32>
    %856 = vector.broadcast %855 : vector<32x1xf32> to vector<32x32xf32>
    %857 = arith.subf %853, %856 : vector<32x32xf32>
    %858 = math.exp %857 : vector<32x32xf32>
    %cst_296 = arith.constant dense<0.000000e+00> : vector<32xf32>
    %859 = vector.multi_reduction <add>, %858, %cst_296 [1] : vector<32x32xf32> to vector<32xf32>
    %860 = vector.shape_cast %859 : vector<32xf32> to vector<32x1xf32>
    %861 = tpu.reciprocal %860 {approx = true} : vector<32x1xf32> -> vector<32x1xf32>
    %862 = vector.broadcast %861 : vector<32x1xf32> to vector<32x32xf32>
    %863 = arith.mulf %858, %862 : vector<32x32xf32>
    %864 = arith.truncf %863 : vector<32x32xf32> to vector<32x32xbf16>
    %cst_297 = arith.constant dense<0.000000e+00> : vector<32x8xf32>
    %865 = tpu.matmul %864, %849, %cst_297 {dimension_numbers = #tpu.dot_dimension_numbers<[1], [0], [0], [1], [0, 0, 1, 1], [], []>} : vector<32x32xbf16>, vector<32x8xbf16>, vector<32x8xf32> -> vector<32x8xf32>
    %866 = vector.extract_strided_slice %821 {offsets = [0, 16], sizes = [32, 8], strides = [1, 1]} : vector<32x96xf32> to vector<32x8xf32>
    %867 = arith.truncf %866 : vector<32x8xf32> to vector<32x8xbf16>
    %868 = vector.extract_strided_slice %821 {offsets = [0, 48], sizes = [32, 8], strides = [1, 1]} : vector<32x96xf32> to vector<32x8xf32>
    %869 = arith.truncf %868 : vector<32x8xf32> to vector<32x8xbf16>
    %870 = vector.extract_strided_slice %821 {offsets = [0, 80], sizes = [32, 8], strides = [1, 1]} : vector<32x96xf32> to vector<32x8xf32>
    %871 = arith.truncf %870 : vector<32x8xf32> to vector<32x8xbf16>
    %cst_298 = arith.constant dense<0.000000e+00> : vector<32x32xf32>
    %872 = tpu.matmul %867, %869, %cst_298 {dimension_numbers = #tpu.dot_dimension_numbers<[1], [1], [0], [0], [0, 0, 1, 0], [], []>} : vector<32x8xbf16>, vector<32x8xbf16>, vector<32x32xf32> -> vector<32x32xf32>
    %cst_299 = arith.constant 0.353553385 : f32
    %873 = vector.broadcast %cst_299 : f32 to vector<32x32xf32>
    %874 = arith.mulf %872, %873 : vector<32x32xf32>
    %875 = arith.addf %874, %6 : vector<32x32xf32>
    %cst_300 = arith.constant dense<0xFF800000> : vector<32xf32>
    %876 = vector.multi_reduction <maximumf>, %875, %cst_300 [1] : vector<32x32xf32> to vector<32xf32>
    %877 = vector.shape_cast %876 : vector<32xf32> to vector<32x1xf32>
    %878 = vector.broadcast %877 : vector<32x1xf32> to vector<32x32xf32>
    %879 = arith.subf %875, %878 : vector<32x32xf32>
    %880 = math.exp %879 : vector<32x32xf32>
    %cst_301 = arith.constant dense<0.000000e+00> : vector<32xf32>
    %881 = vector.multi_reduction <add>, %880, %cst_301 [1] : vector<32x32xf32> to vector<32xf32>
    %882 = vector.shape_cast %881 : vector<32xf32> to vector<32x1xf32>
    %883 = tpu.reciprocal %882 {approx = true} : vector<32x1xf32> -> vector<32x1xf32>
    %884 = vector.broadcast %883 : vector<32x1xf32> to vector<32x32xf32>
    %885 = arith.mulf %880, %884 : vector<32x32xf32>
    %886 = arith.truncf %885 : vector<32x32xf32> to vector<32x32xbf16>
    %cst_302 = arith.constant dense<0.000000e+00> : vector<32x8xf32>
    %887 = tpu.matmul %886, %871, %cst_302 {dimension_numbers = #tpu.dot_dimension_numbers<[1], [0], [0], [1], [0, 0, 1, 1], [], []>} : vector<32x32xbf16>, vector<32x8xbf16>, vector<32x8xf32> -> vector<32x8xf32>
    %888 = vector.extract_strided_slice %821 {offsets = [0, 24], sizes = [32, 8], strides = [1, 1]} : vector<32x96xf32> to vector<32x8xf32>
    %889 = arith.truncf %888 : vector<32x8xf32> to vector<32x8xbf16>
    %890 = vector.extract_strided_slice %821 {offsets = [0, 56], sizes = [32, 8], strides = [1, 1]} : vector<32x96xf32> to vector<32x8xf32>
    %891 = arith.truncf %890 : vector<32x8xf32> to vector<32x8xbf16>
    %892 = vector.extract_strided_slice %821 {offsets = [0, 88], sizes = [32, 8], strides = [1, 1]} : vector<32x96xf32> to vector<32x8xf32>
    %893 = arith.truncf %892 : vector<32x8xf32> to vector<32x8xbf16>
    %cst_303 = arith.constant dense<0.000000e+00> : vector<32x32xf32>
    %894 = tpu.matmul %889, %891, %cst_303 {dimension_numbers = #tpu.dot_dimension_numbers<[1], [1], [0], [0], [0, 0, 1, 0], [], []>} : vector<32x8xbf16>, vector<32x8xbf16>, vector<32x32xf32> -> vector<32x32xf32>
    %cst_304 = arith.constant 0.353553385 : f32
    %895 = vector.broadcast %cst_304 : f32 to vector<32x32xf32>
    %896 = arith.mulf %894, %895 : vector<32x32xf32>
    %897 = arith.addf %896, %6 : vector<32x32xf32>
    %cst_305 = arith.constant dense<0xFF800000> : vector<32xf32>
    %898 = vector.multi_reduction <maximumf>, %897, %cst_305 [1] : vector<32x32xf32> to vector<32xf32>
    %899 = vector.shape_cast %898 : vector<32xf32> to vector<32x1xf32>
    %900 = vector.broadcast %899 : vector<32x1xf32> to vector<32x32xf32>
    %901 = arith.subf %897, %900 : vector<32x32xf32>
    %902 = math.exp %901 : vector<32x32xf32>
    %cst_306 = arith.constant dense<0.000000e+00> : vector<32xf32>
    %903 = vector.multi_reduction <add>, %902, %cst_306 [1] : vector<32x32xf32> to vector<32xf32>
    %904 = vector.shape_cast %903 : vector<32xf32> to vector<32x1xf32>
    %905 = tpu.reciprocal %904 {approx = true} : vector<32x1xf32> -> vector<32x1xf32>
    %906 = vector.broadcast %905 : vector<32x1xf32> to vector<32x32xf32>
    %907 = arith.mulf %902, %906 : vector<32x32xf32>
    %908 = arith.truncf %907 : vector<32x32xf32> to vector<32x32xbf16>
    %cst_307 = arith.constant dense<0.000000e+00> : vector<32x8xf32>
    %909 = tpu.matmul %908, %893, %cst_307 {dimension_numbers = #tpu.dot_dimension_numbers<[1], [0], [0], [1], [0, 0, 1, 1], [], []>} : vector<32x32xbf16>, vector<32x8xbf16>, vector<32x8xf32> -> vector<32x8xf32>
    %910 = tpu.concatenate %843, %865, %887, %909 in 1 : vector<32x8xf32>, vector<32x8xf32>, vector<32x8xf32>, vector<32x8xf32> -> vector<32x32xf32>
    %911 = arith.truncf %910 : vector<32x32xf32> to vector<32x32xbf16>
    %c4_308 = arith.constant 4 : index
    %c0_309 = arith.constant 0 : index
    %c0_310 = arith.constant 0 : index
    %912 = vector.load %arg9[%c4_308, %c0_309, %c0_310] : memref<6x32x32xbf16, #tpu.memory_space<vmem>>, vector<1x32x32xbf16>
    %913 = vector.shape_cast %912 : vector<1x32x32xbf16> to vector<32x32xbf16>
    %cst_311 = arith.constant dense<0.000000e+00> : vector<32x32xf32>
    %914 = tpu.matmul %911, %913, %cst_311 {dimension_numbers = #tpu.dot_dimension_numbers<[1], [0], [0], [1], [0, 0, 1, 1], [], []>} : vector<32x32xbf16>, vector<32x32xbf16>, vector<32x32xf32> -> vector<32x32xf32>
    %c4_312 = arith.constant 4 : index
    %c0_313 = arith.constant 0 : index
    %c0_314 = arith.constant 0 : index
    %915 = vector.load %arg10[%c4_312, %c0_313, %c0_314] : memref<6x1x32xf32, #tpu.memory_space<vmem>>, vector<1x1x32xf32>
    %916 = vector.shape_cast %915 : vector<1x1x32xf32> to vector<1x32xf32>
    %917 = vector.broadcast %916 : vector<1x32xf32> to vector<32x32xf32>
    %918 = arith.addf %914, %917 : vector<32x32xf32>
    %919 = arith.addf %811, %918 : vector<32x32xf32>
    %920 = vector.extract_strided_slice %813 {offsets = [0, 0], sizes = [1, 32], strides = [1, 1]} : vector<4x32xf32> to vector<1x32xf32>
    %921 = vector.extract_strided_slice %813 {offsets = [1, 0], sizes = [1, 32], strides = [1, 1]} : vector<4x32xf32> to vector<1x32xf32>
    %cst_315 = arith.constant dense<0.000000e+00> : vector<32xf32>
    %922 = vector.multi_reduction <add>, %919, %cst_315 [1] : vector<32x32xf32> to vector<32xf32>
    %923 = vector.shape_cast %922 : vector<32xf32> to vector<32x1xf32>
    %cst_316 = arith.constant 3.200000e+01 : f32
    %924 = vector.broadcast %cst_316 : f32 to vector<32x1xf32>
    %925 = arith.divf %923, %924 : vector<32x1xf32>
    %926 = vector.broadcast %925 : vector<32x1xf32> to vector<32x32xf32>
    %927 = arith.subf %919, %926 : vector<32x32xf32>
    %928 = arith.mulf %927, %927 : vector<32x32xf32>
    %cst_317 = arith.constant dense<0.000000e+00> : vector<32xf32>
    %929 = vector.multi_reduction <add>, %928, %cst_317 [1] : vector<32x32xf32> to vector<32xf32>
    %930 = vector.shape_cast %929 : vector<32xf32> to vector<32x1xf32>
    %cst_318 = arith.constant 3.200000e+01 : f32
    %931 = vector.broadcast %cst_318 : f32 to vector<32x1xf32>
    %932 = arith.divf %930, %931 : vector<32x1xf32>
    %933 = vector.broadcast %925 : vector<32x1xf32> to vector<32x32xf32>
    %934 = arith.subf %919, %933 : vector<32x32xf32>
    %cst_319 = arith.constant 9.99999996E-13 : f32
    %935 = vector.broadcast %cst_319 : f32 to vector<32x1xf32>
    %936 = arith.addf %932, %935 : vector<32x1xf32>
    %937 = math.rsqrt %936 : vector<32x1xf32>
    %938 = vector.broadcast %937 : vector<32x1xf32> to vector<32x32xf32>
    %939 = arith.mulf %934, %938 : vector<32x32xf32>
    %940 = vector.broadcast %920 : vector<1x32xf32> to vector<32x32xf32>
    %941 = arith.mulf %939, %940 : vector<32x32xf32>
    %942 = vector.broadcast %921 : vector<1x32xf32> to vector<32x32xf32>
    %943 = arith.addf %941, %942 : vector<32x32xf32>
    %944 = arith.truncf %943 : vector<32x32xf32> to vector<32x32xbf16>
    %c4_320 = arith.constant 4 : index
    %c0_321 = arith.constant 0 : index
    %c0_322 = arith.constant 0 : index
    %945 = vector.load %arg12[%c4_320, %c0_321, %c0_322] : memref<6x32x64xbf16, #tpu.memory_space<vmem>>, vector<1x32x64xbf16>
    %946 = vector.shape_cast %945 : vector<1x32x64xbf16> to vector<32x64xbf16>
    %cst_323 = arith.constant dense<0.000000e+00> : vector<32x64xf32>
    %947 = tpu.matmul %944, %946, %cst_323 {dimension_numbers = #tpu.dot_dimension_numbers<[1], [0], [0], [1], [0, 0, 1, 1], [], []>} : vector<32x32xbf16>, vector<32x64xbf16>, vector<32x64xf32> -> vector<32x64xf32>
    %c4_324 = arith.constant 4 : index
    %c0_325 = arith.constant 0 : index
    %c0_326 = arith.constant 0 : index
    %948 = vector.load %arg13[%c4_324, %c0_325, %c0_326] : memref<6x1x64xf32, #tpu.memory_space<vmem>>, vector<1x1x64xf32>
    %949 = vector.shape_cast %948 : vector<1x1x64xf32> to vector<1x64xf32>
    %950 = vector.broadcast %949 : vector<1x64xf32> to vector<32x64xf32>
    %951 = arith.addf %947, %950 : vector<32x64xf32>
    %cst_327 = arith.constant 5.000000e-01 : f32
    %952 = vector.broadcast %cst_327 : f32 to vector<32x64xf32>
    %953 = arith.mulf %952, %951 : vector<32x64xf32>
    %cst_328 = arith.constant 4.471500e-02 : f32
    %954 = vector.broadcast %cst_328 : f32 to vector<32x64xf32>
    %955 = arith.mulf %954, %951 : vector<32x64xf32>
    %956 = arith.mulf %955, %951 : vector<32x64xf32>
    %957 = arith.mulf %956, %951 : vector<32x64xf32>
    %958 = arith.addf %951, %957 : vector<32x64xf32>
    %cst_329 = arith.constant 0.797884583 : f32
    %959 = vector.broadcast %cst_329 : f32 to vector<32x64xf32>
    %960 = arith.mulf %959, %958 : vector<32x64xf32>
    %961 = math.tanh %960 : vector<32x64xf32>
    %cst_330 = arith.constant 1.000000e+00 : f32
    %962 = vector.broadcast %cst_330 : f32 to vector<32x64xf32>
    %963 = arith.addf %962, %961 : vector<32x64xf32>
    %964 = arith.mulf %953, %963 : vector<32x64xf32>
    %965 = arith.truncf %964 : vector<32x64xf32> to vector<32x64xbf16>
    %c4_331 = arith.constant 4 : index
    %c0_332 = arith.constant 0 : index
    %c0_333 = arith.constant 0 : index
    %966 = vector.load %arg14[%c4_331, %c0_332, %c0_333] : memref<6x64x32xbf16, #tpu.memory_space<vmem>>, vector<1x64x32xbf16>
    %967 = vector.shape_cast %966 : vector<1x64x32xbf16> to vector<64x32xbf16>
    %cst_334 = arith.constant dense<0.000000e+00> : vector<32x32xf32>
    %968 = tpu.matmul %965, %967, %cst_334 {dimension_numbers = #tpu.dot_dimension_numbers<[1], [0], [0], [1], [0, 0, 1, 1], [], []>} : vector<32x64xbf16>, vector<64x32xbf16>, vector<32x32xf32> -> vector<32x32xf32>
    %c4_335 = arith.constant 4 : index
    %c0_336 = arith.constant 0 : index
    %c0_337 = arith.constant 0 : index
    %969 = vector.load %arg15[%c4_335, %c0_336, %c0_337] : memref<6x1x32xf32, #tpu.memory_space<vmem>>, vector<1x1x32xf32>
    %970 = vector.shape_cast %969 : vector<1x1x32xf32> to vector<1x32xf32>
    %971 = vector.broadcast %970 : vector<1x32xf32> to vector<32x32xf32>
    %972 = arith.addf %968, %971 : vector<32x32xf32>
    %973 = arith.addf %943, %972 : vector<32x32xf32>
    %974 = vector.extract_strided_slice %813 {offsets = [2, 0], sizes = [1, 32], strides = [1, 1]} : vector<4x32xf32> to vector<1x32xf32>
    %975 = vector.extract_strided_slice %813 {offsets = [3, 0], sizes = [1, 32], strides = [1, 1]} : vector<4x32xf32> to vector<1x32xf32>
    %cst_338 = arith.constant dense<0.000000e+00> : vector<32xf32>
    %976 = vector.multi_reduction <add>, %973, %cst_338 [1] : vector<32x32xf32> to vector<32xf32>
    %977 = vector.shape_cast %976 : vector<32xf32> to vector<32x1xf32>
    %cst_339 = arith.constant 3.200000e+01 : f32
    %978 = vector.broadcast %cst_339 : f32 to vector<32x1xf32>
    %979 = arith.divf %977, %978 : vector<32x1xf32>
    %980 = vector.broadcast %979 : vector<32x1xf32> to vector<32x32xf32>
    %981 = arith.subf %973, %980 : vector<32x32xf32>
    %982 = arith.mulf %981, %981 : vector<32x32xf32>
    %cst_340 = arith.constant dense<0.000000e+00> : vector<32xf32>
    %983 = vector.multi_reduction <add>, %982, %cst_340 [1] : vector<32x32xf32> to vector<32xf32>
    %984 = vector.shape_cast %983 : vector<32xf32> to vector<32x1xf32>
    %cst_341 = arith.constant 3.200000e+01 : f32
    %985 = vector.broadcast %cst_341 : f32 to vector<32x1xf32>
    %986 = arith.divf %984, %985 : vector<32x1xf32>
    %987 = vector.broadcast %979 : vector<32x1xf32> to vector<32x32xf32>
    %988 = arith.subf %973, %987 : vector<32x32xf32>
    %cst_342 = arith.constant 9.99999996E-13 : f32
    %989 = vector.broadcast %cst_342 : f32 to vector<32x1xf32>
    %990 = arith.addf %986, %989 : vector<32x1xf32>
    %991 = math.rsqrt %990 : vector<32x1xf32>
    %992 = vector.broadcast %991 : vector<32x1xf32> to vector<32x32xf32>
    %993 = arith.mulf %988, %992 : vector<32x32xf32>
    %994 = vector.broadcast %974 : vector<1x32xf32> to vector<32x32xf32>
    %995 = arith.mulf %993, %994 : vector<32x32xf32>
    %996 = vector.broadcast %975 : vector<1x32xf32> to vector<32x32xf32>
    %997 = arith.addf %995, %996 : vector<32x32xf32>
    %c5 = arith.constant 5 : index
    %c0_343 = arith.constant 0 : index
    %c0_344 = arith.constant 0 : index
    %998 = vector.load %arg11[%c5, %c0_343, %c0_344] : memref<6x4x32xf32, #tpu.memory_space<vmem>>, vector<1x4x32xf32>
    %999 = vector.shape_cast %998 : vector<1x4x32xf32> to vector<4x32xf32>
    %1000 = arith.truncf %997 : vector<32x32xf32> to vector<32x32xbf16>
    %c5_345 = arith.constant 5 : index
    %c0_346 = arith.constant 0 : index
    %c0_347 = arith.constant 0 : index
    %1001 = vector.load %arg7[%c5_345, %c0_346, %c0_347] : memref<6x32x96xbf16, #tpu.memory_space<vmem>>, vector<1x32x96xbf16>
    %1002 = vector.shape_cast %1001 : vector<1x32x96xbf16> to vector<32x96xbf16>
    %cst_348 = arith.constant dense<0.000000e+00> : vector<32x96xf32>
    %1003 = tpu.matmul %1000, %1002, %cst_348 {dimension_numbers = #tpu.dot_dimension_numbers<[1], [0], [0], [1], [0, 0, 1, 1], [], []>} : vector<32x32xbf16>, vector<32x96xbf16>, vector<32x96xf32> -> vector<32x96xf32>
    %c5_349 = arith.constant 5 : index
    %c0_350 = arith.constant 0 : index
    %c0_351 = arith.constant 0 : index
    %1004 = vector.load %arg8[%c5_349, %c0_350, %c0_351] : memref<6x1x96xf32, #tpu.memory_space<vmem>>, vector<1x1x96xf32>
    %1005 = vector.shape_cast %1004 : vector<1x1x96xf32> to vector<1x96xf32>
    %1006 = vector.broadcast %1005 : vector<1x96xf32> to vector<32x96xf32>
    %1007 = arith.addf %1003, %1006 : vector<32x96xf32>
    %1008 = vector.extract_strided_slice %1007 {offsets = [0, 0], sizes = [32, 8], strides = [1, 1]} : vector<32x96xf32> to vector<32x8xf32>
    %1009 = arith.truncf %1008 : vector<32x8xf32> to vector<32x8xbf16>
    %1010 = vector.extract_strided_slice %1007 {offsets = [0, 32], sizes = [32, 8], strides = [1, 1]} : vector<32x96xf32> to vector<32x8xf32>
    %1011 = arith.truncf %1010 : vector<32x8xf32> to vector<32x8xbf16>
    %1012 = vector.extract_strided_slice %1007 {offsets = [0, 64], sizes = [32, 8], strides = [1, 1]} : vector<32x96xf32> to vector<32x8xf32>
    %1013 = arith.truncf %1012 : vector<32x8xf32> to vector<32x8xbf16>
    %cst_352 = arith.constant dense<0.000000e+00> : vector<32x32xf32>
    %1014 = tpu.matmul %1009, %1011, %cst_352 {dimension_numbers = #tpu.dot_dimension_numbers<[1], [1], [0], [0], [0, 0, 1, 0], [], []>} : vector<32x8xbf16>, vector<32x8xbf16>, vector<32x32xf32> -> vector<32x32xf32>
    %cst_353 = arith.constant 0.353553385 : f32
    %1015 = vector.broadcast %cst_353 : f32 to vector<32x32xf32>
    %1016 = arith.mulf %1014, %1015 : vector<32x32xf32>
    %1017 = arith.addf %1016, %6 : vector<32x32xf32>
    %cst_354 = arith.constant dense<0xFF800000> : vector<32xf32>
    %1018 = vector.multi_reduction <maximumf>, %1017, %cst_354 [1] : vector<32x32xf32> to vector<32xf32>
    %1019 = vector.shape_cast %1018 : vector<32xf32> to vector<32x1xf32>
    %1020 = vector.broadcast %1019 : vector<32x1xf32> to vector<32x32xf32>
    %1021 = arith.subf %1017, %1020 : vector<32x32xf32>
    %1022 = math.exp %1021 : vector<32x32xf32>
    %cst_355 = arith.constant dense<0.000000e+00> : vector<32xf32>
    %1023 = vector.multi_reduction <add>, %1022, %cst_355 [1] : vector<32x32xf32> to vector<32xf32>
    %1024 = vector.shape_cast %1023 : vector<32xf32> to vector<32x1xf32>
    %1025 = tpu.reciprocal %1024 {approx = true} : vector<32x1xf32> -> vector<32x1xf32>
    %1026 = vector.broadcast %1025 : vector<32x1xf32> to vector<32x32xf32>
    %1027 = arith.mulf %1022, %1026 : vector<32x32xf32>
    %1028 = arith.truncf %1027 : vector<32x32xf32> to vector<32x32xbf16>
    %cst_356 = arith.constant dense<0.000000e+00> : vector<32x8xf32>
    %1029 = tpu.matmul %1028, %1013, %cst_356 {dimension_numbers = #tpu.dot_dimension_numbers<[1], [0], [0], [1], [0, 0, 1, 1], [], []>} : vector<32x32xbf16>, vector<32x8xbf16>, vector<32x8xf32> -> vector<32x8xf32>
    %1030 = vector.extract_strided_slice %1007 {offsets = [0, 8], sizes = [32, 8], strides = [1, 1]} : vector<32x96xf32> to vector<32x8xf32>
    %1031 = arith.truncf %1030 : vector<32x8xf32> to vector<32x8xbf16>
    %1032 = vector.extract_strided_slice %1007 {offsets = [0, 40], sizes = [32, 8], strides = [1, 1]} : vector<32x96xf32> to vector<32x8xf32>
    %1033 = arith.truncf %1032 : vector<32x8xf32> to vector<32x8xbf16>
    %1034 = vector.extract_strided_slice %1007 {offsets = [0, 72], sizes = [32, 8], strides = [1, 1]} : vector<32x96xf32> to vector<32x8xf32>
    %1035 = arith.truncf %1034 : vector<32x8xf32> to vector<32x8xbf16>
    %cst_357 = arith.constant dense<0.000000e+00> : vector<32x32xf32>
    %1036 = tpu.matmul %1031, %1033, %cst_357 {dimension_numbers = #tpu.dot_dimension_numbers<[1], [1], [0], [0], [0, 0, 1, 0], [], []>} : vector<32x8xbf16>, vector<32x8xbf16>, vector<32x32xf32> -> vector<32x32xf32>
    %cst_358 = arith.constant 0.353553385 : f32
    %1037 = vector.broadcast %cst_358 : f32 to vector<32x32xf32>
    %1038 = arith.mulf %1036, %1037 : vector<32x32xf32>
    %1039 = arith.addf %1038, %6 : vector<32x32xf32>
    %cst_359 = arith.constant dense<0xFF800000> : vector<32xf32>
    %1040 = vector.multi_reduction <maximumf>, %1039, %cst_359 [1] : vector<32x32xf32> to vector<32xf32>
    %1041 = vector.shape_cast %1040 : vector<32xf32> to vector<32x1xf32>
    %1042 = vector.broadcast %1041 : vector<32x1xf32> to vector<32x32xf32>
    %1043 = arith.subf %1039, %1042 : vector<32x32xf32>
    %1044 = math.exp %1043 : vector<32x32xf32>
    %cst_360 = arith.constant dense<0.000000e+00> : vector<32xf32>
    %1045 = vector.multi_reduction <add>, %1044, %cst_360 [1] : vector<32x32xf32> to vector<32xf32>
    %1046 = vector.shape_cast %1045 : vector<32xf32> to vector<32x1xf32>
    %1047 = tpu.reciprocal %1046 {approx = true} : vector<32x1xf32> -> vector<32x1xf32>
    %1048 = vector.broadcast %1047 : vector<32x1xf32> to vector<32x32xf32>
    %1049 = arith.mulf %1044, %1048 : vector<32x32xf32>
    %1050 = arith.truncf %1049 : vector<32x32xf32> to vector<32x32xbf16>
    %cst_361 = arith.constant dense<0.000000e+00> : vector<32x8xf32>
    %1051 = tpu.matmul %1050, %1035, %cst_361 {dimension_numbers = #tpu.dot_dimension_numbers<[1], [0], [0], [1], [0, 0, 1, 1], [], []>} : vector<32x32xbf16>, vector<32x8xbf16>, vector<32x8xf32> -> vector<32x8xf32>
    %1052 = vector.extract_strided_slice %1007 {offsets = [0, 16], sizes = [32, 8], strides = [1, 1]} : vector<32x96xf32> to vector<32x8xf32>
    %1053 = arith.truncf %1052 : vector<32x8xf32> to vector<32x8xbf16>
    %1054 = vector.extract_strided_slice %1007 {offsets = [0, 48], sizes = [32, 8], strides = [1, 1]} : vector<32x96xf32> to vector<32x8xf32>
    %1055 = arith.truncf %1054 : vector<32x8xf32> to vector<32x8xbf16>
    %1056 = vector.extract_strided_slice %1007 {offsets = [0, 80], sizes = [32, 8], strides = [1, 1]} : vector<32x96xf32> to vector<32x8xf32>
    %1057 = arith.truncf %1056 : vector<32x8xf32> to vector<32x8xbf16>
    %cst_362 = arith.constant dense<0.000000e+00> : vector<32x32xf32>
    %1058 = tpu.matmul %1053, %1055, %cst_362 {dimension_numbers = #tpu.dot_dimension_numbers<[1], [1], [0], [0], [0, 0, 1, 0], [], []>} : vector<32x8xbf16>, vector<32x8xbf16>, vector<32x32xf32> -> vector<32x32xf32>
    %cst_363 = arith.constant 0.353553385 : f32
    %1059 = vector.broadcast %cst_363 : f32 to vector<32x32xf32>
    %1060 = arith.mulf %1058, %1059 : vector<32x32xf32>
    %1061 = arith.addf %1060, %6 : vector<32x32xf32>
    %cst_364 = arith.constant dense<0xFF800000> : vector<32xf32>
    %1062 = vector.multi_reduction <maximumf>, %1061, %cst_364 [1] : vector<32x32xf32> to vector<32xf32>
    %1063 = vector.shape_cast %1062 : vector<32xf32> to vector<32x1xf32>
    %1064 = vector.broadcast %1063 : vector<32x1xf32> to vector<32x32xf32>
    %1065 = arith.subf %1061, %1064 : vector<32x32xf32>
    %1066 = math.exp %1065 : vector<32x32xf32>
    %cst_365 = arith.constant dense<0.000000e+00> : vector<32xf32>
    %1067 = vector.multi_reduction <add>, %1066, %cst_365 [1] : vector<32x32xf32> to vector<32xf32>
    %1068 = vector.shape_cast %1067 : vector<32xf32> to vector<32x1xf32>
    %1069 = tpu.reciprocal %1068 {approx = true} : vector<32x1xf32> -> vector<32x1xf32>
    %1070 = vector.broadcast %1069 : vector<32x1xf32> to vector<32x32xf32>
    %1071 = arith.mulf %1066, %1070 : vector<32x32xf32>
    %1072 = arith.truncf %1071 : vector<32x32xf32> to vector<32x32xbf16>
    %cst_366 = arith.constant dense<0.000000e+00> : vector<32x8xf32>
    %1073 = tpu.matmul %1072, %1057, %cst_366 {dimension_numbers = #tpu.dot_dimension_numbers<[1], [0], [0], [1], [0, 0, 1, 1], [], []>} : vector<32x32xbf16>, vector<32x8xbf16>, vector<32x8xf32> -> vector<32x8xf32>
    %1074 = vector.extract_strided_slice %1007 {offsets = [0, 24], sizes = [32, 8], strides = [1, 1]} : vector<32x96xf32> to vector<32x8xf32>
    %1075 = arith.truncf %1074 : vector<32x8xf32> to vector<32x8xbf16>
    %1076 = vector.extract_strided_slice %1007 {offsets = [0, 56], sizes = [32, 8], strides = [1, 1]} : vector<32x96xf32> to vector<32x8xf32>
    %1077 = arith.truncf %1076 : vector<32x8xf32> to vector<32x8xbf16>
    %1078 = vector.extract_strided_slice %1007 {offsets = [0, 88], sizes = [32, 8], strides = [1, 1]} : vector<32x96xf32> to vector<32x8xf32>
    %1079 = arith.truncf %1078 : vector<32x8xf32> to vector<32x8xbf16>
    %cst_367 = arith.constant dense<0.000000e+00> : vector<32x32xf32>
    %1080 = tpu.matmul %1075, %1077, %cst_367 {dimension_numbers = #tpu.dot_dimension_numbers<[1], [1], [0], [0], [0, 0, 1, 0], [], []>} : vector<32x8xbf16>, vector<32x8xbf16>, vector<32x32xf32> -> vector<32x32xf32>
    %cst_368 = arith.constant 0.353553385 : f32
    %1081 = vector.broadcast %cst_368 : f32 to vector<32x32xf32>
    %1082 = arith.mulf %1080, %1081 : vector<32x32xf32>
    %1083 = arith.addf %1082, %6 : vector<32x32xf32>
    %cst_369 = arith.constant dense<0xFF800000> : vector<32xf32>
    %1084 = vector.multi_reduction <maximumf>, %1083, %cst_369 [1] : vector<32x32xf32> to vector<32xf32>
    %1085 = vector.shape_cast %1084 : vector<32xf32> to vector<32x1xf32>
    %1086 = vector.broadcast %1085 : vector<32x1xf32> to vector<32x32xf32>
    %1087 = arith.subf %1083, %1086 : vector<32x32xf32>
    %1088 = math.exp %1087 : vector<32x32xf32>
    %cst_370 = arith.constant dense<0.000000e+00> : vector<32xf32>
    %1089 = vector.multi_reduction <add>, %1088, %cst_370 [1] : vector<32x32xf32> to vector<32xf32>
    %1090 = vector.shape_cast %1089 : vector<32xf32> to vector<32x1xf32>
    %1091 = tpu.reciprocal %1090 {approx = true} : vector<32x1xf32> -> vector<32x1xf32>
    %1092 = vector.broadcast %1091 : vector<32x1xf32> to vector<32x32xf32>
    %1093 = arith.mulf %1088, %1092 : vector<32x32xf32>
    %1094 = arith.truncf %1093 : vector<32x32xf32> to vector<32x32xbf16>
    %cst_371 = arith.constant dense<0.000000e+00> : vector<32x8xf32>
    %1095 = tpu.matmul %1094, %1079, %cst_371 {dimension_numbers = #tpu.dot_dimension_numbers<[1], [0], [0], [1], [0, 0, 1, 1], [], []>} : vector<32x32xbf16>, vector<32x8xbf16>, vector<32x8xf32> -> vector<32x8xf32>
    %1096 = tpu.concatenate %1029, %1051, %1073, %1095 in 1 : vector<32x8xf32>, vector<32x8xf32>, vector<32x8xf32>, vector<32x8xf32> -> vector<32x32xf32>
    %1097 = arith.truncf %1096 : vector<32x32xf32> to vector<32x32xbf16>
    %c5_372 = arith.constant 5 : index
    %c0_373 = arith.constant 0 : index
    %c0_374 = arith.constant 0 : index
    %1098 = vector.load %arg9[%c5_372, %c0_373, %c0_374] : memref<6x32x32xbf16, #tpu.memory_space<vmem>>, vector<1x32x32xbf16>
    %1099 = vector.shape_cast %1098 : vector<1x32x32xbf16> to vector<32x32xbf16>
    %cst_375 = arith.constant dense<0.000000e+00> : vector<32x32xf32>
    %1100 = tpu.matmul %1097, %1099, %cst_375 {dimension_numbers = #tpu.dot_dimension_numbers<[1], [0], [0], [1], [0, 0, 1, 1], [], []>} : vector<32x32xbf16>, vector<32x32xbf16>, vector<32x32xf32> -> vector<32x32xf32>
    %c5_376 = arith.constant 5 : index
    %c0_377 = arith.constant 0 : index
    %c0_378 = arith.constant 0 : index
    %1101 = vector.load %arg10[%c5_376, %c0_377, %c0_378] : memref<6x1x32xf32, #tpu.memory_space<vmem>>, vector<1x1x32xf32>
    %1102 = vector.shape_cast %1101 : vector<1x1x32xf32> to vector<1x32xf32>
    %1103 = vector.broadcast %1102 : vector<1x32xf32> to vector<32x32xf32>
    %1104 = arith.addf %1100, %1103 : vector<32x32xf32>
    %1105 = arith.addf %997, %1104 : vector<32x32xf32>
    %1106 = vector.extract_strided_slice %999 {offsets = [0, 0], sizes = [1, 32], strides = [1, 1]} : vector<4x32xf32> to vector<1x32xf32>
    %1107 = vector.extract_strided_slice %999 {offsets = [1, 0], sizes = [1, 32], strides = [1, 1]} : vector<4x32xf32> to vector<1x32xf32>
    %cst_379 = arith.constant dense<0.000000e+00> : vector<32xf32>
    %1108 = vector.multi_reduction <add>, %1105, %cst_379 [1] : vector<32x32xf32> to vector<32xf32>
    %1109 = vector.shape_cast %1108 : vector<32xf32> to vector<32x1xf32>
    %cst_380 = arith.constant 3.200000e+01 : f32
    %1110 = vector.broadcast %cst_380 : f32 to vector<32x1xf32>
    %1111 = arith.divf %1109, %1110 : vector<32x1xf32>
    %1112 = vector.broadcast %1111 : vector<32x1xf32> to vector<32x32xf32>
    %1113 = arith.subf %1105, %1112 : vector<32x32xf32>
    %1114 = arith.mulf %1113, %1113 : vector<32x32xf32>
    %cst_381 = arith.constant dense<0.000000e+00> : vector<32xf32>
    %1115 = vector.multi_reduction <add>, %1114, %cst_381 [1] : vector<32x32xf32> to vector<32xf32>
    %1116 = vector.shape_cast %1115 : vector<32xf32> to vector<32x1xf32>
    %cst_382 = arith.constant 3.200000e+01 : f32
    %1117 = vector.broadcast %cst_382 : f32 to vector<32x1xf32>
    %1118 = arith.divf %1116, %1117 : vector<32x1xf32>
    %1119 = vector.broadcast %1111 : vector<32x1xf32> to vector<32x32xf32>
    %1120 = arith.subf %1105, %1119 : vector<32x32xf32>
    %cst_383 = arith.constant 9.99999996E-13 : f32
    %1121 = vector.broadcast %cst_383 : f32 to vector<32x1xf32>
    %1122 = arith.addf %1118, %1121 : vector<32x1xf32>
    %1123 = math.rsqrt %1122 : vector<32x1xf32>
    %1124 = vector.broadcast %1123 : vector<32x1xf32> to vector<32x32xf32>
    %1125 = arith.mulf %1120, %1124 : vector<32x32xf32>
    %1126 = vector.broadcast %1106 : vector<1x32xf32> to vector<32x32xf32>
    %1127 = arith.mulf %1125, %1126 : vector<32x32xf32>
    %1128 = vector.broadcast %1107 : vector<1x32xf32> to vector<32x32xf32>
    %1129 = arith.addf %1127, %1128 : vector<32x32xf32>
    %1130 = arith.truncf %1129 : vector<32x32xf32> to vector<32x32xbf16>
    %c5_384 = arith.constant 5 : index
    %c0_385 = arith.constant 0 : index
    %c0_386 = arith.constant 0 : index
    %1131 = vector.load %arg12[%c5_384, %c0_385, %c0_386] : memref<6x32x64xbf16, #tpu.memory_space<vmem>>, vector<1x32x64xbf16>
    %1132 = vector.shape_cast %1131 : vector<1x32x64xbf16> to vector<32x64xbf16>
    %cst_387 = arith.constant dense<0.000000e+00> : vector<32x64xf32>
    %1133 = tpu.matmul %1130, %1132, %cst_387 {dimension_numbers = #tpu.dot_dimension_numbers<[1], [0], [0], [1], [0, 0, 1, 1], [], []>} : vector<32x32xbf16>, vector<32x64xbf16>, vector<32x64xf32> -> vector<32x64xf32>
    %c5_388 = arith.constant 5 : index
    %c0_389 = arith.constant 0 : index
    %c0_390 = arith.constant 0 : index
    %1134 = vector.load %arg13[%c5_388, %c0_389, %c0_390] : memref<6x1x64xf32, #tpu.memory_space<vmem>>, vector<1x1x64xf32>
    %1135 = vector.shape_cast %1134 : vector<1x1x64xf32> to vector<1x64xf32>
    %1136 = vector.broadcast %1135 : vector<1x64xf32> to vector<32x64xf32>
    %1137 = arith.addf %1133, %1136 : vector<32x64xf32>
    %cst_391 = arith.constant 5.000000e-01 : f32
    %1138 = vector.broadcast %cst_391 : f32 to vector<32x64xf32>
    %1139 = arith.mulf %1138, %1137 : vector<32x64xf32>
    %cst_392 = arith.constant 4.471500e-02 : f32
    %1140 = vector.broadcast %cst_392 : f32 to vector<32x64xf32>
    %1141 = arith.mulf %1140, %1137 : vector<32x64xf32>
    %1142 = arith.mulf %1141, %1137 : vector<32x64xf32>
    %1143 = arith.mulf %1142, %1137 : vector<32x64xf32>
    %1144 = arith.addf %1137, %1143 : vector<32x64xf32>
    %cst_393 = arith.constant 0.797884583 : f32
    %1145 = vector.broadcast %cst_393 : f32 to vector<32x64xf32>
    %1146 = arith.mulf %1145, %1144 : vector<32x64xf32>
    %1147 = math.tanh %1146 : vector<32x64xf32>
    %cst_394 = arith.constant 1.000000e+00 : f32
    %1148 = vector.broadcast %cst_394 : f32 to vector<32x64xf32>
    %1149 = arith.addf %1148, %1147 : vector<32x64xf32>
    %1150 = arith.mulf %1139, %1149 : vector<32x64xf32>
    %1151 = arith.truncf %1150 : vector<32x64xf32> to vector<32x64xbf16>
    %c5_395 = arith.constant 5 : index
    %c0_396 = arith.constant 0 : index
    %c0_397 = arith.constant 0 : index
    %1152 = vector.load %arg14[%c5_395, %c0_396, %c0_397] : memref<6x64x32xbf16, #tpu.memory_space<vmem>>, vector<1x64x32xbf16>
    %1153 = vector.shape_cast %1152 : vector<1x64x32xbf16> to vector<64x32xbf16>
    %cst_398 = arith.constant dense<0.000000e+00> : vector<32x32xf32>
    %1154 = tpu.matmul %1151, %1153, %cst_398 {dimension_numbers = #tpu.dot_dimension_numbers<[1], [0], [0], [1], [0, 0, 1, 1], [], []>} : vector<32x64xbf16>, vector<64x32xbf16>, vector<32x32xf32> -> vector<32x32xf32>
    %c5_399 = arith.constant 5 : index
    %c0_400 = arith.constant 0 : index
    %c0_401 = arith.constant 0 : index
    %1155 = vector.load %arg15[%c5_399, %c0_400, %c0_401] : memref<6x1x32xf32, #tpu.memory_space<vmem>>, vector<1x1x32xf32>
    %1156 = vector.shape_cast %1155 : vector<1x1x32xf32> to vector<1x32xf32>
    %1157 = vector.broadcast %1156 : vector<1x32xf32> to vector<32x32xf32>
    %1158 = arith.addf %1154, %1157 : vector<32x32xf32>
    %1159 = arith.addf %1129, %1158 : vector<32x32xf32>
    %1160 = vector.extract_strided_slice %999 {offsets = [2, 0], sizes = [1, 32], strides = [1, 1]} : vector<4x32xf32> to vector<1x32xf32>
    %1161 = vector.extract_strided_slice %999 {offsets = [3, 0], sizes = [1, 32], strides = [1, 1]} : vector<4x32xf32> to vector<1x32xf32>
    %cst_402 = arith.constant dense<0.000000e+00> : vector<32xf32>
    %1162 = vector.multi_reduction <add>, %1159, %cst_402 [1] : vector<32x32xf32> to vector<32xf32>
    %1163 = vector.shape_cast %1162 : vector<32xf32> to vector<32x1xf32>
    %cst_403 = arith.constant 3.200000e+01 : f32
    %1164 = vector.broadcast %cst_403 : f32 to vector<32x1xf32>
    %1165 = arith.divf %1163, %1164 : vector<32x1xf32>
    %1166 = vector.broadcast %1165 : vector<32x1xf32> to vector<32x32xf32>
    %1167 = arith.subf %1159, %1166 : vector<32x32xf32>
    %1168 = arith.mulf %1167, %1167 : vector<32x32xf32>
    %cst_404 = arith.constant dense<0.000000e+00> : vector<32xf32>
    %1169 = vector.multi_reduction <add>, %1168, %cst_404 [1] : vector<32x32xf32> to vector<32xf32>
    %1170 = vector.shape_cast %1169 : vector<32xf32> to vector<32x1xf32>
    %cst_405 = arith.constant 3.200000e+01 : f32
    %1171 = vector.broadcast %cst_405 : f32 to vector<32x1xf32>
    %1172 = arith.divf %1170, %1171 : vector<32x1xf32>
    %1173 = vector.broadcast %1165 : vector<32x1xf32> to vector<32x32xf32>
    %1174 = arith.subf %1159, %1173 : vector<32x32xf32>
    %cst_406 = arith.constant 9.99999996E-13 : f32
    %1175 = vector.broadcast %cst_406 : f32 to vector<32x1xf32>
    %1176 = arith.addf %1172, %1175 : vector<32x1xf32>
    %1177 = math.rsqrt %1176 : vector<32x1xf32>
    %1178 = vector.broadcast %1177 : vector<32x1xf32> to vector<32x32xf32>
    %1179 = arith.mulf %1174, %1178 : vector<32x32xf32>
    %1180 = vector.broadcast %1160 : vector<1x32xf32> to vector<32x32xf32>
    %1181 = arith.mulf %1179, %1180 : vector<32x32xf32>
    %1182 = vector.broadcast %1161 : vector<1x32xf32> to vector<32x32xf32>
    %1183 = arith.addf %1181, %1182 : vector<32x32xf32>
    %1184 = vector.extract_strided_slice %1183 {offsets = [0, 0], sizes = [1, 32], strides = [1, 1]} : vector<32x32xf32> to vector<1x32xf32>
    %1185 = vector.extract_strided_slice %1183 {offsets = [16, 0], sizes = [1, 32], strides = [1, 1]} : vector<32x32xf32> to vector<1x32xf32>
    %1186 = tpu.concatenate %1184, %1185 in 0 : vector<1x32xf32>, vector<1x32xf32> -> vector<2x32xf32>
    %c0_407 = arith.constant 0 : index
    %c0_408 = arith.constant 0 : index
    %1187 = vector.load %arg17[%c0_407, %c0_408] : memref<3x16xf32, #tpu.memory_space<vmem>>, vector<3x16xf32>
    %1188 = arith.truncf %1186 : vector<2x32xf32> to vector<2x32xbf16>
    %c0_409 = arith.constant 0 : index
    %c0_410 = arith.constant 0 : index
    %1189 = vector.load %arg16[%c0_409, %c0_410] : memref<32x16xbf16, #tpu.memory_space<vmem>>, vector<32x16xbf16>
    %cst_411 = arith.constant dense<0.000000e+00> : vector<2x16xf32>
    %1190 = tpu.matmul %1188, %1189, %cst_411 {dimension_numbers = #tpu.dot_dimension_numbers<[1], [0], [0], [1], [0, 0, 1, 1], [], []>} : vector<2x32xbf16>, vector<32x16xbf16>, vector<2x16xf32> -> vector<2x16xf32>
    %1191 = vector.extract_strided_slice %1187 {offsets = [0, 0], sizes = [1, 16], strides = [1, 1]} : vector<3x16xf32> to vector<1x16xf32>
    %1192 = vector.broadcast %1191 : vector<1x16xf32> to vector<2x16xf32>
    %1193 = arith.addf %1190, %1192 : vector<2x16xf32>
    %1194 = math.tanh %1193 : vector<2x16xf32>
    %1195 = vector.extract_strided_slice %1187 {offsets = [1, 0], sizes = [1, 16], strides = [1, 1]} : vector<3x16xf32> to vector<1x16xf32>
    %1196 = vector.broadcast %1195 : vector<1x16xf32> to vector<2x16xf32>
    %1197 = arith.mulf %1194, %1196 : vector<2x16xf32>
    %cst_412 = arith.constant dense<0.000000e+00> : vector<2xf32>
    %1198 = vector.multi_reduction <add>, %1197, %cst_412 [1] : vector<2x16xf32> to vector<2xf32>
    %1199 = vector.shape_cast %1198 : vector<2xf32> to vector<2x1xf32>
    %1200 = vector.extract_strided_slice %1187 {offsets = [2, 0], sizes = [1, 1], strides = [1, 1]} : vector<3x16xf32> to vector<1x1xf32>
    %1201 = vector.broadcast %1200 : vector<1x1xf32> to vector<2x1xf32>
    %1202 = arith.addf %1199, %1201 : vector<2x1xf32>
    %cst_413 = arith.constant 5.000000e-01 : f32
    %1203 = vector.broadcast %cst_413 : f32 to vector<2x1xf32>
    %1204 = arith.mulf %1203, %1202 : vector<2x1xf32>
    %1205 = math.tanh %1204 : vector<2x1xf32>
    %cst_414 = arith.constant 1.000000e+00 : f32
    %1206 = vector.broadcast %cst_414 : f32 to vector<2x1xf32>
    %1207 = arith.addf %1205, %1206 : vector<2x1xf32>
    %cst_415 = arith.constant 5.000000e-01 : f32
    %1208 = vector.broadcast %cst_415 : f32 to vector<2x1xf32>
    %1209 = arith.mulf %1208, %1207 : vector<2x1xf32>
    %c0_416 = arith.constant 0 : index
    %c0_417 = arith.constant 0 : index
    %1210 = vector.load %arg18[%c0_416, %c0_417] : memref<2x1xf32, #tpu.memory_space<vmem>>, vector<2x1xf32>
    tpu.vector_store %arg18[%c0_416, %c0_417], %1209 {strides = array<i32>} : memref<2x1xf32, #tpu.memory_space<vmem>>, vector<2x1xf32>,
    return
  }
  func.func @transform_0(%arg0: i32) -> (i32, i32) {
    %c0_i32 = arith.constant 0 : i32
    %c0_i32_0 = arith.constant 0 : i32
    %c0_i32_1 = arith.constant 0 : i32
    return %c0_i32, %c0_i32_0 : i32, i32
  }
  func.func @transform_1(%arg0: i32) -> (i32, i32) {
    %c0_i32 = arith.constant 0 : i32
    %c0_i32_0 = arith.constant 0 : i32
    %c0_i32_1 = arith.constant 0 : i32
    return %c0_i32, %c0_i32_0 : i32, i32
  }
  func.func @transform_2(%arg0: i32) -> (i32, i32, i32) {
    %c0_i32 = arith.constant 0 : i32
    %c0_i32_0 = arith.constant 0 : i32
    %c0_i32_1 = arith.constant 0 : i32
    %c0_i32_2 = arith.constant 0 : i32
    return %c0_i32, %c0_i32_0, %c0_i32_1 : i32, i32, i32
  }
  func.func @transform_3(%arg0: i32) -> (i32, i32) {
    %c0_i32 = arith.constant 0 : i32
    %c0_i32_0 = arith.constant 0 : i32
    %c0_i32_1 = arith.constant 0 : i32
    return %c0_i32, %c0_i32_0 : i32, i32
  }
  func.func @transform_4(%arg0: i32) -> (i32, i32) {
    %c0_i32 = arith.constant 0 : i32
    %c0_i32_0 = arith.constant 0 : i32
    %c0_i32_1 = arith.constant 0 : i32
    return %c0_i32, %c0_i32_0 : i32, i32
  }
  func.func @transform_5(%arg0: i32) -> (i32, i32) {
    %c0_i32 = arith.constant 0 : i32
    %c0_i32_0 = arith.constant 0 : i32
    %c0_i32_1 = arith.constant 0 : i32
    return %c0_i32, %c0_i32_0 : i32, i32
  }
  func.func @transform_6(%arg0: i32) -> (i32, i32, i32) {
    %c0_i32 = arith.constant 0 : i32
    %c0_i32_0 = arith.constant 0 : i32
    %c0_i32_1 = arith.constant 0 : i32
    %c0_i32_2 = arith.constant 0 : i32
    return %c0_i32, %c0_i32_0, %c0_i32_1 : i32, i32, i32
  }
  func.func @transform_7(%arg0: i32) -> (i32, i32, i32) {
    %c0_i32 = arith.constant 0 : i32
    %c0_i32_0 = arith.constant 0 : i32
    %c0_i32_1 = arith.constant 0 : i32
    %c0_i32_2 = arith.constant 0 : i32
    return %c0_i32, %c0_i32_0, %c0_i32_1 : i32, i32, i32
  }
  func.func @transform_8(%arg0: i32) -> (i32, i32, i32) {
    %c0_i32 = arith.constant 0 : i32
    %c0_i32_0 = arith.constant 0 : i32
    %c0_i32_1 = arith.constant 0 : i32
    %c0_i32_2 = arith.constant 0 : i32
    return %c0_i32, %c0_i32_0, %c0_i32_1 : i32, i32, i32
  }
  func.func @transform_9(%arg0: i32) -> (i32, i32, i32) {
    %c0_i32 = arith.constant 0 : i32
    %c0_i32_0 = arith.constant 0 : i32
    %c0_i32_1 = arith.constant 0 : i32
    %c0_i32_2 = arith.constant 0 : i32
    return %c0_i32, %c0_i32_0, %c0_i32_1 : i32, i32, i32
  }
  func.func @transform_10(%arg0: i32) -> (i32, i32, i32) {
    %c0_i32 = arith.constant 0 : i32
    %c0_i32_0 = arith.constant 0 : i32
    %c0_i32_1 = arith.constant 0 : i32
    %c0_i32_2 = arith.constant 0 : i32
    return %c0_i32, %c0_i32_0, %c0_i32_1 : i32, i32, i32
  }
  func.func @transform_11(%arg0: i32) -> (i32, i32, i32) {
    %c0_i32 = arith.constant 0 : i32
    %c0_i32_0 = arith.constant 0 : i32
    %c0_i32_1 = arith.constant 0 : i32
    %c0_i32_2 = arith.constant 0 : i32
    return %c0_i32, %c0_i32_0, %c0_i32_1 : i32, i32, i32
  }
  func.func @transform_12(%arg0: i32) -> (i32, i32, i32) {
    %c0_i32 = arith.constant 0 : i32
    %c0_i32_0 = arith.constant 0 : i32
    %c0_i32_1 = arith.constant 0 : i32
    %c0_i32_2 = arith.constant 0 : i32
    return %c0_i32, %c0_i32_0, %c0_i32_1 : i32, i32, i32
  }
  func.func @transform_13(%arg0: i32) -> (i32, i32, i32) {
    %c0_i32 = arith.constant 0 : i32
    %c0_i32_0 = arith.constant 0 : i32
    %c0_i32_1 = arith.constant 0 : i32
    %c0_i32_2 = arith.constant 0 : i32
    return %c0_i32, %c0_i32_0, %c0_i32_1 : i32, i32, i32
  }
  func.func @transform_14(%arg0: i32) -> (i32, i32, i32) {
    %c0_i32 = arith.constant 0 : i32
    %c0_i32_0 = arith.constant 0 : i32
    %c0_i32_1 = arith.constant 0 : i32
    %c0_i32_2 = arith.constant 0 : i32
    return %c0_i32, %c0_i32_0, %c0_i32_1 : i32, i32, i32
  }
  func.func @transform_15(%arg0: i32) -> (i32, i32) {
    %c0_i32 = arith.constant 0 : i32
    %c0_i32_0 = arith.constant 0 : i32
    %c0_i32_1 = arith.constant 0 : i32
    return %c0_i32, %c0_i32_0 : i32, i32
  }
  func.func @transform_16(%arg0: i32) -> (i32, i32) {
    %c0_i32 = arith.constant 0 : i32
    %c0_i32_0 = arith.constant 0 : i32
    %c0_i32_1 = arith.constant 0 : i32
    return %c0_i32, %c0_i32_0 : i32, i32
  }
  func.func @transform_17(%arg0: i32) -> (i32, i32) {
    %c0_i32 = arith.constant 0 : i32
    %c0_i32_0 = arith.constant 0 : i32
    %c0_i32_1 = arith.constant 0 : i32
    return %c0_i32, %c0_i32_0 : i32, i32
  }
}

</mosaic_0001>

<bundles_post_ra>
// kernel: forward.1
= control target key start
LH: loop header
LB: loop body
LE: loop exit
PB: predicated region body
PF: predicated region fallthrough
CT: control target
= control target key end

     0   :  { %vm68_vm0 = vcmask 261120   ;;  %v8381_v14 = vmov 0.0   ;;  %vm8382_vm1 = vmmov 0   ;;  %v96_v23 = vlaneseq  ;;  %s10071_s23 = smov 88   ;;  %s10073_s24 = smov 96   ;;  %s10027_s0 = inlined_call_operand.vmem [shape: f32[16,32], index: 0, kind: input, shape index: {}]   ;;  %s10028_s6 = inlined_call_operand.vmem [shape: bf16[6,32,96], index: 6, kind: input, shape index: {}]   ;;  %s10029_s3 = inlined_call_operand.vmem [shape: f32[4,32], index: 3, kind: input, shape index: {}]   ;;  %s10030_s7 = inlined_call_operand.vmem [shape: f32[6,1,96], index: 7, kind: input, shape index: {}]   ;;  %s10031_s2 = inlined_call_operand.vmem [shape: f32[3,32,32], index: 2, kind: input, shape index: {}]   ;;  %s10032_s8 = inlined_call_operand.vmem [shape: bf16[6,32,32], index: 8, kind: input, shape index: {}]   ;;  %s10033_s9 = inlined_call_operand.vmem [shape: f32[6,1,32], index: 9, kind: input, shape index: {}]   ;;  %s10034_s11 = inlined_call_operand.vmem [shape: bf16[6,32,64], index: 11, kind: input, shape index: {}]   ;;  %s10035_s10 = inlined_call_operand.vmem [shape: f32[6,4,32], index: 10, kind: input, shape index: {}]   ;;  %s10036_s13 = inlined_call_operand.vmem [shape: bf16[6,64,32], index: 13, kind: input, shape index: {}]   ;;  %s10037_s12 = inlined_call_operand.vmem [shape: f32[6,1,64], index: 12, kind: input, shape index: {}]   ;;  %s10038_s14 = inlined_call_operand.vmem [shape: f32[6,1,32], index: 14, kind: input, shape index: {}]   ;;  %s10039_s4 = inlined_call_operand.vmem [shape: bf16[192,32], index: 4, kind: input, shape index: {}]   ;;  %s10040_s1 = inlined_call_operand.vmem [shape: f32[16,192], index: 1, kind: input, shape index: {}]   ;;  %s10041_s5 = inlined_call_operand.vmem [shape: f32[16,32], index: 5, kind: input, shape index: {}]   ;;  %s10042_s15 = inlined_call_operand.vmem [shape: bf16[32,16], index: 15, kind: input, shape index: {}]   ;;  %s10043_s16 = inlined_call_operand.vmem [shape: f32[3,16], index: 16, kind: input, shape index: {}]   ;;  %s10044_s17 = inlined_call_operand.vmem [shape: f32[2,1], index: 17, kind: output, shape index: {}]  }
   0x1   :  { %10080 = sst [smem:[#allocation2_spill]] %s10027_s0  ;;  %7242 = vmatprep.subr.bf16.mxu0 %v8381_v14  ;;  %7246 = vmatprep.mubr.msk.bf16.mxu0 %vm8382_vm1, %v8381_v14  ;;  %v65_v26 = vld [vmem:[%s10029_s3] sm:$0xf]  ;;  %s10069_s25 = smov 120   ;;  %vm181_vm2 = vcmask 64512   ;;  %vm233_vm3 = vcmask 130048  }
   0x2   :  { %10081 = sst [smem:[#allocation3_spill]] %s10028_s6  ;;  %7250 = vmatprep.subr.bf16.mxu1 %v8381_v14  ;;  %7252 = vmatprep.mubr.msk.bf16.mxu1 %vm8382_vm1, %v8381_v14  ;;  %v8512_v24 = vshrl.u32 %v96_v23, 7  ;;  %v6698_v40 = vld [vmem:[%s10030_s7] ss:$0 sm:$0xff]  ;;  %s10067_s27 = smov 80   ;;  %vm707_vm4 = vcmask 195584  }
   0x3   :  { %10082 = sst [smem:[#allocation4_spill]] %s10029_s3  ;;  %s10063_s28 = smov 104   ;;  %v57_v59 = vld [vmem:[%s10031_s2] sm:$0xff]  ;;  %vm944_vm5 = vcmask 523264   ;;  %vm6606_vm6 = vcmask 1040384   ;;  %vm6679_vm7 = vcmask 123904  }
   0x4   :  { %10083 = sst [smem:[#allocation5_spill]] %s10031_s2  ;;  %v8515_v25 = vsub.s32 0, %v8512_v24  ;;  %v8522_v30 = vsub.s32 1, %v8512_v24  ;;  %s10061_s29 = smov 72   ;;  %vm6692_vm8 = vcmask 1024  }
   0x5   :  { %10084 = sst [smem:[#allocation6_spill]] %s10035_s10  ;;  %s10059_s20 = smov 64  }
   0x6   :  { %10085 = sst [smem:[#allocation7_spill]] %s10042_s15  ;;  %v99_v29 = vrot.slane %v65_v26, %v8515_v25  ;;  %v105_v34 = vrot.slane %v65_v26, %v8522_v30  ;;  %s10057_s21 = smov 48  }
   0x7   :  { %10086 = sst [smem:[#allocation8_spill]] %s10043_s16  ;;  %s10049_s22 = smov 40  }
   0x8   :  { %10087 = sst [smem:[#allocation9_spill]] %s10044_s17  ;;  %s10047_s0 = smov 56  }
   0x9   :  { %s10088_s26 = sld [smem:[#allocation2_spill]]  ;;  %s10055_s6 = smov 8  }
   0xa   :  { %s10089_s30 = sld [smem:[#allocation3_spill]]  ;;  %s10053_s18 = smov 16  }
   0xb   :  { %s10051_s19 = smov 24   ;;  %s10099_s16 = smov 88  }
   0xc   :  { %s10104_s15 = sld [smem:[#allocation4_spill]] }
   0xf   :  { %v66_v0 = vld [vmem:[%s10088_s26] sm:$0xff]  ;;  %v67_v1 = vld [vmem:[%s10088_s26 + $0x8] sm:$0xff]  ;;  %s10065_s26 = smov 112  }
  0x10   :  { %v69_v2 = vsel %vm68_vm0, %v66_v0, 0.0  ;;  %v72_v3 = vsel %vm68_vm0, %v67_v1, 0.0  ;;  %v7939_v15 = vld [vmem:[%s10089_s30 + $0x8] sm:$0xff]   ;;  %v7940_v16 = vld [vmem:[%s10089_s30] sm:$0xff]  }
  0x11   :  { %70 = vadd.xlane.f32.xlu0 %v69_v2  ;;  %7243 = vmatpush3.bf16.msra.mxu0 %v7939_v15 }
  0x12   :  { %7244 = vmatprep.subr.bf16.mxu0 %v8381_v14 }
  0x15   :  { %73 = vadd.xlane.f32.xlu0 %v72_v3  ;;  %7245 = vmatpush3.bf16.msra.mxu0 %v7940_v16 }
  0x16   :  { %7256 = vmatprep.subr.bf16.mxu0 %v8381_v14 }
  0x9a   :  { %v71_v4 = vpop.xlane.xlu0 %70 }
  0x9b   :  { %v76_v5 = vmul.f32 0.03125, %v71_v4 }
  0x9d   :  { %v78_v6 = vsub.f32 %v66_v0, %v76_v5  ;;  %v58_v0 = vld [vmem:[%s10031_s2 + $0x8] sm:$0xff] }
  0x9e   :  { %v74_v7 = vpop.xlane.xlu0 %73 }
  0x9f   :  { %v77_v8 = vmul.f32 0.03125, %v74_v7  ;;  %v80_v9 = vmul.f32 %v78_v6, %v78_v6 }
  0xa1   :  { %v79_v10 = vsub.f32 %v67_v1, %v77_v8  ;;  %v82_v11 = vsel %vm68_vm0, %v80_v9, 0.0 }
  0xa2   :  { %83 = vadd.xlane.f32.xlu1 %v82_v11 }
  0xa3   :  { %v81_v12 = vmul.f32 %v79_v10, %v79_v10 }
  0xa5   :  { %v85_v13 = vsel %vm68_vm0, %v81_v12, 0.0 }
  0xa6   :  { %86 = vadd.xlane.f32.xlu1 %v85_v13 }
 0x12b   :  { %v84_v17 = vpop.xlane.xlu1 %83 }
 0x12c   :  { %v88_v18 = vmul.f32 0.03125, %v84_v17 }
 0x12e   :  { %v90_v19 = vadd.f32 1e-12, %v88_v18 }
 0x12f   :  { %v87_v20 = vpop.xlane.xlu1 %86 }
 0x130   :  { %8013 = vrsqrt.f32 %v90_v19  ;;  %v89_v21 = vmul.f32 0.03125, %v87_v20 }
 0x132   :  { %v91_v22 = vadd.f32 1e-12, %v89_v21 }
 0x134   :  { %8015 = vrsqrt.f32 %v91_v22 }
 0x13d   :  { %v8014_v27 = vpop.eup %8013 }
 0x13e   :  { %v94_v28 = vmul.f32 %v8014_v27, %v78_v6 }
 0x140   :  { %v100_v33 = vmul.f32 %v99_v29, %v94_v28 }
 0x141   :  { %v8016_v31 = vpop.eup %8015 }
 0x142   :  { %v95_v32 = vmul.f32 %v8016_v31, %v79_v10  ;;  %v8525_v36 = vadd.f32 %v105_v34, %v100_v33 }
 0x144   :  { %v101_v35 = vmul.f32 %v99_v29, %v95_v32 }
 0x146   :  { %v8527_v37 = vadd.f32 %v105_v34, %v101_v35 }
 0x148   :  { %v109_v38 = vpack.c.bf16 %v8527_v37, %v8525_v36 }
 0x14a   :  { %7247 = vmatmul.mubr.msk.bf16.vlgmr.msra.gmra.mxu0 %vm68_vm0, %v109_v38 }
 0x14b   :  { %7258 = vmatprep.mubr.msk.bf16.mxu0 %vm8382_vm1, %v8381_v14 }
 0x20a   :  { %v170_v39 = vpop.f32.mrf.mxu0 }
 0x20b   :  { %v171_v43 = vadd.f32 %v6698_v40, %v170_v39 }
 0x20c   :  { %v7248_v41 = vpop.f32.mrf.mxu0 }
 0x20e   :  { %v173_v42 = vpop.f32.mrf.mxu0 }
 0x20f   :  { %v174_v44 = vadd.f32 %v6698_v40, %v173_v42 }
 0x210   :  { %v7249_v45 = vpop.f32.mrf.mxu0 }
 0x211   :  { %v8537_v46 = vpack.c.bf16 %v174_v44, %v171_v43 }
 0x213   :  { %306 = vrot.lane.b32.xlu1 %v8537_v46, %s10071_s23  ;;  %179 = vrot.lane.b32.xlu0 %v8537_v46, %s10073_s24 }
 0x217   :  { %304 = vrot.lane.b32.xlu1 %v8537_v46, %s10069_s25  ;;  %429 = vrot.lane.b32.xlu0 %v8537_v46, %s10065_s26 }
 0x21b   :  { %431 = vrot.lane.b32.xlu1 %v8537_v46, %s10067_s27  ;;  %554 = vrot.lane.b32.xlu0 %v8537_v46, %s10063_s28 }
 0x21f   :  { %556 = vrot.lane.b32.xlu1 %v8537_v46, %s10061_s29  ;;  %s10090_s29 = smov 72  }
 0x285   :  { %v180_v47 = vpop.permute.xlu0 %179  ;;  %v307_v49 = vpop.permute.xlu1 %306 }
 0x286   :  { %v186_v48 = vsel %vm181_vm2, %v180_v47, 0  ;;  %v312_v51 = vsel %vm181_vm2, %v307_v49, 0 }
 0x287   :  { %7251 = vmatpush3.bf16.xpose.msra.mxu1 %v186_v48 }
 0x288   :  { %7262 = vmatprep.subr.bf16.mxu1 %v8381_v14 }
 0x289   :  { %v305_v50 = vpop.permute.xlu1 %304  ;;  %v430_v55 = vpop.permute.xlu0 %429 }
 0x28d   :  { %v432_v52 = vpop.permute.xlu1 %431  ;;  %v555_v57 = vpop.permute.xlu0 %554 }
 0x28e   :  { %7253 = vmatmul.mubr.msk.bf16.vlgmr.msra.gmra.mxu1 %vm181_vm2, %v8537_v46  ;;  %v437_v53 = vsel %vm181_vm2, %v432_v52, 0 }
 0x28f   :  { %7263 = vmatpush3.bf16.xpose.msra.mxu1 %v312_v51  ;;  %7264 = vmatprep.mubr.msk.bf16.mxu1 %vm8382_vm1, %v8381_v14 }
 0x290   :  { %7274 = vmatprep.subr.bf16.mxu1 %v8381_v14 }
 0x291   :  { %v557_v54 = vpop.permute.xlu1 %556 }
 0x292   :  { %v562_v56 = vsel %vm181_vm2, %v557_v54, 0 }
 0x296   :  { %7265 = vmatmul.mubr.msk.bf16.vlgmr.msra.gmra.mxu1 %vm181_vm2, %v305_v50 }
 0x297   :  { %7275 = vmatpush3.bf16.xpose.msra.mxu1 %v437_v53  ;;  %7276 = vmatprep.mubr.msk.bf16.mxu1 %vm8382_vm1, %v8381_v14 }
 0x298   :  { %7286 = vmatprep.subr.bf16.mxu1 %v8381_v14 }
 0x29e   :  { %7277 = vmatmul.mubr.msk.bf16.vlgmr.msra.gmra.mxu1 %vm181_vm2, %v430_v55 }
 0x29f   :  { %7287 = vmatpush3.bf16.xpose.msra.mxu1 %v562_v56  ;;  %7288 = vmatprep.mubr.msk.bf16.mxu1 %vm8382_vm1, %v8381_v14 }
 0x2a0   :  { %7298 = vmatprep.subr.bf16.mxu1 %v8381_v14 }
 0x2a6   :  { %7289 = vmatmul.mubr.msk.bf16.vlgmr.msra.gmra.mxu1 %vm181_vm2, %v555_v57 }
 0x2a7   :  { %7302 = vmatprep.mubr.msk.bf16.mxu1 %vm8382_vm1, %v8381_v14 }
 0x34e   :  { %v222_v58 = vpop.f32.mrf.mxu1 }
 0x34f   :  { %v229_v60 = vmul.f32 0.35355338, %v222_v58 }
 0x350   :  { %v7254_v61 = vpop.f32.mrf.mxu1 }
 0x351   :  { %v231_v62 = vadd.f32 %v229_v60, %v57_v59 }
 0x352   :  { %v225_v63 = vpop.f32.mrf.mxu1 }
 0x353   :  { %v230_v1 = vmul.f32 0.35355338, %v225_v63  ;;  %v234_v2 = vsel %vm233_vm3, %v231_v62, -inf }
 0x354   :  { %235 = vmax.xlane.f32.xlu1 %v234_v2  ;;  %v7255_v3 = vpop.f32.mrf.mxu1 }
 0x355   :  { %v232_v4 = vadd.f32 %v230_v1, %v58_v0 }
 0x356   :  { %v348_v5 = vpop.f32.mrf.mxu1 }
 0x357   :  { %v355_v6 = vmul.f32 0.35355338, %v348_v5  ;;  %v237_v7 = vsel %vm233_vm3, %v232_v4, -inf }
 0x358   :  { %238 = vmax.xlane.f32.xlu0 %v237_v7  ;;  %v7266_v8 = vpop.f32.mrf.mxu1 }
 0x359   :  { %v357_v9 = vadd.f32 %v355_v6, %v57_v59 }
 0x35a   :  { %v351_v10 = vpop.f32.mrf.mxu1 }
 0x35b   :  { %v356_v11 = vmul.f32 0.35355338, %v351_v10  ;;  %v359_v12 = vsel %vm233_vm3, %v357_v9, -inf }
 0x35c   :  { %360 = vmax.xlane.f32.xlu0 %v359_v12  ;;  %v7267_v13 = vpop.f32.mrf.mxu1 }
 0x35d   :  { %v358_v15 = vadd.f32 %v356_v11, %v58_v0 }
 0x35e   :  { %v473_v16 = vpop.f32.mrf.mxu1 }
 0x35f   :  { %v480_v17 = vmul.f32 0.35355338, %v473_v16  ;;  %v362_v18 = vsel %vm233_vm3, %v358_v15, -inf }
 0x360   :  { %363 = vmax.xlane.f32.xlu0 %v362_v18  ;;  %v7278_v19 = vpop.f32.mrf.mxu1 }
 0x361   :  { %v482_v20 = vadd.f32 %v480_v17, %v57_v59 }
 0x362   :  { %v476_v21 = vpop.f32.mrf.mxu1 }
 0x363   :  { %v481_v22 = vmul.f32 0.35355338, %v476_v21  ;;  %v484_v23 = vsel %vm233_vm3, %v482_v20, -inf }
 0x364   :  { %485 = vmax.xlane.f32.xlu1 %v484_v23  ;;  %v7279_v26 = vpop.f32.mrf.mxu1 }
 0x365   :  { %v483_v27 = vadd.f32 %v481_v22, %v58_v0 }
 0x366   :  { %v598_v28 = vpop.f32.mrf.mxu1 }
 0x367   :  { %v605_v29 = vmul.f32 0.35355338, %v598_v28  ;;  %v487_v31 = vsel %vm233_vm3, %v483_v27, -inf }
 0x368   :  { %488 = vmax.xlane.f32.xlu0 %v487_v31  ;;  %v7290_v32 = vpop.f32.mrf.mxu1 }
 0x369   :  { %v607_v33 = vadd.f32 %v605_v29, %v57_v59 }
 0x36a   :  { %v601_v34 = vpop.f32.mrf.mxu1 }
 0x36b   :  { %v606_v35 = vmul.f32 0.35355338, %v601_v34  ;;  %v609_v38 = vsel %vm233_vm3, %v607_v33, -inf }
 0x36c   :  { %610 = vmax.xlane.f32.xlu1 %v609_v38  ;;  %v7291_v39 = vpop.f32.mrf.mxu1 }
 0x36d   :  { %v608_v40 = vadd.f32 %v606_v35, %v58_v0 }
 0x36f   :  { %v612_v41 = vsel %vm233_vm3, %v608_v40, -inf }
 0x370   :  { %613 = vmax.xlane.f32.xlu0 %v612_v41 }
 0x37d   :  { %257 = vrot.lane.b32.xlu1 %v8537_v46, %s10059_s20  ;;  %s10094_s20 = smov 56  }
 0x3dd   :  { %v236_v42 = vpop.xlane.xlu1 %235 }
 0x3de   :  { %v240_v43 = vsub.f32 %v231_v62, %v236_v42 }
 0x3e0   :  { %v242_v44 = vmul.f32 1.442695, %v240_v43 }
 0x3e1   :  { %v239_v45 = vpop.xlane.xlu0 %238 }
 0x3e2   :  { %8017 = vpow2.f32 %v242_v44  ;;  %v241_v47 = vsub.f32 %v232_v4, %v239_v45 }
 0x3e4   :  { %v244_v48 = vmul.f32 1.442695, %v241_v47 }
 0x3e5   :  { %v361_v49 = vpop.xlane.xlu0 %360 }
 0x3e6   :  { %8019 = vpow2.f32 %v244_v48  ;;  %v365_v50 = vsub.f32 %v357_v9, %v361_v49 }
 0x3e8   :  { %v367_v51 = vmul.f32 1.442695, %v365_v50 }
 0x3e9   :  { %v364_v52 = vpop.xlane.xlu0 %363 }
 0x3ea   :  { %8021 = vpow2.f32 %v367_v51  ;;  %v366_v53 = vsub.f32 %v358_v15, %v364_v52 }
 0x3ec   :  { %v369_v54 = vmul.f32 1.442695, %v366_v53 }
 0x3ed   :  { %v486_v55 = vpop.xlane.xlu1 %485 }
 0x3ee   :  { %8023 = vpow2.f32 %v369_v54  ;;  %v490_v56 = vsub.f32 %v482_v20, %v486_v55 }
 0x3ef   :  { %v8018_v57 = vpop.eup %8017 }
 0x3f0   :  { %v492_v58 = vmul.f32 1.442695, %v490_v56  ;;  %v246_v59 = vsel %vm233_vm3, %v8018_v57, 0.0 }
 0x3f1   :  { %247 = vadd.xlane.f32.xlu1 %v246_v59  ;;  %v489_v60 = vpop.xlane.xlu0 %488 }
 0x3f2   :  { %8025 = vpow2.f32 %v492_v58  ;;  %v491_v61 = vsub.f32 %v483_v27, %v489_v60 }
 0x3f3   :  { %v8020_v62 = vpop.eup %8019 }
 0x3f4   :  { %v494_v63 = vmul.f32 1.442695, %v491_v61  ;;  %v249_v0 = vsel %vm233_vm3, %v8020_v62, 0.0 }
 0x3f5   :  { %v611_v1 = vpop.xlane.xlu1 %610  ;;  %250 = vadd.xlane.f32.xlu0 %v249_v0 }
 0x3f6   :  { %8027 = vpow2.f32 %v494_v63  ;;  %v615_v2 = vsub.f32 %v607_v33, %v611_v1  ;;  %v7941_v1 = vld [vmem:[%s10032_s8 + $0x8] sm:$0xff]  }
 0x3f7   :  { %v8022_v3 = vpop.eup %8021  ;;  %7299 = vmatpush3.bf16.msra.mxu1 %v7941_v1 }
 0x3f8   :  { %v617_v4 = vmul.f32 1.442695, %v615_v2  ;;  %v371_v5 = vsel %vm233_vm3, %v8022_v3, 0.0  ;;  %7300 = vmatprep.subr.bf16.mxu1 %v8381_v14 }
 0x3f9   :  { %v258_v6 = vpop.permute.xlu1 %257  ;;  %372 = vadd.xlane.f32.xlu1 %v371_v5  ;;  %v614_v7 = vpop.xlane.xlu0 %613  ;;  %v7942_v5 = vld [vmem:[%s10032_s8] sm:$0xff]  }
 0x3fa   :  { %8029 = vpow2.f32 %v617_v4  ;;  %v616_v8 = vsub.f32 %v608_v40, %v614_v7  ;;  %7257 = vmatpush3.bf16.msra.mxu0 %v258_v6 }
 0x3fb   :  { %v8024_v9 = vpop.eup %8023  ;;  %7268 = vmatprep.subr.bf16.mxu0 %v8381_v14  ;;  %7301 = vmatpush3.bf16.msra.mxu1 %v7942_v5 }
 0x3fc   :  { %v619_v10 = vmul.f32 1.442695, %v616_v8  ;;  %v374_v11 = vsel %vm233_vm3, %v8024_v9, 0.0  ;;  %7314 = vmatprep.subr.bf16.mxu1 %v8381_v14 }
 0x3fd   :  { %375 = vadd.xlane.f32.xlu0 %v374_v11 }
 0x3fe   :  { %8031 = vpow2.f32 %v619_v10 }
 0x3ff   :  { %v8026_v12 = vpop.eup %8025 }
 0x400   :  { %v496_v13 = vsel %vm233_vm3, %v8026_v12, 0.0 }
 0x401   :  { %497 = vadd.xlane.f32.xlu1 %v496_v13 }
 0x403   :  { %v8028_v15 = vpop.eup %8027 }
 0x404   :  { %v499_v16 = vsel %vm233_vm3, %v8028_v15, 0.0 }
 0x405   :  { %500 = vadd.xlane.f32.xlu0 %v499_v16 }
 0x407   :  { %v8030_v17 = vpop.eup %8029 }
 0x408   :  { %v621_v18 = vsel %vm233_vm3, %v8030_v17, 0.0 }
 0x409   :  { %622 = vadd.xlane.f32.xlu1 %v621_v18 }
 0x40b   :  { %v8032_v19 = vpop.eup %8031 }
 0x40c   :  { %v624_v20 = vsel %vm233_vm3, %v8032_v19, 0.0 }
 0x40d   :  { %625 = vadd.xlane.f32.xlu0 %v624_v20 }
 0x41a   :  { %507 = vrot.lane.b32.xlu1 %v8537_v46, %s10057_s21  ;;  %s10096_s21 = smov 16  }
 0x41e   :  { %632 = vrot.lane.b32.xlu1 %v8537_v46, %s10049_s22  ;;  %s10095_s22 = smov 8  }
 0x423   :  { %382 = vrot.lane.b32.xlu0 %v8537_v46, %s10047_s0  ;;  %s10091_s0 = smov 64  }
 0x47a   :  { %v248_v21 = vpop.xlane.xlu1 %247 }
 0x47b   :  { %8033 = vrcp.f32 %v248_v21 }
 0x47e   :  { %v251_v22 = vpop.xlane.xlu0 %250 }
 0x47f   :  { %8035 = vrcp.f32 %v251_v22 }
 0x482   :  { %v373_v26 = vpop.xlane.xlu1 %372 }
 0x486   :  { %v376_v23 = vpop.xlane.xlu0 %375 }
 0x487   :  { %8037 = vrcp.f32 %v376_v23 }
 0x488   :  { %v8034_v27 = vpop.eup %8033  ;;  %8039 = vrcp.f32 %v373_v26 }
 0x489   :  { %v254_v29 = vmul.f32 %v8034_v27, %v8018_v57 }
 0x48a   :  { %v498_v33 = vpop.xlane.xlu1 %497 }
 0x48c   :  { %v8036_v28 = vpop.eup %8035 }
 0x48d   :  { %v255_v31 = vmul.f32 %v8036_v28, %v8020_v62 }
 0x48e   :  { %v501_v32 = vpop.xlane.xlu0 %500 }
 0x48f   :  { %v256_v34 = vpack.c.bf16 %v255_v31, %v254_v29  ;;  %8041 = vrcp.f32 %v501_v32 }
 0x490   :  { %8043 = vrcp.f32 %v498_v33 }
 0x491   :  { %7259 = vmatmul.mubr.msk.bf16.vlgmr.msra.gmra.mxu0 %vm233_vm3, %v256_v34  ;;  %v6710_v34 = vld [vmem:[%s10033_s9] ss:$0 sm:$0xff] }
 0x492   :  { %7270 = vmatprep.mubr.msk.bf16.mxu0 %vm8382_vm1, %v8381_v14  ;;  %v623_v39 = vpop.xlane.xlu1 %622 }
 0x494   :  { %v8038_v46 = vpop.eup %8037 }
 0x495   :  { %v8040_v38 = vpop.eup %8039  ;;  %v380_v40 = vmul.f32 %v8038_v46, %v8024_v9 }
 0x496   :  { %v626_v35 = vpop.xlane.xlu0 %625  ;;  %v379_v42 = vmul.f32 %v8040_v38, %v8022_v3  ;;  %v508_v45 = vpop.permute.xlu1 %507 }
 0x497   :  { %8045 = vrcp.f32 %v626_v35 }
 0x498   :  { %8047 = vrcp.f32 %v623_v39  ;;  %v381_v43 = vpack.c.bf16 %v380_v40, %v379_v42 }
 0x49a   :  { %v383_v41 = vpop.permute.xlu0 %382  ;;  %v633_v52 = vpop.permute.xlu1 %632 }
 0x49b   :  { %7269 = vmatpush3.bf16.msra.mxu0 %v383_v41 }
 0x49c   :  { %7280 = vmatprep.subr.bf16.mxu0 %v8381_v14  ;;  %v8042_v44 = vpop.eup %8041 }
 0x49d   :  { %v8044_v47 = vpop.eup %8043  ;;  %v505_v48 = vmul.f32 %v8042_v44, %v8028_v15 }
 0x49e   :  { %7271 = vmatmul.mubr.msk.bf16.vlgmr.msra.gmra.mxu0 %vm233_vm3, %v381_v43  ;;  %v504_v49 = vmul.f32 %v8044_v47, %v8026_v12 }
 0x49f   :  { %7281 = vmatpush3.bf16.msra.mxu0 %v508_v45  ;;  %7282 = vmatprep.mubr.msk.bf16.mxu0 %vm8382_vm1, %v8381_v14 }
 0x4a0   :  { %7292 = vmatprep.subr.bf16.mxu0 %v8381_v14  ;;  %v506_v50 = vpack.c.bf16 %v505_v48, %v504_v49 }
 0x4a4   :  { %v8046_v51 = vpop.eup %8045 }
 0x4a5   :  { %v8048_v53 = vpop.eup %8047  ;;  %v630_v54 = vmul.f32 %v8046_v51, %v8032_v19 }
 0x4a6   :  { %7283 = vmatmul.mubr.msk.bf16.vlgmr.msra.gmra.mxu0 %vm233_vm3, %v506_v50  ;;  %v629_v55 = vmul.f32 %v8048_v53, %v8030_v17 }
 0x4a7   :  { %7293 = vmatpush3.bf16.msra.mxu0 %v633_v52  ;;  %7294 = vmatprep.mubr.msk.bf16.mxu0 %vm8382_vm1, %v8381_v14 }
 0x4a8   :  { %7306 = vmatprep.subr.bf16.mxu0 %v8381_v14  ;;  %v631_v56 = vpack.c.bf16 %v630_v54, %v629_v55 }
 0x4ae   :  { %7295 = vmatmul.mubr.msk.bf16.vlgmr.msra.gmra.mxu0 %vm233_vm3, %v631_v56  ;;  %v7944_v56 = vld [vmem:[%s10034_s11] sm:$0xff]  }
 0x4af   :  { %7310 = vmatprep.mubr.msk.bf16.mxu0 %vm8382_vm1, %v8381_v14 }
 0x551   :  { %v297_v57 = vpop.f32.mrf.mxu0 }
 0x553   :  { %v7260_v58 = vpop.f32.mrf.mxu0 }
 0x555   :  { %v300_v59 = vpop.f32.mrf.mxu0 }
 0x557   :  { %v7261_v60 = vpop.f32.mrf.mxu0 }
 0x55e   :  { %v422_v61 = vpop.f32.mrf.mxu0 }
 0x560   :  { %v7272_v62 = vpop.f32.mrf.mxu0 }
 0x562   :  { %v425_v63 = vpop.f32.mrf.mxu0 }
 0x563   :  { %v7819_v0 = vpack.i.bf16 %v425_v63, %v422_v61  ;;  %v8660_v63 = vld [vmem:[%s10035_s10] sm:$0xf] }
 0x564   :  { %v7273_v2 = vpop.f32.mrf.mxu0 }
 0x565   :  { %7820 = vrot.lane.b32.xlu1 %v7819_v0, %s10055_s6  ;;  %v809_v2 = vrot.slane %v8660_v63, %v8515_v25  ;;  %s10097_s6 = smov 24  }
 0x566   :  { %v547_v3 = vpop.f32.mrf.mxu0 }
 0x568   :  { %v7284_v4 = vpop.f32.mrf.mxu0 }
 0x56a   :  { %v550_v6 = vpop.f32.mrf.mxu0 }
 0x56b   :  { %v7824_v7 = vpack.i.bf16 %v550_v6, %v547_v3  ;;  %v815_v6 = vrot.slane %v8660_v63, %v8522_v30 }
 0x56c   :  { %v7285_v8 = vpop.f32.mrf.mxu0 }
 0x56d   :  { %7825 = vrot.lane.b32.xlu0 %v7824_v7, %s10053_s18  ;;  %s10092_s18 = smov 48  }
 0x56e   :  { %v672_v9 = vpop.f32.mrf.mxu0 }
 0x570   :  { %v7296_v10 = vpop.f32.mrf.mxu0 }
 0x572   :  { %v675_v11 = vpop.f32.mrf.mxu0 }
 0x573   :  { %v7829_v12 = vpack.i.bf16 %v675_v11, %v672_v9  ;;  %v7945_v11 = vld [vmem:[%s10036_s13 + $0x18] sm:$0xff]  }
 0x574   :  { %v7297_v13 = vpop.f32.mrf.mxu0 }
 0x575   :  { %7830 = vrot.lane.b32.xlu1 %v7829_v12, %s10051_s19  ;;  %v7946_v12 = vld [vmem:[%s10036_s13 + $0x10] sm:$0xff]   ;;  %v7947_v13 = vld [vmem:[%s10036_s13 + $0x8] sm:$0xff]   ;;  %s10093_s19 = smov 40  }
 0x5d7   :  { %v7821_v15 = vpop.permute.xlu1 %7820 }
 0x5d8   :  { %v7823_v17 = vunpack.i.h.bf16 %v7821_v15  ;;  %v7822_v18 = vunpack.i.l.bf16 %v7821_v15  ;;  %v7948_v15 = vld [vmem:[%s10036_s13] sm:$0xff]  }
 0x5da   :  { %v704_v22 = vsel %vm181_vm2, %v300_v59, %v7823_v17  ;;  %v703_v23 = vsel %vm181_vm2, %v297_v57, %v7822_v18 }
 0x5df   :  { %v7826_v16 = vpop.permute.xlu0 %7825 }
 0x5e0   :  { %v7828_v19 = vunpack.i.h.bf16 %v7826_v16  ;;  %v7827_v20 = vunpack.i.l.bf16 %v7826_v16  ;;  %v6714_v16 = vld [vmem:[%s10037_s12] ss:$0 sm:$0xff] }
 0x5e2   :  { %v706_v28 = vsel %vm233_vm3, %v704_v22, %v7828_v19  ;;  %v705_v29 = vsel %vm233_vm3, %v703_v23, %v7827_v20 }
 0x5e7   :  { %v7831_v21 = vpop.permute.xlu1 %7830 }
 0x5e8   :  { %v7833_v26 = vunpack.i.h.bf16 %v7831_v21  ;;  %v7832_v27 = vunpack.i.l.bf16 %v7831_v21 }
 0x5ea   :  { %v709_v31 = vsel %vm707_vm4, %v706_v28, %v7833_v26  ;;  %v708_v32 = vsel %vm707_vm4, %v705_v29, %v7832_v27 }
 0x5eb   :  { %v710_v33 = vpack.c.bf16 %v709_v31, %v708_v32 }
 0x5ed   :  { %7303 = vmatmul.mubr.msk.bf16.vlgmr.msra.gmra.mxu1 %vm68_vm0, %v710_v33 }
 0x5ee   :  { %7322 = vmatprep.mubr.msk.bf16.mxu1 %vm8382_vm1, %v8381_v14  ;;  %7315 = vmatpush3.bf16.msra.mxu1 %v7945_v11  ;;  %v8707_v11 = vsub.s32 2, %v8512_v24 }
 0x5ef   :  { %7316 = vmatprep.subr.bf16.mxu1 %v8381_v14 }
 0x5f2   :  { %7317 = vmatpush3.bf16.msra.mxu1 %v7946_v12 }
 0x5f3   :  { %7318 = vmatprep.subr.bf16.mxu1 %v8381_v14 }
 0x5f6   :  { %7319 = vmatpush3.bf16.msra.mxu1 %v7947_v13 }
 0x5f7   :  { %7320 = vmatprep.subr.bf16.mxu1 %v8381_v14 }
 0x5fa   :  { %7321 = vmatpush3.bf16.msra.mxu1 %v7948_v15  ;;  %v1020_v15 = vrot.slane %v8660_v63, %v8707_v11 }
 0x5fb   :  { %7340 = vmatprep.subr.bf16.mxu1 %v8381_v14 }
 0x6ad   :  { %v771_v46 = vpop.f32.mrf.mxu1 }
 0x6ae   :  { %v772_v35 = vadd.f32 %v6710_v34, %v771_v46 }
 0x6af   :  { %v7304_v38 = vpop.f32.mrf.mxu1 }
 0x6b0   :  { %v778_v39 = vadd.f32 %v772_v35, %v8525_v36 }
 0x6b1   :  { %v774_v40 = vpop.f32.mrf.mxu1 }
 0x6b2   :  { %v775_v41 = vadd.f32 %v6710_v34, %v774_v40  ;;  %v780_v42 = vsel %vm68_vm0, %v778_v39, 0.0 }
 0x6b3   :  { %781 = vadd.xlane.f32.xlu0 %v780_v42  ;;  %v7305_v43 = vpop.f32.mrf.mxu1 }
 0x6b4   :  { %v779_v44 = vadd.f32 %v775_v41, %v8527_v37  ;;  %v7943_v37 = vld [vmem:[%s10034_s11 + $0x8] sm:$0xff]  }
 0x6b5   :  { %7307 = vmatpush3.bf16.msra.mxu0 %v7943_v37 }
 0x6b6   :  { %v783_v45 = vsel %vm68_vm0, %v779_v44, 0.0  ;;  %7308 = vmatprep.subr.bf16.mxu0 %v8381_v14 }
 0x6b7   :  { %784 = vadd.xlane.f32.xlu1 %v783_v45 }
 0x6b9   :  { %7309 = vmatpush3.bf16.msra.mxu0 %v7944_v56 }
 0x6ba   :  { %7326 = vmatprep.subr.bf16.mxu0 %v8381_v14 }
 0x73c   :  { %v782_v47 = vpop.xlane.xlu0 %781 }
 0x73d   :  { %v786_v48 = vmul.f32 0.03125, %v782_v47  ;;  %v6718_v47 = vld [vmem:[%s10038_s14] ss:$0 sm:$0xff] }
 0x73f   :  { %v788_v49 = vsub.f32 %v778_v39, %v786_v48 }
 0x740   :  { %v785_v50 = vpop.xlane.xlu1 %784 }
 0x741   :  { %v787_v51 = vmul.f32 0.03125, %v785_v50  ;;  %v790_v52 = vmul.f32 %v788_v49, %v788_v49 }
 0x743   :  { %v789_v53 = vsub.f32 %v779_v44, %v787_v51  ;;  %v792_v36 = vsel %vm68_vm0, %v790_v52, 0.0 }
 0x744   :  { %793 = vadd.xlane.f32.xlu0 %v792_v36 }
 0x745   :  { %v791_v54 = vmul.f32 %v789_v53, %v789_v53 }
 0x747   :  { %v795_v55 = vsel %vm68_vm0, %v791_v54, 0.0 }
 0x748   :  { %796 = vadd.xlane.f32.xlu0 %v795_v55 }
 0x7cd   :  { %v794_v57 = vpop.xlane.xlu0 %793 }
 0x7ce   :  { %v798_v58 = vmul.f32 0.03125, %v794_v57 }
 0x7d0   :  { %v800_v59 = vadd.f32 1e-12, %v798_v58 }
 0x7d1   :  { %v797_v60 = vpop.xlane.xlu0 %796 }
 0x7d2   :  { %8049 = vrsqrt.f32 %v800_v59  ;;  %v799_v61 = vmul.f32 0.03125, %v797_v60 }
 0x7d4   :  { %v801_v62 = vadd.f32 1e-12, %v799_v61 }
 0x7d6   :  { %8051 = vrsqrt.f32 %v801_v62 }
 0x7df   :  { %v8050_v0 = vpop.eup %8049 }
 0x7e0   :  { %v804_v1 = vmul.f32 %v8050_v0, %v788_v49 }
 0x7e2   :  { %v810_v5 = vmul.f32 %v809_v2, %v804_v1 }
 0x7e3   :  { %v8052_v3 = vpop.eup %8051 }
 0x7e4   :  { %v805_v4 = vmul.f32 %v8052_v3, %v789_v53  ;;  %v816_v8 = vadd.f32 %v815_v6, %v810_v5  ;;  %v7949_v3 = vld [vmem:[%s10089_s30 + $0x18] sm:$0xff]  }
 0x7e6   :  { %v811_v7 = vmul.f32 %v809_v2, %v805_v4  ;;  %v7950_v4 = vld [vmem:[%s10089_s30 + $0x10] sm:$0xff]  }
 0x7e8   :  { %v817_v9 = vadd.f32 %v815_v6, %v811_v7 }
 0x7ea   :  { %v818_v10 = vpack.c.bf16 %v817_v9, %v816_v8 }
 0x7ec   :  { %7311 = vmatmul.mubr.msk.bf16.vlgmr.msra.gmra.mxu0 %vm68_vm0, %v818_v10 }
 0x7ed   :  { %7330 = vmatprep.mubr.msk.bf16.mxu0 %vm8382_vm1, %v8381_v14  ;;  %7327 = vmatpush3.bf16.msra.mxu0 %v7949_v3 }
 0x7ee   :  { %7328 = vmatprep.subr.bf16.mxu0 %v8381_v14 }
 0x7f1   :  { %7329 = vmatpush3.bf16.msra.mxu0 %v7950_v4 }
 0x7f2   :  { %7334 = vmatprep.subr.bf16.mxu0 %v8381_v14 }
 0x8ac   :  { %v879_v17 = vpop.f32.mrf.mxu0 }
 0x8ad   :  { %v880_v18 = vadd.f32 %v6714_v16, %v879_v17 }
 0x8ae   :  { %v7312_v19 = vpop.f32.mrf.mxu0 }
 0x8af   :  { %v888_v20 = vmul.f32 0.044715, %v880_v18  ;;  %v886_v40 = vmul.f32 0.5, %v880_v18 }
 0x8b0   :  { %v882_v21 = vpop.f32.mrf.mxu0 }
 0x8b1   :  { %v890_v22 = vmul.f32 %v888_v20, %v880_v18  ;;  %v883_v23 = vadd.f32 %v6714_v16, %v882_v21  ;;  %v8712_v16 = vsub.s32 3, %v8512_v24 }
 0x8b2   :  { %v7313_v26 = vpop.f32.mrf.mxu0 }
 0x8b3   :  { %v892_v27 = vmul.f32 %v890_v22, %v880_v18  ;;  %v889_v28 = vmul.f32 0.044715, %v883_v23  ;;  %v887_v41 = vmul.f32 0.5, %v883_v23  ;;  %v1026_v20 = vrot.slane %v8660_v63, %v8712_v16 }
 0x8b5   :  { %v894_v29 = vadd.f32 %v892_v27, %v880_v18  ;;  %v891_v31 = vmul.f32 %v889_v28, %v883_v23  ;;  %v6730_v27 = vld [vmem:[%s10030_s7 + $0x1] ss:$0 sm:$0xff] }
 0x8b7   :  { %v896_v32 = vmul.f32 0.7978846, %v894_v29  ;;  %v893_v33 = vmul.f32 %v891_v31, %v883_v23 }
 0x8b9   :  { %8053 = vtanh.f32 %v896_v32  ;;  %v895_v34 = vadd.f32 %v893_v33, %v883_v23 }
 0x8bb   :  { %v897_v46 = vmul.f32 0.7978846, %v895_v34 }
 0x8bd   :  { %8055 = vtanh.f32 %v897_v46 }
 0x8c6   :  { %v8054_v35 = vpop.eup %8053 }
 0x8c7   :  { %v900_v38 = vadd.f32 1.0, %v8054_v35 }
 0x8c9   :  { %v902_v43 = vmul.f32 %v900_v38, %v886_v40 }
 0x8ca   :  { %v8056_v39 = vpop.eup %8055 }
 0x8cb   :  { %v901_v42 = vadd.f32 1.0, %v8056_v39 }
 0x8cd   :  { %v903_v44 = vmul.f32 %v901_v42, %v887_v41 }
 0x8cf   :  { %v904_v45 = vpack.c.bf16 %v903_v44, %v902_v43 }
 0x8d1   :  { %7323 = vmatmul.mubr.msk.bf16.vlgmr.msra.gmra.mxu1 %vm944_vm5, %v904_v45 }
 0x8d2   :  { %7342 = vmatprep.mubr.msk.bf16.mxu1 %vm8382_vm1, %v8381_v14 }
 0x991   :  { %v982_v48 = vpop.f32.mrf.mxu1 }
 0x992   :  { %v983_v49 = vadd.f32 %v6718_v47, %v982_v48 }
 0x993   :  { %v7324_v50 = vpop.f32.mrf.mxu1 }
 0x994   :  { %v989_v51 = vadd.f32 %v983_v49, %v816_v8  ;;  %v8373_v50 = vld [vmem:[%s10031_s2] sm:$0xff] }
 0x995   :  { %v985_v52 = vpop.f32.mrf.mxu1 }
 0x996   :  { %v986_v53 = vadd.f32 %v6718_v47, %v985_v52  ;;  %v991_v36 = vsel %vm68_vm0, %v989_v51, 0.0 }
 0x997   :  { %992 = vadd.xlane.f32.xlu0 %v991_v36  ;;  %v7325_v54 = vpop.f32.mrf.mxu1 }
 0x998   :  { %v990_v55 = vadd.f32 %v986_v53, %v817_v9 }
 0x99a   :  { %v994_v37 = vsel %vm68_vm0, %v990_v55, 0.0 }
 0x99b   :  { %995 = vadd.xlane.f32.xlu1 %v994_v37 }
 0xa20   :  { %v993_v56 = vpop.xlane.xlu0 %992 }
 0xa21   :  { %v997_v57 = vmul.f32 0.03125, %v993_v56 }
 0xa23   :  { %v999_v58 = vsub.f32 %v989_v51, %v997_v57 }
 0xa24   :  { %v996_v59 = vpop.xlane.xlu1 %995 }
 0xa25   :  { %v998_v60 = vmul.f32 0.03125, %v996_v59  ;;  %v1001_v61 = vmul.f32 %v999_v58, %v999_v58 }
 0xa27   :  { %v1000_v62 = vsub.f32 %v990_v55, %v998_v60  ;;  %v1003_v0 = vsel %vm68_vm0, %v1001_v61, 0.0  ;;  %v8374_v55 = vld [vmem:[%s10031_s2 + $0x8] sm:$0xff] }
 0xa28   :  { %1004 = vadd.xlane.f32.xlu0 %v1003_v0 }
 0xa29   :  { %v1002_v1 = vmul.f32 %v1000_v62, %v1000_v62 }
 0xa2b   :  { %v1006_v2 = vsel %vm68_vm0, %v1002_v1, 0.0 }
 0xa2c   :  { %1007 = vadd.xlane.f32.xlu1 %v1006_v2 }
 0xab1   :  { %v1005_v5 = vpop.xlane.xlu0 %1004 }
 0xab2   :  { %v1009_v6 = vmul.f32 0.03125, %v1005_v5 }
 0xab4   :  { %v1011_v7 = vadd.f32 1e-12, %v1009_v6 }
 0xab5   :  { %v1008_v8 = vpop.xlane.xlu1 %1007 }
 0xab6   :  { %8057 = vrsqrt.f32 %v1011_v7  ;;  %v1010_v9 = vmul.f32 0.03125, %v1008_v8 }
 0xab8   :  { %v1012_v10 = vadd.f32 1e-12, %v1010_v9 }
 0xaba   :  { %8059 = vrsqrt.f32 %v1012_v10 }
 0xac3   :  { %v8058_v12 = vpop.eup %8057 }
 0xac4   :  { %v1015_v13 = vmul.f32 %v8058_v12, %v999_v58 }
 0xac6   :  { %v1021_v19 = vmul.f32 %v1020_v15, %v1015_v13 }
 0xac7   :  { %v8060_v17 = vpop.eup %8059 }
 0xac8   :  { %v1016_v18 = vmul.f32 %v8060_v17, %v1000_v62  ;;  %v8716_v22 = vadd.f32 %v1026_v20, %v1021_v19 }
 0xaca   :  { %v1022_v21 = vmul.f32 %v1020_v15, %v1016_v18 }
 0xacc   :  { %v8718_v23 = vadd.f32 %v1026_v20, %v1022_v21 }
 0xace   :  { %v1031_v26 = vpack.c.bf16 %v8718_v23, %v8716_v22 }
 0xad0   :  { %7331 = vmatmul.mubr.msk.bf16.vlgmr.msra.gmra.mxu0 %vm68_vm0, %v1031_v26 }
 0xad1   :  { %7336 = vmatprep.mubr.msk.bf16.mxu0 %vm8382_vm1, %v8381_v14 }
 0xb90   :  { %v1094_v24 = vpop.f32.mrf.mxu0 }
 0xb91   :  { %v1095_v29 = vadd.f32 %v6730_v27, %v1094_v24 }
 0xb92   :  { %v7332_v28 = vpop.f32.mrf.mxu0 }
 0xb94   :  { %v1097_v63 = vpop.f32.mrf.mxu0 }
 0xb95   :  { %v1098_v31 = vadd.f32 %v6730_v27, %v1097_v63 }
 0xb96   :  { %v7333_v32 = vpop.f32.mrf.mxu0 }
 0xb97   :  { %v8728_v33 = vpack.c.bf16 %v1098_v31, %v1095_v29 }
 0xb99   :  { %1228 = vrot.lane.b32.xlu1 %v8728_v33, %s10071_s23  ;;  %1103 = vrot.lane.b32.xlu0 %v8728_v33, %s10073_s24  ;;  %s10102_s23 = smov 112   ;;  %s10103_s24 = smov 104  }
 0xb9d   :  { %1226 = vrot.lane.b32.xlu1 %v8728_v33, %s10069_s25  ;;  %1351 = vrot.lane.b32.xlu0 %v8728_v33, %s10065_s26  ;;  %s10107_s26 = sld [smem:[#allocation7_spill]] }
 0xba1   :  { %1353 = vrot.lane.b32.xlu1 %v8728_v33, %s10067_s27  ;;  %1476 = vrot.lane.b32.xlu0 %v8728_v33, %s10063_s28  ;;  %s10100_s28 = smov 120  }
 0xba5   :  { %1478 = vrot.lane.b32.xlu1 %v8728_v33, %s10090_s29 }
 0xc0b   :  { %v1104_v34 = vpop.permute.xlu0 %1103  ;;  %v1229_v35 = vpop.permute.xlu1 %1228 }
 0xc0c   :  { %v1109_v46 = vsel %vm181_vm2, %v1104_v34, 0  ;;  %v1234_v39 = vsel %vm181_vm2, %v1229_v35, 0 }
 0xc0d   :  { %7335 = vmatpush3.bf16.xpose.msra.mxu0 %v1109_v46 }
 0xc0e   :  { %7346 = vmatprep.subr.bf16.mxu0 %v8381_v14 }
 0xc0f   :  { %v1227_v38 = vpop.permute.xlu1 %1226  ;;  %v1352_v43 = vpop.permute.xlu0 %1351 }
 0xc13   :  { %v1354_v40 = vpop.permute.xlu1 %1353  ;;  %v1477_v45 = vpop.permute.xlu0 %1476 }
 0xc14   :  { %7337 = vmatmul.mubr.msk.bf16.vlgmr.msra.gmra.mxu0 %vm181_vm2, %v8728_v33  ;;  %v1359_v41 = vsel %vm181_vm2, %v1354_v40, 0 }
 0xc15   :  { %7347 = vmatpush3.bf16.xpose.msra.mxu0 %v1234_v39  ;;  %7348 = vmatprep.mubr.msk.bf16.mxu0 %vm8382_vm1, %v8381_v14 }
 0xc16   :  { %7358 = vmatprep.subr.bf16.mxu0 %v8381_v14 }
 0xc17   :  { %v1479_v42 = vpop.permute.xlu1 %1478 }
 0xc18   :  { %v1484_v44 = vsel %vm181_vm2, %v1479_v42, 0 }
 0xc1c   :  { %7349 = vmatmul.mubr.msk.bf16.vlgmr.msra.gmra.mxu0 %vm181_vm2, %v1227_v38 }
 0xc1d   :  { %7359 = vmatpush3.bf16.xpose.msra.mxu0 %v1359_v41  ;;  %7360 = vmatprep.mubr.msk.bf16.mxu0 %vm8382_vm1, %v8381_v14 }
 0xc1e   :  { %7370 = vmatprep.subr.bf16.mxu0 %v8381_v14 }
 0xc24   :  { %7361 = vmatmul.mubr.msk.bf16.vlgmr.msra.gmra.mxu0 %vm181_vm2, %v1352_v43 }
 0xc25   :  { %7371 = vmatpush3.bf16.xpose.msra.mxu0 %v1484_v44  ;;  %7372 = vmatprep.mubr.msk.bf16.mxu0 %vm8382_vm1, %v8381_v14 }
 0xc26   :  { %7382 = vmatprep.subr.bf16.mxu0 %v8381_v14 }
 0xc2c   :  { %7373 = vmatmul.mubr.msk.bf16.vlgmr.msra.gmra.mxu0 %vm181_vm2, %v1477_v45 }
 0xc2d   :  { %7386 = vmatprep.mubr.msk.bf16.mxu0 %vm8382_vm1, %v8381_v14 }
 0xcd4   :  { %v1145_v47 = vpop.f32.mrf.mxu0 }
 0xcd5   :  { %v1152_v48 = vmul.f32 0.35355338, %v1145_v47 }
 0xcd6   :  { %v7338_v49 = vpop.f32.mrf.mxu0 }
 0xcd7   :  { %v1154_v51 = vadd.f32 %v8373_v50, %v1152_v48 }
 0xcd8   :  { %v1148_v52 = vpop.f32.mrf.mxu0 }
 0xcd9   :  { %v1153_v53 = vmul.f32 0.35355338, %v1148_v52  ;;  %v1156_v36 = vsel %vm233_vm3, %v1154_v51, -inf }
 0xcda   :  { %1157 = vmax.xlane.f32.xlu1 %v1156_v36  ;;  %v7339_v54 = vpop.f32.mrf.mxu0 }
 0xcdb   :  { %v1155_v37 = vadd.f32 %v8374_v55, %v1153_v53 }
 0xcdc   :  { %v1270_v56 = vpop.f32.mrf.mxu0 }
 0xcdd   :  { %v1277_v57 = vmul.f32 0.35355338, %v1270_v56  ;;  %v1159_v58 = vsel %vm233_vm3, %v1155_v37, -inf }
 0xcde   :  { %1160 = vmax.xlane.f32.xlu0 %v1159_v58  ;;  %v7350_v59 = vpop.f32.mrf.mxu0 }
 0xcdf   :  { %v1279_v60 = vadd.f32 %v8373_v50, %v1277_v57 }
 0xce0   :  { %v1273_v61 = vpop.f32.mrf.mxu0 }
 0xce1   :  { %v1278_v62 = vmul.f32 0.35355338, %v1273_v61  ;;  %v1281_v0 = vsel %vm233_vm3, %v1279_v60, -inf }
 0xce2   :  { %1282 = vmax.xlane.f32.xlu0 %v1281_v0  ;;  %v7351_v1 = vpop.f32.mrf.mxu0 }
 0xce3   :  { %v1280_v2 = vadd.f32 %v8374_v55, %v1278_v62 }
 0xce4   :  { %v1395_v3 = vpop.f32.mrf.mxu0 }
 0xce5   :  { %v1402_v4 = vmul.f32 0.35355338, %v1395_v3  ;;  %v1284_v5 = vsel %vm233_vm3, %v1280_v2, -inf }
 0xce6   :  { %1285 = vmax.xlane.f32.xlu0 %v1284_v5  ;;  %v7362_v6 = vpop.f32.mrf.mxu0 }
 0xce7   :  { %v1404_v7 = vadd.f32 %v8373_v50, %v1402_v4 }
 0xce8   :  { %v1398_v8 = vpop.f32.mrf.mxu0 }
 0xce9   :  { %v1403_v9 = vmul.f32 0.35355338, %v1398_v8  ;;  %v1406_v10 = vsel %vm233_vm3, %v1404_v7, -inf }
 0xcea   :  { %1407 = vmax.xlane.f32.xlu1 %v1406_v10  ;;  %v7363_v12 = vpop.f32.mrf.mxu0 }
 0xceb   :  { %v1405_v13 = vadd.f32 %v8374_v55, %v1403_v9 }
 0xcec   :  { %v1520_v15 = vpop.f32.mrf.mxu0 }
 0xced   :  { %v1527_v17 = vmul.f32 0.35355338, %v1520_v15  ;;  %v1409_v18 = vsel %vm233_vm3, %v1405_v13, -inf }
 0xcee   :  { %1410 = vmax.xlane.f32.xlu0 %v1409_v18  ;;  %v7374_v19 = vpop.f32.mrf.mxu0 }
 0xcef   :  { %v1529_v20 = vadd.f32 %v8373_v50, %v1527_v17 }
 0xcf0   :  { %v1523_v21 = vpop.f32.mrf.mxu0 }
 0xcf1   :  { %v1528_v26 = vmul.f32 0.35355338, %v1523_v21  ;;  %v1531_v24 = vsel %vm233_vm3, %v1529_v20, -inf }
 0xcf2   :  { %1532 = vmax.xlane.f32.xlu1 %v1531_v24  ;;  %v7375_v27 = vpop.f32.mrf.mxu0 }
 0xcf3   :  { %v1530_v28 = vadd.f32 %v8374_v55, %v1528_v26 }
 0xcf5   :  { %v1534_v63 = vsel %vm233_vm3, %v1530_v28, -inf }
 0xcf6   :  { %1535 = vmax.xlane.f32.xlu0 %v1534_v63 }
 0xd03   :  { %1179 = vrot.lane.b32.xlu1 %v8728_v33, %s10091_s0 }
 0xd63   :  { %v1158_v29 = vpop.xlane.xlu1 %1157 }
 0xd64   :  { %v1162_v31 = vsub.f32 %v1154_v51, %v1158_v29 }
 0xd66   :  { %v1164_v32 = vmul.f32 1.442695, %v1162_v31 }
 0xd67   :  { %v1161_v34 = vpop.xlane.xlu0 %1160 }
 0xd68   :  { %8061 = vpow2.f32 %v1164_v32  ;;  %v1163_v46 = vsub.f32 %v1155_v37, %v1161_v34 }
 0xd6a   :  { %v1166_v35 = vmul.f32 1.442695, %v1163_v46 }
 0xd6b   :  { %v1283_v38 = vpop.xlane.xlu0 %1282 }
 0xd6c   :  { %8063 = vpow2.f32 %v1166_v35  ;;  %v1287_v39 = vsub.f32 %v1279_v60, %v1283_v38 }
 0xd6e   :  { %v1289_v40 = vmul.f32 1.442695, %v1287_v39 }
 0xd6f   :  { %v1286_v41 = vpop.xlane.xlu0 %1285 }
 0xd70   :  { %8065 = vpow2.f32 %v1289_v40  ;;  %v1288_v42 = vsub.f32 %v1280_v2, %v1286_v41 }
 0xd72   :  { %v1291_v43 = vmul.f32 1.442695, %v1288_v42 }
 0xd73   :  { %v1408_v44 = vpop.xlane.xlu1 %1407 }
 0xd74   :  { %8067 = vpow2.f32 %v1291_v43  ;;  %v1412_v45 = vsub.f32 %v1404_v7, %v1408_v44 }
 0xd75   :  { %v8062_v47 = vpop.eup %8061 }
 0xd76   :  { %v1414_v48 = vmul.f32 1.442695, %v1412_v45  ;;  %v1168_v49 = vsel %vm233_vm3, %v8062_v47, 0.0 }
 0xd77   :  { %v1411_v50 = vpop.xlane.xlu0 %1410  ;;  %1169 = vadd.xlane.f32.xlu1 %v1168_v49 }
 0xd78   :  { %8069 = vpow2.f32 %v1414_v48  ;;  %v1413_v51 = vsub.f32 %v1405_v13, %v1411_v50 }
 0xd79   :  { %v8064_v52 = vpop.eup %8063 }
 0xd7a   :  { %v1416_v53 = vmul.f32 1.442695, %v1413_v51  ;;  %v1171_v36 = vsel %vm233_vm3, %v8064_v52, 0.0 }
 0xd7b   :  { %v1533_v54 = vpop.xlane.xlu1 %1532  ;;  %1172 = vadd.xlane.f32.xlu0 %v1171_v36 }
 0xd7c   :  { %8071 = vpow2.f32 %v1416_v53  ;;  %v1537_v55 = vsub.f32 %v1529_v20, %v1533_v54  ;;  %v7951_v54 = vld [vmem:[%s10032_s8 + $0x18] sm:$0xff]  }
 0xd7d   :  { %v8066_v37 = vpop.eup %8065  ;;  %7383 = vmatpush3.bf16.msra.mxu0 %v7951_v54 }
 0xd7e   :  { %v1539_v56 = vmul.f32 1.442695, %v1537_v55  ;;  %v1293_v57 = vsel %vm233_vm3, %v8066_v37, 0.0  ;;  %7384 = vmatprep.subr.bf16.mxu0 %v8381_v14 }
 0xd7f   :  { %1294 = vadd.xlane.f32.xlu1 %v1293_v57  ;;  %v1180_v58 = vpop.permute.xlu1 %1179  ;;  %v1536_v59 = vpop.xlane.xlu0 %1535 }
 0xd80   :  { %8073 = vpow2.f32 %v1539_v56  ;;  %v1538_v60 = vsub.f32 %v1530_v28, %v1536_v59  ;;  %7341 = vmatpush3.bf16.msra.mxu1 %v1180_v58  ;;  %v7952_v58 = vld [vmem:[%s10032_s8 + $0x10] sm:$0xff]  }
 0xd81   :  { %v8068_v61 = vpop.eup %8067  ;;  %7352 = vmatprep.subr.bf16.mxu1 %v8381_v14  ;;  %7385 = vmatpush3.bf16.msra.mxu0 %v7952_v58 }
 0xd82   :  { %v1541_v62 = vmul.f32 1.442695, %v1538_v60  ;;  %v1296_v0 = vsel %vm233_vm3, %v8068_v61, 0.0  ;;  %7398 = vmatprep.subr.bf16.mxu0 %v8381_v14 }
 0xd83   :  { %1297 = vadd.xlane.f32.xlu0 %v1296_v0 }
 0xd84   :  { %8075 = vpow2.f32 %v1541_v62 }
 0xd85   :  { %v8070_v1 = vpop.eup %8069 }
 0xd86   :  { %v1418_v2 = vsel %vm233_vm3, %v8070_v1, 0.0 }
 0xd87   :  { %1419 = vadd.xlane.f32.xlu1 %v1418_v2 }
 0xd89   :  { %v8072_v3 = vpop.eup %8071 }
 0xd8a   :  { %v1421_v4 = vsel %vm233_vm3, %v8072_v3, 0.0 }
 0xd8b   :  { %1422 = vadd.xlane.f32.xlu0 %v1421_v4 }
 0xd8d   :  { %v8074_v5 = vpop.eup %8073 }
 0xd8e   :  { %v1543_v6 = vsel %vm233_vm3, %v8074_v5, 0.0 }
 0xd8f   :  { %1544 = vadd.xlane.f32.xlu1 %v1543_v6 }
 0xd91   :  { %v8076_v7 = vpop.eup %8075 }
 0xd92   :  { %v1546_v8 = vsel %vm233_vm3, %v8076_v7, 0.0 }
 0xd93   :  { %1547 = vadd.xlane.f32.xlu0 %v1546_v8 }
 0xda0   :  { %1429 = vrot.lane.b32.xlu1 %v8728_v33, %s10092_s18 }
 0xda4   :  { %1554 = vrot.lane.b32.xlu1 %v8728_v33, %s10093_s19 }
 0xda9   :  { %1304 = vrot.lane.b32.xlu0 %v8728_v33, %s10094_s20 }
 0xe00   :  { %v1170_v9 = vpop.xlane.xlu1 %1169 }
 0xe01   :  { %8077 = vrcp.f32 %v1170_v9 }
 0xe04   :  { %v1173_v10 = vpop.xlane.xlu0 %1172 }
 0xe05   :  { %8079 = vrcp.f32 %v1173_v10 }
 0xe08   :  { %v1295_v13 = vpop.xlane.xlu1 %1294 }
 0xe0c   :  { %v1298_v12 = vpop.xlane.xlu0 %1297 }
 0xe0d   :  { %8081 = vrcp.f32 %v1298_v12 }
 0xe0e   :  { %v8078_v15 = vpop.eup %8077  ;;  %8083 = vrcp.f32 %v1295_v13 }
 0xe0f   :  { %v1176_v18 = vmul.f32 %v8078_v15, %v8062_v47 }
 0xe10   :  { %v1420_v21 = vpop.xlane.xlu1 %1419 }
 0xe12   :  { %v8080_v17 = vpop.eup %8079 }
 0xe13   :  { %v1177_v19 = vmul.f32 %v8080_v17, %v8064_v52 }
 0xe14   :  { %v1423_v20 = vpop.xlane.xlu0 %1422 }
 0xe15   :  { %v1178_v26 = vpack.c.bf16 %v1177_v19, %v1176_v18  ;;  %8085 = vrcp.f32 %v1423_v20 }
 0xe16   :  { %8087 = vrcp.f32 %v1420_v21 }
 0xe17   :  { %7343 = vmatmul.mubr.msk.bf16.vlgmr.msra.gmra.mxu1 %vm233_vm3, %v1178_v26 }
 0xe18   :  { %7354 = vmatprep.mubr.msk.bf16.mxu1 %vm8382_vm1, %v8381_v14  ;;  %v1545_v28 = vpop.xlane.xlu1 %1544 }
 0xe1a   :  { %v8082_v33 = vpop.eup %8081 }
 0xe1b   :  { %v8084_v27 = vpop.eup %8083  ;;  %v1302_v63 = vmul.f32 %v8082_v33, %v8068_v61  ;;  %v6747_v33 = vld [vmem:[%s10033_s9 + $0x1] ss:$0 sm:$0xff] }
 0xe1c   :  { %v1548_v24 = vpop.xlane.xlu0 %1547  ;;  %v1301_v31 = vmul.f32 %v8084_v27, %v8066_v37  ;;  %v1430_v46 = vpop.permute.xlu1 %1429 }
 0xe1d   :  { %8089 = vrcp.f32 %v1548_v24 }
 0xe1e   :  { %8091 = vrcp.f32 %v1545_v28  ;;  %v1303_v32 = vpack.c.bf16 %v1302_v63, %v1301_v31 }
 0xe20   :  { %v1305_v29 = vpop.permute.xlu0 %1304  ;;  %v1555_v42 = vpop.permute.xlu1 %1554 }
 0xe21   :  { %7353 = vmatpush3.bf16.msra.mxu1 %v1305_v29 }
 0xe22   :  { %7364 = vmatprep.subr.bf16.mxu1 %v8381_v14  ;;  %v8086_v34 = vpop.eup %8085 }
 0xe23   :  { %v8088_v35 = vpop.eup %8087  ;;  %v1427_v38 = vmul.f32 %v8086_v34, %v8072_v3 }
 0xe24   :  { %7355 = vmatmul.mubr.msk.bf16.vlgmr.msra.gmra.mxu1 %vm233_vm3, %v1303_v32  ;;  %v1426_v39 = vmul.f32 %v8088_v35, %v8070_v1 }
 0xe25   :  { %7365 = vmatpush3.bf16.msra.mxu1 %v1430_v46  ;;  %7366 = vmatprep.mubr.msk.bf16.mxu1 %vm8382_vm1, %v8381_v14 }
 0xe26   :  { %7376 = vmatprep.subr.bf16.mxu1 %v8381_v14  ;;  %v1428_v40 = vpack.c.bf16 %v1427_v38, %v1426_v39 }
 0xe2a   :  { %v8090_v41 = vpop.eup %8089 }
 0xe2b   :  { %v8092_v43 = vpop.eup %8091  ;;  %v1552_v44 = vmul.f32 %v8090_v41, %v8076_v7 }
 0xe2c   :  { %7367 = vmatmul.mubr.msk.bf16.vlgmr.msra.gmra.mxu1 %vm233_vm3, %v1428_v40  ;;  %v1551_v45 = vmul.f32 %v8092_v43, %v8074_v5 }
 0xe2d   :  { %7377 = vmatpush3.bf16.msra.mxu1 %v1555_v42  ;;  %7378 = vmatprep.mubr.msk.bf16.mxu1 %vm8382_vm1, %v8381_v14 }
 0xe2e   :  { %7390 = vmatprep.subr.bf16.mxu1 %v8381_v14  ;;  %v1553_v47 = vpack.c.bf16 %v1552_v44, %v1551_v45 }
 0xe34   :  { %7379 = vmatmul.mubr.msk.bf16.vlgmr.msra.gmra.mxu1 %vm233_vm3, %v1553_v47 }
 0xe35   :  { %7394 = vmatprep.mubr.msk.bf16.mxu1 %vm8382_vm1, %v8381_v14 }
 0xed7   :  { %v1219_v48 = vpop.f32.mrf.mxu1 }
 0xed9   :  { %v7344_v49 = vpop.f32.mrf.mxu1 }
 0xeda   :  { %v8397_v49 = vmov 0  }
 0xedb   :  { %v1222_v50 = vpop.f32.mrf.mxu1 }
 0xedd   :  { %v7345_v51 = vpop.f32.mrf.mxu1 }
 0xee4   :  { %v1344_v52 = vpop.f32.mrf.mxu1 }
 0xee6   :  { %v7356_v53 = vpop.f32.mrf.mxu1 }
 0xee8   :  { %v1347_v36 = vpop.f32.mrf.mxu1 }
 0xee9   :  { %v7834_v55 = vpack.i.bf16 %v1347_v36, %v1344_v52 }
 0xeea   :  { %v7357_v37 = vpop.f32.mrf.mxu1 }
 0xeeb   :  { %7835 = vrot.lane.b32.xlu1 %v7834_v55, %s10095_s22  ;;  %v6724_v55 = vld [vmem:[%s10035_s10 + $0x4] sm:$0xf] }
 0xeec   :  { %v1469_v56 = vpop.f32.mrf.mxu1 }
 0xeee   :  { %v7368_v57 = vpop.f32.mrf.mxu1 }
 0xeef   :  { %v1732_v57 = vrot.slane %v6724_v55, %v8515_v25 }
 0xef0   :  { %v1472_v59 = vpop.f32.mrf.mxu1 }
 0xef1   :  { %v7839_v60 = vpack.i.bf16 %v1472_v59, %v1469_v56 }
 0xef2   :  { %v7369_v61 = vpop.f32.mrf.mxu1 }
 0xef3   :  { %7840 = vrot.lane.b32.xlu0 %v7839_v60, %s10096_s21  ;;  %v1738_v61 = vrot.slane %v6724_v55, %v8522_v30 }
 0xef4   :  { %v1594_v62 = vpop.f32.mrf.mxu1 }
 0xef6   :  { %v7380_v0 = vpop.f32.mrf.mxu1 }
 0xef7   :  { %v1956_v0 = vld [vmem:[%s10040_s1 + $0x8] sm:$0xff] }
 0xef8   :  { %v1597_v1 = vpop.f32.mrf.mxu1 }
 0xef9   :  { %v7844_v2 = vpack.i.bf16 %v1597_v1, %v1594_v62  ;;  %v1958_v1 = vld [vmem:[%s10040_s1 + $0x18] sm:$0xff] }
 0xefa   :  { %v7381_v3 = vpop.f32.mrf.mxu1 }
 0xefb   :  { %7845 = vrot.lane.b32.xlu1 %v7844_v2, %s10097_s6 }
 0xf5d   :  { %v7836_v4 = vpop.permute.xlu1 %7835 }
 0xf5e   :  { %v7838_v6 = vunpack.i.h.bf16 %v7836_v4  ;;  %v7837_v7 = vunpack.i.l.bf16 %v7836_v4  ;;  %v7955_v4 = vld [vmem:[%s10039_s4 + $0x38] sm:$0xff]  }
 0xf60   :  { %v1626_v12 = vsel %vm181_vm2, %v1222_v50, %v7838_v6  ;;  %v1625_v13 = vsel %vm181_vm2, %v1219_v48, %v7837_v7  ;;  %v7954_v48 = vld [vmem:[%s10034_s11 + $0x10] sm:$0xff]  }
 0xf61   :  { %v7956_v7 = vld [vmem:[%s10039_s4 + $0x30] sm:$0xff]  }
 0xf65   :  { %v7841_v5 = vpop.permute.xlu0 %7840 }
 0xf66   :  { %v7843_v8 = vunpack.i.h.bf16 %v7841_v5  ;;  %v7842_v9 = vunpack.i.l.bf16 %v7841_v5  ;;  %v1960_v5 = vpack.c.bf16 %v1958_v1, %v1956_v0 }
 0xf68   :  { %v1628_v18 = vsel %vm233_vm3, %v1626_v12, %v7843_v8  ;;  %v1627_v19 = vsel %vm233_vm3, %v1625_v13, %v7842_v9  ;;  %v7957_v8 = vld [vmem:[%s10039_s4 + $0x28] sm:$0xff]   ;;  %v7958_v9 = vld [vmem:[%s10039_s4 + $0x20] sm:$0xff]   ;;  %v7960_v12 = vld [vmem:[%s10039_s4 + $0x10] sm:$0xff]  }
 0xf69   :  { %v7961_v13 = vld [vmem:[%s10039_s4 + $0x8] sm:$0xff]  }
 0xf6d   :  { %v7846_v10 = vpop.permute.xlu1 %7845 }
 0xf6e   :  { %v7848_v15 = vunpack.i.h.bf16 %v7846_v10  ;;  %v7847_v17 = vunpack.i.l.bf16 %v7846_v10  ;;  %v7959_v10 = vld [vmem:[%s10039_s4 + $0x18] sm:$0xff]  }
 0xf70   :  { %v1630_v20 = vsel %vm707_vm4, %v1628_v18, %v7848_v15  ;;  %v1629_v21 = vsel %vm707_vm4, %v1627_v19, %v7847_v17  ;;  %v7962_v15 = vld [vmem:[%s10039_s4] sm:$0xff]   ;;  %v7963_v17 = vld [vmem:[%s10039_s4 + $0x58] sm:$0xff]   ;;  %v7964_v18 = vld [vmem:[%s10039_s4 + $0x50] sm:$0xff]  }
 0xf71   :  { %v1631_v26 = vpack.c.bf16 %v1630_v20, %v1629_v21  ;;  %v7965_v19 = vld [vmem:[%s10039_s4 + $0x48] sm:$0xff]   ;;  %v7966_v20 = vld [vmem:[%s10039_s4 + $0x40] sm:$0xff]   ;;  %s10098_s4 = smov 96  }
 0xf72   :  { %v1955_v21 = vld [vmem:[%s10040_s1] sm:$0xff] }
 0xf73   :  { %7387 = vmatmul.mubr.msk.bf16.vlgmr.msra.gmra.mxu0 %vm68_vm0, %v1631_v26  ;;  %v1957_v26 = vld [vmem:[%s10040_s1 + $0x10] sm:$0xff]  ;;  %s10105_s1 = sld [smem:[#allocation5_spill]] }
 0xf74   :  { %7406 = vmatprep.mubr.msk.bf16.mxu0 %vm8382_vm1, %v8381_v14 }
0x1033   :  { %v1694_v24 = vpop.f32.mrf.mxu0 }
0x1034   :  { %v1695_v27 = vadd.f32 %v6747_v33, %v1694_v24  ;;  %v7967_v24 = vld [vmem:[%s10036_s13 + $0x38] sm:$0xff]  }
0x1035   :  { %v7388_v28 = vpop.f32.mrf.mxu0  ;;  %7399 = vmatpush3.bf16.msra.mxu0 %v7967_v24 }
0x1036   :  { %v1701_v63 = vadd.f32 %v1695_v27, %v8716_v22  ;;  %v7968_v27 = vld [vmem:[%s10036_s13 + $0x30] sm:$0xff]   ;;  %7400 = vmatprep.subr.bf16.mxu0 %v8381_v14  ;;  %v7969_v28 = vld [vmem:[%s10036_s13 + $0x28] sm:$0xff]  }
0x1037   :  { %v1697_v29 = vpop.f32.mrf.mxu0 }
0x1038   :  { %v1698_v31 = vadd.f32 %v6747_v33, %v1697_v29  ;;  %v1703_v32 = vsel %vm68_vm0, %v1701_v63, 0.0  ;;  %v1959_v33 = vpack.c.bf16 %v1957_v26, %v1955_v21  ;;  %v6756_v29 = vld [vmem:[%s10037_s12 + $0x1] ss:$0 sm:$0xff] }
0x1039   :  { %1704 = vadd.xlane.f32.xlu0 %v1703_v32  ;;  %v7389_v34 = vpop.f32.mrf.mxu0  ;;  %7401 = vmatpush3.bf16.msra.mxu0 %v7968_v27 }
0x103a   :  { %v1702_v46 = vadd.f32 %v1698_v31, %v8718_v23  ;;  %v7953_v23 = vld [vmem:[%s10034_s11 + $0x18] sm:$0xff]   ;;  %7402 = vmatprep.subr.bf16.mxu0 %v8381_v14 }
0x103b   :  { %7391 = vmatpush3.bf16.msra.mxu1 %v7953_v23 }
0x103c   :  { %v1706_v35 = vsel %vm68_vm0, %v1702_v46, 0.0  ;;  %7392 = vmatprep.subr.bf16.mxu1 %v8381_v14 }
0x103d   :  { %1707 = vadd.xlane.f32.xlu1 %v1706_v35  ;;  %7403 = vmatpush3.bf16.msra.mxu0 %v7969_v28 }
0x103e   :  { %7404 = vmatprep.subr.bf16.mxu0 %v8381_v14 }
0x103f   :  { %7393 = vmatpush3.bf16.msra.mxu1 %v7954_v48 }
0x1040   :  { %2062 = vmatprep.subr.bf16.mxu1 %v8397_v49 }
0x10c2   :  { %v1705_v38 = vpop.xlane.xlu0 %1704 }
0x10c3   :  { %v1709_v39 = vmul.f32 0.03125, %v1705_v38 }
0x10c5   :  { %v1711_v40 = vsub.f32 %v1701_v63, %v1709_v39  ;;  %v7970_v63 = vld [vmem:[%s10036_s13 + $0x20] sm:$0xff]  }
0x10c6   :  { %v1708_v41 = vpop.xlane.xlu1 %1707  ;;  %7405 = vmatpush3.bf16.msra.mxu0 %v7970_v63 }
0x10c7   :  { %v1710_v42 = vmul.f32 0.03125, %v1708_v41  ;;  %v1713_v43 = vmul.f32 %v1711_v40, %v1711_v40  ;;  %7410 = vmatprep.subr.bf16.mxu0 %v8381_v14 }
0x10c9   :  { %v1712_v44 = vsub.f32 %v1702_v46, %v1710_v42  ;;  %v1715_v22 = vsel %vm68_vm0, %v1713_v43, 0.0 }
0x10ca   :  { %1716 = vadd.xlane.f32.xlu0 %v1715_v22 }
0x10cb   :  { %v1714_v45 = vmul.f32 %v1712_v44, %v1712_v44 }
0x10cd   :  { %v1718_v47 = vsel %vm68_vm0, %v1714_v45, 0.0 }
0x10ce   :  { %1719 = vadd.xlane.f32.xlu0 %v1718_v47 }
0x1153   :  { %v1717_v50 = vpop.xlane.xlu0 %1716 }
0x1154   :  { %v1721_v51 = vmul.f32 0.03125, %v1717_v50 }
0x1156   :  { %v1723_v52 = vadd.f32 1e-12, %v1721_v51 }
0x1157   :  { %v1720_v53 = vpop.xlane.xlu0 %1719 }
0x1158   :  { %8093 = vrsqrt.f32 %v1723_v52  ;;  %v1722_v36 = vmul.f32 0.03125, %v1720_v53 }
0x115a   :  { %v1724_v54 = vadd.f32 1e-12, %v1722_v36 }
0x115c   :  { %8095 = vrsqrt.f32 %v1724_v54 }
0x1165   :  { %v8094_v37 = vpop.eup %8093 }
0x1166   :  { %v1727_v56 = vmul.f32 %v8094_v37, %v1711_v40  ;;  %v1985_v37 = vld [vmem:[%s10041_s5] sm:$0xff] }
0x1168   :  { %v1733_v60 = vmul.f32 %v1732_v57, %v1727_v56 }
0x1169   :  { %v8096_v58 = vpop.eup %8095 }
0x116a   :  { %v1728_v59 = vmul.f32 %v8096_v58, %v1712_v44  ;;  %v8859_v2 = vadd.f32 %v1738_v61, %v1733_v60 }
0x116c   :  { %v1734_v62 = vmul.f32 %v1732_v57, %v1728_v59  ;;  %v1986_v59 = vld [vmem:[%s10041_s5 + $0x8] sm:$0xff]  ;;  %s10101_s5 = smov 80  }
0x116e   :  { %v8861_v3 = vadd.f32 %v1738_v61, %v1734_v62 }
0x1170   :  { %v1741_v6 = vpack.c.bf16 %v8861_v3, %v8859_v2 }
0x1172   :  { %7395 = vmatmul.mubr.msk.bf16.vlgmr.msra.gmra.mxu1 %vm68_vm0, %v1741_v6 }
0x1173   :  { %2063 = vmatpush1.bf16.msra.mxu1 %v7955_v4  ;;  %6787 = vmatprep.mubr.msk.bf16.mxu1 %vm944_vm5, %v1960_v5 }
0x1174   :  { %2064 = vmatprep.subr.bf16.mxu1 %v8397_v49 }
0x1177   :  { %2065 = vmatpush1.bf16.msra.mxu1 %v7956_v7 }
0x1178   :  { %2066 = vmatprep.subr.bf16.mxu1 %v8397_v49 }
0x117b   :  { %2067 = vmatpush1.bf16.msra.mxu1 %v7957_v8 }
0x117c   :  { %2068 = vmatprep.subr.bf16.mxu1 %v8397_v49 }
0x117f   :  { %2069 = vmatpush1.bf16.msra.mxu1 %v7958_v9 }
0x1180   :  { %2070 = vmatprep.subr.bf16.mxu1 %v8397_v49 }
0x1183   :  { %2071 = vmatpush1.bf16.msra.mxu1 %v7959_v10 }
0x1184   :  { %2072 = vmatprep.subr.bf16.mxu1 %v8397_v49 }
0x1187   :  { %2073 = vmatpush1.bf16.msra.mxu1 %v7960_v12 }
0x1188   :  { %2074 = vmatprep.subr.bf16.mxu1 %v8397_v49 }
0x118b   :  { %2075 = vmatpush1.bf16.msra.mxu1 %v7961_v13 }
0x118c   :  { %2076 = vmatprep.subr.bf16.mxu1 %v8397_v49 }
0x118f   :  { %2077 = vmatpush1.bf16.msra.mxu1 %v7962_v15 }
0x1190   :  { %2086 = vmatprep.subr.bf16.mxu1 %v8397_v49 }
0x1193   :  { %2087 = vmatpush2.bf16.msra.mxu1 %v7963_v17  ;;  %v7971_v17 = vld [vmem:[%s10089_s30 + $0x28] sm:$0xff]  }
0x1194   :  { %2088 = vmatprep.subr.bf16.mxu1 %v8397_v49 }
0x1197   :  { %2089 = vmatpush2.bf16.msra.mxu1 %v7964_v18 }
0x1198   :  { %2090 = vmatprep.subr.bf16.mxu1 %v8397_v49 }
0x119b   :  { %2091 = vmatpush2.bf16.msra.mxu1 %v7965_v19  ;;  %v7972_v19 = vld [vmem:[%s10089_s30 + $0x20] sm:$0xff]  }
0x119c   :  { %2092 = vmatprep.subr.bf16.mxu1 %v8397_v49 }
0x119f   :  { %2093 = vmatpush2.bf16.msra.mxu1 %v7966_v20 }
0x11a0   :  { %7442 = vmatprep.subr.bf16.mxu1 %v8381_v14 }
0x11a2   :  { %2095 = vmatmul.mubr.bf16.vlgmr.msra.gmra.mxu1 %v1959_v33 }
0x11a3   :  { %7444 = vmatprep.mubr.msk.bf16.mxu1 %vm8382_vm1, %v8381_v14 }
0x1232   :  { %v1804_v31 = vpop.f32.mrf.mxu1 }
0x1233   :  { %v1805_v32 = vadd.f32 %v6756_v29, %v1804_v31  ;;  %v8978_v31 = vld [vmem:[%s10035_s10 + $0x8] sm:$0xf] }
0x1234   :  { %v7396_v34 = vpop.f32.mrf.mxu1 }
0x1235   :  { %v1813_v46 = vmul.f32 0.044715, %v1805_v32  ;;  %v1811_v51 = vmul.f32 0.5, %v1805_v32 }
0x1236   :  { %v1807_v35 = vpop.f32.mrf.mxu1 }
0x1237   :  { %v1815_v38 = vmul.f32 %v1813_v46, %v1805_v32  ;;  %v1808_v39 = vadd.f32 %v6756_v29, %v1807_v35  ;;  %v2134_v46 = vrot.slane %v8978_v31, %v8515_v25 }
0x1238   :  { %v7397_v40 = vpop.f32.mrf.mxu1 }
0x1239   :  { %v1817_v41 = vmul.f32 %v1815_v38, %v1805_v32  ;;  %v1814_v42 = vmul.f32 0.044715, %v1808_v39  ;;  %v1812_v52 = vmul.f32 0.5, %v1808_v39  ;;  %v2140_v40 = vrot.slane %v8978_v31, %v8522_v30 }
0x123b   :  { %v1819_v43 = vadd.f32 %v1817_v41, %v1805_v32  ;;  %v1816_v44 = vmul.f32 %v1814_v42, %v1808_v39 }
0x123d   :  { %v1821_v22 = vmul.f32 0.7978846, %v1819_v43  ;;  %v1818_v45 = vmul.f32 %v1816_v44, %v1808_v39 }
0x123f   :  { %8097 = vtanh.f32 %v1821_v22  ;;  %v1820_v47 = vadd.f32 %v1818_v45, %v1808_v39  ;;  %v6794_v45 = vld [vmem:[%s10030_s7 + $0x2] ss:$0 sm:$0xff] }
0x1241   :  { %v1822_v23 = vmul.f32 0.7978846, %v1820_v47 }
0x1243   :  { %8099 = vtanh.f32 %v1822_v23 }
0x124c   :  { %v8098_v48 = vpop.eup %8097 }
0x124d   :  { %v1825_v49 = vadd.f32 1.0, %v8098_v48 }
0x124f   :  { %v1827_v36 = vmul.f32 %v1825_v49, %v1811_v51 }
0x1250   :  { %v8100_v50 = vpop.eup %8099 }
0x1251   :  { %v1826_v53 = vadd.f32 1.0, %v8100_v50 }
0x1253   :  { %v1828_v54 = vmul.f32 %v1826_v53, %v1812_v52 }
0x1255   :  { %v1829_v55 = vpack.c.bf16 %v1828_v54, %v1827_v36 }
0x1257   :  { %7407 = vmatmul.mubr.msk.bf16.vlgmr.msra.gmra.mxu0 %vm944_vm5, %v1829_v55 }
0x1258   :  { %7414 = vmatprep.mubr.msk.bf16.mxu0 %vm8382_vm1, %v8381_v14  ;;  %7411 = vmatpush3.bf16.msra.mxu0 %v7971_v17 }
0x1259   :  { %7412 = vmatprep.subr.bf16.mxu0 %v8381_v14 }
0x125c   :  { %7413 = vmatpush3.bf16.msra.mxu0 %v7972_v19 }
0x125d   :  { %7418 = vmatprep.subr.bf16.mxu0 %v8381_v14 }
0x1262   :  { %v2096_v56 = vpop.f32.mrf.mxu1 }
0x1263   :  { %v8948_v57 = vadd.f32 %v2096_v56, %v1985_v37 }
0x1264   :  { %v2098_v58 = vpop.f32.mrf.mxu1 }
0x1265   :  { %v2105_v60 = vsel %vm68_vm0, %v8948_v57, 0.0  ;;  %v9015_v58 = vld [vmem:[%s10031_s2 + $0x20] sm:$0xff] }
0x1266   :  { %v2099_v61 = vpop.f32.mrf.mxu1  ;;  %2106 = vadd.xlane.f32.xlu0 %v2105_v60 }
0x1267   :  { %v8955_v62 = vadd.f32 %v2099_v61, %v1986_v59 }
0x1268   :  { %v2101_v0 = vpop.f32.mrf.mxu1 }
0x1269   :  { %v2108_v1 = vsel %vm68_vm0, %v8955_v62, 0.0 }
0x126a   :  { %2109 = vadd.xlane.f32.xlu1 %v2108_v1  ;;  %v9021_v1 = vld [vmem:[%s10031_s2 + $0x28] sm:$0xff] }
0x12ef   :  { %v2107_v4 = vpop.xlane.xlu0 %2106 }
0x12f0   :  { %v2111_v5 = vmul.f32 0.03125, %v2107_v4 }
0x12f2   :  { %v2113_v6 = vsub.f32 %v8948_v57, %v2111_v5 }
0x12f3   :  { %v2110_v7 = vpop.xlane.xlu1 %2109 }
0x12f4   :  { %v2112_v8 = vmul.f32 0.03125, %v2110_v7  ;;  %v2115_v9 = vmul.f32 %v2113_v6, %v2113_v6 }
0x12f6   :  { %v2114_v10 = vsub.f32 %v8955_v62, %v2112_v8  ;;  %v2117_v12 = vsel %vm68_vm0, %v2115_v9, 0.0 }
0x12f7   :  { %2118 = vadd.xlane.f32.xlu0 %v2117_v12 }
0x12f8   :  { %v2116_v13 = vmul.f32 %v2114_v10, %v2114_v10 }
0x12fa   :  { %v2120_v15 = vsel %vm68_vm0, %v2116_v13, 0.0 }
0x12fb   :  { %2121 = vadd.xlane.f32.xlu1 %v2120_v15 }
0x1317   :  { %v8966_v18 = vpop.f32.mrf.mxu0 }
0x1319   :  { %v7408_v20 = vpop.f32.mrf.mxu0 }
0x131b   :  { %v8972_v21 = vpop.f32.mrf.mxu0 }
0x131d   :  { %v7409_v26 = vpop.f32.mrf.mxu0 }
0x1380   :  { %v2119_v33 = vpop.xlane.xlu0 %2118 }
0x1381   :  { %v2123_v24 = vmul.f32 0.03125, %v2119_v33 }
0x1383   :  { %v2125_v27 = vadd.f32 1e-12, %v2123_v24 }
0x1384   :  { %v2122_v28 = vpop.xlane.xlu1 %2121 }
0x1385   :  { %8101 = vrsqrt.f32 %v2125_v27  ;;  %v2124_v63 = vmul.f32 0.03125, %v2122_v28 }
0x1387   :  { %v2126_v29 = vadd.f32 1e-12, %v2124_v63 }
0x1389   :  { %8103 = vrsqrt.f32 %v2126_v29 }
0x1392   :  { %v8102_v32 = vpop.eup %8101 }
0x1393   :  { %v2129_v34 = vmul.f32 %v8102_v32, %v2113_v6 }
0x1395   :  { %v2135_v39 = vmul.f32 %v2134_v46, %v2129_v34 }
0x1396   :  { %v8104_v35 = vpop.eup %8103 }
0x1397   :  { %v2130_v38 = vmul.f32 %v8104_v35, %v2114_v10  ;;  %v2141_v42 = vadd.f32 %v2140_v40, %v2135_v39 }
0x1399   :  { %v2136_v41 = vmul.f32 %v2134_v46, %v2130_v38 }
0x139b   :  { %v2142_v43 = vadd.f32 %v2140_v40, %v2136_v41 }
0x139d   :  { %v2143_v44 = vpack.c.bf16 %v2142_v43, %v2141_v42 }
0x139f   :  { %7415 = vmatmul.mubr.msk.bf16.vlgmr.msra.gmra.mxu0 %vm68_vm0, %v2143_v44 }
0x13a0   :  { %7420 = vmatprep.mubr.msk.bf16.mxu0 %vm8382_vm1, %v8381_v14 }
0x145f   :  { %v2206_v22 = vpop.f32.mrf.mxu0 }
0x1460   :  { %v2207_v48 = vadd.f32 %v6794_v45, %v2206_v22 }
0x1461   :  { %v7416_v47 = vpop.f32.mrf.mxu0 }
0x1463   :  { %v2209_v23 = vpop.f32.mrf.mxu0 }
0x1464   :  { %v2210_v49 = vadd.f32 %v6794_v45, %v2209_v23 }
0x1465   :  { %v7417_v50 = vpop.f32.mrf.mxu0 }
0x1466   :  { %v8990_v51 = vpack.c.bf16 %v2210_v49, %v2207_v48 }
0x1468   :  { %2215 = vrot.lane.b32.xlu0 %v8990_v51, %s10098_s4 }
0x146c   :  { %2340 = vrot.lane.b32.xlu0 %v8990_v51, %s10099_s16 }
0x1470   :  { %2338 = vrot.lane.b32.xlu0 %v8990_v51, %s10100_s28 }
0x1474   :  { %2465 = vrot.lane.b32.xlu0 %v8990_v51, %s10101_s5 }
0x1478   :  { %2590 = vrot.lane.b32.xlu0 %v8990_v51, %s10090_s29 }
0x14da   :  { %v2216_v52 = vpop.permute.xlu0 %2215 }
0x14db   :  { %v2221_v53 = vsel %vm181_vm2, %v2216_v52, 0 }
0x14dc   :  { %7419 = vmatpush3.bf16.xpose.msra.mxu0 %v2221_v53 }
0x14dd   :  { %7424 = vmatprep.subr.bf16.mxu0 %v8381_v14 }
0x14de   :  { %v2341_v36 = vpop.permute.xlu0 %2340 }
0x14df   :  { %v2346_v41 = vsel %vm181_vm2, %v2341_v36, 0 }
0x14e2   :  { %v9004_v54 = vpop.permute.xlu0 %2338 }
0x14e3   :  { %7421 = vmatmul.mubr.msk.bf16.vlgmr.msra.gmra.mxu0 %vm181_vm2, %v8990_v51 }
0x14e4   :  { %7426 = vmatprep.mubr.msk.bf16.mxu0 %vm8382_vm1, %v8381_v14 }
0x14e6   :  { %v2466_v55 = vpop.permute.xlu0 %2465 }
0x14e7   :  { %v2471_v37 = vsel %vm181_vm2, %v2466_v55, 0 }
0x14e8   :  { %7443 = vmatpush3.bf16.xpose.msra.mxu1 %v2471_v37 }
0x14e9   :  { %7454 = vmatprep.subr.bf16.mxu1 %v8381_v14 }
0x14ea   :  { %v2591_v63 = vpop.permute.xlu0 %2590 }
0x14eb   :  { %v2596_v32 = vsel %vm181_vm2, %v2591_v63, 0 }
0x15a3   :  { %v2257_v56 = vpop.f32.mrf.mxu0 }
0x15a4   :  { %v2264_v59 = vmul.f32 0.35355338, %v2257_v56 }
0x15a5   :  { %v7422_v60 = vpop.f32.mrf.mxu0 }
0x15a6   :  { %v2266_v61 = vadd.f32 %v2264_v59, %v9015_v58 }
0x15a7   :  { %v2260_v0 = vpop.f32.mrf.mxu0 }
0x15a8   :  { %v2265_v4 = vmul.f32 0.35355338, %v2260_v0  ;;  %v2268_v5 = vsel %vm233_vm3, %v2266_v61, -inf }
0x15a9   :  { %2269 = vmax.xlane.f32.xlu1 %v2268_v5  ;;  %v7423_v6 = vpop.f32.mrf.mxu0 }
0x15aa   :  { %v2267_v7 = vadd.f32 %v2265_v4, %v9021_v1 }
0x15ac   :  { %v2271_v8 = vsel %vm233_vm3, %v2267_v7, -inf }
0x15ad   :  { %2272 = vmax.xlane.f32.xlu1 %v2271_v8 }
0x1632   :  { %v2270_v9 = vpop.xlane.xlu1 %2269 }
0x1633   :  { %v2274_v10 = vsub.f32 %v2266_v61, %v2270_v9 }
0x1635   :  { %v2276_v12 = vmul.f32 1.442695, %v2274_v10 }
0x1636   :  { %v2273_v13 = vpop.xlane.xlu1 %2272 }
0x1637   :  { %8105 = vpow2.f32 %v2276_v12  ;;  %v2275_v15 = vsub.f32 %v2267_v7, %v2273_v13 }
0x1639   :  { %v2278_v17 = vmul.f32 1.442695, %v2275_v15 }
0x163b   :  { %8107 = vpow2.f32 %v2278_v17 }
0x1644   :  { %v8106_v19 = vpop.eup %8105 }
0x1645   :  { %v2280_v20 = vsel %vm233_vm3, %v8106_v19, 0.0 }
0x1646   :  { %2281 = vadd.xlane.f32.xlu1 %v2280_v20 }
0x1648   :  { %v8108_v26 = vpop.eup %8107 }
0x1649   :  { %v2283_v33 = vsel %vm233_vm3, %v8108_v26, 0.0 }
0x164a   :  { %2284 = vadd.xlane.f32.xlu1 %v2283_v33 }
0x165b   :  { %2291 = vrot.lane.b32.xlu1 %v8990_v51, %s10091_s0 }
0x165f   :  { %2463 = vrot.lane.b32.xlu1 %v8990_v51, %s10102_s23 }
0x1663   :  { %2588 = vrot.lane.b32.xlu1 %v8990_v51, %s10103_s24 }
0x16cf   :  { %v2282_v24 = vpop.xlane.xlu1 %2281 }
0x16d0   :  { %8109 = vrcp.f32 %v2282_v24 }
0x16d3   :  { %v2285_v27 = vpop.xlane.xlu1 %2284 }
0x16d4   :  { %8111 = vrcp.f32 %v2285_v27 }
0x16d7   :  { %v2292_v28 = vpop.permute.xlu1 %2291 }
0x16d8   :  { %7425 = vmatpush3.bf16.msra.mxu0 %v2292_v28 }
0x16d9   :  { %7430 = vmatprep.subr.bf16.mxu0 %v8381_v14 }
0x16db   :  { %v2464_v29 = vpop.permute.xlu1 %2463 }
0x16dc   :  { %7445 = vmatmul.mubr.msk.bf16.vlgmr.msra.gmra.mxu1 %vm181_vm2, %v2464_v29 }
0x16dd   :  { %7455 = vmatpush3.bf16.xpose.msra.mxu1 %v2596_v32  ;;  %7456 = vmatprep.mubr.msk.bf16.mxu1 %vm8382_vm1, %v8381_v14  ;;  %v8110_v34 = vpop.eup %8109 }
0x16de   :  { %7466 = vmatprep.subr.bf16.mxu1 %v8381_v14  ;;  %v2288_v35 = vmul.f32 %v8110_v34, %v8106_v19 }
0x16df   :  { %v2589_v39 = vpop.permute.xlu1 %2588 }
0x16e1   :  { %v8112_v46 = vpop.eup %8111 }
0x16e2   :  { %v2289_v38 = vmul.f32 %v8112_v46, %v8108_v26 }
0x16e4   :  { %7457 = vmatmul.mubr.msk.bf16.vlgmr.msra.gmra.mxu1 %vm181_vm2, %v2589_v39  ;;  %v2290_v40 = vpack.c.bf16 %v2289_v38, %v2288_v35 }
0x16e5   :  { %7470 = vmatprep.mubr.msk.bf16.mxu1 %vm8382_vm1, %v8381_v14 }
0x16e6   :  { %7427 = vmatmul.mubr.msk.bf16.vlgmr.msra.gmra.mxu0 %vm233_vm3, %v2290_v40 }
0x16e7   :  { %7431 = vmatpush3.bf16.xpose.msra.mxu0 %v2346_v41  ;;  %7432 = vmatprep.mubr.msk.bf16.mxu0 %vm8382_vm1, %v8381_v14 }
0x16e8   :  { %7436 = vmatprep.subr.bf16.mxu0 %v8381_v14 }
0x16ee   :  { %7433 = vmatmul.mubr.msk.bf16.vlgmr.msra.gmra.mxu0 %vm181_vm2, %v9004_v54 }
0x16ef   :  { %7438 = vmatprep.mubr.msk.bf16.mxu0 %vm8382_vm1, %v8381_v14 }
0x179c   :  { %v2507_v42 = vpop.f32.mrf.mxu1 }
0x179d   :  { %v2514_v36 = vmul.f32 0.35355338, %v2507_v42 }
0x179e   :  { %v7446_v43 = vpop.f32.mrf.mxu1 }
0x179f   :  { %v2516_v61 = vadd.f32 %v2514_v36, %v9015_v58 }
0x17a0   :  { %v2510_v44 = vpop.f32.mrf.mxu1 }
0x17a1   :  { %v2515_v59 = vmul.f32 0.35355338, %v2510_v44  ;;  %v2518_v8 = vsel %vm233_vm3, %v2516_v61, -inf }
0x17a2   :  { %v7447_v22 = vpop.f32.mrf.mxu1 }
0x17a3   :  { %v2517_v12 = vadd.f32 %v2515_v59, %v9021_v1 }
0x17a4   :  { %v2632_v45 = vpop.f32.mrf.mxu1 }
0x17a5   :  { %v2639_v9 = vmul.f32 0.35355338, %v2632_v45  ;;  %v2521_v15 = vsel %vm233_vm3, %v2517_v12, -inf }
0x17a6   :  { %v9052_v47 = vpop.f32.mrf.mxu0  ;;  %v7458_v23 = vpop.f32.mrf.mxu1 }
0x17a7   :  { %v2641_v19 = vadd.f32 %v2639_v9, %v9015_v58 }
0x17a8   :  { %v7428_v48 = vpop.f32.mrf.mxu0  ;;  %v2635_v49 = vpop.f32.mrf.mxu1 }
0x17a9   :  { %v2640_v0 = vmul.f32 0.35355338, %v2635_v49  ;;  %v2643_v20 = vsel %vm233_vm3, %v2641_v19, -inf }
0x17aa   :  { %v9054_v50 = vpop.f32.mrf.mxu0  ;;  %v7459_v52 = vpop.f32.mrf.mxu1 }
0x17ab   :  { %v2642_v13 = vadd.f32 %v2640_v0, %v9021_v1 }
0x17ac   :  { %v7429_v53 = vpop.f32.mrf.mxu0 }
0x17ad   :  { %v2646_v17 = vsel %vm233_vm3, %v2642_v13, -inf }
0x17ae   :  { %v2382_v55 = vpop.f32.mrf.mxu0 }
0x17af   :  { %v2389_v54 = vmul.f32 0.35355338, %v2382_v55 }
0x17b0   :  { %v7434_v37 = vpop.f32.mrf.mxu0 }
0x17b1   :  { %v2391_v56 = vadd.f32 %v2389_v54, %v9015_v58 }
0x17b2   :  { %v2385_v60 = vpop.f32.mrf.mxu0 }
0x17b3   :  { %v2390_v4 = vmul.f32 0.35355338, %v2385_v60  ;;  %v2393_v5 = vsel %vm233_vm3, %v2391_v56, -inf }
0x17b4   :  { %2394 = vmax.xlane.f32.xlu0 %v2393_v5  ;;  %v7435_v6 = vpop.f32.mrf.mxu0 }
0x17b5   :  { %v2392_v7 = vadd.f32 %v2390_v4, %v9021_v1 }
0x17b7   :  { %v2396_v10 = vsel %vm233_vm3, %v2392_v7, -inf }
0x17b8   :  { %2519 = vmax.xlane.f32.xlu0 %v2518_v8  ;;  %2397 = vmax.xlane.f32.xlu1 %v2396_v10 }
0x17bc   :  { %2522 = vmax.xlane.f32.xlu0 %v2521_v15  ;;  %2647 = vmax.xlane.f32.xlu1 %v2646_v17 }
0x17c0   :  { %2644 = vmax.xlane.f32.xlu0 %v2643_v20 }
0x183d   :  { %v2395_v26 = vpop.xlane.xlu0 %2394 }
0x183e   :  { %v2399_v46 = vsub.f32 %v2391_v56, %v2395_v26 }
0x1840   :  { %v2401_v42 = vmul.f32 1.442695, %v2399_v46  ;;  %v7973_v46 = vld [vmem:[%s10032_s8 + $0x28] sm:$0xff]  }
0x1841   :  { %v2520_v33 = vpop.xlane.xlu0 %2519  ;;  %v2398_v24 = vpop.xlane.xlu1 %2397  ;;  %7467 = vmatpush3.bf16.msra.mxu1 %v7973_v46  ;;  %v7976_v46 = vld [vmem:[%s10034_s11 + $0x20] sm:$0xff]  }
0x1842   :  { %v2524_v27 = vsub.f32 %v2516_v61, %v2520_v33  ;;  %v2400_v35 = vsub.f32 %v2392_v7, %v2398_v24  ;;  %7468 = vmatprep.subr.bf16.mxu1 %v8381_v14 }
0x1844   :  { %v2526_v28 = vmul.f32 1.442695, %v2524_v27  ;;  %v2403_v43 = vmul.f32 1.442695, %v2400_v35 }
0x1845   :  { %v2523_v63 = vpop.xlane.xlu0 %2522  ;;  %v2648_v29 = vpop.xlane.xlu1 %2647 }
0x1846   :  { %8113 = vpow2.f32 %v2526_v28  ;;  %v2525_v32 = vsub.f32 %v2517_v12, %v2523_v63  ;;  %v2650_v34 = vsub.f32 %v2642_v13, %v2648_v29 }
0x1848   :  { %v2528_v38 = vmul.f32 1.442695, %v2525_v32  ;;  %v2653_v39 = vmul.f32 1.442695, %v2650_v34 }
0x1849   :  { %v2645_v40 = vpop.xlane.xlu0 %2644 }
0x184a   :  { %8115 = vpow2.f32 %v2528_v38  ;;  %v2649_v41 = vsub.f32 %v2641_v19, %v2645_v40 }
0x184b   :  { %8117 = vpow2.f32 %v2653_v39 }
0x184c   :  { %v2651_v44 = vmul.f32 1.442695, %v2649_v41  ;;  %v7974_v41 = vld [vmem:[%s10032_s8 + $0x20] sm:$0xff]  }
0x184d   :  { %7469 = vmatpush3.bf16.msra.mxu1 %v7974_v41 }
0x184e   :  { %8119 = vpow2.f32 %v2651_v44  ;;  %7482 = vmatprep.subr.bf16.mxu1 %v8381_v14 }
0x184f   :  { %8121 = vpow2.f32 %v2401_v42 }
0x1850   :  { %8123 = vpow2.f32 %v2403_v43 }
0x1853   :  { %v8114_v22 = vpop.eup %8113 }
0x1854   :  { %v2530_v45 = vsel %vm233_vm3, %v8114_v22, 0.0 }
0x1855   :  { %2531 = vadd.xlane.f32.xlu0 %v2530_v45 }
0x1857   :  { %v8116_v23 = vpop.eup %8115 }
0x1858   :  { %v2533_v48 = vsel %vm233_vm3, %v8116_v23, 0.0  ;;  %v8118_v49 = vpop.eup %8117 }
0x1859   :  { %2534 = vadd.xlane.f32.xlu1 %v2533_v48  ;;  %v2658_v55 = vsel %vm233_vm3, %v8118_v49, 0.0 }
0x185b   :  { %v8120_v52 = vpop.eup %8119 }
0x185c   :  { %v8122_v53 = vpop.eup %8121  ;;  %v2655_v36 = vsel %vm233_vm3, %v8120_v52, 0.0 }
0x185d   :  { %v8124_v54 = vpop.eup %8123  ;;  %2656 = vadd.xlane.f32.xlu0 %v2655_v36  ;;  %2659 = vadd.xlane.f32.xlu1 %v2658_v55  ;;  %v2405_v37 = vsel %vm233_vm3, %v8122_v53, 0.0 }
0x185e   :  { %v2408_v56 = vsel %vm233_vm3, %v8124_v54, 0.0 }
0x1861   :  { %2406 = vadd.xlane.f32.xlu0 %v2405_v37  ;;  %2409 = vadd.xlane.f32.xlu1 %v2408_v56 }
0x1872   :  { %2541 = vrot.lane.b32.xlu1 %v8990_v51, %s10092_s18 }
0x1876   :  { %2666 = vrot.lane.b32.xlu1 %v8990_v51, %s10093_s19 }
0x1877   :  { %2416 = vrot.lane.b32.xlu0 %v8990_v51, %s10094_s20 }
0x18de   :  { %v2532_v59 = vpop.xlane.xlu0 %2531 }
0x18e2   :  { %v2535_v60 = vpop.xlane.xlu1 %2534 }
0x18e6   :  { %v2657_v61 = vpop.xlane.xlu0 %2656  ;;  %v2660_v0 = vpop.xlane.xlu1 %2659 }
0x18ea   :  { %v2407_v4 = vpop.xlane.xlu0 %2406  ;;  %v2410_v5 = vpop.xlane.xlu1 %2409 }
0x18eb   :  { %8125 = vrcp.f32 %v2407_v4 }
0x18ec   :  { %8127 = vrcp.f32 %v2410_v5 }
0x18ed   :  { %8129 = vrcp.f32 %v2535_v60 }
0x18ee   :  { %v2417_v6 = vpop.permute.xlu0 %2416  ;;  %8131 = vrcp.f32 %v2532_v59  ;;  %v2542_v13 = vpop.permute.xlu1 %2541 }
0x18ef   :  { %7437 = vmatpush3.bf16.msra.mxu0 %v2417_v6  ;;  %8133 = vrcp.f32 %v2657_v61 }
0x18f0   :  { %7448 = vmatprep.subr.bf16.mxu0 %v8381_v14  ;;  %8135 = vrcp.f32 %v2660_v0 }
0x18f2   :  { %v2667_v24 = vpop.permute.xlu1 %2666 }
0x18f8   :  { %v8126_v7 = vpop.eup %8125 }
0x18f9   :  { %v8128_v8 = vpop.eup %8127  ;;  %v2413_v9 = vmul.f32 %v8126_v7, %v8122_v53 }
0x18fa   :  { %v2414_v51 = vmul.f32 %v8128_v8, %v8124_v54  ;;  %v8130_v12 = vpop.eup %8129 }
0x18fb   :  { %v8132_v15 = vpop.eup %8131  ;;  %v2539_v17 = vmul.f32 %v8130_v12, %v8116_v23 }
0x18fc   :  { %v2415_v10 = vpack.c.bf16 %v2414_v51, %v2413_v9  ;;  %v2538_v19 = vmul.f32 %v8132_v15, %v8114_v22  ;;  %v8134_v20 = vpop.eup %8133 }
0x18fd   :  { %v8136_v33 = vpop.eup %8135  ;;  %v2663_v27 = vmul.f32 %v8134_v20, %v8120_v52 }
0x18fe   :  { %7439 = vmatmul.mubr.msk.bf16.vlgmr.msra.gmra.mxu0 %vm233_vm3, %v2415_v10  ;;  %v2540_v26 = vpack.c.bf16 %v2539_v17, %v2538_v19  ;;  %v2664_v28 = vmul.f32 %v8136_v33, %v8118_v49 }
0x18ff   :  { %7449 = vmatpush3.bf16.msra.mxu0 %v2542_v13  ;;  %7450 = vmatprep.mubr.msk.bf16.mxu0 %vm8382_vm1, %v8381_v14 }
0x1900   :  { %7460 = vmatprep.subr.bf16.mxu0 %v8381_v14  ;;  %v2665_v63 = vpack.c.bf16 %v2664_v28, %v2663_v27 }
0x1906   :  { %7451 = vmatmul.mubr.msk.bf16.vlgmr.msra.gmra.mxu0 %vm233_vm3, %v2540_v26 }
0x1907   :  { %7461 = vmatpush3.bf16.msra.mxu0 %v2667_v24  ;;  %7462 = vmatprep.mubr.msk.bf16.mxu0 %vm8382_vm1, %v8381_v14 }
0x1908   :  { %7474 = vmatprep.subr.bf16.mxu0 %v8381_v14 }
0x190e   :  { %7463 = vmatmul.mubr.msk.bf16.vlgmr.msra.gmra.mxu0 %vm233_vm3, %v2665_v63 }
0x190f   :  { %7478 = vmatprep.mubr.msk.bf16.mxu0 %vm8382_vm1, %v8381_v14 }
0x19be   :  { %v2456_v29 = vpop.f32.mrf.mxu0 }
0x19c0   :  { %v7440_v32 = vpop.f32.mrf.mxu0 }
0x19c2   :  { %v2459_v34 = vpop.f32.mrf.mxu0 }
0x19c3   :  { %v7849_v35 = vpack.i.bf16 %v2459_v34, %v2456_v29  ;;  %v7975_v34 = vld [vmem:[%s10034_s11 + $0x28] sm:$0xff]  }
0x19c4   :  { %v7441_v38 = vpop.f32.mrf.mxu0  ;;  %7475 = vmatpush3.bf16.msra.mxu0 %v7975_v34 }
0x19c5   :  { %7850 = vrot.lane.b32.xlu1 %v7849_v35, %s10095_s22  ;;  %7476 = vmatprep.subr.bf16.mxu0 %v8381_v14 }
0x19c6   :  { %v2581_v39 = vpop.f32.mrf.mxu0 }
0x19c8   :  { %v7452_v40 = vpop.f32.mrf.mxu0  ;;  %7477 = vmatpush3.bf16.msra.mxu0 %v7976_v46 }
0x19c9   :  { %7494 = vmatprep.subr.bf16.mxu0 %v8381_v14 }
0x19ca   :  { %v2584_v42 = vpop.f32.mrf.mxu0 }
0x19cb   :  { %v7854_v43 = vpack.i.bf16 %v2584_v42, %v2581_v39 }
0x19cc   :  { %v7453_v44 = vpop.f32.mrf.mxu0 }
0x19cd   :  { %7855 = vrot.lane.b32.xlu0 %v7854_v43, %s10096_s21 }
0x19ce   :  { %v2706_v22 = vpop.f32.mrf.mxu0 }
0x19d0   :  { %v7464_v45 = vpop.f32.mrf.mxu0 }
0x19d2   :  { %v2709_v23 = vpop.f32.mrf.mxu0 }
0x19d3   :  { %v7859_v48 = vpack.i.bf16 %v2709_v23, %v2706_v22  ;;  %v2844_v22 = vrot.slane %v8978_v31, %v8707_v11 }
0x19d4   :  { %v7465_v49 = vpop.f32.mrf.mxu0 }
0x19d5   :  { %7860 = vrot.lane.b32.xlu1 %v7859_v48, %s10097_s6  ;;  %v2850_v49 = vrot.slane %v8978_v31, %v8712_v16  ;;  %v7979_v31 = vld [vmem:[%s10036_s13 + $0x48] sm:$0xff]  }
0x1a37   :  { %v7851_v52 = vpop.permute.xlu1 %7850 }
0x1a38   :  { %v7853_v36 = vunpack.i.h.bf16 %v7851_v52  ;;  %v7852_v55 = vunpack.i.l.bf16 %v7851_v52 }
0x1a3a   :  { %v2738_v59 = vsel %vm181_vm2, %v9054_v50, %v7853_v36  ;;  %v2737_v60 = vsel %vm181_vm2, %v9052_v47, %v7852_v55  ;;  %v6811_v47 = vld [vmem:[%s10033_s9 + $0x2] ss:$0 sm:$0xff] }
0x1a3f   :  { %v7856_v53 = vpop.permute.xlu0 %7855 }
0x1a40   :  { %v7858_v54 = vunpack.i.h.bf16 %v7856_v53  ;;  %v7857_v37 = vunpack.i.l.bf16 %v7856_v53 }
0x1a42   :  { %v2740_v4 = vsel %vm233_vm3, %v2738_v59, %v7858_v54  ;;  %v2739_v5 = vsel %vm233_vm3, %v2737_v60, %v7857_v37  ;;  %v7977_v54 = vld [vmem:[%s10036_s13 + $0x58] sm:$0xff]   ;;  %v7978_v37 = vld [vmem:[%s10036_s13 + $0x50] sm:$0xff]   ;;  %v6820_v59 = vld [vmem:[%s10037_s12 + $0x2] ss:$0 sm:$0xff] }
0x1a47   :  { %v7861_v56 = vpop.permute.xlu1 %7860 }
0x1a48   :  { %v7863_v61 = vunpack.i.h.bf16 %v7861_v56  ;;  %v7862_v0 = vunpack.i.l.bf16 %v7861_v56  ;;  %v7980_v56 = vld [vmem:[%s10036_s13 + $0x40] sm:$0xff]  }
0x1a4a   :  { %v2742_v6 = vsel %vm707_vm4, %v2740_v4, %v7863_v61  ;;  %v2741_v7 = vsel %vm707_vm4, %v2739_v5, %v7862_v0 }
0x1a4b   :  { %v2743_v8 = vpack.c.bf16 %v2742_v6, %v2741_v7 }
0x1a4d   :  { %7471 = vmatmul.mubr.msk.bf16.vlgmr.msra.gmra.mxu1 %vm68_vm0, %v2743_v8 }
0x1a4e   :  { %7490 = vmatprep.mubr.msk.bf16.mxu1 %vm8382_vm1, %v8381_v14  ;;  %7483 = vmatpush3.bf16.msra.mxu1 %v7977_v54 }
0x1a4f   :  { %7484 = vmatprep.subr.bf16.mxu1 %v8381_v14 }
0x1a52   :  { %7485 = vmatpush3.bf16.msra.mxu1 %v7978_v37 }
0x1a53   :  { %7486 = vmatprep.subr.bf16.mxu1 %v8381_v14 }
0x1a56   :  { %7487 = vmatpush3.bf16.msra.mxu1 %v7979_v31 }
0x1a57   :  { %7488 = vmatprep.subr.bf16.mxu1 %v8381_v14 }
0x1a5a   :  { %7489 = vmatpush3.bf16.msra.mxu1 %v7980_v56 }
0x1a5b   :  { %7508 = vmatprep.subr.bf16.mxu1 %v8381_v14 }
0x1b0d   :  { %v2806_v50 = vpop.f32.mrf.mxu1 }
0x1b0e   :  { %v2807_v9 = vadd.f32 %v6811_v47, %v2806_v50 }
0x1b0f   :  { %v7472_v51 = vpop.f32.mrf.mxu1 }
0x1b10   :  { %v9118_v10 = vadd.f32 %v2807_v9, %v8948_v57 }
0x1b11   :  { %v2809_v12 = vpop.f32.mrf.mxu1 }
0x1b12   :  { %v2810_v13 = vadd.f32 %v6811_v47, %v2809_v12  ;;  %v2815_v15 = vsel %vm68_vm0, %v9118_v10, 0.0 }
0x1b13   :  { %2816 = vadd.xlane.f32.xlu0 %v2815_v15  ;;  %v7473_v17 = vpop.f32.mrf.mxu1 }
0x1b14   :  { %v9123_v19 = vadd.f32 %v2810_v13, %v8955_v62 }
0x1b16   :  { %v2818_v20 = vsel %vm68_vm0, %v9123_v19, 0.0 }
0x1b17   :  { %2819 = vadd.xlane.f32.xlu1 %v2818_v20 }
0x1b9c   :  { %v2817_v26 = vpop.xlane.xlu0 %2816 }
0x1b9d   :  { %v2821_v33 = vmul.f32 0.03125, %v2817_v26 }
0x1b9f   :  { %v2823_v24 = vsub.f32 %v9118_v10, %v2821_v33 }
0x1ba0   :  { %v2820_v57 = vpop.xlane.xlu1 %2819 }
0x1ba1   :  { %v2822_v27 = vmul.f32 0.03125, %v2820_v57  ;;  %v2825_v28 = vmul.f32 %v2823_v24, %v2823_v24 }
0x1ba3   :  { %v2824_v63 = vsub.f32 %v9123_v19, %v2822_v27  ;;  %v2827_v29 = vsel %vm68_vm0, %v2825_v28, 0.0 }
0x1ba4   :  { %2828 = vadd.xlane.f32.xlu0 %v2827_v29 }
0x1ba5   :  { %v2826_v32 = vmul.f32 %v2824_v63, %v2824_v63 }
0x1ba7   :  { %v2830_v62 = vsel %vm68_vm0, %v2826_v32, 0.0  ;;  %v6833_v32 = vld [vmem:[%s10038_s14 + $0x2] ss:$0 sm:$0xff] }
0x1ba8   :  { %2831 = vadd.xlane.f32.xlu0 %v2830_v62 }
0x1c2d   :  { %v2829_v35 = vpop.xlane.xlu0 %2828 }
0x1c2e   :  { %v2833_v38 = vmul.f32 0.03125, %v2829_v35 }
0x1c30   :  { %v2835_v39 = vadd.f32 1e-12, %v2833_v38 }
0x1c31   :  { %v2832_v40 = vpop.xlane.xlu0 %2831 }
0x1c32   :  { %8137 = vrsqrt.f32 %v2835_v39  ;;  %v2834_v41 = vmul.f32 0.03125, %v2832_v40 }
0x1c34   :  { %v2836_v42 = vadd.f32 1e-12, %v2834_v41 }
0x1c36   :  { %8139 = vrsqrt.f32 %v2836_v42 }
0x1c3f   :  { %v8138_v43 = vpop.eup %8137 }
0x1c40   :  { %v2839_v44 = vmul.f32 %v8138_v43, %v2823_v24 }
0x1c42   :  { %v2845_v48 = vmul.f32 %v2844_v22, %v2839_v44 }
0x1c43   :  { %v8140_v45 = vpop.eup %8139 }
0x1c44   :  { %v2840_v23 = vmul.f32 %v8140_v45, %v2824_v63  ;;  %v2851_v53 = vadd.f32 %v2850_v49, %v2845_v48 }
0x1c46   :  { %v2846_v52 = vmul.f32 %v2844_v22, %v2840_v23 }
0x1c48   :  { %v2852_v36 = vadd.f32 %v2850_v49, %v2846_v52 }
0x1c4a   :  { %v2853_v55 = vpack.c.bf16 %v2852_v36, %v2851_v53  ;;  %v7981_v36 = vld [vmem:[%s10089_s30 + $0x38] sm:$0xff]  }
0x1c4c   :  { %7479 = vmatmul.mubr.msk.bf16.vlgmr.msra.gmra.mxu0 %vm68_vm0, %v2853_v55  ;;  %v7982_v55 = vld [vmem:[%s10089_s30 + $0x30] sm:$0xff]  }
0x1c4d   :  { %7498 = vmatprep.mubr.msk.bf16.mxu0 %vm8382_vm1, %v8381_v14  ;;  %7495 = vmatpush3.bf16.msra.mxu0 %v7981_v36 }
0x1c4e   :  { %7496 = vmatprep.subr.bf16.mxu0 %v8381_v14 }
0x1c51   :  { %7497 = vmatpush3.bf16.msra.mxu0 %v7982_v55 }
0x1c52   :  { %7502 = vmatprep.subr.bf16.mxu0 %v8381_v14 }
0x1d0c   :  { %v2916_v60 = vpop.f32.mrf.mxu0 }
0x1d0d   :  { %v2917_v61 = vadd.f32 %v6820_v59, %v2916_v60 }
0x1d0e   :  { %v7480_v0 = vpop.f32.mrf.mxu0 }
0x1d0f   :  { %v2925_v4 = vmul.f32 0.044715, %v2917_v61  ;;  %v2923_v24 = vmul.f32 0.5, %v2917_v61 }
0x1d10   :  { %v2919_v5 = vpop.f32.mrf.mxu0 }
0x1d11   :  { %v2927_v6 = vmul.f32 %v2925_v4, %v2917_v61  ;;  %v2920_v7 = vadd.f32 %v6820_v59, %v2919_v5 }
0x1d12   :  { %v7481_v8 = vpop.f32.mrf.mxu0 }
0x1d13   :  { %v2929_v47 = vmul.f32 %v2927_v6, %v2917_v61  ;;  %v2926_v50 = vmul.f32 0.044715, %v2920_v7  ;;  %v2924_v57 = vmul.f32 0.5, %v2920_v7 }
0x1d15   :  { %v2931_v9 = vadd.f32 %v2929_v47, %v2917_v61  ;;  %v2928_v51 = vmul.f32 %v2926_v50, %v2920_v7  ;;  %v9196_v61 = vld [vmem:[%s10035_s10 + $0xc] sm:$0xf] }
0x1d16   :  { %v3060_v5 = vrot.slane %v9196_v61, %v8515_v25  ;;  %v3066_v47 = vrot.slane %v9196_v61, %v8522_v30 }
0x1d17   :  { %v2933_v12 = vmul.f32 0.7978846, %v2931_v9  ;;  %v2930_v13 = vmul.f32 %v2928_v51, %v2920_v7 }
0x1d19   :  { %8141 = vtanh.f32 %v2933_v12  ;;  %v2932_v15 = vadd.f32 %v2930_v13, %v2920_v7 }
0x1d1b   :  { %v2934_v17 = vmul.f32 0.7978846, %v2932_v15  ;;  %v6845_v15 = vld [vmem:[%s10030_s7 + $0x3] ss:$0 sm:$0xff] }
0x1d1d   :  { %8143 = vtanh.f32 %v2934_v17 }
0x1d26   :  { %v8142_v20 = vpop.eup %8141 }
0x1d27   :  { %v2937_v26 = vadd.f32 1.0, %v8142_v20 }
0x1d29   :  { %v2939_v28 = vmul.f32 %v2937_v26, %v2923_v24 }
0x1d2a   :  { %v8144_v33 = vpop.eup %8143 }
0x1d2b   :  { %v2938_v27 = vadd.f32 1.0, %v8144_v33 }
0x1d2d   :  { %v2940_v63 = vmul.f32 %v2938_v27, %v2924_v57 }
0x1d2f   :  { %v2941_v29 = vpack.c.bf16 %v2940_v63, %v2939_v28 }
0x1d31   :  { %7491 = vmatmul.mubr.msk.bf16.vlgmr.msra.gmra.mxu1 %vm944_vm5, %v2941_v29 }
0x1d32   :  { %7510 = vmatprep.mubr.msk.bf16.mxu1 %vm8382_vm1, %v8381_v14 }
0x1df1   :  { %v3020_v62 = vpop.f32.mrf.mxu1 }
0x1df2   :  { %v3021_v34 = vadd.f32 %v6833_v32, %v3020_v62 }
0x1df3   :  { %v7492_v46 = vpop.f32.mrf.mxu1 }
0x1df4   :  { %v9172_v35 = vadd.f32 %v3021_v34, %v9118_v10 }
0x1df5   :  { %v3023_v38 = vpop.f32.mrf.mxu1 }
0x1df6   :  { %v3024_v39 = vadd.f32 %v6833_v32, %v3023_v38  ;;  %v3031_v40 = vsel %vm68_vm0, %v9172_v35, 0.0 }
0x1df7   :  { %3032 = vadd.xlane.f32.xlu0 %v3031_v40  ;;  %v7493_v41 = vpop.f32.mrf.mxu1 }
0x1df8   :  { %v9177_v42 = vadd.f32 %v3024_v39, %v9123_v19 }
0x1dfa   :  { %v3034_v43 = vsel %vm68_vm0, %v9177_v42, 0.0 }
0x1dfb   :  { %3035 = vadd.xlane.f32.xlu1 %v3034_v43 }
0x1e80   :  { %v3033_v44 = vpop.xlane.xlu0 %3032 }
0x1e81   :  { %v3037_v22 = vmul.f32 0.03125, %v3033_v44 }
0x1e83   :  { %v3039_v45 = vsub.f32 %v9172_v35, %v3037_v22 }
0x1e84   :  { %v3036_v10 = vpop.xlane.xlu1 %3035 }
0x1e85   :  { %v3038_v23 = vmul.f32 0.03125, %v3036_v10  ;;  %v3041_v48 = vmul.f32 %v3039_v45, %v3039_v45 }
0x1e87   :  { %v3040_v49 = vsub.f32 %v9177_v42, %v3038_v23  ;;  %v3043_v52 = vsel %vm68_vm0, %v3041_v48, 0.0 }
0x1e88   :  { %3044 = vadd.xlane.f32.xlu0 %v3043_v52 }
0x1e89   :  { %v3042_v53 = vmul.f32 %v3040_v49, %v3040_v49 }
0x1e8b   :  { %v3046_v19 = vsel %vm68_vm0, %v3042_v53, 0.0 }
0x1e8c   :  { %3047 = vadd.xlane.f32.xlu1 %v3046_v19 }
0x1f11   :  { %v3045_v54 = vpop.xlane.xlu0 %3044 }
0x1f12   :  { %v3049_v37 = vmul.f32 0.03125, %v3045_v54 }
0x1f14   :  { %v3051_v31 = vadd.f32 1e-12, %v3049_v37 }
0x1f15   :  { %v3048_v56 = vpop.xlane.xlu1 %3047 }
0x1f16   :  { %8145 = vrsqrt.f32 %v3051_v31  ;;  %v3050_v59 = vmul.f32 0.03125, %v3048_v56 }
0x1f18   :  { %v3052_v60 = vadd.f32 1e-12, %v3050_v59 }
0x1f1a   :  { %8147 = vrsqrt.f32 %v3052_v60 }
0x1f23   :  { %v8146_v0 = vpop.eup %8145 }
0x1f24   :  { %v3055_v4 = vmul.f32 %v8146_v0, %v3039_v45 }
0x1f26   :  { %v3061_v8 = vmul.f32 %v3060_v5, %v3055_v4 }
0x1f27   :  { %v8148_v6 = vpop.eup %8147 }
0x1f28   :  { %v3056_v7 = vmul.f32 %v8148_v6, %v3040_v49  ;;  %v3067_v9 = vadd.f32 %v3066_v47, %v3061_v8 }
0x1f2a   :  { %v3062_v50 = vmul.f32 %v3060_v5, %v3056_v7 }
0x1f2c   :  { %v3068_v51 = vadd.f32 %v3066_v47, %v3062_v50 }
0x1f2e   :  { %v3069_v12 = vpack.c.bf16 %v3068_v51, %v3067_v9 }
0x1f30   :  { %7499 = vmatmul.mubr.msk.bf16.vlgmr.msra.gmra.mxu0 %vm68_vm0, %v3069_v12 }
0x1f31   :  { %7504 = vmatprep.mubr.msk.bf16.mxu0 %vm8382_vm1, %v8381_v14 }
0x1ff0   :  { %v3132_v13 = vpop.f32.mrf.mxu0 }
0x1ff1   :  { %v3133_v26 = vadd.f32 %v6845_v15, %v3132_v13 }
0x1ff2   :  { %v7500_v17 = vpop.f32.mrf.mxu0 }
0x1ff4   :  { %v3135_v20 = vpop.f32.mrf.mxu0 }
0x1ff5   :  { %v3136_v33 = vadd.f32 %v6845_v15, %v3135_v20 }
0x1ff6   :  { %v7501_v24 = vpop.f32.mrf.mxu0 }
0x1ff7   :  { %v9208_v57 = vpack.c.bf16 %v3136_v33, %v3133_v26 }
0x1ff9   :  { %3266 = vrot.lane.b32.xlu1 %v9208_v57, %s10099_s16  ;;  %3141 = vrot.lane.b32.xlu0 %v9208_v57, %s10098_s4 }
0x1ffd   :  { %3264 = vrot.lane.b32.xlu1 %v9208_v57, %s10100_s28  ;;  %3389 = vrot.lane.b32.xlu0 %v9208_v57, %s10102_s23 }
0x2001   :  { %3391 = vrot.lane.b32.xlu1 %v9208_v57, %s10101_s5  ;;  %3514 = vrot.lane.b32.xlu0 %v9208_v57, %s10103_s24 }
0x2005   :  { %3516 = vrot.lane.b32.xlu1 %v9208_v57, %s10090_s29 }
0x206b   :  { %v3142_v27 = vpop.permute.xlu0 %3141  ;;  %v3267_v63 = vpop.permute.xlu1 %3266 }
0x206c   :  { %v3147_v28 = vsel %vm181_vm2, %v3142_v27, 0  ;;  %v3272_v32 = vsel %vm181_vm2, %v3267_v63, 0 }
0x206d   :  { %7503 = vmatpush3.bf16.xpose.msra.mxu0 %v3147_v28 }
0x206e   :  { %7514 = vmatprep.subr.bf16.mxu0 %v8381_v14 }
0x206f   :  { %v3265_v29 = vpop.permute.xlu1 %3264  ;;  %v3390_v38 = vpop.permute.xlu0 %3389 }
0x2073   :  { %v3392_v62 = vpop.permute.xlu1 %3391  ;;  %v3515_v40 = vpop.permute.xlu0 %3514 }
0x2074   :  { %7505 = vmatmul.mubr.msk.bf16.vlgmr.msra.gmra.mxu0 %vm181_vm2, %v9208_v57  ;;  %v3397_v34 = vsel %vm181_vm2, %v3392_v62, 0 }
0x2075   :  { %7515 = vmatpush3.bf16.xpose.msra.mxu0 %v3272_v32  ;;  %7516 = vmatprep.mubr.msk.bf16.mxu0 %vm8382_vm1, %v8381_v14 }
0x2076   :  { %7526 = vmatprep.subr.bf16.mxu0 %v8381_v14 }
0x2077   :  { %v3517_v46 = vpop.permute.xlu1 %3516 }
0x2078   :  { %v3522_v39 = vsel %vm181_vm2, %v3517_v46, 0 }
0x207c   :  { %7517 = vmatmul.mubr.msk.bf16.vlgmr.msra.gmra.mxu0 %vm181_vm2, %v3265_v29 }
0x207d   :  { %7527 = vmatpush3.bf16.xpose.msra.mxu0 %v3397_v34  ;;  %7528 = vmatprep.mubr.msk.bf16.mxu0 %vm8382_vm1, %v8381_v14 }
0x207e   :  { %7538 = vmatprep.subr.bf16.mxu0 %v8381_v14 }
0x2084   :  { %7529 = vmatmul.mubr.msk.bf16.vlgmr.msra.gmra.mxu0 %vm181_vm2, %v3390_v38 }
0x2085   :  { %7539 = vmatpush3.bf16.xpose.msra.mxu0 %v3522_v39  ;;  %7540 = vmatprep.mubr.msk.bf16.mxu0 %vm8382_vm1, %v8381_v14 }
0x2086   :  { %7550 = vmatprep.subr.bf16.mxu0 %v8381_v14 }
0x208c   :  { %7541 = vmatmul.mubr.msk.bf16.vlgmr.msra.gmra.mxu0 %vm181_vm2, %v3515_v40 }
0x208d   :  { %7554 = vmatprep.mubr.msk.bf16.mxu0 %vm8382_vm1, %v8381_v14 }
0x2134   :  { %v3183_v41 = vpop.f32.mrf.mxu0 }
0x2135   :  { %v3190_v43 = vmul.f32 0.35355338, %v3183_v41 }
0x2136   :  { %v7506_v44 = vpop.f32.mrf.mxu0 }
0x2137   :  { %v3192_v22 = vadd.f32 %v3190_v43, %v9015_v58 }
0x2138   :  { %v3186_v45 = vpop.f32.mrf.mxu0 }
0x2139   :  { %v3191_v10 = vmul.f32 0.35355338, %v3186_v45  ;;  %v3194_v23 = vsel %vm233_vm3, %v3192_v22, -inf }
0x213a   :  { %3195 = vmax.xlane.f32.xlu1 %v3194_v23  ;;  %v7507_v48 = vpop.f32.mrf.mxu0 }
0x213b   :  { %v3193_v49 = vadd.f32 %v3191_v10, %v9021_v1 }
0x213c   :  { %v3308_v52 = vpop.f32.mrf.mxu0 }
0x213d   :  { %v3315_v53 = vmul.f32 0.35355338, %v3308_v52  ;;  %v3197_v19 = vsel %vm233_vm3, %v3193_v49, -inf }
0x213e   :  { %3198 = vmax.xlane.f32.xlu0 %v3197_v19  ;;  %v7518_v36 = vpop.f32.mrf.mxu0 }
0x213f   :  { %v3317_v55 = vadd.f32 %v3315_v53, %v9015_v58 }
0x2140   :  { %v3311_v54 = vpop.f32.mrf.mxu0 }
0x2141   :  { %v3316_v37 = vmul.f32 0.35355338, %v3311_v54  ;;  %v3319_v31 = vsel %vm233_vm3, %v3317_v55, -inf }
0x2142   :  { %3320 = vmax.xlane.f32.xlu0 %v3319_v31  ;;  %v7519_v56 = vpop.f32.mrf.mxu0 }
0x2143   :  { %v3318_v59 = vadd.f32 %v3316_v37, %v9021_v1 }
0x2144   :  { %v3433_v60 = vpop.f32.mrf.mxu0 }
0x2145   :  { %v3440_v0 = vmul.f32 0.35355338, %v3433_v60  ;;  %v3322_v4 = vsel %vm233_vm3, %v3318_v59, -inf }
0x2146   :  { %3323 = vmax.xlane.f32.xlu0 %v3322_v4  ;;  %v7530_v5 = vpop.f32.mrf.mxu0 }
0x2147   :  { %v3442_v6 = vadd.f32 %v3440_v0, %v9015_v58 }
0x2148   :  { %v3436_v7 = vpop.f32.mrf.mxu0 }
0x2149   :  { %v3441_v8 = vmul.f32 0.35355338, %v3436_v7  ;;  %v3444_v47 = vsel %vm233_vm3, %v3442_v6, -inf }
0x214a   :  { %3445 = vmax.xlane.f32.xlu1 %v3444_v47  ;;  %v7531_v50 = vpop.f32.mrf.mxu0 }
0x214b   :  { %v3443_v9 = vadd.f32 %v3441_v8, %v9021_v1 }
0x214c   :  { %v3558_v51 = vpop.f32.mrf.mxu0 }
0x214d   :  { %v3565_v12 = vmul.f32 0.35355338, %v3558_v51  ;;  %v3447_v13 = vsel %vm233_vm3, %v3443_v9, -inf }
0x214e   :  { %3448 = vmax.xlane.f32.xlu0 %v3447_v13  ;;  %v7542_v15 = vpop.f32.mrf.mxu0 }
0x214f   :  { %v3567_v17 = vadd.f32 %v3565_v12, %v9015_v58 }
0x2150   :  { %v3561_v20 = vpop.f32.mrf.mxu0 }
0x2151   :  { %v3566_v26 = vmul.f32 0.35355338, %v3561_v20  ;;  %v3569_v33 = vsel %vm233_vm3, %v3567_v17, -inf }
0x2152   :  { %3570 = vmax.xlane.f32.xlu1 %v3569_v33  ;;  %v7543_v24 = vpop.f32.mrf.mxu0 }
0x2153   :  { %v3568_v27 = vadd.f32 %v3566_v26, %v9021_v1 }
0x2155   :  { %v3572_v28 = vsel %vm233_vm3, %v3568_v27, -inf }
0x2156   :  { %3573 = vmax.xlane.f32.xlu0 %v3572_v28 }
0x2163   :  { %3217 = vrot.lane.b32.xlu1 %v9208_v57, %s10091_s0 }
0x21c3   :  { %v3196_v63 = vpop.xlane.xlu1 %3195 }
0x21c4   :  { %v3200_v29 = vsub.f32 %v3192_v22, %v3196_v63 }
0x21c6   :  { %v3202_v32 = vmul.f32 1.442695, %v3200_v29 }
0x21c7   :  { %v3199_v62 = vpop.xlane.xlu0 %3198 }
0x21c8   :  { %8149 = vpow2.f32 %v3202_v32  ;;  %v3201_v58 = vsub.f32 %v3193_v49, %v3199_v62 }
0x21ca   :  { %v3204_v34 = vmul.f32 1.442695, %v3201_v58 }
0x21cb   :  { %v3321_v46 = vpop.xlane.xlu0 %3320 }
0x21cc   :  { %8151 = vpow2.f32 %v3204_v34  ;;  %v3325_v38 = vsub.f32 %v3317_v55, %v3321_v46 }
0x21ce   :  { %v3327_v39 = vmul.f32 1.442695, %v3325_v38 }
0x21cf   :  { %v3324_v40 = vpop.xlane.xlu0 %3323 }
0x21d0   :  { %8153 = vpow2.f32 %v3327_v39  ;;  %v3326_v1 = vsub.f32 %v3318_v59, %v3324_v40 }
0x21d2   :  { %v3329_v41 = vmul.f32 1.442695, %v3326_v1 }
0x21d3   :  { %v3446_v43 = vpop.xlane.xlu1 %3445 }
0x21d4   :  { %8155 = vpow2.f32 %v3329_v41  ;;  %v3450_v44 = vsub.f32 %v3442_v6, %v3446_v43 }
0x21d5   :  { %v8150_v45 = vpop.eup %8149 }
0x21d6   :  { %v3452_v10 = vmul.f32 1.442695, %v3450_v44  ;;  %v3206_v22 = vsel %vm233_vm3, %v8150_v45, 0.0 }
0x21d7   :  { %v3449_v23 = vpop.xlane.xlu0 %3448  ;;  %3207 = vadd.xlane.f32.xlu1 %v3206_v22 }
0x21d8   :  { %8157 = vpow2.f32 %v3452_v10  ;;  %v3451_v48 = vsub.f32 %v3443_v9, %v3449_v23 }
0x21d9   :  { %v8152_v49 = vpop.eup %8151 }
0x21da   :  { %v3454_v52 = vmul.f32 1.442695, %v3451_v48  ;;  %v3209_v53 = vsel %vm233_vm3, %v8152_v49, 0.0 }
0x21db   :  { %v3571_v19 = vpop.xlane.xlu1 %3570  ;;  %3210 = vadd.xlane.f32.xlu0 %v3209_v53 }
0x21dc   :  { %8159 = vpow2.f32 %v3454_v52  ;;  %v3575_v36 = vsub.f32 %v3567_v17, %v3571_v19 }
0x21dd   :  { %v8154_v55 = vpop.eup %8153 }
0x21de   :  { %v3577_v54 = vmul.f32 1.442695, %v3575_v36  ;;  %v3331_v37 = vsel %vm233_vm3, %v8154_v55, 0.0 }
0x21df   :  { %3332 = vadd.xlane.f32.xlu1 %v3331_v37  ;;  %v3218_v31 = vpop.permute.xlu1 %3217  ;;  %v3574_v56 = vpop.xlane.xlu0 %3573 }
0x21e0   :  { %8161 = vpow2.f32 %v3577_v54  ;;  %v3576_v59 = vsub.f32 %v3568_v27, %v3574_v56  ;;  %7509 = vmatpush3.bf16.msra.mxu1 %v3218_v31  ;;  %v7983_v31 = vld [vmem:[%s10032_s8 + $0x38] sm:$0xff]  }
0x21e1   :  { %v8156_v60 = vpop.eup %8155  ;;  %7520 = vmatprep.subr.bf16.mxu1 %v8381_v14  ;;  %7551 = vmatpush3.bf16.msra.mxu0 %v7983_v31 }
0x21e2   :  { %v3579_v0 = vmul.f32 1.442695, %v3576_v59  ;;  %v3334_v4 = vsel %vm233_vm3, %v8156_v60, 0.0  ;;  %7552 = vmatprep.subr.bf16.mxu0 %v8381_v14 }
0x21e3   :  { %3335 = vadd.xlane.f32.xlu0 %v3334_v4  ;;  %v7984_v4 = vld [vmem:[%s10032_s8 + $0x30] sm:$0xff]  }
0x21e4   :  { %8163 = vpow2.f32 %v3579_v0 }
0x21e5   :  { %v8158_v5 = vpop.eup %8157  ;;  %7553 = vmatpush3.bf16.msra.mxu0 %v7984_v4 }
0x21e6   :  { %v3456_v6 = vsel %vm233_vm3, %v8158_v5, 0.0  ;;  %7566 = vmatprep.subr.bf16.mxu0 %v8381_v14 }
0x21e7   :  { %3457 = vadd.xlane.f32.xlu1 %v3456_v6 }
0x21e9   :  { %v8160_v7 = vpop.eup %8159 }
0x21ea   :  { %v3459_v8 = vsel %vm233_vm3, %v8160_v7, 0.0 }
0x21eb   :  { %3460 = vadd.xlane.f32.xlu0 %v3459_v8 }
0x21ed   :  { %v8162_v47 = vpop.eup %8161 }
0x21ee   :  { %v3581_v50 = vsel %vm233_vm3, %v8162_v47, 0.0 }
0x21ef   :  { %3582 = vadd.xlane.f32.xlu1 %v3581_v50 }
0x21f1   :  { %v8164_v9 = vpop.eup %8163 }
0x21f2   :  { %v3584_v51 = vsel %vm233_vm3, %v8164_v9, 0.0 }
0x21f3   :  { %3585 = vadd.xlane.f32.xlu0 %v3584_v51 }
0x2200   :  { %3467 = vrot.lane.b32.xlu1 %v9208_v57, %s10092_s18 }
0x2204   :  { %3592 = vrot.lane.b32.xlu1 %v9208_v57, %s10093_s19 }
0x2209   :  { %3342 = vrot.lane.b32.xlu0 %v9208_v57, %s10094_s20 }
0x2260   :  { %v3208_v12 = vpop.xlane.xlu1 %3207 }
0x2261   :  { %8165 = vrcp.f32 %v3208_v12 }
0x2264   :  { %v3211_v13 = vpop.xlane.xlu0 %3210 }
0x2265   :  { %8167 = vrcp.f32 %v3211_v13 }
0x2268   :  { %v3333_v17 = vpop.xlane.xlu1 %3332 }
0x226c   :  { %v3336_v15 = vpop.xlane.xlu0 %3335 }
0x226d   :  { %8169 = vrcp.f32 %v3336_v15 }
0x226e   :  { %v8166_v20 = vpop.eup %8165  ;;  %8171 = vrcp.f32 %v3333_v17 }
0x226f   :  { %v3214_v33 = vmul.f32 %v8166_v20, %v8150_v45 }
0x2270   :  { %v3458_v28 = vpop.xlane.xlu1 %3457 }
0x2272   :  { %v8168_v26 = vpop.eup %8167 }
0x2273   :  { %v3215_v24 = vmul.f32 %v8168_v26, %v8152_v49 }
0x2274   :  { %v3461_v27 = vpop.xlane.xlu0 %3460 }
0x2275   :  { %v3216_v63 = vpack.c.bf16 %v3215_v24, %v3214_v33  ;;  %8173 = vrcp.f32 %v3461_v27 }
0x2276   :  { %8175 = vrcp.f32 %v3458_v28 }
0x2277   :  { %7511 = vmatmul.mubr.msk.bf16.vlgmr.msra.gmra.mxu1 %vm233_vm3, %v3216_v63 }
0x2278   :  { %7522 = vmatprep.mubr.msk.bf16.mxu1 %vm8382_vm1, %v8381_v14  ;;  %v3583_v62 = vpop.xlane.xlu1 %3582 }
0x227a   :  { %v8170_v57 = vpop.eup %8169 }
0x227b   :  { %v8172_v32 = vpop.eup %8171  ;;  %v3340_v58 = vmul.f32 %v8170_v57, %v8156_v60 }
0x227c   :  { %v3586_v29 = vpop.xlane.xlu0 %3585  ;;  %v3339_v46 = vmul.f32 %v8172_v32, %v8154_v55  ;;  %v3468_v40 = vpop.permute.xlu1 %3467 }
0x227d   :  { %8177 = vrcp.f32 %v3586_v29 }
0x227e   :  { %8179 = vrcp.f32 %v3583_v62  ;;  %v3341_v38 = vpack.c.bf16 %v3340_v58, %v3339_v46 }
0x2280   :  { %v3343_v34 = vpop.permute.xlu0 %3342  ;;  %v3593_v10 = vpop.permute.xlu1 %3592 }
0x2281   :  { %7521 = vmatpush3.bf16.msra.mxu1 %v3343_v34  ;;  %v6862_v34 = vld [vmem:[%s10033_s9 + $0x3] ss:$0 sm:$0xff] }
0x2282   :  { %7532 = vmatprep.subr.bf16.mxu1 %v8381_v14  ;;  %v8174_v39 = vpop.eup %8173 }
0x2283   :  { %v8176_v1 = vpop.eup %8175  ;;  %v3465_v41 = vmul.f32 %v8174_v39, %v8160_v7 }
0x2284   :  { %7523 = vmatmul.mubr.msk.bf16.vlgmr.msra.gmra.mxu1 %vm233_vm3, %v3341_v38  ;;  %v3464_v43 = vmul.f32 %v8176_v1, %v8158_v5 }
0x2285   :  { %7533 = vmatpush3.bf16.msra.mxu1 %v3468_v40  ;;  %7534 = vmatprep.mubr.msk.bf16.mxu1 %vm8382_vm1, %v8381_v14 }
0x2286   :  { %7544 = vmatprep.subr.bf16.mxu1 %v8381_v14  ;;  %v3466_v44 = vpack.c.bf16 %v3465_v41, %v3464_v43 }
0x228a   :  { %v8178_v45 = vpop.eup %8177 }
0x228b   :  { %v8180_v22 = vpop.eup %8179  ;;  %v3590_v23 = vmul.f32 %v8178_v45, %v8164_v9 }
0x228c   :  { %7535 = vmatmul.mubr.msk.bf16.vlgmr.msra.gmra.mxu1 %vm233_vm3, %v3466_v44  ;;  %v3589_v48 = vmul.f32 %v8180_v22, %v8162_v47 }
0x228d   :  { %7545 = vmatpush3.bf16.msra.mxu1 %v3593_v10  ;;  %7546 = vmatprep.mubr.msk.bf16.mxu1 %vm8382_vm1, %v8381_v14 }
0x228e   :  { %7558 = vmatprep.subr.bf16.mxu1 %v8381_v14  ;;  %v3591_v49 = vpack.c.bf16 %v3590_v23, %v3589_v48 }
0x2294   :  { %7547 = vmatmul.mubr.msk.bf16.vlgmr.msra.gmra.mxu1 %vm233_vm3, %v3591_v49 }
0x2295   :  { %7562 = vmatprep.mubr.msk.bf16.mxu1 %vm8382_vm1, %v8381_v14 }
0x2337   :  { %v3257_v52 = vpop.f32.mrf.mxu1 }
0x2339   :  { %v7512_v53 = vpop.f32.mrf.mxu1 }
0x233b   :  { %v3260_v19 = vpop.f32.mrf.mxu1 }
0x233d   :  { %v7513_v36 = vpop.f32.mrf.mxu1 }
0x2344   :  { %v3382_v55 = vpop.f32.mrf.mxu1 }
0x2346   :  { %v7524_v54 = vpop.f32.mrf.mxu1 }
0x2348   :  { %v3385_v37 = vpop.f32.mrf.mxu1 }
0x2349   :  { %v7864_v56 = vpack.i.bf16 %v3385_v37, %v3382_v55 }
0x234a   :  { %v7525_v59 = vpop.f32.mrf.mxu1 }
0x234b   :  { %7865 = vrot.lane.b32.xlu1 %v7864_v56, %s10095_s22 }
0x234c   :  { %v3507_v60 = vpop.f32.mrf.mxu1 }
0x234e   :  { %v7536_v0 = vpop.f32.mrf.mxu1 }
0x2350   :  { %v3510_v5 = vpop.f32.mrf.mxu1 }
0x2351   :  { %v7869_v6 = vpack.i.bf16 %v3510_v5, %v3507_v60  ;;  %v7985_v60 = vld [vmem:[%s10034_s11 + $0x38] sm:$0xff]  }
0x2352   :  { %v7537_v7 = vpop.f32.mrf.mxu1  ;;  %7559 = vmatpush3.bf16.msra.mxu1 %v7985_v60 }
0x2353   :  { %7870 = vrot.lane.b32.xlu0 %v7869_v6, %s10096_s21  ;;  %7560 = vmatprep.subr.bf16.mxu1 %v8381_v14 }
0x2354   :  { %v3632_v8 = vpop.f32.mrf.mxu1 }
0x2356   :  { %v7548_v47 = vpop.f32.mrf.mxu1 }
0x2358   :  { %v3635_v50 = vpop.f32.mrf.mxu1 }
0x2359   :  { %v7874_v9 = vpack.i.bf16 %v3635_v50, %v3632_v8 }
0x235a   :  { %v7549_v51 = vpop.f32.mrf.mxu1 }
0x235b   :  { %7875 = vrot.lane.b32.xlu1 %v7874_v9, %s10097_s6 }
0x23bd   :  { %v7866_v12 = vpop.permute.xlu1 %7865 }
0x23be   :  { %v7868_v15 = vunpack.i.h.bf16 %v7866_v12  ;;  %v7867_v17 = vunpack.i.l.bf16 %v7866_v12 }
0x23c0   :  { %v3664_v24 = vsel %vm181_vm2, %v3260_v19, %v7868_v15  ;;  %v3663_v27 = vsel %vm181_vm2, %v3257_v52, %v7867_v17 }
0x23c5   :  { %v7871_v13 = vpop.permute.xlu0 %7870 }
0x23c6   :  { %v7873_v20 = vunpack.i.h.bf16 %v7871_v13  ;;  %v7872_v26 = vunpack.i.l.bf16 %v7871_v13 }
0x23c8   :  { %v3666_v57 = vsel %vm233_vm3, %v3664_v24, %v7873_v20  ;;  %v3665_v29 = vsel %vm233_vm3, %v3663_v27, %v7872_v26 }
0x23cd   :  { %v7876_v33 = vpop.permute.xlu1 %7875 }
0x23ce   :  { %v7878_v28 = vunpack.i.h.bf16 %v7876_v33  ;;  %v7877_v63 = vunpack.i.l.bf16 %v7876_v33  ;;  %v3770_v33 = vrot.slane %v9196_v61, %v8707_v11 }
0x23d0   :  { %v3668_v32 = vsel %vm707_vm4, %v3666_v57, %v7878_v28  ;;  %v3667_v62 = vsel %vm707_vm4, %v3665_v29, %v7877_v63  ;;  %v3776_v63 = vrot.slane %v9196_v61, %v8712_v16  ;;  %v7989_v61 = vld [vmem:[%s10036_s13 + $0x68] sm:$0xff]  }
0x23d1   :  { %v3669_v58 = vpack.c.bf16 %v3668_v32, %v3667_v62 }
0x23d3   :  { %7555 = vmatmul.mubr.msk.bf16.vlgmr.msra.gmra.mxu0 %vm68_vm0, %v3669_v58  ;;  %v7987_v58 = vld [vmem:[%s10036_s13 + $0x78] sm:$0xff]  }
0x23d4   :  { %7574 = vmatprep.mubr.msk.bf16.mxu0 %vm8382_vm1, %v8381_v14  ;;  %7567 = vmatpush3.bf16.msra.mxu0 %v7987_v58 }
0x23d5   :  { %7568 = vmatprep.subr.bf16.mxu0 %v8381_v14 }
0x2493   :  { %v3732_v46 = vpop.f32.mrf.mxu0 }
0x2494   :  { %v3733_v38 = vadd.f32 %v6862_v34, %v3732_v46  ;;  %v7990_v46 = vld [vmem:[%s10036_s13 + $0x60] sm:$0xff]  }
0x2495   :  { %v7556_v39 = vpop.f32.mrf.mxu0 }
0x2496   :  { %v9317_v40 = vadd.f32 %v3733_v38, %v9172_v35  ;;  %v6769_v35 = vld [vmem:[%s10038_s14 + $0x1] ss:$0 sm:$0xff]  ;;  %v6871_v38 = vld [vmem:[%s10037_s12 + $0x3] ss:$0 sm:$0xff] }
0x2497   :  { %v3735_v1 = vpop.f32.mrf.mxu0  ;;  %v1909_v19 = vadd.f32 %v6769_v35, %v8966_v18  ;;  %v1912_v37 = vadd.f32 %v6769_v35, %v8972_v21 }
0x2498   :  { %v3736_v41 = vadd.f32 %v6862_v34, %v3735_v1  ;;  %v3741_v43 = vsel %vm68_vm0, %v9317_v40, 0.0  ;;  %v7988_v34 = vld [vmem:[%s10036_s13 + $0x70] sm:$0xff]  }
0x2499   :  { %3742 = vadd.xlane.f32.xlu0 %v3741_v43  ;;  %v7557_v44 = vpop.f32.mrf.mxu0  ;;  %v1915_v54 = vadd.f32 %v1909_v19, %v8859_v2  ;;  %v1916_v56 = vadd.f32 %v1912_v37, %v8861_v3  ;;  %v7986_v2 = vld [vmem:[%s10034_s11 + $0x30] sm:$0xff]   ;;  %7569 = vmatpush3.bf16.msra.mxu0 %v7988_v34 }
0x249a   :  { %v9322_v45 = vadd.f32 %v3736_v41, %v9177_v42  ;;  %7561 = vmatpush3.bf16.msra.mxu1 %v7986_v2  ;;  %7570 = vmatprep.subr.bf16.mxu0 %v8381_v14 }
0x249b   :  { %v1917_v59 = vsel %vm68_vm0, %v1915_v54, 0.0  ;;  %v1920_v18 = vsel %vm68_vm0, %v1916_v56, 0.0 }
0x249c   :  { %v3744_v10 = vsel %vm68_vm0, %v9322_v45, 0.0 }
0x249d   :  { %3745 = vadd.xlane.f32.xlu1 %v3744_v10  ;;  %7571 = vmatpush3.bf16.msra.mxu0 %v7989_v61 }
0x249e   :  { %7572 = vmatprep.subr.bf16.mxu0 %v8381_v14 }
0x24a1   :  { %7573 = vmatpush3.bf16.msra.mxu0 %v7990_v46 }
0x2522   :  { %v3743_v22 = vpop.xlane.xlu0 %3742 }
0x2523   :  { %v3747_v23 = vmul.f32 0.03125, %v3743_v22 }
0x2525   :  { %v3749_v48 = vsub.f32 %v9317_v40, %v3747_v23 }
0x2526   :  { %v3746_v49 = vpop.xlane.xlu1 %3745 }
0x2527   :  { %v3748_v52 = vmul.f32 0.03125, %v3746_v49  ;;  %v3751_v53 = vmul.f32 %v3749_v48, %v3749_v48 }
0x2529   :  { %v3750_v42 = vsub.f32 %v9322_v45, %v3748_v52  ;;  %v3753_v36 = vsel %vm68_vm0, %v3751_v53, 0.0 }
0x252a   :  { %3754 = vadd.xlane.f32.xlu0 %v3753_v36 }
0x252b   :  { %v3752_v55 = vmul.f32 %v3750_v42, %v3750_v42 }
0x252d   :  { %v3756_v31 = vsel %vm68_vm0, %v3752_v55, 0.0 }
0x252e   :  { %3757 = vadd.xlane.f32.xlu0 %v3756_v31 }
0x2532   :  { %1918 = vadd.xlane.f32.xlu0 %v1917_v59 }
0x2536   :  { %1921 = vadd.xlane.f32.xlu0 %v1920_v18 }
0x25b3   :  { %v3755_v21 = vpop.xlane.xlu0 %3754 }
0x25b4   :  { %v3759_v3 = vmul.f32 0.03125, %v3755_v21  ;;  %v6884_v21 = vld [vmem:[%s10038_s14 + $0x3] ss:$0 sm:$0xff] }
0x25b6   :  { %v3761_v0 = vadd.f32 1e-12, %v3759_v3 }
0x25b7   :  { %v3758_v4 = vpop.xlane.xlu0 %3757 }
0x25b8   :  { %8181 = vrsqrt.f32 %v3761_v0  ;;  %v3760_v5 = vmul.f32 0.03125, %v3758_v4 }
0x25ba   :  { %v3762_v6 = vadd.f32 1e-12, %v3760_v5 }
0x25bb   :  { %v1919_v7 = vpop.xlane.xlu0 %1918 }
0x25bc   :  { %8183 = vrsqrt.f32 %v3762_v6  ;;  %v1923_v8 = vmul.f32 0.03125, %v1919_v7 }
0x25be   :  { %v9346_v47 = vsub.f32 %v1915_v54, %v1923_v8 }
0x25bf   :  { %v1922_v50 = vpop.xlane.xlu0 %1921 }
0x25c0   :  { %v1924_v9 = vmul.f32 0.03125, %v1922_v50  ;;  %v1927_v51 = vmul.f32 %v9346_v47, %v9346_v47 }
0x25c2   :  { %v9350_v12 = vsub.f32 %v1916_v56, %v1924_v9  ;;  %v1929_v13 = vsel %vm68_vm0, %v1927_v51, 0.0 }
0x25c3   :  { %1930 = vadd.xlane.f32.xlu0 %v1929_v13 }
0x25c4   :  { %v1928_v15 = vmul.f32 %v9350_v12, %v9350_v12 }
0x25c5   :  { %v8182_v17 = vpop.eup %8181 }
0x25c6   :  { %v3765_v20 = vmul.f32 %v8182_v17, %v3749_v48  ;;  %v1932_v26 = vsel %vm68_vm0, %v1928_v15, 0.0 }
0x25c7   :  { %1933 = vadd.xlane.f32.xlu0 %v1932_v26 }
0x25c8   :  { %v3771_v28 = vmul.f32 %v3770_v33, %v3765_v20 }
0x25c9   :  { %v8184_v24 = vpop.eup %8183 }
0x25ca   :  { %v3766_v27 = vmul.f32 %v8184_v24, %v3750_v42  ;;  %v3777_v29 = vadd.f32 %v3776_v63, %v3771_v28 }
0x25cc   :  { %v3772_v57 = vmul.f32 %v3770_v33, %v3766_v27 }
0x25ce   :  { %v3778_v32 = vadd.f32 %v3776_v63, %v3772_v57  ;;  %v7992_v63 = vld [vmem:[%s10089_s30 + $0x40] sm:$0xff]  }
0x25d0   :  { %v3779_v62 = vpack.c.bf16 %v3778_v32, %v3777_v29 }
0x25d2   :  { %7563 = vmatmul.mubr.msk.bf16.vlgmr.msra.gmra.mxu1 %vm68_vm0, %v3779_v62 }
0x264c   :  { %v1931_v57 = vpop.xlane.xlu0 %1930 }
0x264d   :  { %v1935_v29 = vmul.f32 0.03125, %v1931_v57  ;;  %v9454_v57 = vld [vmem:[%s10105_s1 + $0x48] sm:$0xff] }
0x264f   :  { %v1937_v62 = vadd.f32 1e-12, %v1935_v29 }
0x2650   :  { %v1934_v32 = vpop.xlane.xlu0 %1933 }
0x2651   :  { %v1936_v58 = vmul.f32 0.03125, %v1934_v32 }
0x2653   :  { %v1938_v34 = vadd.f32 1e-12, %v1936_v58 }
0x2692   :  { %v3842_v39 = vpop.f32.mrf.mxu1 }
0x2693   :  { %v3843_v1 = vadd.f32 %v6871_v38, %v3842_v39 }
0x2694   :  { %v7564_v41 = vpop.f32.mrf.mxu1 }
0x2695   :  { %v3851_v43 = vmul.f32 0.044715, %v3843_v1  ;;  %v3849_v31 = vmul.f32 0.5, %v3843_v1 }
0x2696   :  { %v3845_v44 = vpop.f32.mrf.mxu1 }
0x2697   :  { %v3853_v10 = vmul.f32 %v3851_v43, %v3843_v1  ;;  %v3846_v22 = vadd.f32 %v6871_v38, %v3845_v44 }
0x2698   :  { %v7565_v23 = vpop.f32.mrf.mxu1 }
0x2699   :  { %v3855_v48 = vmul.f32 %v3853_v10, %v3843_v1  ;;  %v3852_v35 = vmul.f32 0.044715, %v3846_v22  ;;  %v3850_v56 = vmul.f32 0.5, %v3846_v22  ;;  %v8375_v10 = vld [vmem:[%s10035_s10 + $0x4] sm:$0xf] }
0x269b   :  { %v3857_v49 = vadd.f32 %v3855_v48, %v3843_v1  ;;  %v3854_v52 = vmul.f32 %v3852_v35, %v3846_v22  ;;  %v8376_v48 = vld [vmem:[%s10104_s15] sm:$0xf] }
0x269c   :  { %v3984_v35 = vrot.slane %v8376_v48, %v8707_v11 }
0x269d   :  { %v3859_v53 = vmul.f32 0.7978846, %v3857_v49  ;;  %v3856_v19 = vmul.f32 %v3854_v52, %v3846_v22  ;;  %v1952_v52 = vrot.slane %v8375_v10, %v8712_v16 }
0x269f   :  { %8185 = vtanh.f32 %v3859_v53  ;;  %v3858_v42 = vadd.f32 %v3856_v19, %v3846_v22  ;;  %v1946_v22 = vrot.slane %v8375_v10, %v8707_v11 }
0x26a1   :  { %v3860_v36 = vmul.f32 0.7978846, %v3858_v42  ;;  %v3990_v42 = vrot.slane %v8376_v48, %v8712_v16 }
0x26a3   :  { %8187 = vtanh.f32 %v3860_v36 }
0x26a4   :  { %8189 = vrsqrt.f32 %v1937_v62 }
0x26a5   :  { %8191 = vrsqrt.f32 %v1938_v34 }
0x26ac   :  { %v8186_v55 = vpop.eup %8185 }
0x26ad   :  { %v3863_v54 = vadd.f32 1.0, %v8186_v55 }
0x26af   :  { %v3865_v18 = vmul.f32 %v3863_v54, %v3849_v31 }
0x26b0   :  { %v8188_v37 = vpop.eup %8187 }
0x26b1   :  { %v3864_v59 = vadd.f32 1.0, %v8188_v37  ;;  %v8190_v43 = vpop.eup %8189 }
0x26b2   :  { %v1941_v44 = vmul.f32 %v8190_v43, %v9346_v47  ;;  %v8192_v23 = vpop.eup %8191 }
0x26b3   :  { %v3866_v60 = vmul.f32 %v3864_v59, %v3850_v56  ;;  %v1942_v53 = vmul.f32 %v8192_v23, %v9350_v12 }
0x26b4   :  { %v1947_v19 = vmul.f32 %v1946_v22, %v1941_v44 }
0x26b5   :  { %v3867_v2 = vpack.c.bf16 %v3866_v60, %v3865_v18  ;;  %v1948_v37 = vmul.f32 %v1946_v22, %v1942_v53 }
0x26b6   :  { %v9407_v31 = vadd.f32 %v1952_v52, %v1947_v19 }
0x26b7   :  { %7575 = vmatmul.mubr.msk.bf16.vlgmr.msra.gmra.mxu0 %vm944_vm5, %v3867_v2  ;;  %v9413_v60 = vadd.f32 %v1952_v52, %v1948_v37 }
0x2777   :  { %v3946_v3 = vpop.f32.mrf.mxu0 }
0x2778   :  { %v3947_v0 = vadd.f32 %v6884_v21, %v3946_v3  ;;  %v6896_v3 = vld [vmem:[%s10030_s7 + $0x4] ss:$0 sm:$0xff] }
0x2779   :  { %v7576_v4 = vpop.f32.mrf.mxu0 }
0x277a   :  { %v3953_v5 = vadd.f32 %v3947_v0, %v9317_v40 }
0x277b   :  { %v3949_v6 = vpop.f32.mrf.mxu0 }
0x277c   :  { %v3950_v7 = vadd.f32 %v6884_v21, %v3949_v6  ;;  %v3955_v8 = vsel %vm68_vm0, %v3953_v5, 0.0 }
0x277d   :  { %3956 = vadd.xlane.f32.xlu1 %v3955_v8  ;;  %v7577_v50 = vpop.f32.mrf.mxu0 }
0x277e   :  { %v3954_v9 = vadd.f32 %v3950_v7, %v9322_v45  ;;  %v7991_v45 = vld [vmem:[%s10089_s30 + $0x48] sm:$0xff]  }
0x277f   :  { %7578 = vmatprep.subr.bf16.mxu1 %v7991_v45 }
0x2780   :  { %v3958_v51 = vsel %vm68_vm0, %v3954_v9, 0.0  ;;  %7579 = vmatpush3.bf16.msra.mxu1 %v7991_v45 }
0x2781   :  { %3959 = vadd.xlane.f32.xlu1 %v3958_v51  ;;  %7580 = vmatprep.subr.bf16.mxu1 %v7992_v63 }
0x2784   :  { %7581 = vmatpush3.bf16.msra.mxu1 %v7992_v63 }
0x2806   :  { %v3957_v13 = vpop.xlane.xlu1 %3956 }
0x2807   :  { %v3961_v15 = vmul.f32 0.03125, %v3957_v13 }
0x2809   :  { %v3963_v17 = vsub.f32 %v3953_v5, %v3961_v15 }
0x280a   :  { %v3960_v20 = vpop.xlane.xlu1 %3959 }
0x280b   :  { %v3962_v26 = vmul.f32 0.03125, %v3960_v20  ;;  %v3965_v33 = vmul.f32 %v3963_v17, %v3963_v17 }
0x280d   :  { %v3964_v24 = vsub.f32 %v3954_v9, %v3962_v26  ;;  %v3967_v40 = vsel %vm68_vm0, %v3965_v33, 0.0  ;;  %v9443_v33 = vld [vmem:[%s10105_s1 + $0x40] sm:$0xff] }
0x280e   :  { %3968 = vadd.xlane.f32.xlu1 %v3967_v40 }
0x280f   :  { %v3966_v27 = vmul.f32 %v3964_v24, %v3964_v24 }
0x2811   :  { %v3970_v28 = vsel %vm68_vm0, %v3966_v27, 0.0  ;;  %v9448_v27 = vld [vmem:[%s10105_s1 + $0x58] sm:$0xff] }
0x2812   :  { %3971 = vadd.xlane.f32.xlu1 %v3970_v28 }
0x2897   :  { %v3969_v61 = vpop.xlane.xlu1 %3968 }
0x2898   :  { %v3973_v46 = vmul.f32 0.03125, %v3969_v61  ;;  %v9461_v61 = vld [vmem:[%s10105_s1 + $0x50] sm:$0xff] }
0x289a   :  { %v3975_v38 = vadd.f32 1e-12, %v3973_v46 }
0x289b   :  { %v3972_v39 = vpop.xlane.xlu1 %3971 }
0x289c   :  { %8193 = vrsqrt.f32 %v3975_v38  ;;  %v3974_v1 = vmul.f32 0.03125, %v3972_v39 }
0x289e   :  { %v3976_v41 = vadd.f32 1e-12, %v3974_v1 }
0x28a0   :  { %8195 = vrsqrt.f32 %v3976_v41 }
0x28a9   :  { %v8194_v49 = vpop.eup %8193 }
0x28aa   :  { %v3979_v47 = vmul.f32 %v8194_v49, %v3963_v17 }
0x28ac   :  { %v3985_v36 = vmul.f32 %v3984_v35, %v3979_v47 }
0x28ad   :  { %v8196_v55 = vpop.eup %8195 }
0x28ae   :  { %v3980_v54 = vmul.f32 %v8196_v55, %v3964_v24  ;;  %v9409_v56 = vadd.f32 %v3990_v42, %v3985_v36 }
0x28b0   :  { %v3986_v59 = vmul.f32 %v3984_v35, %v3980_v54  ;;  %v3995_v18 = vpack.c.bf16 %v9409_v56, %v9407_v31 }
0x28b2   :  { %v9415_v2 = vadd.f32 %v3990_v42, %v3986_v59  ;;  %7582 = vmatprep.mubr.msk.bf16.mxu1 %vm68_vm0, %v3995_v18 }
0x28b4   :  { %v3996_v12 = vpack.c.bf16 %v9415_v2, %v9413_v60 }
0x28b6   :  { %7583 = vmatmul.mubr.msk.bf16.vlgmr.msra.gmra.mxu1 %vm68_vm0, %v3996_v12 }
0x2976   :  { %v7584_v21 = vpop.f32.mrf.mxu1 }
0x2977   :  { %v4071_v5 = vadd.f32 %v7584_v21, %v6896_v3 }
0x2978   :  { %v4062_v0 = vpop.f32.mrf.mxu1 }
0x2979   :  { %v4063_v8 = vadd.f32 %v6896_v3, %v4062_v0 }
0x297a   :  { %v7585_v4 = vpop.f32.mrf.mxu1 }
0x297b   :  { %v4074_v6 = vadd.f32 %v7585_v4, %v6896_v3 }
0x297c   :  { %v4065_v7 = vpop.f32.mrf.mxu1 }
0x297d   :  { %v9424_v50 = vpack.c.bf16 %v4074_v6, %v4071_v5  ;;  %v4066_v9 = vadd.f32 %v6896_v3, %v4065_v7 }
0x297f   :  { %v9426_v51 = vpack.c.bf16 %v4066_v9, %v4063_v8  ;;  %4083 = vrot.lane.b32.xlu0 %v9424_v50, %s10098_s4 }
0x2981   :  { %4081 = vrot.lane.b32.xlu1 %v9426_v51, %s10098_s4  ;;  %7590 = vmatprep.mubr.msk.bf16.mxu1 %vm181_vm2, %v9426_v51 }
0x29f1   :  { %v4084_v13 = vpop.permute.xlu0 %4083 }
0x29f2   :  { %7786 = vmatprep.subr.msk.bf16.mxu1 %vm181_vm2, %v4084_v13  ;;  %v4095_v15 = vsel %vm181_vm2, %v4084_v13, 0 }
0x29f3   :  { %7587 = vmatpush3.bf16.xpose.msra.mxu1 %v4095_v15  ;;  %v4082_v17 = vpop.permute.xlu1 %4081 }
0x29f4   :  { %7787 = vmatprep.subr.msk.bf16.mxu1 %vm181_vm2, %v4082_v17  ;;  %v4092_v20 = vsel %vm181_vm2, %v4082_v17, 0 }
0x29fb   :  { %7589 = vmatpush3.bf16.xpose.msra.mxu1 %v4092_v20 }
0x2a02   :  { %7591 = vmatmul.mubr.msk.bf16.vlgmr.msra.gmra.mxu1 %vm181_vm2, %v9424_v50 }
0x2ac2   :  { %v7592_v26 = vpop.f32.mrf.mxu1 }
0x2ac3   :  { %v4148_v32 = vmul.f32 0.35355338, %v7592_v26 }
0x2ac4   :  { %v4131_v24 = vpop.f32.mrf.mxu1 }
0x2ac5   :  { %v4146_v40 = vmul.f32 0.35355338, %v4131_v24  ;;  %v4152_v38 = vadd.f32 %v4148_v32, %v9461_v61 }
0x2ac6   :  { %v7593_v28 = vpop.f32.mrf.mxu1 }
0x2ac7   :  { %v4150_v45 = vadd.f32 %v4146_v40, %v9443_v33  ;;  %v4149_v63 = vmul.f32 0.35355338, %v7593_v28  ;;  %v4160_v41 = vsel %vm68_vm0, %v4152_v38, -inf }
0x2ac8   :  { %v4134_v29 = vpop.f32.mrf.mxu1 }
0x2ac9   :  { %v4153_v62 = vadd.f32 %v4149_v63, %v9448_v27  ;;  %v4147_v58 = vmul.f32 0.35355338, %v4134_v29  ;;  %v4154_v34 = vsel %vm68_vm0, %v4150_v45, -inf }
0x2aca   :  { %4155 = vmax.xlane.f32.xlu1 %v4154_v34 }
0x2acb   :  { %v4151_v46 = vadd.f32 %v4147_v58, %v9454_v57  ;;  %v4163_v39 = vsel %vm68_vm0, %v4153_v62, -inf }
0x2acd   :  { %v4157_v1 = vsel %vm68_vm0, %v4151_v46, -inf }
0x2ace   :  { %4164 = vmax.xlane.f32.xlu1 %v4163_v39  ;;  %4158 = vmax.xlane.f32.xlu0 %v4157_v1 }
0x2ad2   :  { %4161 = vmax.xlane.f32.xlu0 %v4160_v41 }
0x2adf   :  { %4200 = vrot.lane.b32.xlu1 %v9426_v51, %s10091_s0 }
0x2b53   :  { %v4156_v43 = vpop.xlane.xlu1 %4155 }
0x2b54   :  { %v4166_v48 = vsub.f32 %v4150_v45, %v4156_v43 }
0x2b56   :  { %v4170_v19 = vmul.f32 1.442695, %v4166_v48 }
0x2b57   :  { %v4165_v44 = vpop.xlane.xlu1 %4164  ;;  %v4159_v10 = vpop.xlane.xlu0 %4158 }
0x2b58   :  { %v4169_v22 = vsub.f32 %v4153_v62, %v4165_v44  ;;  %v4167_v23 = vsub.f32 %v4151_v46, %v4159_v10 }
0x2b5a   :  { %v4176_v35 = vmul.f32 1.442695, %v4169_v22  ;;  %v4172_v49 = vmul.f32 1.442695, %v4167_v23 }
0x2b5b   :  { %v4162_v52 = vpop.xlane.xlu0 %4161  ;;  %v4201_v21 = vpop.permute.xlu1 %4200 }
0x2b5c   :  { %8197 = vpow2.f32 %v4176_v35  ;;  %v4168_v53 = vsub.f32 %v4152_v38, %v4162_v52 }
0x2b5d   :  { %8199 = vpow2.f32 %v4172_v49 }
0x2b5e   :  { %v4174_v47 = vmul.f32 1.442695, %v4168_v53 }
0x2b60   :  { %8201 = vpow2.f32 %v4174_v47 }
0x2b61   :  { %8203 = vpow2.f32 %v4170_v19 }
0x2b69   :  { %v8198_v42 = vpop.eup %8197 }
0x2b6a   :  { %v4187_v36 = vsel %vm68_vm0, %v8198_v42, 0.0  ;;  %v8200_v55 = vpop.eup %8199 }
0x2b6b   :  { %4188 = vadd.xlane.f32.xlu1 %v4187_v36  ;;  %v4181_v37 = vsel %vm68_vm0, %v8200_v55, 0.0 }
0x2b6d   :  { %v8202_v54 = vpop.eup %8201 }
0x2b6e   :  { %v4184_v59 = vsel %vm68_vm0, %v8202_v54, 0.0  ;;  %v8204_v18 = vpop.eup %8203 }
0x2b6f   :  { %4182 = vadd.xlane.f32.xlu1 %v4181_v37  ;;  %4185 = vadd.xlane.f32.xlu0 %v4184_v59  ;;  %v4178_v12 = vsel %vm68_vm0, %v8204_v18, 0.0 }
0x2b73   :  { %4179 = vadd.xlane.f32.xlu0 %v4178_v12 }
0x2b80   :  { %4267 = vrot.lane.b32.xlu1 %v9424_v50, %s10099_s16 }
0x2b84   :  { %4265 = vrot.lane.b32.xlu1 %v9426_v51, %s10099_s16 }
0x2b88   :  { %4263 = vrot.lane.b32.xlu1 %v9424_v50, %s10100_s28 }
0x2b89   :  { %4202 = vrot.lane.b32.xlu0 %v9424_v50, %s10091_s0 }
0x2b8d   :  { %4261 = vrot.lane.b32.xlu0 %v9426_v51, %s10100_s28 }
0x2bf4   :  { %v4189_v3 = vpop.xlane.xlu1 %4188 }
0x2bf8   :  { %v4183_v0 = vpop.xlane.xlu1 %4182  ;;  %v4186_v4 = vpop.xlane.xlu0 %4185 }
0x2bf9   :  { %8205 = vrcp.f32 %v4186_v4 }
0x2bfa   :  { %8207 = vrcp.f32 %v4183_v0 }
0x2bfb   :  { %8209 = vrcp.f32 %v4189_v3 }
0x2bfc   :  { %v4180_v5 = vpop.xlane.xlu0 %4179  ;;  %v4268_v7 = vpop.permute.xlu1 %4267 }
0x2bfd   :  { %8211 = vrcp.f32 %v4180_v5  ;;  %v4279_v63 = vsel %vm181_vm2, %v4268_v7, 0 }
0x2c00   :  { %v4203_v6 = vpop.permute.xlu0 %4202  ;;  %v4266_v29 = vpop.permute.xlu1 %4265 }
0x2c01   :  { %7594 = vmatprep.subr.bf16.mxu0 %v4203_v6  ;;  %v4276_v32 = vsel %vm181_vm2, %v4266_v29, 0 }
0x2c02   :  { %7595 = vmatpush3.bf16.msra.mxu0 %v4203_v6 }
0x2c03   :  { %7596 = vmatprep.subr.bf16.mxu0 %v4201_v21 }
0x2c04   :  { %v4262_v45 = vpop.permute.xlu0 %4261  ;;  %v4264_v62 = vpop.permute.xlu1 %4263 }
0x2c06   :  { %7597 = vmatpush3.bf16.msra.mxu0 %v4201_v21  ;;  %v8206_v8 = vpop.eup %8205 }
0x2c07   :  { %7788 = vmatprep.subr.msk.bf16.mxu0 %vm181_vm2, %v4268_v7  ;;  %v8208_v9 = vpop.eup %8207  ;;  %v4196_v17 = vmul.f32 %v8206_v8, %v8202_v54 }
0x2c08   :  { %v8210_v13 = vpop.eup %8209  ;;  %v4195_v26 = vmul.f32 %v8208_v9, %v8200_v55 }
0x2c09   :  { %v4197_v24 = vmul.f32 %v8210_v13, %v8198_v42 }
0x2c0a   :  { %v8212_v15 = vpop.eup %8211 }
0x2c0b   :  { %v4194_v20 = vmul.f32 %v8212_v15, %v8204_v18  ;;  %v4199_v28 = vpack.c.bf16 %v4197_v24, %v4196_v17 }
0x2c0d   :  { %v4198_v40 = vpack.c.bf16 %v4195_v26, %v4194_v20 }
0x2c0f   :  { %7598 = vmatprep.mubr.msk.bf16.mxu0 %vm68_vm0, %v4198_v40 }
0x2c10   :  { %7599 = vmatmul.mubr.msk.bf16.vlgmr.msra.gmra.mxu0 %vm68_vm0, %v4199_v28 }
0x2c11   :  { %7603 = vmatpush3.bf16.xpose.msra.mxu0 %v4279_v63  ;;  %7606 = vmatprep.mubr.msk.bf16.mxu0 %vm181_vm2, %v4262_v45 }
0x2c12   :  { %7789 = vmatprep.subr.msk.bf16.mxu0 %vm181_vm2, %v4266_v29 }
0x2c19   :  { %7605 = vmatpush3.bf16.xpose.msra.mxu0 %v4276_v32 }
0x2c20   :  { %7607 = vmatmul.mubr.msk.bf16.vlgmr.msra.gmra.mxu0 %vm181_vm2, %v4264_v62 }
0x2cd0   :  { %v9492_v58 = vpop.f32.mrf.mxu0 }
0x2cd2   :  { %v9494_v34 = vpop.f32.mrf.mxu0 }
0x2cd4   :  { %v9496_v46 = vpop.f32.mrf.mxu0 }
0x2cd6   :  { %v9498_v38 = vpop.f32.mrf.mxu0 }
0x2ce0   :  { %v7608_v39 = vpop.f32.mrf.mxu0 }
0x2ce1   :  { %v4332_v41 = vmul.f32 0.35355338, %v7608_v39 }
0x2ce2   :  { %v4315_v1 = vpop.f32.mrf.mxu0 }
0x2ce3   :  { %v4330_v43 = vmul.f32 0.35355338, %v4315_v1  ;;  %v4336_v23 = vadd.f32 %v4332_v41, %v9461_v61 }
0x2ce4   :  { %v7609_v44 = vpop.f32.mrf.mxu0 }
0x2ce5   :  { %v4334_v10 = vadd.f32 %v4330_v43, %v9443_v33  ;;  %v4333_v48 = vmul.f32 0.35355338, %v7609_v44  ;;  %v4344_v19 = vsel %vm68_vm0, %v4336_v23, -inf }
0x2ce6   :  { %v4318_v22 = vpop.f32.mrf.mxu0 }
0x2ce7   :  { %v4331_v35 = vmul.f32 0.35355338, %v4318_v22  ;;  %v4338_v49 = vsel %vm68_vm0, %v4334_v10, -inf  ;;  %v4337_v53 = vadd.f32 %v4333_v48, %v9448_v27 }
0x2ce8   :  { %4339 = vmax.xlane.f32.xlu0 %v4338_v49 }
0x2ce9   :  { %v4335_v52 = vadd.f32 %v4331_v35, %v9454_v57  ;;  %v4347_v42 = vsel %vm68_vm0, %v4337_v53, -inf }
0x2ceb   :  { %v4341_v47 = vsel %vm68_vm0, %v4335_v52, -inf }
0x2cec   :  { %4345 = vmax.xlane.f32.xlu0 %v4344_v19  ;;  %4342 = vmax.xlane.f32.xlu1 %v4341_v47 }
0x2cf0   :  { %4348 = vmax.xlane.f32.xlu0 %v4347_v42 }
0x2cfd   :  { %4384 = vrot.lane.b32.xlu1 %v9426_v51, %s10094_s20 }
0x2d71   :  { %v4340_v36 = vpop.xlane.xlu0 %4339 }
0x2d72   :  { %v4350_v55 = vsub.f32 %v4334_v10, %v4340_v36 }
0x2d74   :  { %v4354_v18 = vmul.f32 1.442695, %v4350_v55 }
0x2d75   :  { %v4346_v54 = vpop.xlane.xlu0 %4345  ;;  %v4343_v37 = vpop.xlane.xlu1 %4342 }
0x2d76   :  { %v4352_v59 = vsub.f32 %v4336_v23, %v4346_v54  ;;  %v4351_v21 = vsub.f32 %v4335_v52, %v4343_v37 }
0x2d78   :  { %v4358_v12 = vmul.f32 1.442695, %v4352_v59  ;;  %v4356_v4 = vmul.f32 1.442695, %v4351_v21 }
0x2d79   :  { %v4349_v3 = vpop.xlane.xlu0 %4348  ;;  %v4385_v26 = vpop.permute.xlu1 %4384 }
0x2d7a   :  { %8213 = vpow2.f32 %v4358_v12  ;;  %v4353_v0 = vsub.f32 %v4337_v53, %v4349_v3 }
0x2d7b   :  { %8215 = vpow2.f32 %v4354_v18 }
0x2d7c   :  { %v4360_v5 = vmul.f32 1.442695, %v4353_v0 }
0x2d7e   :  { %8217 = vpow2.f32 %v4360_v5 }
0x2d7f   :  { %8219 = vpow2.f32 %v4356_v4 }
0x2d87   :  { %v8214_v6 = vpop.eup %8213 }
0x2d88   :  { %v4368_v7 = vsel %vm68_vm0, %v8214_v6, 0.0  ;;  %v8216_v8 = vpop.eup %8215 }
0x2d89   :  { %4369 = vadd.xlane.f32.xlu0 %v4368_v7  ;;  %v4362_v13 = vsel %vm68_vm0, %v8216_v8, 0.0 }
0x2d8b   :  { %v8218_v9 = vpop.eup %8217 }
0x2d8c   :  { %v4371_v15 = vsel %vm68_vm0, %v8218_v9, 0.0  ;;  %v8220_v17 = vpop.eup %8219 }
0x2d8d   :  { %4363 = vadd.xlane.f32.xlu0 %v4362_v13  ;;  %4372 = vadd.xlane.f32.xlu1 %v4371_v15  ;;  %v4365_v20 = vsel %vm68_vm0, %v8220_v17, 0.0 }
0x2d91   :  { %4366 = vadd.xlane.f32.xlu1 %v4365_v20 }
0x2da2   :  { %4451 = vrot.lane.b32.xlu1 %v9424_v50, %s10101_s5 }
0x2da3   :  { %4386 = vrot.lane.b32.xlu0 %v9424_v50, %s10094_s20 }
0x2da6   :  { %4449 = vrot.lane.b32.xlu1 %v9426_v51, %s10101_s5 }
0x2da7   :  { %4445 = vrot.lane.b32.xlu0 %v9426_v51, %s10102_s23 }
0x2daa   :  { %4447 = vrot.lane.b32.xlu1 %v9424_v50, %s10102_s23 }
0x2e12   :  { %v4370_v24 = vpop.xlane.xlu0 %4369 }
0x2e16   :  { %v4364_v40 = vpop.xlane.xlu0 %4363  ;;  %v4373_v28 = vpop.xlane.xlu1 %4372 }
0x2e17   :  { %8221 = vrcp.f32 %v4373_v28 }
0x2e18   :  { %8223 = vrcp.f32 %v4364_v40 }
0x2e19   :  { %8225 = vrcp.f32 %v4370_v24 }
0x2e1a   :  { %v4387_v45 = vpop.permute.xlu0 %4386  ;;  %v4367_v63 = vpop.xlane.xlu1 %4366 }
0x2e1b   :  { %8227 = vrcp.f32 %v4367_v63  ;;  %7610 = vmatprep.subr.bf16.mxu1 %v4387_v45 }
0x2e1c   :  { %7611 = vmatpush3.bf16.msra.mxu1 %v4387_v45 }
0x2e1d   :  { %7612 = vmatprep.subr.bf16.mxu1 %v4385_v26 }
0x2e1e   :  { %v4452_v29 = vpop.permute.xlu1 %4451  ;;  %v4446_v48 = vpop.permute.xlu0 %4445 }
0x2e1f   :  { %v4463_v35 = vsel %vm181_vm2, %v4452_v29, 0 }
0x2e20   :  { %7613 = vmatpush3.bf16.msra.mxu1 %v4385_v26 }
0x2e21   :  { %7790 = vmatprep.subr.msk.bf16.mxu1 %vm181_vm2, %v4452_v29 }
0x2e22   :  { %v4450_v49 = vpop.permute.xlu1 %4449 }
0x2e23   :  { %v4460_v52 = vsel %vm181_vm2, %v4450_v49, 0 }
0x2e24   :  { %v8222_v32 = vpop.eup %8221 }
0x2e25   :  { %v8224_v62 = vpop.eup %8223  ;;  %v4381_v41 = vmul.f32 %v8222_v32, %v8218_v9 }
0x2e26   :  { %v8226_v39 = vpop.eup %8225  ;;  %v4378_v43 = vmul.f32 %v8224_v62, %v8216_v8  ;;  %v4448_v53 = vpop.permute.xlu1 %4447 }
0x2e27   :  { %v4380_v10 = vmul.f32 %v8226_v39, %v8214_v6 }
0x2e28   :  { %v8228_v1 = vpop.eup %8227 }
0x2e29   :  { %v4379_v44 = vmul.f32 %v8228_v1, %v8220_v17  ;;  %v4383_v23 = vpack.c.bf16 %v4381_v41, %v4380_v10 }
0x2e2b   :  { %v4382_v22 = vpack.c.bf16 %v4379_v44, %v4378_v43 }
0x2e2d   :  { %7614 = vmatprep.mubr.msk.bf16.mxu1 %vm68_vm0, %v4382_v22 }
0x2e2e   :  { %7615 = vmatmul.mubr.msk.bf16.vlgmr.msra.gmra.mxu1 %vm68_vm0, %v4383_v23 }
0x2e2f   :  { %7619 = vmatpush3.bf16.xpose.msra.mxu1 %v4463_v35  ;;  %7622 = vmatprep.mubr.msk.bf16.mxu1 %vm181_vm2, %v4446_v48 }
0x2e30   :  { %7791 = vmatprep.subr.msk.bf16.mxu1 %vm181_vm2, %v4450_v49 }
0x2e37   :  { %7621 = vmatpush3.bf16.xpose.msra.mxu1 %v4460_v52 }
0x2e3e   :  { %7623 = vmatmul.mubr.msk.bf16.vlgmr.msra.gmra.mxu1 %vm181_vm2, %v4448_v53 }
0x2eee   :  { %v9532_v19 = vpop.f32.mrf.mxu1 }
0x2ef0   :  { %v9534_v47 = vpop.f32.mrf.mxu1 }
0x2ef2   :  { %v9536_v42 = vpop.f32.mrf.mxu1 }
0x2ef3   :  { %v7884_v36 = vpack.i.bf16 %v9536_v42, %v9532_v19 }
0x2ef4   :  { %v9540_v55 = vpop.f32.mrf.mxu1 }
0x2ef5   :  { %v7879_v54 = vpack.i.bf16 %v9540_v55, %v9534_v47 }
0x2efe   :  { %v7624_v37 = vpop.f32.mrf.mxu1 }
0x2eff   :  { %v4516_v18 = vmul.f32 0.35355338, %v7624_v37 }
0x2f00   :  { %v4499_v59 = vpop.f32.mrf.mxu1 }
0x2f01   :  { %v4514_v12 = vmul.f32 0.35355338, %v4499_v59  ;;  %v4520_v4 = vadd.f32 %v4516_v18, %v9461_v61 }
0x2f02   :  { %v7625_v21 = vpop.f32.mrf.mxu1 }
0x2f03   :  { %v4518_v3 = vadd.f32 %v4514_v12, %v9443_v33  ;;  %v4517_v5 = vmul.f32 0.35355338, %v7625_v21  ;;  %v4528_v13 = vsel %vm68_vm0, %v4520_v4, -inf }
0x2f04   :  { %v4502_v0 = vpop.f32.mrf.mxu1 }
0x2f05   :  { %v4515_v6 = vmul.f32 0.35355338, %v4502_v0  ;;  %v4522_v7 = vsel %vm68_vm0, %v4518_v3, -inf  ;;  %v4521_v9 = vadd.f32 %v4517_v5, %v9448_v27 }
0x2f06   :  { %4523 = vmax.xlane.f32.xlu0 %v4522_v7 }
0x2f07   :  { %v4519_v8 = vadd.f32 %v4515_v6, %v9454_v57  ;;  %v4531_v17 = vsel %vm68_vm0, %v4521_v9, -inf }
0x2f09   :  { %v4525_v15 = vsel %vm68_vm0, %v4519_v8, -inf }
0x2f0a   :  { %4529 = vmax.xlane.f32.xlu0 %v4528_v13  ;;  %4526 = vmax.xlane.f32.xlu1 %v4525_v15 }
0x2f0e   :  { %4532 = vmax.xlane.f32.xlu0 %v4531_v17 }
0x2f1b   :  { %4568 = vrot.lane.b32.xlu1 %v9426_v51, %s10092_s18 }
0x2f8f   :  { %v4524_v20 = vpop.xlane.xlu0 %4523 }
0x2f90   :  { %v4534_v26 = vsub.f32 %v4518_v3, %v4524_v20 }
0x2f92   :  { %v4538_v45 = vmul.f32 1.442695, %v4534_v26 }
0x2f93   :  { %v4530_v24 = vpop.xlane.xlu0 %4529  ;;  %v4527_v40 = vpop.xlane.xlu1 %4526 }
0x2f94   :  { %v4536_v28 = vsub.f32 %v4520_v4, %v4530_v24  ;;  %v4535_v29 = vsub.f32 %v4519_v8, %v4527_v40 }
0x2f96   :  { %v4542_v63 = vmul.f32 1.442695, %v4536_v28  ;;  %v4540_v39 = vmul.f32 1.442695, %v4535_v29 }
0x2f97   :  { %v4533_v32 = vpop.xlane.xlu0 %4532  ;;  %v4569_v49 = vpop.permute.xlu1 %4568 }
0x2f98   :  { %8229 = vpow2.f32 %v4542_v63  ;;  %v4537_v62 = vsub.f32 %v4521_v9, %v4533_v32 }
0x2f99   :  { %8231 = vpow2.f32 %v4538_v45 }
0x2f9a   :  { %v4544_v1 = vmul.f32 1.442695, %v4537_v62 }
0x2f9c   :  { %8233 = vpow2.f32 %v4544_v1 }
0x2f9d   :  { %8235 = vpow2.f32 %v4540_v39 }
0x2fa5   :  { %v8230_v41 = vpop.eup %8229 }
0x2fa6   :  { %v4552_v43 = vsel %vm68_vm0, %v8230_v41, 0.0  ;;  %v8232_v44 = vpop.eup %8231 }
0x2fa7   :  { %4553 = vadd.xlane.f32.xlu0 %v4552_v43  ;;  %v4546_v22 = vsel %vm68_vm0, %v8232_v44, 0.0 }
0x2fa9   :  { %v8234_v10 = vpop.eup %8233 }
0x2faa   :  { %v4555_v23 = vsel %vm68_vm0, %v8234_v10, 0.0  ;;  %v8236_v48 = vpop.eup %8235 }
0x2fab   :  { %4547 = vadd.xlane.f32.xlu0 %v4546_v22  ;;  %4556 = vadd.xlane.f32.xlu1 %v4555_v23  ;;  %v4549_v35 = vsel %vm68_vm0, %v8236_v48, 0.0 }
0x2faf   :  { %4550 = vadd.xlane.f32.xlu1 %v4549_v35 }
0x2fc0   :  { %4635 = vrot.lane.b32.xlu1 %v9424_v50, %s10090_s29 }
0x2fc1   :  { %4570 = vrot.lane.b32.xlu0 %v9424_v50, %s10092_s18 }
0x2fc4   :  { %4633 = vrot.lane.b32.xlu1 %v9426_v51, %s10090_s29 }
0x2fc5   :  { %4629 = vrot.lane.b32.xlu0 %v9426_v51, %s10103_s24 }
0x2fc8   :  { %4631 = vrot.lane.b32.xlu1 %v9424_v50, %s10103_s24 }
0x3030   :  { %v4554_v52 = vpop.xlane.xlu0 %4553 }
0x3034   :  { %v4548_v53 = vpop.xlane.xlu0 %4547  ;;  %v4557_v37 = vpop.xlane.xlu1 %4556 }
0x3035   :  { %8237 = vrcp.f32 %v4557_v37 }
0x3036   :  { %8239 = vrcp.f32 %v4548_v53 }
0x3037   :  { %8241 = vrcp.f32 %v4554_v52 }
0x3038   :  { %v4571_v59 = vpop.permute.xlu0 %4570  ;;  %v4551_v18 = vpop.xlane.xlu1 %4550 }
0x3039   :  { %8243 = vrcp.f32 %v4551_v18  ;;  %7626 = vmatprep.subr.bf16.mxu0 %v4571_v59 }
0x303a   :  { %7627 = vmatpush3.bf16.msra.mxu0 %v4571_v59 }
0x303b   :  { %7628 = vmatprep.subr.bf16.mxu0 %v4569_v49 }
0x303c   :  { %v4636_v12 = vpop.permute.xlu1 %4635  ;;  %v4630_v15 = vpop.permute.xlu0 %4629 }
0x303d   :  { %v4647_v17 = vsel %vm181_vm2, %v4636_v12, 0 }
0x303e   :  { %7629 = vmatpush3.bf16.msra.mxu0 %v4569_v49 }
0x303f   :  { %7792 = vmatprep.subr.msk.bf16.mxu0 %vm181_vm2, %v4636_v12 }
0x3040   :  { %v4634_v20 = vpop.permute.xlu1 %4633 }
0x3041   :  { %v4644_v26 = vsel %vm181_vm2, %v4634_v20, 0 }
0x3042   :  { %v8238_v21 = vpop.eup %8237 }
0x3043   :  { %v8240_v3 = vpop.eup %8239  ;;  %v4565_v5 = vmul.f32 %v8238_v21, %v8234_v10 }
0x3044   :  { %v8242_v0 = vpop.eup %8241  ;;  %v4562_v6 = vmul.f32 %v8240_v3, %v8232_v44  ;;  %v4632_v24 = vpop.permute.xlu1 %4631 }
0x3045   :  { %v4564_v8 = vmul.f32 %v8242_v0, %v8230_v41 }
0x3046   :  { %v8244_v4 = vpop.eup %8243 }
0x3047   :  { %v4563_v7 = vmul.f32 %v8244_v4, %v8236_v48  ;;  %v4567_v13 = vpack.c.bf16 %v4565_v5, %v4564_v8 }
0x3049   :  { %v4566_v9 = vpack.c.bf16 %v4563_v7, %v4562_v6 }
0x304b   :  { %7630 = vmatprep.mubr.msk.bf16.mxu0 %vm68_vm0, %v4566_v9 }
0x304c   :  { %7631 = vmatmul.mubr.msk.bf16.vlgmr.msra.gmra.mxu0 %vm68_vm0, %v4567_v13 }
0x304d   :  { %7635 = vmatpush3.bf16.xpose.msra.mxu0 %v4647_v17  ;;  %7638 = vmatprep.mubr.msk.bf16.mxu0 %vm181_vm2, %v4630_v15 }
0x304e   :  { %7793 = vmatprep.subr.msk.bf16.mxu0 %vm181_vm2, %v4634_v20 }
0x3055   :  { %7637 = vmatpush3.bf16.xpose.msra.mxu0 %v4644_v26 }
0x305c   :  { %7639 = vmatmul.mubr.msk.bf16.vlgmr.msra.gmra.mxu0 %vm181_vm2, %v4632_v24 }
0x310c   :  { %v7632_v40 = vpop.f32.mrf.mxu0 }
0x310e   :  { %v4614_v28 = vpop.f32.mrf.mxu0 }
0x3110   :  { %v7633_v45 = vpop.f32.mrf.mxu0 }
0x3111   :  { %v7894_v63 = vpack.i.bf16 %v7633_v45, %v7632_v40 }
0x3112   :  { %v4617_v29 = vpop.f32.mrf.mxu0 }
0x3113   :  { %v7889_v32 = vpack.i.bf16 %v4617_v29, %v4614_v28 }
0x311c   :  { %v7640_v62 = vpop.f32.mrf.mxu0 }
0x311d   :  { %v4700_v1 = vmul.f32 0.35355338, %v7640_v62 }
0x311e   :  { %v4683_v39 = vpop.f32.mrf.mxu0 }
0x311f   :  { %v4698_v41 = vmul.f32 0.35355338, %v4683_v39  ;;  %v4704_v22 = vadd.f32 %v4700_v1, %v9461_v61  ;;  %v7993_v39 = vld [vmem:[%s10032_s8 + $0x48] sm:$0xff]   ;;  %v7994_v1 = vld [vmem:[%s10032_s8 + $0x40] sm:$0xff]  }
0x3120   :  { %v7641_v43 = vpop.f32.mrf.mxu0 }
0x3121   :  { %v4702_v44 = vadd.f32 %v4698_v41, %v9443_v33  ;;  %v4701_v23 = vmul.f32 0.35355338, %v7641_v43  ;;  %v4712_v53 = vsel %vm68_vm0, %v4704_v22, -inf }
0x3122   :  { %v4686_v10 = vpop.f32.mrf.mxu0 }
0x3123   :  { %v4699_v48 = vmul.f32 0.35355338, %v4686_v10  ;;  %v4706_v35 = vsel %vm68_vm0, %v4702_v44, -inf  ;;  %v4705_v52 = vadd.f32 %v4701_v23, %v9448_v27 }
0x3124   :  { %4707 = vmax.xlane.f32.xlu0 %v4706_v35 }
0x3125   :  { %v4703_v49 = vadd.f32 %v4699_v48, %v9454_v57  ;;  %v4715_v33 = vsel %vm68_vm0, %v4705_v52, -inf }
0x3127   :  { %v4709_v37 = vsel %vm68_vm0, %v4703_v49, -inf }
0x3128   :  { %4713 = vmax.xlane.f32.xlu0 %v4712_v53  ;;  %4710 = vmax.xlane.f32.xlu1 %v4709_v37 }
0x312c   :  { %4716 = vmax.xlane.f32.xlu0 %v4715_v33 }
0x31ad   :  { %v4708_v59 = vpop.xlane.xlu0 %4707 }
0x31ae   :  { %v4718_v61 = vsub.f32 %v4702_v44, %v4708_v59 }
0x31b0   :  { %v4722_v3 = vmul.f32 1.442695, %v4718_v61 }
0x31b1   :  { %v4714_v18 = vpop.xlane.xlu0 %4713  ;;  %v4711_v12 = vpop.xlane.xlu1 %4710 }
0x31b2   :  { %v4720_v21 = vsub.f32 %v4704_v22, %v4714_v18  ;;  %v4719_v4 = vsub.f32 %v4703_v49, %v4711_v12 }
0x31b4   :  { %v4726_v0 = vmul.f32 1.442695, %v4720_v21  ;;  %v4724_v5 = vmul.f32 1.442695, %v4719_v4 }
0x31b5   :  { %v4717_v57 = vpop.xlane.xlu0 %4716 }
0x31b6   :  { %8245 = vpow2.f32 %v4726_v0  ;;  %v4721_v27 = vsub.f32 %v4705_v52, %v4717_v57 }
0x31b7   :  { %8247 = vpow2.f32 %v4722_v3 }
0x31b8   :  { %v4728_v6 = vmul.f32 1.442695, %v4721_v27 }
0x31ba   :  { %8249 = vpow2.f32 %v4728_v6 }
0x31bb   :  { %8251 = vpow2.f32 %v4724_v5 }
0x31c3   :  { %v8246_v7 = vpop.eup %8245 }
0x31c4   :  { %v4736_v8 = vsel %vm68_vm0, %v8246_v7, 0.0  ;;  %v8248_v9 = vpop.eup %8247 }
0x31c5   :  { %4737 = vadd.xlane.f32.xlu0 %v4736_v8  ;;  %v4730_v15 = vsel %vm68_vm0, %v8248_v9, 0.0 }
0x31c7   :  { %v8250_v13 = vpop.eup %8249 }
0x31c8   :  { %v4739_v17 = vsel %vm68_vm0, %v8250_v13, 0.0  ;;  %v8252_v20 = vpop.eup %8251 }
0x31c9   :  { %4731 = vadd.xlane.f32.xlu0 %v4730_v15  ;;  %4740 = vadd.xlane.f32.xlu1 %v4739_v17  ;;  %v4733_v26 = vsel %vm68_vm0, %v8252_v20, 0.0 }
0x31cd   :  { %4734 = vadd.xlane.f32.xlu1 %v4733_v26 }
0x31de   :  { %4752 = vrot.lane.b32.xlu1 %v9426_v51, %s10093_s19 }
0x31df   :  { %4754 = vrot.lane.b32.xlu0 %v9424_v50, %s10093_s19 }
0x31e2   :  { %7880 = vrot.lane.b32.xlu1 %v7879_v54, %s10095_s22 }
0x31e3   :  { %7890 = vrot.lane.b32.xlu0 %v7889_v32, %s10096_s21 }
0x31e6   :  { %7885 = vrot.lane.b32.xlu1 %v7884_v36, %s10095_s22 }
0x31ea   :  { %7895 = vrot.lane.b32.xlu1 %v7894_v63, %s10096_s21 }
0x324e   :  { %v4738_v24 = vpop.xlane.xlu0 %4737 }
0x3252   :  { %v4732_v40 = vpop.xlane.xlu0 %4731  ;;  %v4741_v51 = vpop.xlane.xlu1 %4740 }
0x3253   :  { %8253 = vrcp.f32 %v4741_v51  ;;  %v6922_v51 = vld [vmem:[%s10033_s9 + $0x4] ss:$0 sm:$0xff] }
0x3254   :  { %8255 = vrcp.f32 %v4732_v40 }
0x3255   :  { %8257 = vrcp.f32 %v4738_v24 }
0x3256   :  { %v4755_v50 = vpop.permute.xlu0 %4754  ;;  %v4735_v28 = vpop.xlane.xlu1 %4734 }
0x3257   :  { %8259 = vrcp.f32 %v4735_v28  ;;  %7642 = vmatprep.subr.bf16.mxu1 %v4755_v50 }
0x3258   :  { %7643 = vmatpush3.bf16.msra.mxu1 %v4755_v50 }
0x325a   :  { %v4753_v47 = vpop.permute.xlu1 %4752  ;;  %v7891_v37 = vpop.permute.xlu0 %7890 }
0x325b   :  { %7644 = vmatprep.subr.bf16.mxu1 %v4753_v47  ;;  %v7893_v57 = vunpack.i.h.bf16 %v7891_v37  ;;  %v7892_v27 = vunpack.i.l.bf16 %v7891_v37 }
0x325c   :  { %7645 = vmatpush3.bf16.msra.mxu1 %v4753_v47 }
0x325d   :  { %7650 = vmatprep.subr.bf16.mxu1 %v7993_v39 }
0x325e   :  { %v7881_v48 = vpop.permute.xlu1 %7880 }
0x325f   :  { %v7883_v52 = vunpack.i.h.bf16 %v7881_v48  ;;  %v7882_v53 = vunpack.i.l.bf16 %v7881_v48 }
0x3260   :  { %v8254_v55 = vpop.eup %8253 }
0x3261   :  { %v8256_v54 = vpop.eup %8255  ;;  %v4749_v36 = vmul.f32 %v8254_v55, %v8250_v13  ;;  %v4862_v21 = vsel %vm181_vm2, %v9498_v38, %v7883_v52  ;;  %v4861_v3 = vsel %vm181_vm2, %v9494_v34, %v7882_v53 }
0x3262   :  { %v8258_v19 = vpop.eup %8257  ;;  %v4746_v45 = vmul.f32 %v8256_v54, %v8248_v9  ;;  %v7886_v35 = vpop.permute.xlu1 %7885  ;;  %v4865_v17 = vsel %vm233_vm3, %v4861_v3, %v7892_v27 }
0x3263   :  { %v4748_v29 = vmul.f32 %v8258_v19, %v8246_v7  ;;  %v7888_v33 = vunpack.i.h.bf16 %v7886_v35  ;;  %v7887_v59 = vunpack.i.l.bf16 %v7886_v35 }
0x3264   :  { %v8260_v42 = vpop.eup %8259 }
0x3265   :  { %v4747_v63 = vmul.f32 %v8260_v42, %v8252_v20  ;;  %v4751_v62 = vpack.c.bf16 %v4749_v36, %v4748_v29  ;;  %v4864_v5 = vsel %vm181_vm2, %v9496_v46, %v7888_v33  ;;  %v4863_v6 = vsel %vm181_vm2, %v9492_v58, %v7887_v59 }
0x3266   :  { %v7896_v49 = vpop.permute.xlu1 %7895  ;;  %v4866_v20 = vsel %vm233_vm3, %v4862_v21, %v7893_v57  ;;  %v7996_v21 = vld [vmem:[%s10034_s11 + $0x40] sm:$0xff]  }
0x3267   :  { %v4750_v32 = vpack.c.bf16 %v4747_v63, %v4746_v45  ;;  %v7898_v61 = vunpack.i.h.bf16 %v7896_v49  ;;  %v7897_v18 = vunpack.i.l.bf16 %v7896_v49 }
0x3269   :  { %7646 = vmatprep.mubr.msk.bf16.mxu1 %vm68_vm0, %v4750_v32  ;;  %v4867_v8 = vsel %vm233_vm3, %v4863_v6, %v7897_v18  ;;  %v4868_v9 = vsel %vm233_vm3, %v4864_v5, %v7898_v61 }
0x326a   :  { %7647 = vmatmul.mubr.msk.bf16.vlgmr.msra.gmra.mxu1 %vm68_vm0, %v4751_v62 }
0x326b   :  { %7651 = vmatpush3.bf16.msra.mxu1 %v7993_v39 }
0x326c   :  { %7652 = vmatprep.subr.bf16.mxu1 %v7994_v1 }
0x326f   :  { %7653 = vmatpush3.bf16.msra.mxu1 %v7994_v1 }
0x332a   :  { %v7648_v41 = vpop.f32.mrf.mxu1 }
0x332c   :  { %v4798_v43 = vpop.f32.mrf.mxu1 }
0x332e   :  { %v7649_v44 = vpop.f32.mrf.mxu1 }
0x332f   :  { %v7904_v10 = vpack.i.bf16 %v7649_v44, %v7648_v41 }
0x3330   :  { %v4801_v22 = vpop.f32.mrf.mxu1 }
0x3331   :  { %v7899_v23 = vpack.i.bf16 %v4801_v22, %v4798_v43  ;;  %7905 = vrot.lane.b32.xlu1 %v7904_v10, %s10097_s6 }
0x3333   :  { %7900 = vrot.lane.b32.xlu0 %v7899_v23, %s10097_s6 }
0x33a3   :  { %v7906_v12 = vpop.permute.xlu1 %7905 }
0x33a4   :  { %v7908_v0 = vunpack.i.h.bf16 %v7906_v12  ;;  %v7907_v4 = vunpack.i.l.bf16 %v7906_v12  ;;  %v7995_v12 = vld [vmem:[%s10034_s11 + $0x48] sm:$0xff]  }
0x33a5   :  { %v7901_v7 = vpop.permute.xlu0 %7900  ;;  %7658 = vmatprep.subr.bf16.mxu0 %v7995_v12 }
0x33a6   :  { %v7903_v13 = vunpack.i.h.bf16 %v7901_v7  ;;  %v7902_v38 = vunpack.i.l.bf16 %v7901_v7  ;;  %v4871_v15 = vsel %vm707_vm4, %v4867_v8, %v7907_v4  ;;  %v4872_v34 = vsel %vm707_vm4, %v4868_v9, %v7908_v0  ;;  %7659 = vmatpush3.bf16.msra.mxu0 %v7995_v12 }
0x33a7   :  { %v4874_v24 = vpack.c.bf16 %v4872_v34, %v4871_v15  ;;  %7660 = vmatprep.subr.bf16.mxu0 %v7996_v21  ;;  %v9654_v15 = vld [vmem:[%s10035_s10 + $0x10] sm:$0xf] }
0x33a8   :  { %v4869_v46 = vsel %vm707_vm4, %v4865_v17, %v7902_v38  ;;  %v4870_v26 = vsel %vm707_vm4, %v4866_v20, %v7903_v13  ;;  %v5014_v17 = vrot.slane %v9654_v15, %v8515_v25 }
0x33a9   :  { %v4873_v58 = vpack.c.bf16 %v4870_v26, %v4869_v46 }
0x33aa   :  { %7661 = vmatpush3.bf16.msra.mxu0 %v7996_v21 }
0x33ab   :  { %7654 = vmatprep.mubr.msk.bf16.mxu1 %vm68_vm0, %v4873_v58 }
0x33ac   :  { %7655 = vmatmul.mubr.msk.bf16.vlgmr.msra.gmra.mxu1 %vm68_vm0, %v4874_v24 }
0x346c   :  { %v7656_v40 = vpop.f32.mrf.mxu1 }
0x346d   :  { %v4949_v28 = vadd.f32 %v7656_v40, %v6922_v51  ;;  %v5022_v40 = vrot.slane %v9654_v15, %v8522_v30 }
0x346e   :  { %v4940_v50 = vpop.f32.mrf.mxu1 }
0x346f   :  { %v4941_v47 = vadd.f32 %v6922_v51, %v4940_v50  ;;  %v4957_v42 = vadd.f32 %v4949_v28, %v9413_v60 }
0x3470   :  { %v7657_v55 = vpop.f32.mrf.mxu1 }
0x3471   :  { %v4955_v54 = vadd.f32 %v4941_v47, %v9407_v31  ;;  %v4952_v36 = vadd.f32 %v7657_v55, %v6922_v51  ;;  %v4965_v39 = vsel %vm68_vm0, %v4957_v42, 0.0 }
0x3472   :  { %v4943_v19 = vpop.f32.mrf.mxu1 }
0x3473   :  { %v4944_v45 = vadd.f32 %v6922_v51, %v4943_v19  ;;  %v4959_v63 = vsel %vm68_vm0, %v4955_v54, 0.0  ;;  %v4958_v32 = vadd.f32 %v4952_v36, %v9415_v2 }
0x3474   :  { %4960 = vadd.xlane.f32.xlu0 %v4959_v63 }
0x3475   :  { %v4956_v29 = vadd.f32 %v4944_v45, %v9409_v56  ;;  %v4968_v31 = vsel %vm68_vm0, %v4958_v32, 0.0 }
0x3477   :  { %v4962_v62 = vsel %vm68_vm0, %v4956_v29, 0.0 }
0x3478   :  { %4963 = vadd.xlane.f32.xlu1 %v4962_v62  ;;  %4966 = vadd.xlane.f32.xlu0 %v4965_v39  ;;  %v7998_v62 = vld [vmem:[%s10036_s13 + $0x90] sm:$0xff]   ;;  %v7999_v39 = vld [vmem:[%s10036_s13 + $0x88] sm:$0xff]  }
0x347c   :  { %4969 = vadd.xlane.f32.xlu0 %v4968_v31  ;;  %v8000_v31 = vld [vmem:[%s10036_s13 + $0x80] sm:$0xff]  }
0x34fd   :  { %v4961_v1 = vpop.xlane.xlu0 %4960 }
0x34fe   :  { %v4971_v60 = vmul.f32 0.03125, %v4961_v1  ;;  %v6932_v1 = vld [vmem:[%s10037_s12 + $0x4] ss:$0 sm:$0xff] }
0x3500   :  { %v4975_v41 = vsub.f32 %v4955_v54, %v4971_v60 }
0x3501   :  { %v4964_v43 = vpop.xlane.xlu1 %4963  ;;  %v4967_v44 = vpop.xlane.xlu0 %4966 }
0x3502   :  { %v4972_v10 = vmul.f32 0.03125, %v4964_v43  ;;  %v4973_v22 = vmul.f32 0.03125, %v4967_v44  ;;  %v4979_v23 = vmul.f32 %v4975_v41, %v4975_v41 }
0x3504   :  { %v4976_v56 = vsub.f32 %v4956_v29, %v4972_v10  ;;  %v4977_v48 = vsub.f32 %v4957_v42, %v4973_v22  ;;  %v4983_v2 = vsel %vm68_vm0, %v4979_v23, 0.0 }
0x3505   :  { %4984 = vadd.xlane.f32.xlu0 %v4983_v2  ;;  %v4970_v35 = vpop.xlane.xlu0 %4969 }
0x3506   :  { %v4974_v49 = vmul.f32 0.03125, %v4970_v35  ;;  %v4980_v52 = vmul.f32 %v4976_v56, %v4976_v56  ;;  %v4981_v53 = vmul.f32 %v4977_v48, %v4977_v48 }
0x3508   :  { %v4978_v37 = vsub.f32 %v4958_v32, %v4974_v49  ;;  %v4986_v33 = vsel %vm68_vm0, %v4980_v52, 0.0  ;;  %v4989_v59 = vsel %vm68_vm0, %v4981_v53, 0.0  ;;  %v7997_v32 = vld [vmem:[%s10036_s13 + $0x98] sm:$0xff]  }
0x3509   :  { %4987 = vadd.xlane.f32.xlu1 %v4986_v33  ;;  %4990 = vadd.xlane.f32.xlu0 %v4989_v59 }
0x350a   :  { %v4982_v61 = vmul.f32 %v4978_v37, %v4978_v37  ;;  %7666 = vmatprep.subr.bf16.mxu1 %v7997_v32 }
0x350b   :  { %7667 = vmatpush3.bf16.msra.mxu1 %v7997_v32 }
0x350c   :  { %v4992_v18 = vsel %vm68_vm0, %v4982_v61, 0.0  ;;  %7668 = vmatprep.subr.bf16.mxu1 %v7998_v62 }
0x350d   :  { %4993 = vadd.xlane.f32.xlu1 %v4992_v18 }
0x350f   :  { %7669 = vmatpush3.bf16.msra.mxu1 %v7998_v62 }
0x3510   :  { %7670 = vmatprep.subr.bf16.mxu1 %v7999_v39 }
0x3513   :  { %7671 = vmatpush3.bf16.msra.mxu1 %v7999_v39 }
0x3514   :  { %7672 = vmatprep.subr.bf16.mxu1 %v8000_v31 }
0x3517   :  { %7673 = vmatpush3.bf16.msra.mxu1 %v8000_v31 }
0x358e   :  { %v4985_v3 = vpop.xlane.xlu0 %4984 }
0x358f   :  { %v4995_v0 = vmul.f32 0.03125, %v4985_v3 }
0x3591   :  { %v4999_v4 = vadd.f32 1e-12, %v4995_v0 }
0x3592   :  { %v4988_v57 = vpop.xlane.xlu1 %4987  ;;  %v4991_v27 = vpop.xlane.xlu0 %4990 }
0x3593   :  { %8261 = vrsqrt.f32 %v4999_v4  ;;  %v4996_v5 = vmul.f32 0.03125, %v4988_v57  ;;  %v4997_v6 = vmul.f32 0.03125, %v4991_v27 }
0x3595   :  { %v5000_v7 = vadd.f32 1e-12, %v4996_v5  ;;  %v5001_v8 = vadd.f32 1e-12, %v4997_v6 }
0x3596   :  { %v4994_v9 = vpop.xlane.xlu1 %4993 }
0x3597   :  { %8263 = vrsqrt.f32 %v5000_v7  ;;  %v4998_v13 = vmul.f32 0.03125, %v4994_v9 }
0x3598   :  { %8265 = vrsqrt.f32 %v5001_v8 }
0x3599   :  { %v5002_v38 = vadd.f32 1e-12, %v4998_v13 }
0x359b   :  { %8267 = vrsqrt.f32 %v5002_v38 }
0x35a0   :  { %v8262_v34 = vpop.eup %8261 }
0x35a1   :  { %v5007_v20 = vmul.f32 %v8262_v34, %v4975_v41 }
0x35a3   :  { %v5015_v24 = vmul.f32 %v5014_v17, %v5007_v20 }
0x35a4   :  { %v8264_v46 = vpop.eup %8263 }
0x35a5   :  { %v8266_v26 = vpop.eup %8265  ;;  %v5008_v58 = vmul.f32 %v8264_v46, %v4976_v56  ;;  %v9660_v54 = vadd.f32 %v5022_v40, %v5015_v24 }
0x35a6   :  { %v5009_v51 = vmul.f32 %v8266_v26, %v4977_v48 }
0x35a7   :  { %v5016_v50 = vmul.f32 %v5014_v17, %v5008_v58 }
0x35a8   :  { %v8268_v28 = vpop.eup %8267  ;;  %v5017_v47 = vmul.f32 %v5014_v17, %v5009_v51 }
0x35a9   :  { %v5010_v55 = vmul.f32 %v8268_v28, %v4978_v37  ;;  %v9662_v19 = vadd.f32 %v5022_v40, %v5016_v50 }
0x35aa   :  { %v9667_v45 = vadd.f32 %v5022_v40, %v5017_v47 }
0x35ab   :  { %v5018_v42 = vmul.f32 %v5014_v17, %v5010_v55  ;;  %v5027_v36 = vpack.c.bf16 %v9662_v19, %v9660_v54 }
0x35ad   :  { %7662 = vmatprep.mubr.msk.bf16.mxu0 %vm68_vm0, %v5027_v36  ;;  %v9669_v63 = vadd.f32 %v5022_v40, %v5018_v42  ;;  %v6946_v36 = vld [vmem:[%s10038_s14 + $0x4] ss:$0 sm:$0xff] }
0x35af   :  { %v5028_v29 = vpack.c.bf16 %v9669_v63, %v9667_v45 }
0x35b1   :  { %7663 = vmatmul.mubr.msk.bf16.vlgmr.msra.gmra.mxu0 %vm68_vm0, %v5028_v29 }
0x3671   :  { %v7664_v60 = vpop.f32.mrf.mxu0 }
0x3672   :  { %v5103_v41 = vadd.f32 %v7664_v60, %v6932_v1 }
0x3673   :  { %v5094_v43 = vpop.f32.mrf.mxu0 }
0x3674   :  { %v5115_v44 = vmul.f32 0.044715, %v5103_v41  ;;  %v5095_v10 = vadd.f32 %v6932_v1, %v5094_v43  ;;  %v5111_v24 = vmul.f32 0.5, %v5103_v41 }
0x3675   :  { %v7665_v22 = vpop.f32.mrf.mxu0 }
0x3676   :  { %v5119_v23 = vmul.f32 %v5115_v44, %v5103_v41  ;;  %v5113_v56 = vmul.f32 0.044715, %v5095_v10  ;;  %v5106_v48 = vadd.f32 %v7665_v22, %v6932_v1  ;;  %v5109_v46 = vmul.f32 0.5, %v5095_v10 }
0x3677   :  { %v5097_v2 = vpop.f32.mrf.mxu0 }
0x3678   :  { %v5123_v35 = vmul.f32 %v5119_v23, %v5103_v41  ;;  %v5117_v49 = vmul.f32 %v5113_v56, %v5095_v10  ;;  %v5116_v52 = vmul.f32 0.044715, %v5106_v48  ;;  %v5098_v53 = vadd.f32 %v6932_v1, %v5097_v2 }
0x3679   :  { %v5112_v17 = vmul.f32 0.5, %v5106_v48 }
0x367a   :  { %v5127_v37 = vadd.f32 %v5123_v35, %v5103_v41  ;;  %v5121_v33 = vmul.f32 %v5117_v49, %v5095_v10  ;;  %v5120_v59 = vmul.f32 %v5116_v52, %v5106_v48  ;;  %v5114_v61 = vmul.f32 0.044715, %v5098_v53 }
0x367b   :  { %v5110_v26 = vmul.f32 0.5, %v5098_v53 }
0x367c   :  { %v5131_v18 = vmul.f32 0.7978846, %v5127_v37  ;;  %v5125_v12 = vadd.f32 %v5121_v33, %v5095_v10  ;;  %v5124_v21 = vmul.f32 %v5120_v59, %v5106_v48  ;;  %v5118_v3 = vmul.f32 %v5114_v61, %v5098_v53 }
0x367e   :  { %v5129_v0 = vmul.f32 0.7978846, %v5125_v12  ;;  %v5128_v4 = vadd.f32 %v5124_v21, %v5106_v48  ;;  %v5122_v57 = vmul.f32 %v5118_v3, %v5098_v53  ;;  %8269 = vtanh.f32 %v5131_v18 }
0x3680   :  { %v5132_v27 = vmul.f32 0.7978846, %v5128_v4  ;;  %8271 = vtanh.f32 %v5129_v0  ;;  %v5126_v5 = vadd.f32 %v5122_v57, %v5098_v53 }
0x3682   :  { %8273 = vtanh.f32 %v5132_v27  ;;  %v5130_v6 = vmul.f32 0.7978846, %v5126_v5  ;;  %v8001_v27 = vld [vmem:[%s10089_s30 + $0x58] sm:$0xff]   ;;  %v8002_v5 = vld [vmem:[%s10089_s30 + $0x50] sm:$0xff]  }
0x3683   :  { %7678 = vmatprep.subr.bf16.mxu0 %v8001_v27 }
0x3684   :  { %8275 = vtanh.f32 %v5130_v6  ;;  %7679 = vmatpush3.bf16.msra.mxu0 %v8001_v27 }
0x3685   :  { %7680 = vmatprep.subr.bf16.mxu0 %v8002_v5 }
0x3688   :  { %7681 = vmatpush3.bf16.msra.mxu0 %v8002_v5 }
0x368b   :  { %v8270_v7 = vpop.eup %8269 }
0x368c   :  { %v5139_v20 = vadd.f32 1.0, %v8270_v7 }
0x368d   :  { %v8272_v8 = vpop.eup %8271 }
0x368e   :  { %v5137_v38 = vadd.f32 1.0, %v8272_v8  ;;  %v5143_v28 = vmul.f32 %v5139_v20, %v5111_v24 }
0x368f   :  { %v8274_v9 = vpop.eup %8273 }
0x3690   :  { %v5140_v13 = vadd.f32 1.0, %v8274_v9  ;;  %v5141_v51 = vmul.f32 %v5137_v38, %v5109_v46 }
0x3691   :  { %v8276_v34 = vpop.eup %8275 }
0x3692   :  { %v5138_v58 = vadd.f32 1.0, %v8276_v34  ;;  %v5144_v40 = vmul.f32 %v5140_v13, %v5112_v17 }
0x3694   :  { %v5142_v50 = vmul.f32 %v5138_v58, %v5110_v26  ;;  %v5146_v55 = vpack.c.bf16 %v5144_v40, %v5143_v28  ;;  %v5302_v40 = vrot.slane %v9654_v15, %v8707_v11 }
0x3696   :  { %v5145_v47 = vpack.c.bf16 %v5142_v50, %v5141_v51 }
0x3698   :  { %7674 = vmatprep.mubr.msk.bf16.mxu1 %vm944_vm5, %v5145_v47 }
0x3699   :  { %7675 = vmatmul.mubr.msk.bf16.vlgmr.msra.gmra.mxu1 %vm944_vm5, %v5146_v55 }
0x3759   :  { %v7676_v42 = vpop.f32.mrf.mxu1 }
0x375a   :  { %v5237_v32 = vadd.f32 %v7676_v42, %v6946_v36  ;;  %v5310_v42 = vrot.slane %v9654_v15, %v8712_v16 }
0x375b   :  { %v5228_v29 = vpop.f32.mrf.mxu1 }
0x375c   :  { %v5229_v62 = vadd.f32 %v6946_v36, %v5228_v29  ;;  %v5245_v60 = vadd.f32 %v5237_v32, %v9667_v45 }
0x375d   :  { %v7677_v39 = vpop.f32.mrf.mxu1 }
0x375e   :  { %v5243_v31 = vadd.f32 %v5229_v62, %v9660_v54  ;;  %v5240_v41 = vadd.f32 %v7677_v39, %v6946_v36  ;;  %v5253_v56 = vsel %vm68_vm0, %v5245_v60, 0.0 }
0x375f   :  { %v5231_v1 = vpop.f32.mrf.mxu1 }
0x3760   :  { %v5232_v43 = vadd.f32 %v6946_v36, %v5231_v1  ;;  %v5247_v44 = vsel %vm68_vm0, %v5243_v31, 0.0  ;;  %v5246_v22 = vadd.f32 %v5240_v41, %v9669_v63 }
0x3761   :  { %5248 = vadd.xlane.f32.xlu0 %v5247_v44 }
0x3762   :  { %v5244_v10 = vadd.f32 %v5232_v43, %v9662_v19  ;;  %v5256_v54 = vsel %vm68_vm0, %v5246_v22, 0.0 }
0x3764   :  { %v5250_v23 = vsel %vm68_vm0, %v5244_v10, 0.0 }
0x3765   :  { %5251 = vadd.xlane.f32.xlu1 %v5250_v23  ;;  %5254 = vadd.xlane.f32.xlu0 %v5253_v56 }
0x3769   :  { %5257 = vadd.xlane.f32.xlu1 %v5256_v54 }
0x37ea   :  { %v5249_v48 = vpop.xlane.xlu0 %5248 }
0x37eb   :  { %v5259_v45 = vmul.f32 0.03125, %v5249_v48 }
0x37ed   :  { %v5263_v2 = vsub.f32 %v5243_v31, %v5259_v45 }
0x37ee   :  { %v5252_v35 = vpop.xlane.xlu1 %5251  ;;  %v5255_v49 = vpop.xlane.xlu0 %5254 }
0x37ef   :  { %v5260_v52 = vmul.f32 0.03125, %v5252_v35  ;;  %v5261_v53 = vmul.f32 0.03125, %v5255_v49  ;;  %v5267_v37 = vmul.f32 %v5263_v2, %v5263_v2 }
0x37f1   :  { %v5264_v19 = vsub.f32 %v5244_v10, %v5260_v52  ;;  %v5265_v33 = vsub.f32 %v5245_v60, %v5261_v53  ;;  %v5271_v63 = vsel %vm68_vm0, %v5267_v37, 0.0 }
0x37f2   :  { %v5258_v59 = vpop.xlane.xlu1 %5257  ;;  %5272 = vadd.xlane.f32.xlu0 %v5271_v63 }
0x37f3   :  { %v5262_v61 = vmul.f32 0.03125, %v5258_v59  ;;  %v5268_v18 = vmul.f32 %v5264_v19, %v5264_v19  ;;  %v5269_v12 = vmul.f32 %v5265_v33, %v5265_v33 }
0x37f5   :  { %v5266_v21 = vsub.f32 %v5246_v22, %v5262_v61  ;;  %v5274_v3 = vsel %vm68_vm0, %v5268_v18, 0.0  ;;  %v5277_v0 = vsel %vm68_vm0, %v5269_v12, 0.0  ;;  %v6959_v22 = vld [vmem:[%s10030_s7 + $0x5] ss:$0 sm:$0xff] }
0x37f6   :  { %5275 = vadd.xlane.f32.xlu1 %v5274_v3  ;;  %5278 = vadd.xlane.f32.xlu0 %v5277_v0  ;;  %v9752_v12 = vld [vmem:[%s10105_s1 + $0x40] sm:$0xff] }
0x37f7   :  { %v5270_v4 = vmul.f32 %v5266_v21, %v5266_v21 }
0x37f9   :  { %v5280_v57 = vsel %vm68_vm0, %v5270_v4, 0.0 }
0x37fa   :  { %5281 = vadd.xlane.f32.xlu1 %v5280_v57  ;;  %v9758_v57 = vld [vmem:[%s10105_s1 + $0x58] sm:$0xff] }
0x387b   :  { %v5273_v6 = vpop.xlane.xlu0 %5272 }
0x387c   :  { %v5283_v7 = vmul.f32 0.03125, %v5273_v6 }
0x387e   :  { %v5287_v8 = vadd.f32 1e-12, %v5283_v7  ;;  %v9765_v7 = vld [vmem:[%s10105_s1 + $0x48] sm:$0xff] }
0x387f   :  { %v5276_v9 = vpop.xlane.xlu1 %5275  ;;  %v5279_v13 = vpop.xlane.xlu0 %5278 }
0x3880   :  { %8277 = vrsqrt.f32 %v5287_v8  ;;  %v5284_v38 = vmul.f32 0.03125, %v5276_v9  ;;  %v5285_v34 = vmul.f32 0.03125, %v5279_v13  ;;  %v9771_v9 = vld [vmem:[%s10105_s1 + $0x50] sm:$0xff] }
0x3882   :  { %v5288_v17 = vadd.f32 1e-12, %v5284_v38  ;;  %v5289_v20 = vadd.f32 1e-12, %v5285_v34 }
0x3883   :  { %v5282_v46 = vpop.xlane.xlu1 %5281 }
0x3884   :  { %8279 = vrsqrt.f32 %v5288_v17  ;;  %v5286_v26 = vmul.f32 0.03125, %v5282_v46 }
0x3885   :  { %8281 = vrsqrt.f32 %v5289_v20 }
0x3886   :  { %v5290_v58 = vadd.f32 1e-12, %v5286_v26 }
0x3888   :  { %8283 = vrsqrt.f32 %v5290_v58 }
0x388d   :  { %v8278_v24 = vpop.eup %8277 }
0x388e   :  { %v5295_v51 = vmul.f32 %v8278_v24, %v5263_v2 }
0x3890   :  { %v5303_v55 = vmul.f32 %v5302_v40, %v5295_v51 }
0x3891   :  { %v8280_v50 = vpop.eup %8279 }
0x3892   :  { %v8282_v28 = vpop.eup %8281  ;;  %v5296_v47 = vmul.f32 %v8280_v50, %v5264_v19  ;;  %v9716_v31 = vadd.f32 %v5310_v42, %v5303_v55 }
0x3893   :  { %v5297_v36 = vmul.f32 %v8282_v28, %v5265_v33 }
0x3894   :  { %v5304_v29 = vmul.f32 %v5302_v40, %v5296_v47 }
0x3895   :  { %v8284_v32 = vpop.eup %8283  ;;  %v5305_v62 = vmul.f32 %v5302_v40, %v5297_v36 }
0x3896   :  { %v5298_v39 = vmul.f32 %v8284_v32, %v5266_v21  ;;  %v9718_v1 = vadd.f32 %v5310_v42, %v5304_v29 }
0x3897   :  { %v9723_v43 = vadd.f32 %v5310_v42, %v5305_v62 }
0x3898   :  { %v5306_v60 = vmul.f32 %v5302_v40, %v5298_v39  ;;  %v5317_v41 = vpack.c.bf16 %v9718_v1, %v9716_v31 }
0x389a   :  { %7682 = vmatprep.mubr.msk.bf16.mxu0 %vm68_vm0, %v5317_v41  ;;  %v9725_v44 = vadd.f32 %v5310_v42, %v5306_v60 }
0x389c   :  { %v5318_v15 = vpack.c.bf16 %v9725_v44, %v9723_v43 }
0x389e   :  { %7683 = vmatmul.mubr.msk.bf16.vlgmr.msra.gmra.mxu0 %vm68_vm0, %v5318_v15 }
0x395e   :  { %v7684_v10 = vpop.f32.mrf.mxu0 }
0x395f   :  { %v5393_v54 = vadd.f32 %v7684_v10, %v6959_v22 }
0x3960   :  { %v5384_v23 = vpop.f32.mrf.mxu0 }
0x3961   :  { %v5385_v2 = vadd.f32 %v6959_v22, %v5384_v23 }
0x3962   :  { %v7685_v56 = vpop.f32.mrf.mxu0 }
0x3963   :  { %v5396_v48 = vadd.f32 %v7685_v56, %v6959_v22 }
0x3964   :  { %v5387_v45 = vpop.f32.mrf.mxu0 }
0x3965   :  { %v9733_v35 = vpack.c.bf16 %v5396_v48, %v5393_v54  ;;  %v5388_v49 = vadd.f32 %v6959_v22, %v5387_v45 }
0x3967   :  { %v9735_v52 = vpack.c.bf16 %v5388_v49, %v5385_v2  ;;  %5405 = vrot.lane.b32.xlu0 %v9733_v35, %s10098_s4 }
0x3969   :  { %5403 = vrot.lane.b32.xlu1 %v9735_v52, %s10098_s4  ;;  %7690 = vmatprep.mubr.msk.bf16.mxu0 %vm181_vm2, %v9735_v52 }
0x39d9   :  { %v5406_v53 = vpop.permute.xlu0 %5405 }
0x39da   :  { %v5417_v37 = vsel %vm181_vm2, %v5406_v53, 0  ;;  %7794 = vmatprep.subr.msk.bf16.mxu0 %vm181_vm2, %v5406_v53 }
0x39db   :  { %7687 = vmatpush3.bf16.xpose.msra.mxu0 %v5417_v37  ;;  %v5404_v19 = vpop.permute.xlu1 %5403 }
0x39dc   :  { %7795 = vmatprep.subr.msk.bf16.mxu0 %vm181_vm2, %v5404_v19  ;;  %v5414_v33 = vsel %vm181_vm2, %v5404_v19, 0 }
0x39e3   :  { %7689 = vmatpush3.bf16.xpose.msra.mxu0 %v5414_v33 }
0x39ea   :  { %7691 = vmatmul.mubr.msk.bf16.vlgmr.msra.gmra.mxu0 %vm181_vm2, %v9733_v35 }
0x3aaa   :  { %v7692_v63 = vpop.f32.mrf.mxu0 }
0x3aab   :  { %v5470_v4 = vmul.f32 0.35355338, %v7692_v63 }
0x3aac   :  { %v5453_v59 = vpop.f32.mrf.mxu0 }
0x3aad   :  { %v5468_v61 = vmul.f32 0.35355338, %v5453_v59  ;;  %v5474_v13 = vadd.f32 %v9771_v9, %v5470_v4 }
0x3aae   :  { %v7693_v18 = vpop.f32.mrf.mxu0 }
0x3aaf   :  { %v5472_v21 = vadd.f32 %v9752_v12, %v5468_v61  ;;  %v5471_v3 = vmul.f32 0.35355338, %v7693_v18  ;;  %v5482_v17 = vsel %vm68_vm0, %v5474_v13, -inf }
0x3ab0   :  { %v5456_v0 = vpop.f32.mrf.mxu0 }
0x3ab1   :  { %v5475_v27 = vadd.f32 %v9758_v57, %v5471_v3  ;;  %v5469_v5 = vmul.f32 0.35355338, %v5456_v0  ;;  %v5476_v6 = vsel %vm68_vm0, %v5472_v21, -inf }
0x3ab2   :  { %5477 = vmax.xlane.f32.xlu1 %v5476_v6 }
0x3ab3   :  { %v5473_v8 = vadd.f32 %v9765_v7, %v5469_v5  ;;  %v5485_v38 = vsel %vm68_vm0, %v5475_v27, -inf }
0x3ab5   :  { %v5479_v34 = vsel %vm68_vm0, %v5473_v8, -inf }
0x3ab6   :  { %5486 = vmax.xlane.f32.xlu1 %v5485_v38  ;;  %5480 = vmax.xlane.f32.xlu0 %v5479_v34 }
0x3aba   :  { %5483 = vmax.xlane.f32.xlu0 %v5482_v17 }
0x3ac7   :  { %5522 = vrot.lane.b32.xlu1 %v9735_v52, %s10091_s0 }
0x3b3b   :  { %v5478_v20 = vpop.xlane.xlu1 %5477 }
0x3b3c   :  { %v5488_v40 = vsub.f32 %v5472_v21, %v5478_v20 }
0x3b3e   :  { %v5492_v55 = vmul.f32 1.442695, %v5488_v40 }
0x3b3f   :  { %v5487_v46 = vpop.xlane.xlu1 %5486  ;;  %v5481_v26 = vpop.xlane.xlu0 %5480 }
0x3b40   :  { %v5491_v58 = vsub.f32 %v5475_v27, %v5487_v46  ;;  %v5489_v24 = vsub.f32 %v5473_v8, %v5481_v26 }
0x3b42   :  { %v5498_v51 = vmul.f32 1.442695, %v5491_v58  ;;  %v5494_v50 = vmul.f32 1.442695, %v5489_v24 }
0x3b43   :  { %v5484_v28 = vpop.xlane.xlu0 %5483  ;;  %v5523_v10 = vpop.permute.xlu1 %5522 }
0x3b44   :  { %8285 = vpow2.f32 %v5498_v51  ;;  %v5490_v47 = vsub.f32 %v5474_v13, %v5484_v28 }
0x3b45   :  { %8287 = vpow2.f32 %v5494_v50 }
0x3b46   :  { %v5496_v42 = vmul.f32 1.442695, %v5490_v47 }
0x3b48   :  { %8289 = vpow2.f32 %v5496_v42 }
0x3b49   :  { %8291 = vpow2.f32 %v5492_v55 }
0x3b51   :  { %v8286_v36 = vpop.eup %8285 }
0x3b52   :  { %v5509_v29 = vsel %vm68_vm0, %v8286_v36, 0.0  ;;  %v8288_v32 = vpop.eup %8287 }
0x3b53   :  { %5510 = vadd.xlane.f32.xlu1 %v5509_v29  ;;  %v5503_v39 = vsel %vm68_vm0, %v8288_v32, 0.0 }
0x3b55   :  { %v8290_v62 = vpop.eup %8289 }
0x3b56   :  { %v5506_v60 = vsel %vm68_vm0, %v8290_v62, 0.0  ;;  %v8292_v41 = vpop.eup %8291 }
0x3b57   :  { %5504 = vadd.xlane.f32.xlu1 %v5503_v39  ;;  %5507 = vadd.xlane.f32.xlu0 %v5506_v60  ;;  %v5500_v15 = vsel %vm68_vm0, %v8292_v41, 0.0 }
0x3b5b   :  { %5501 = vadd.xlane.f32.xlu0 %v5500_v15 }
0x3b68   :  { %5589 = vrot.lane.b32.xlu1 %v9733_v35, %s10099_s16 }
0x3b6c   :  { %5587 = vrot.lane.b32.xlu1 %v9735_v52, %s10099_s16 }
0x3b70   :  { %5585 = vrot.lane.b32.xlu1 %v9733_v35, %s10100_s28 }
0x3b71   :  { %5524 = vrot.lane.b32.xlu0 %v9733_v35, %s10091_s0  ;;  %s10108_s0 = sld [smem:[#allocation8_spill]] }
0x3b75   :  { %5583 = vrot.lane.b32.xlu0 %v9735_v52, %s10100_s28  ;;  %s10106_s28 = sld [smem:[#allocation6_spill]] }
0x3bdc   :  { %v5511_v22 = vpop.xlane.xlu1 %5510 }
0x3be0   :  { %v5505_v23 = vpop.xlane.xlu1 %5504  ;;  %v5508_v56 = vpop.xlane.xlu0 %5507 }
0x3be1   :  { %8293 = vrcp.f32 %v5508_v56 }
0x3be2   :  { %8295 = vrcp.f32 %v5505_v23 }
0x3be3   :  { %8297 = vrcp.f32 %v5511_v22 }
0x3be4   :  { %v5502_v54 = vpop.xlane.xlu0 %5501  ;;  %v5590_v45 = vpop.permute.xlu1 %5589 }
0x3be5   :  { %8299 = vrcp.f32 %v5502_v54  ;;  %v5601_v21 = vsel %vm181_vm2, %v5590_v45, 0 }
0x3be8   :  { %v5525_v48 = vpop.permute.xlu0 %5524  ;;  %v5588_v0 = vpop.permute.xlu1 %5587 }
0x3be9   :  { %7694 = vmatprep.subr.bf16.mxu1 %v5525_v48  ;;  %v5598_v4 = vsel %vm181_vm2, %v5588_v0, 0 }
0x3bea   :  { %7695 = vmatpush3.bf16.msra.mxu1 %v5525_v48 }
0x3beb   :  { %7696 = vmatprep.subr.bf16.mxu1 %v5523_v10 }
0x3bec   :  { %v5584_v3 = vpop.permute.xlu0 %5583  ;;  %v5586_v27 = vpop.permute.xlu1 %5585 }
0x3bee   :  { %7697 = vmatpush3.bf16.msra.mxu1 %v5523_v10  ;;  %v8294_v2 = vpop.eup %8293 }
0x3bef   :  { %7796 = vmatprep.subr.msk.bf16.mxu1 %vm181_vm2, %v5590_v45  ;;  %v8296_v49 = vpop.eup %8295  ;;  %v5518_v19 = vmul.f32 %v8294_v2, %v8290_v62 }
0x3bf0   :  { %v8298_v53 = vpop.eup %8297  ;;  %v5517_v63 = vmul.f32 %v8296_v49, %v8288_v32 }
0x3bf1   :  { %v5519_v59 = vmul.f32 %v8298_v53, %v8286_v36 }
0x3bf2   :  { %v8300_v37 = vpop.eup %8299 }
0x3bf3   :  { %v5516_v33 = vmul.f32 %v8300_v37, %v8292_v41  ;;  %v5521_v18 = vpack.c.bf16 %v5519_v59, %v5518_v19 }
0x3bf5   :  { %v5520_v61 = vpack.c.bf16 %v5517_v63, %v5516_v33 }
0x3bf7   :  { %7698 = vmatprep.mubr.msk.bf16.mxu1 %vm68_vm0, %v5520_v61 }
0x3bf8   :  { %7699 = vmatmul.mubr.msk.bf16.vlgmr.msra.gmra.mxu1 %vm68_vm0, %v5521_v18 }
0x3bf9   :  { %7703 = vmatpush3.bf16.xpose.msra.mxu1 %v5601_v21  ;;  %7706 = vmatprep.mubr.msk.bf16.mxu1 %vm181_vm2, %v5584_v3 }
0x3bfa   :  { %7797 = vmatprep.subr.msk.bf16.mxu1 %vm181_vm2, %v5588_v0 }
0x3c01   :  { %7705 = vmatpush3.bf16.xpose.msra.mxu1 %v5598_v4 }
0x3c08   :  { %7707 = vmatmul.mubr.msk.bf16.vlgmr.msra.gmra.mxu1 %vm181_vm2, %v5586_v27 }
0x3cb8   :  { %v9801_v5 = vpop.f32.mrf.mxu1 }
0x3cba   :  { %v9803_v6 = vpop.f32.mrf.mxu1 }
0x3cbc   :  { %v9805_v8 = vpop.f32.mrf.mxu1 }
0x3cbe   :  { %v9807_v13 = vpop.f32.mrf.mxu1 }
0x3cc8   :  { %v7708_v38 = vpop.f32.mrf.mxu1 }
0x3cc9   :  { %v5654_v17 = vmul.f32 0.35355338, %v7708_v38 }
0x3cca   :  { %v5637_v34 = vpop.f32.mrf.mxu1 }
0x3ccb   :  { %v5652_v20 = vmul.f32 0.35355338, %v5637_v34  ;;  %v5658_v24 = vadd.f32 %v9771_v9, %v5654_v17 }
0x3ccc   :  { %v7709_v46 = vpop.f32.mrf.mxu1 }
0x3ccd   :  { %v5656_v26 = vadd.f32 %v9752_v12, %v5652_v20  ;;  %v5655_v40 = vmul.f32 0.35355338, %v7709_v46  ;;  %v5666_v55 = vsel %vm68_vm0, %v5658_v24, -inf }
0x3cce   :  { %v5640_v58 = vpop.f32.mrf.mxu1 }
0x3ccf   :  { %v5653_v51 = vmul.f32 0.35355338, %v5640_v58  ;;  %v5660_v50 = vsel %vm68_vm0, %v5656_v26, -inf  ;;  %v5659_v47 = vadd.f32 %v9758_v57, %v5655_v40 }
0x3cd0   :  { %5661 = vmax.xlane.f32.xlu0 %v5660_v50 }
0x3cd1   :  { %v5657_v28 = vadd.f32 %v9765_v7, %v5653_v51  ;;  %v5669_v36 = vsel %vm68_vm0, %v5659_v47, -inf }
0x3cd3   :  { %v5663_v42 = vsel %vm68_vm0, %v5657_v28, -inf }
0x3cd4   :  { %5667 = vmax.xlane.f32.xlu0 %v5666_v55  ;;  %5664 = vmax.xlane.f32.xlu1 %v5663_v42 }
0x3cd8   :  { %5670 = vmax.xlane.f32.xlu0 %v5669_v36 }
0x3ce5   :  { %5706 = vrot.lane.b32.xlu1 %v9735_v52, %s10094_s20 }
0x3d59   :  { %v5662_v29 = vpop.xlane.xlu0 %5661 }
0x3d5a   :  { %v5672_v32 = vsub.f32 %v5656_v26, %v5662_v29 }
0x3d5c   :  { %v5676_v41 = vmul.f32 1.442695, %v5672_v32 }
0x3d5d   :  { %v5668_v62 = vpop.xlane.xlu0 %5667  ;;  %v5665_v39 = vpop.xlane.xlu1 %5664 }
0x3d5e   :  { %v5674_v60 = vsub.f32 %v5658_v24, %v5668_v62  ;;  %v5673_v10 = vsub.f32 %v5657_v28, %v5665_v39 }
0x3d60   :  { %v5680_v15 = vmul.f32 1.442695, %v5674_v60  ;;  %v5678_v56 = vmul.f32 1.442695, %v5673_v10 }
0x3d61   :  { %v5671_v22 = vpop.xlane.xlu0 %5670  ;;  %v5707_v63 = vpop.permute.xlu1 %5706 }
0x3d62   :  { %8301 = vpow2.f32 %v5680_v15  ;;  %v5675_v23 = vsub.f32 %v5659_v47, %v5671_v22 }
0x3d63   :  { %8303 = vpow2.f32 %v5676_v41 }
0x3d64   :  { %v5682_v54 = vmul.f32 1.442695, %v5675_v23 }
0x3d66   :  { %8305 = vpow2.f32 %v5682_v54 }
0x3d67   :  { %8307 = vpow2.f32 %v5678_v56 }
0x3d6f   :  { %v8302_v48 = vpop.eup %8301 }
0x3d70   :  { %v5690_v45 = vsel %vm68_vm0, %v8302_v48, 0.0  ;;  %v8304_v2 = vpop.eup %8303 }
0x3d71   :  { %5691 = vadd.xlane.f32.xlu0 %v5690_v45  ;;  %v5684_v53 = vsel %vm68_vm0, %v8304_v2, 0.0 }
0x3d73   :  { %v8306_v49 = vpop.eup %8305 }
0x3d74   :  { %v5693_v37 = vsel %vm68_vm0, %v8306_v49, 0.0  ;;  %v8308_v19 = vpop.eup %8307 }
0x3d75   :  { %5685 = vadd.xlane.f32.xlu0 %v5684_v53  ;;  %5694 = vadd.xlane.f32.xlu1 %v5693_v37  ;;  %v5687_v33 = vsel %vm68_vm0, %v8308_v19, 0.0 }
0x3d79   :  { %5688 = vadd.xlane.f32.xlu1 %v5687_v33 }
0x3d8a   :  { %5773 = vrot.lane.b32.xlu1 %v9733_v35, %s10101_s5 }
0x3d8b   :  { %5708 = vrot.lane.b32.xlu0 %v9733_v35, %s10094_s20 }
0x3d8e   :  { %5771 = vrot.lane.b32.xlu1 %v9735_v52, %s10101_s5 }
0x3d8f   :  { %5767 = vrot.lane.b32.xlu0 %v9735_v52, %s10102_s23 }
0x3d92   :  { %5769 = vrot.lane.b32.xlu1 %v9733_v35, %s10102_s23 }
0x3dfa   :  { %v5692_v59 = vpop.xlane.xlu0 %5691 }
0x3dfe   :  { %v5686_v61 = vpop.xlane.xlu0 %5685  ;;  %v5695_v18 = vpop.xlane.xlu1 %5694 }
0x3dff   :  { %8309 = vrcp.f32 %v5695_v18 }
0x3e00   :  { %8311 = vrcp.f32 %v5686_v61 }
0x3e01   :  { %8313 = vrcp.f32 %v5692_v59 }
0x3e02   :  { %v5709_v21 = vpop.permute.xlu0 %5708  ;;  %v5689_v3 = vpop.xlane.xlu1 %5688 }
0x3e03   :  { %8315 = vrcp.f32 %v5689_v3  ;;  %7710 = vmatprep.subr.bf16.mxu0 %v5709_v21 }
0x3e04   :  { %7711 = vmatpush3.bf16.msra.mxu0 %v5709_v21 }
0x3e05   :  { %7712 = vmatprep.subr.bf16.mxu0 %v5707_v63 }
0x3e06   :  { %v5774_v0 = vpop.permute.xlu1 %5773  ;;  %v5768_v40 = vpop.permute.xlu0 %5767 }
0x3e07   :  { %v5785_v51 = vsel %vm181_vm2, %v5774_v0, 0 }
0x3e08   :  { %7713 = vmatpush3.bf16.msra.mxu0 %v5707_v63 }
0x3e09   :  { %7798 = vmatprep.subr.msk.bf16.mxu0 %vm181_vm2, %v5774_v0 }
0x3e0a   :  { %v5772_v50 = vpop.permute.xlu1 %5771 }
0x3e0b   :  { %v5782_v28 = vsel %vm181_vm2, %v5772_v50, 0 }
0x3e0c   :  { %v8310_v4 = vpop.eup %8309 }
0x3e0d   :  { %v8312_v27 = vpop.eup %8311  ;;  %v5703_v17 = vmul.f32 %v8310_v4, %v8306_v49 }
0x3e0e   :  { %v8314_v38 = vpop.eup %8313  ;;  %v5700_v20 = vmul.f32 %v8312_v27, %v8304_v2  ;;  %v5770_v47 = vpop.permute.xlu1 %5769 }
0x3e0f   :  { %v5702_v26 = vmul.f32 %v8314_v38, %v8302_v48 }
0x3e10   :  { %v8316_v34 = vpop.eup %8315 }
0x3e11   :  { %v5701_v46 = vmul.f32 %v8316_v34, %v8308_v19  ;;  %v5705_v24 = vpack.c.bf16 %v5703_v17, %v5702_v26 }
0x3e13   :  { %v5704_v58 = vpack.c.bf16 %v5701_v46, %v5700_v20 }
0x3e15   :  { %7714 = vmatprep.mubr.msk.bf16.mxu0 %vm68_vm0, %v5704_v58 }
0x3e16   :  { %7715 = vmatmul.mubr.msk.bf16.vlgmr.msra.gmra.mxu0 %vm68_vm0, %v5705_v24 }
0x3e17   :  { %7719 = vmatpush3.bf16.xpose.msra.mxu0 %v5785_v51  ;;  %7722 = vmatprep.mubr.msk.bf16.mxu0 %vm181_vm2, %v5768_v40 }
0x3e18   :  { %7799 = vmatprep.subr.msk.bf16.mxu0 %vm181_vm2, %v5772_v50 }
0x3e1f   :  { %7721 = vmatpush3.bf16.xpose.msra.mxu0 %v5782_v28 }
0x3e26   :  { %7723 = vmatmul.mubr.msk.bf16.vlgmr.msra.gmra.mxu0 %vm181_vm2, %v5770_v47 }
0x3ed6   :  { %v9841_v55 = vpop.f32.mrf.mxu0 }
0x3ed8   :  { %v9843_v42 = vpop.f32.mrf.mxu0 }
0x3eda   :  { %v9845_v36 = vpop.f32.mrf.mxu0 }
0x3edb   :  { %v7914_v29 = vpack.i.bf16 %v9845_v36, %v9841_v55 }
0x3edc   :  { %v9849_v32 = vpop.f32.mrf.mxu0 }
0x3edd   :  { %v7909_v62 = vpack.i.bf16 %v9849_v32, %v9843_v42 }
0x3ee6   :  { %v7724_v39 = vpop.f32.mrf.mxu0 }
0x3ee7   :  { %v5838_v41 = vmul.f32 0.35355338, %v7724_v39 }
0x3ee8   :  { %v5821_v60 = vpop.f32.mrf.mxu0 }
0x3ee9   :  { %v5836_v15 = vmul.f32 0.35355338, %v5821_v60  ;;  %v5842_v56 = vadd.f32 %v9771_v9, %v5838_v41 }
0x3eea   :  { %v7725_v10 = vpop.f32.mrf.mxu0 }
0x3eeb   :  { %v5840_v22 = vadd.f32 %v9752_v12, %v5836_v15  ;;  %v5839_v54 = vmul.f32 0.35355338, %v7725_v10  ;;  %v5850_v53 = vsel %vm68_vm0, %v5842_v56, -inf }
0x3eec   :  { %v5824_v23 = vpop.f32.mrf.mxu0 }
0x3eed   :  { %v5837_v48 = vmul.f32 0.35355338, %v5824_v23  ;;  %v5844_v45 = vsel %vm68_vm0, %v5840_v22, -inf  ;;  %v5843_v49 = vadd.f32 %v9758_v57, %v5839_v54 }
0x3eee   :  { %5845 = vmax.xlane.f32.xlu0 %v5844_v45 }
0x3eef   :  { %v5841_v2 = vadd.f32 %v9765_v7, %v5837_v48  ;;  %v5853_v19 = vsel %vm68_vm0, %v5843_v49, -inf }
0x3ef1   :  { %v5847_v37 = vsel %vm68_vm0, %v5841_v2, -inf }
0x3ef2   :  { %5851 = vmax.xlane.f32.xlu0 %v5850_v53  ;;  %5848 = vmax.xlane.f32.xlu1 %v5847_v37 }
0x3ef6   :  { %5854 = vmax.xlane.f32.xlu0 %v5853_v19 }
0x3f03   :  { %5890 = vrot.lane.b32.xlu1 %v9735_v52, %s10092_s18 }
0x3f77   :  { %v5846_v33 = vpop.xlane.xlu0 %5845 }
0x3f78   :  { %v5856_v63 = vsub.f32 %v5840_v22, %v5846_v33 }
0x3f7a   :  { %v5860_v21 = vmul.f32 1.442695, %v5856_v63 }
0x3f7b   :  { %v5852_v59 = vpop.xlane.xlu0 %5851  ;;  %v5849_v61 = vpop.xlane.xlu1 %5848 }
0x3f7c   :  { %v5858_v18 = vsub.f32 %v5842_v56, %v5852_v59  ;;  %v5857_v0 = vsub.f32 %v5841_v2, %v5849_v61 }
0x3f7e   :  { %v5864_v3 = vmul.f32 1.442695, %v5858_v18  ;;  %v5862_v38 = vmul.f32 1.442695, %v5857_v0 }
0x3f7f   :  { %v5855_v4 = vpop.xlane.xlu0 %5854  ;;  %v5891_v50 = vpop.permute.xlu1 %5890 }
0x3f80   :  { %8317 = vpow2.f32 %v5864_v3  ;;  %v5859_v27 = vsub.f32 %v5843_v49, %v5855_v4 }
0x3f81   :  { %8319 = vpow2.f32 %v5860_v21 }
0x3f82   :  { %v5866_v34 = vmul.f32 1.442695, %v5859_v27 }
0x3f84   :  { %8321 = vpow2.f32 %v5866_v34 }
0x3f85   :  { %8323 = vpow2.f32 %v5862_v38 }
0x3f8d   :  { %v8318_v17 = vpop.eup %8317 }
0x3f8e   :  { %v5874_v20 = vsel %vm68_vm0, %v8318_v17, 0.0  ;;  %v8320_v46 = vpop.eup %8319 }
0x3f8f   :  { %5875 = vadd.xlane.f32.xlu0 %v5874_v20  ;;  %v5868_v58 = vsel %vm68_vm0, %v8320_v46, 0.0 }
0x3f91   :  { %v8322_v26 = vpop.eup %8321 }
0x3f92   :  { %v5877_v24 = vsel %vm68_vm0, %v8322_v26, 0.0  ;;  %v8324_v40 = vpop.eup %8323 }
0x3f93   :  { %5869 = vadd.xlane.f32.xlu0 %v5868_v58  ;;  %5878 = vadd.xlane.f32.xlu1 %v5877_v24  ;;  %v5871_v51 = vsel %vm68_vm0, %v8324_v40, 0.0 }
0x3f97   :  { %5872 = vadd.xlane.f32.xlu1 %v5871_v51 }
0x3fa8   :  { %5957 = vrot.lane.b32.xlu1 %v9733_v35, %s10090_s29 }
0x3fa9   :  { %5892 = vrot.lane.b32.xlu0 %v9733_v35, %s10092_s18 }
0x3fac   :  { %5955 = vrot.lane.b32.xlu1 %v9735_v52, %s10090_s29 }
0x3fad   :  { %5951 = vrot.lane.b32.xlu0 %v9735_v52, %s10103_s24 }
0x3fb0   :  { %5953 = vrot.lane.b32.xlu1 %v9733_v35, %s10103_s24 }
0x4018   :  { %v5876_v28 = vpop.xlane.xlu0 %5875 }
0x401c   :  { %v5870_v47 = vpop.xlane.xlu0 %5869  ;;  %v5879_v39 = vpop.xlane.xlu1 %5878 }
0x401d   :  { %8325 = vrcp.f32 %v5879_v39 }
0x401e   :  { %8327 = vrcp.f32 %v5870_v47 }
0x401f   :  { %8329 = vrcp.f32 %v5876_v28 }
0x4020   :  { %v5893_v60 = vpop.permute.xlu0 %5892  ;;  %v5873_v41 = vpop.xlane.xlu1 %5872 }
0x4021   :  { %8331 = vrcp.f32 %v5873_v41  ;;  %7726 = vmatprep.subr.bf16.mxu1 %v5893_v60 }
0x4022   :  { %7727 = vmatpush3.bf16.msra.mxu1 %v5893_v60 }
0x4023   :  { %7728 = vmatprep.subr.bf16.mxu1 %v5891_v50 }
0x4024   :  { %v5958_v15 = vpop.permute.xlu1 %5957  ;;  %v5952_v37 = vpop.permute.xlu0 %5951 }
0x4025   :  { %v5969_v19 = vsel %vm181_vm2, %v5958_v15, 0 }
0x4026   :  { %7729 = vmatpush3.bf16.msra.mxu1 %v5891_v50 }
0x4027   :  { %7800 = vmatprep.subr.msk.bf16.mxu1 %vm181_vm2, %v5958_v15 }
0x4028   :  { %v5956_v33 = vpop.permute.xlu1 %5955 }
0x4029   :  { %v5966_v63 = vsel %vm181_vm2, %v5956_v33, 0 }
0x402a   :  { %v8326_v10 = vpop.eup %8325 }
0x402b   :  { %v8328_v22 = vpop.eup %8327  ;;  %v5887_v54 = vmul.f32 %v8326_v10, %v8322_v26 }
0x402c   :  { %v8330_v23 = vpop.eup %8329  ;;  %v5884_v48 = vmul.f32 %v8328_v22, %v8320_v46  ;;  %v5954_v59 = vpop.permute.xlu1 %5953 }
0x402d   :  { %v5886_v2 = vmul.f32 %v8330_v23, %v8318_v17 }
0x402e   :  { %v8332_v56 = vpop.eup %8331 }
0x402f   :  { %v5885_v45 = vmul.f32 %v8332_v56, %v8324_v40  ;;  %v5889_v53 = vpack.c.bf16 %v5887_v54, %v5886_v2 }
0x4031   :  { %v5888_v49 = vpack.c.bf16 %v5885_v45, %v5884_v48 }
0x4033   :  { %7730 = vmatprep.mubr.msk.bf16.mxu1 %vm68_vm0, %v5888_v49 }
0x4034   :  { %7731 = vmatmul.mubr.msk.bf16.vlgmr.msra.gmra.mxu1 %vm68_vm0, %v5889_v53 }
0x4035   :  { %7735 = vmatpush3.bf16.xpose.msra.mxu1 %v5969_v19  ;;  %7738 = vmatprep.mubr.msk.bf16.mxu1 %vm181_vm2, %v5952_v37 }
0x4036   :  { %7801 = vmatprep.subr.msk.bf16.mxu1 %vm181_vm2, %v5956_v33 }
0x403d   :  { %7737 = vmatpush3.bf16.xpose.msra.mxu1 %v5966_v63 }
0x4044   :  { %7739 = vmatmul.mubr.msk.bf16.vlgmr.msra.gmra.mxu1 %vm181_vm2, %v5954_v59 }
0x40f4   :  { %v7732_v61 = vpop.f32.mrf.mxu1 }
0x40f6   :  { %v5936_v18 = vpop.f32.mrf.mxu1 }
0x40f8   :  { %v7733_v21 = vpop.f32.mrf.mxu1 }
0x40f9   :  { %v7924_v3 = vpack.i.bf16 %v7733_v21, %v7732_v61 }
0x40fa   :  { %v5939_v0 = vpop.f32.mrf.mxu1 }
0x40fb   :  { %v7919_v4 = vpack.i.bf16 %v5939_v0, %v5936_v18 }
0x4104   :  { %v7740_v27 = vpop.f32.mrf.mxu1 }
0x4105   :  { %v6022_v34 = vmul.f32 0.35355338, %v7740_v27 }
0x4106   :  { %v6005_v38 = vpop.f32.mrf.mxu1 }
0x4107   :  { %v6020_v17 = vmul.f32 0.35355338, %v6005_v38  ;;  %v6026_v58 = vadd.f32 %v9771_v9, %v6022_v34  ;;  %v8003_v38 = vld [vmem:[%s10032_s8 + $0x58] sm:$0xff]   ;;  %v8004_v34 = vld [vmem:[%s10032_s8 + $0x50] sm:$0xff]   ;;  %s10109_s8 = sld [smem:[#allocation9_spill]] }
0x4108   :  { %v7741_v20 = vpop.f32.mrf.mxu1 }
0x4109   :  { %v6024_v46 = vadd.f32 %v9752_v12, %v6020_v17  ;;  %v6023_v24 = vmul.f32 0.35355338, %v7741_v20  ;;  %v6034_v47 = vsel %vm68_vm0, %v6026_v58, -inf }
0x410a   :  { %v6008_v26 = vpop.f32.mrf.mxu1 }
0x410b   :  { %v6021_v40 = vmul.f32 0.35355338, %v6008_v26  ;;  %v6028_v51 = vsel %vm68_vm0, %v6024_v46, -inf  ;;  %v6027_v28 = vadd.f32 %v9758_v57, %v6023_v24 }
0x410c   :  { %6029 = vmax.xlane.f32.xlu0 %v6028_v51 }
0x410d   :  { %v6025_v50 = vadd.f32 %v9765_v7, %v6021_v40  ;;  %v6037_v12 = vsel %vm68_vm0, %v6027_v28, -inf }
0x410f   :  { %v6031_v39 = vsel %vm68_vm0, %v6025_v50, -inf }
0x4110   :  { %6035 = vmax.xlane.f32.xlu0 %v6034_v47  ;;  %6032 = vmax.xlane.f32.xlu1 %v6031_v39 }
0x4114   :  { %6038 = vmax.xlane.f32.xlu0 %v6037_v12 }
0x4195   :  { %v6030_v60 = vpop.xlane.xlu0 %6029 }
0x4196   :  { %v6040_v9 = vsub.f32 %v6024_v46, %v6030_v60 }
0x4198   :  { %v6044_v22 = vmul.f32 1.442695, %v6040_v9 }
0x4199   :  { %v6036_v41 = vpop.xlane.xlu0 %6035  ;;  %v6033_v15 = vpop.xlane.xlu1 %6032 }
0x419a   :  { %v6042_v10 = vsub.f32 %v6026_v58, %v6036_v41  ;;  %v6041_v56 = vsub.f32 %v6025_v50, %v6033_v15 }
0x419c   :  { %v6048_v23 = vmul.f32 1.442695, %v6042_v10  ;;  %v6046_v54 = vmul.f32 1.442695, %v6041_v56 }
0x419d   :  { %v6039_v7 = vpop.xlane.xlu0 %6038 }
0x419e   :  { %8333 = vpow2.f32 %v6048_v23  ;;  %v6043_v57 = vsub.f32 %v6027_v28, %v6039_v7 }
0x419f   :  { %8335 = vpow2.f32 %v6044_v22 }
0x41a0   :  { %v6050_v48 = vmul.f32 1.442695, %v6043_v57 }
0x41a2   :  { %8337 = vpow2.f32 %v6050_v48 }
0x41a3   :  { %8339 = vpow2.f32 %v6046_v54 }
0x41ab   :  { %v8334_v45 = vpop.eup %8333 }
0x41ac   :  { %v6058_v2 = vsel %vm68_vm0, %v8334_v45, 0.0  ;;  %v8336_v49 = vpop.eup %8335 }
0x41ad   :  { %6059 = vadd.xlane.f32.xlu0 %v6058_v2  ;;  %v6052_v37 = vsel %vm68_vm0, %v8336_v49, 0.0 }
0x41af   :  { %v8338_v53 = vpop.eup %8337 }
0x41b0   :  { %v6061_v19 = vsel %vm68_vm0, %v8338_v53, 0.0  ;;  %v8340_v33 = vpop.eup %8339 }
0x41b1   :  { %6053 = vadd.xlane.f32.xlu0 %v6052_v37  ;;  %6062 = vadd.xlane.f32.xlu1 %v6061_v19  ;;  %v6055_v63 = vsel %vm68_vm0, %v8340_v33, 0.0 }
0x41b5   :  { %6056 = vadd.xlane.f32.xlu1 %v6055_v63 }
0x41c6   :  { %6074 = vrot.lane.b32.xlu1 %v9735_v52, %s10093_s19 }
0x41c7   :  { %6076 = vrot.lane.b32.xlu0 %v9733_v35, %s10093_s19 }
0x41ca   :  { %7910 = vrot.lane.b32.xlu1 %v7909_v62, %s10095_s22 }
0x41cb   :  { %7920 = vrot.lane.b32.xlu0 %v7919_v4, %s10096_s21 }
0x41ce   :  { %7915 = vrot.lane.b32.xlu1 %v7914_v29, %s10095_s22 }
0x41d2   :  { %7925 = vrot.lane.b32.xlu1 %v7924_v3, %s10096_s21 }
0x4236   :  { %v6060_v59 = vpop.xlane.xlu0 %6059 }
0x423a   :  { %v6054_v61 = vpop.xlane.xlu0 %6053  ;;  %v6063_v52 = vpop.xlane.xlu1 %6062 }
0x423b   :  { %8341 = vrcp.f32 %v6063_v52  ;;  %v6985_v52 = vld [vmem:[%s10033_s9 + $0x5] ss:$0 sm:$0xff] }
0x423c   :  { %8343 = vrcp.f32 %v6054_v61 }
0x423d   :  { %8345 = vrcp.f32 %v6060_v59 }
0x423e   :  { %v6077_v35 = vpop.permute.xlu0 %6076  ;;  %v6057_v18 = vpop.xlane.xlu1 %6056 }
0x423f   :  { %8347 = vrcp.f32 %v6057_v18  ;;  %7742 = vmatprep.subr.bf16.mxu0 %v6077_v35 }
0x4240   :  { %7743 = vmatpush3.bf16.msra.mxu0 %v6077_v35 }
0x4242   :  { %v6075_v42 = vpop.permute.xlu1 %6074  ;;  %v7921_v39 = vpop.permute.xlu0 %7920 }
0x4243   :  { %7744 = vmatprep.subr.bf16.mxu0 %v6075_v42  ;;  %v7923_v7 = vunpack.i.h.bf16 %v7921_v39  ;;  %v7922_v57 = vunpack.i.l.bf16 %v7921_v39 }
0x4244   :  { %7745 = vmatpush3.bf16.msra.mxu0 %v6075_v42 }
0x4245   :  { %7750 = vmatprep.subr.bf16.mxu0 %v8003_v38 }
0x4246   :  { %v7911_v40 = vpop.permute.xlu1 %7910 }
0x4247   :  { %v7913_v28 = vunpack.i.h.bf16 %v7911_v40  ;;  %v7912_v47 = vunpack.i.l.bf16 %v7911_v40 }
0x4248   :  { %v8342_v32 = vpop.eup %8341 }
0x4249   :  { %v8344_v62 = vpop.eup %8343  ;;  %v6071_v29 = vmul.f32 %v8342_v32, %v8338_v53  ;;  %v6184_v10 = vsel %vm181_vm2, %v9807_v13, %v7913_v28  ;;  %v6183_v22 = vsel %vm181_vm2, %v9803_v6, %v7912_v47 }
0x424a   :  { %v8346_v55 = vpop.eup %8345  ;;  %v6068_v21 = vmul.f32 %v8344_v62, %v8336_v49  ;;  %v7916_v51 = vpop.permute.xlu1 %7915  ;;  %v6187_v19 = vsel %vm233_vm3, %v6183_v22, %v7922_v57 }
0x424b   :  { %v6070_v0 = vmul.f32 %v8346_v55, %v8334_v45  ;;  %v7918_v12 = vunpack.i.h.bf16 %v7916_v51  ;;  %v7917_v60 = vunpack.i.l.bf16 %v7916_v51 }
0x424c   :  { %v8348_v36 = vpop.eup %8347 }
0x424d   :  { %v6069_v3 = vmul.f32 %v8348_v36, %v8340_v33  ;;  %v6073_v27 = vpack.c.bf16 %v6071_v29, %v6070_v0  ;;  %v6186_v54 = vsel %vm181_vm2, %v9805_v8, %v7918_v12  ;;  %v6185_v48 = vsel %vm181_vm2, %v9801_v5, %v7917_v60 }
0x424e   :  { %v7926_v50 = vpop.permute.xlu1 %7925  ;;  %v6188_v33 = vsel %vm233_vm3, %v6184_v10, %v7923_v7  ;;  %v8006_v10 = vld [vmem:[%s10034_s11 + $0x50] sm:$0xff]  }
0x424f   :  { %v6072_v4 = vpack.c.bf16 %v6069_v3, %v6068_v21  ;;  %v7928_v9 = vunpack.i.h.bf16 %v7926_v50  ;;  %v7927_v41 = vunpack.i.l.bf16 %v7926_v50 }
0x4251   :  { %7746 = vmatprep.mubr.msk.bf16.mxu0 %vm68_vm0, %v6072_v4  ;;  %v6189_v2 = vsel %vm233_vm3, %v6185_v48, %v7927_v41  ;;  %v6190_v49 = vsel %vm233_vm3, %v6186_v54, %v7928_v9 }
0x4252   :  { %7747 = vmatmul.mubr.msk.bf16.vlgmr.msra.gmra.mxu0 %vm68_vm0, %v6073_v27 }
0x4253   :  { %7751 = vmatpush3.bf16.msra.mxu0 %v8003_v38 }
0x4254   :  { %7752 = vmatprep.subr.bf16.mxu0 %v8004_v34 }
0x4257   :  { %7753 = vmatpush3.bf16.msra.mxu0 %v8004_v34 }
0x4312   :  { %v7748_v17 = vpop.f32.mrf.mxu0 }
0x4314   :  { %v6120_v20 = vpop.f32.mrf.mxu0 }
0x4316   :  { %v7749_v46 = vpop.f32.mrf.mxu0 }
0x4317   :  { %v7934_v26 = vpack.i.bf16 %v7749_v46, %v7748_v17 }
0x4318   :  { %v6123_v58 = vpop.f32.mrf.mxu0 }
0x4319   :  { %v7929_v24 = vpack.i.bf16 %v6123_v58, %v6120_v20  ;;  %7935 = vrot.lane.b32.xlu1 %v7934_v26, %s10097_s6 }
0x431b   :  { %7930 = vrot.lane.b32.xlu0 %v7929_v24, %s10097_s6 }
0x438b   :  { %v7936_v15 = vpop.permute.xlu1 %7935 }
0x438c   :  { %v7938_v23 = vunpack.i.h.bf16 %v7936_v15  ;;  %v7937_v56 = vunpack.i.l.bf16 %v7936_v15  ;;  %v8005_v15 = vld [vmem:[%s10034_s11 + $0x58] sm:$0xff]  }
0x438d   :  { %v7931_v45 = vpop.permute.xlu0 %7930  ;;  %7758 = vmatprep.subr.bf16.mxu1 %v8005_v15 }
0x438e   :  { %v7933_v53 = vunpack.i.h.bf16 %v7931_v45  ;;  %v7932_v13 = vunpack.i.l.bf16 %v7931_v45  ;;  %v6193_v37 = vsel %vm707_vm4, %v6189_v2, %v7937_v56  ;;  %v6194_v6 = vsel %vm707_vm4, %v6190_v49, %v7938_v23  ;;  %7759 = vmatpush3.bf16.msra.mxu1 %v8005_v15 }
0x438f   :  { %v6196_v59 = vpack.c.bf16 %v6194_v6, %v6193_v37  ;;  %7760 = vmatprep.subr.bf16.mxu1 %v8006_v10  ;;  %v9964_v37 = vld [vmem:[%s10106_s28 + $0x14] sm:$0xf] }
0x4390   :  { %v6191_v8 = vsel %vm707_vm4, %v6187_v19, %v7932_v13  ;;  %v6192_v63 = vsel %vm707_vm4, %v6188_v33, %v7933_v53  ;;  %v6336_v19 = vrot.slane %v9964_v37, %v8515_v25 }
0x4391   :  { %v6195_v5 = vpack.c.bf16 %v6192_v63, %v6191_v8 }
0x4392   :  { %7761 = vmatpush3.bf16.msra.mxu1 %v8006_v10 }
0x4393   :  { %7754 = vmatprep.mubr.msk.bf16.mxu0 %vm68_vm0, %v6195_v5  ;;  %7778 = vmatprep.subr.bf16.mxu1 %v8381_v14 }
0x4394   :  { %7755 = vmatmul.mubr.msk.bf16.vlgmr.msra.gmra.mxu0 %vm68_vm0, %v6196_v59 }
0x4454   :  { %v7756_v61 = vpop.f32.mrf.mxu0 }
0x4455   :  { %v6271_v18 = vadd.f32 %v7756_v61, %v6985_v52  ;;  %v6344_v61 = vrot.slane %v9964_v37, %v8522_v30 }
0x4456   :  { %v6262_v35 = vpop.f32.mrf.mxu0 }
0x4457   :  { %v6263_v42 = vadd.f32 %v6985_v52, %v6262_v35  ;;  %v6279_v36 = vadd.f32 %v6271_v18, %v9723_v43 }
0x4458   :  { %v7757_v32 = vpop.f32.mrf.mxu0 }
0x4459   :  { %v6277_v62 = vadd.f32 %v6263_v42, %v9716_v31  ;;  %v6274_v29 = vadd.f32 %v7757_v32, %v6985_v52  ;;  %v6287_v38 = vsel %vm68_vm0, %v6279_v36, 0.0 }
0x445a   :  { %v6265_v55 = vpop.f32.mrf.mxu0 }
0x445b   :  { %v6266_v21 = vadd.f32 %v6985_v52, %v6265_v55  ;;  %v6281_v3 = vsel %vm68_vm0, %v6277_v62, 0.0  ;;  %v6280_v4 = vadd.f32 %v6274_v29, %v9725_v44 }
0x445c   :  { %6282 = vadd.xlane.f32.xlu0 %v6281_v3 }
0x445d   :  { %v6278_v0 = vadd.f32 %v6266_v21, %v9718_v1  ;;  %v6290_v31 = vsel %vm68_vm0, %v6280_v4, 0.0 }
0x445f   :  { %v6284_v27 = vsel %vm68_vm0, %v6278_v0, 0.0 }
0x4460   :  { %6285 = vadd.xlane.f32.xlu1 %v6284_v27  ;;  %6288 = vadd.xlane.f32.xlu0 %v6287_v38  ;;  %v8008_v27 = vld [vmem:[%s10036_s13 + $0xb0] sm:$0xff]   ;;  %v8009_v38 = vld [vmem:[%s10036_s13 + $0xa8] sm:$0xff]  }
0x4464   :  { %6291 = vadd.xlane.f32.xlu0 %v6290_v31  ;;  %v8010_v31 = vld [vmem:[%s10036_s13 + $0xa0] sm:$0xff]  }
0x44e5   :  { %v6283_v34 = vpop.xlane.xlu0 %6282 }
0x44e6   :  { %v6293_v43 = vmul.f32 0.03125, %v6283_v34  ;;  %v6995_v34 = vld [vmem:[%s10037_s12 + $0x5] ss:$0 sm:$0xff] }
0x44e8   :  { %v6297_v17 = vsub.f32 %v6277_v62, %v6293_v43 }
0x44e9   :  { %v6286_v20 = vpop.xlane.xlu1 %6285  ;;  %v6289_v46 = vpop.xlane.xlu0 %6288 }
0x44ea   :  { %v6294_v26 = vmul.f32 0.03125, %v6286_v20  ;;  %v6295_v58 = vmul.f32 0.03125, %v6289_v46  ;;  %v6301_v24 = vmul.f32 %v6297_v17, %v6297_v17 }
0x44ec   :  { %v6298_v1 = vsub.f32 %v6278_v0, %v6294_v26  ;;  %v6299_v40 = vsub.f32 %v6279_v36, %v6295_v58  ;;  %v6305_v44 = vsel %vm68_vm0, %v6301_v24, 0.0 }
0x44ed   :  { %6306 = vadd.xlane.f32.xlu0 %v6305_v44  ;;  %v6292_v51 = vpop.xlane.xlu0 %6291 }
0x44ee   :  { %v6296_v50 = vmul.f32 0.03125, %v6292_v51  ;;  %v6302_v28 = vmul.f32 %v6298_v1, %v6298_v1  ;;  %v6303_v47 = vmul.f32 %v6299_v40, %v6299_v40 }
0x44f0   :  { %v6300_v39 = vsub.f32 %v6280_v4, %v6296_v50  ;;  %v6308_v12 = vsel %vm68_vm0, %v6302_v28, 0.0  ;;  %v6311_v60 = vsel %vm68_vm0, %v6303_v47, 0.0  ;;  %v8007_v4 = vld [vmem:[%s10036_s13 + $0xb8] sm:$0xff]  }
0x44f1   :  { %6309 = vadd.xlane.f32.xlu1 %v6308_v12  ;;  %6312 = vadd.xlane.f32.xlu0 %v6311_v60 }
0x44f2   :  { %v6304_v9 = vmul.f32 %v6300_v39, %v6300_v39  ;;  %7766 = vmatprep.subr.bf16.mxu0 %v8007_v4 }
0x44f3   :  { %7767 = vmatpush3.bf16.msra.mxu0 %v8007_v4 }
0x44f4   :  { %v6314_v41 = vsel %vm68_vm0, %v6304_v9, 0.0  ;;  %7768 = vmatprep.subr.bf16.mxu0 %v8008_v27 }
0x44f5   :  { %6315 = vadd.xlane.f32.xlu1 %v6314_v41 }
0x44f7   :  { %7769 = vmatpush3.bf16.msra.mxu0 %v8008_v27 }
0x44f8   :  { %7770 = vmatprep.subr.bf16.mxu0 %v8009_v38 }
0x44fb   :  { %7771 = vmatpush3.bf16.msra.mxu0 %v8009_v38 }
0x44fc   :  { %7772 = vmatprep.subr.bf16.mxu0 %v8010_v31 }
0x44ff   :  { %7773 = vmatpush3.bf16.msra.mxu0 %v8010_v31 }
0x4576   :  { %v6307_v22 = vpop.xlane.xlu0 %6306 }
0x4577   :  { %v6317_v23 = vmul.f32 0.03125, %v6307_v22 }
0x4579   :  { %v6321_v56 = vadd.f32 1e-12, %v6317_v23 }
0x457a   :  { %v6310_v7 = vpop.xlane.xlu1 %6309  ;;  %v6313_v57 = vpop.xlane.xlu0 %6312 }
0x457b   :  { %8349 = vrsqrt.f32 %v6321_v56  ;;  %v6318_v54 = vmul.f32 0.03125, %v6310_v7  ;;  %v6319_v48 = vmul.f32 0.03125, %v6313_v57 }
0x457d   :  { %v6322_v45 = vadd.f32 1e-12, %v6318_v54  ;;  %v6323_v2 = vadd.f32 1e-12, %v6319_v48 }
0x457e   :  { %v6316_v49 = vpop.xlane.xlu1 %6315 }
0x457f   :  { %8351 = vrsqrt.f32 %v6322_v45  ;;  %v6320_v53 = vmul.f32 0.03125, %v6316_v49 }
0x4580   :  { %8353 = vrsqrt.f32 %v6323_v2 }
0x4581   :  { %v6324_v13 = vadd.f32 1e-12, %v6320_v53 }
0x4583   :  { %8355 = vrsqrt.f32 %v6324_v13 }
0x4588   :  { %v8350_v6 = vpop.eup %8349 }
0x4589   :  { %v6329_v33 = vmul.f32 %v8350_v6, %v6297_v17 }
0x458b   :  { %v6337_v59 = vmul.f32 %v6336_v19, %v6329_v33 }
0x458c   :  { %v8352_v8 = vpop.eup %8351 }
0x458d   :  { %v8354_v63 = vpop.eup %8353  ;;  %v6330_v5 = vmul.f32 %v8352_v8, %v6298_v1  ;;  %v9970_v62 = vadd.f32 %v6344_v61, %v6337_v59 }
0x458e   :  { %v6331_v52 = vmul.f32 %v8354_v63, %v6299_v40 }
0x458f   :  { %v6338_v35 = vmul.f32 %v6336_v19, %v6330_v5 }
0x4590   :  { %v8356_v18 = vpop.eup %8355  ;;  %v6339_v42 = vmul.f32 %v6336_v19, %v6331_v52 }
0x4591   :  { %v6332_v32 = vmul.f32 %v8356_v18, %v6300_v39  ;;  %v6346_v55 = vadd.f32 %v6344_v61, %v6338_v35 }
0x4592   :  { %v9974_v21 = vadd.f32 %v6344_v61, %v6339_v42 }
0x4593   :  { %v6340_v36 = vmul.f32 %v6336_v19, %v6332_v32  ;;  %v6349_v29 = vpack.c.bf16 %v6346_v55, %v9970_v62  ;;  %v7009_v55 = vld [vmem:[%s10038_s14 + $0x5] ss:$0 sm:$0xff] }
0x4595   :  { %7762 = vmatprep.mubr.msk.bf16.mxu1 %vm68_vm0, %v6349_v29  ;;  %v6348_v3 = vadd.f32 %v6344_v61, %v6340_v36 }
0x4597   :  { %v6350_v0 = vpack.c.bf16 %v6348_v3, %v9974_v21 }
0x4599   :  { %7763 = vmatmul.mubr.msk.bf16.vlgmr.msra.gmra.mxu1 %vm68_vm0, %v6350_v0 }
0x459a   :  { %7782 = vmatprep.mubr.msk.bf16.mxu1 %vm8382_vm1, %v8381_v14 }
0x4659   :  { %v7764_v43 = vpop.f32.mrf.mxu1 }
0x465a   :  { %v6425_v17 = vadd.f32 %v7764_v43, %v6995_v34 }
0x465b   :  { %v6416_v20 = vpop.f32.mrf.mxu1 }
0x465c   :  { %v6437_v46 = vmul.f32 0.044715, %v6425_v17  ;;  %v6417_v26 = vadd.f32 %v6995_v34, %v6416_v20  ;;  %v6433_v59 = vmul.f32 0.5, %v6425_v17 }
0x465d   :  { %v7765_v58 = vpop.f32.mrf.mxu1 }
0x465e   :  { %v6441_v24 = vmul.f32 %v6437_v46, %v6425_v17  ;;  %v6435_v1 = vmul.f32 0.044715, %v6417_v26  ;;  %v6428_v40 = vadd.f32 %v7765_v58, %v6995_v34  ;;  %v6431_v8 = vmul.f32 0.5, %v6417_v26 }
0x465f   :  { %v6419_v44 = vpop.f32.mrf.mxu1 }
0x4660   :  { %v6445_v51 = vmul.f32 %v6441_v24, %v6425_v17  ;;  %v6439_v50 = vmul.f32 %v6435_v1, %v6417_v26  ;;  %v6438_v28 = vmul.f32 0.044715, %v6428_v40  ;;  %v6420_v47 = vadd.f32 %v6995_v34, %v6419_v44  ;;  %v8011_v44 = vld [vmem:[%s10107_s26 + $0x8] sm:$0xff]  }
0x4661   :  { %v6434_v33 = vmul.f32 0.5, %v6428_v40  ;;  %7779 = vmatpush3.bf16.msra.mxu1 %v8011_v44 }
0x4662   :  { %v6449_v39 = vadd.f32 %v6445_v51, %v6425_v17  ;;  %v6443_v12 = vmul.f32 %v6439_v50, %v6417_v26  ;;  %v6442_v60 = vmul.f32 %v6438_v28, %v6428_v40  ;;  %v6436_v9 = vmul.f32 0.044715, %v6420_v47  ;;  %7780 = vmatprep.subr.bf16.mxu1 %v8381_v14  ;;  %v8012_v51 = vld [vmem:[%s10107_s26] sm:$0xff]  }
0x4663   :  { %v6432_v63 = vmul.f32 0.5, %v6420_v47  ;;  %v6600_v14 = vrot.slane %v9964_v37, %v8712_v16 }
0x4664   :  { %v6453_v41 = vmul.f32 0.7978846, %v6449_v39  ;;  %v6447_v15 = vadd.f32 %v6443_v12, %v6417_v26  ;;  %v6446_v10 = vmul.f32 %v6442_v60, %v6428_v40  ;;  %v6440_v22 = vmul.f32 %v6436_v9, %v6420_v47 }
0x4665   :  { %7781 = vmatpush3.bf16.msra.mxu1 %v8012_v51  ;;  %v6594_v9 = vrot.slane %v9964_v37, %v8707_v11 }
0x4666   :  { %v6451_v23 = vmul.f32 0.7978846, %v6447_v15  ;;  %v6450_v56 = vadd.f32 %v6446_v10, %v6428_v40  ;;  %v6444_v7 = vmul.f32 %v6440_v22, %v6420_v47  ;;  %8357 = vtanh.f32 %v6453_v41 }
0x4668   :  { %v6454_v57 = vmul.f32 0.7978846, %v6450_v56  ;;  %8359 = vtanh.f32 %v6451_v23  ;;  %v6448_v54 = vadd.f32 %v6444_v7, %v6420_v47 }
0x466a   :  { %8361 = vtanh.f32 %v6454_v57  ;;  %v6452_v48 = vmul.f32 0.7978846, %v6448_v54 }
0x466c   :  { %8363 = vtanh.f32 %v6452_v48 }
0x4673   :  { %v8358_v45 = vpop.eup %8357 }
0x4674   :  { %v6461_v19 = vadd.f32 1.0, %v8358_v45 }
0x4675   :  { %v8360_v2 = vpop.eup %8359 }
0x4676   :  { %v6459_v13 = vadd.f32 1.0, %v8360_v2  ;;  %v6465_v18 = vmul.f32 %v6461_v19, %v6433_v59  ;;  %v6608_v2 = vld [vmem:[%s10108_s0] sm:$0x7] }
0x4677   :  { %v8362_v49 = vpop.eup %8361  ;;  %v6677_v19 = vrot.slane %v6608_v2, %v8522_v30 }
0x4678   :  { %v6462_v53 = vadd.f32 1.0, %v8362_v49  ;;  %v6463_v52 = vmul.f32 %v6459_v13, %v6431_v8  ;;  %v6617_v49 = vrot.slane %v6608_v2, %v8515_v25 }
0x4679   :  { %v8364_v6 = vpop.eup %8363 }
0x467a   :  { %v6460_v5 = vadd.f32 1.0, %v8364_v6  ;;  %v6466_v61 = vmul.f32 %v6462_v53, %v6434_v33 }
0x467c   :  { %v6464_v35 = vmul.f32 %v6460_v5, %v6432_v63  ;;  %v6468_v32 = vpack.c.bf16 %v6466_v61, %v6465_v18  ;;  %v6686_v5 = vrot.slane %v6608_v2, %v8707_v11 }
0x467e   :  { %v6467_v42 = vpack.c.bf16 %v6464_v35, %v6463_v52 }
0x4680   :  { %7774 = vmatprep.mubr.msk.bf16.mxu0 %vm944_vm5, %v6467_v42 }
0x4681   :  { %7775 = vmatmul.mubr.msk.bf16.vlgmr.msra.gmra.mxu0 %vm944_vm5, %v6468_v32 }
0x4741   :  { %v7776_v36 = vpop.f32.mrf.mxu0 }
0x4742   :  { %v6558_v29 = vadd.f32 %v7776_v36, %v7009_v55 }
0x4743   :  { %v6550_v3 = vpop.f32.mrf.mxu0 }
0x4744   :  { %v6564_v0 = vadd.f32 %v6558_v29, %v9974_v21  ;;  %v6551_v4 = vadd.f32 %v7009_v55, %v6550_v3 }
0x4745   :  { %v7777_v27 = vpop.f32.mrf.mxu0 }
0x4746   :  { %v6563_v38 = vadd.f32 %v6551_v4, %v9970_v62  ;;  %v6568_v31 = vsel %vm68_vm0, %v6564_v0, 0.0 }
0x4747   :  { %6569 = vadd.xlane.f32.xlu0 %v6568_v31  ;;  %v6553_v34 = vpop.f32.mrf.mxu0 }
0x4748   :  { %v6565_v43 = vsel %vm68_vm0, %v6563_v38, 0.0 }
0x4749   :  { %6566 = vadd.xlane.f32.xlu1 %v6565_v43 }
0x47d0   :  { %v6570_v17 = vpop.xlane.xlu0 %6569 }
0x47d1   :  { %v6572_v20 = vmul.f32 0.03125, %v6570_v17 }
0x47d2   :  { %v6567_v46 = vpop.xlane.xlu1 %6566 }
0x47d3   :  { %v6574_v26 = vsub.f32 %v6564_v0, %v6572_v20  ;;  %v6571_v58 = vmul.f32 0.03125, %v6567_v46 }
0x47d5   :  { %v6573_v24 = vsub.f32 %v6563_v38, %v6571_v58  ;;  %v6576_v1 = vmul.f32 %v6574_v26, %v6574_v26 }
0x47d7   :  { %v6580_v21 = vsel %vm68_vm0, %v6576_v1, 0.0  ;;  %v6575_v40 = vmul.f32 %v6573_v24, %v6573_v24 }
0x47d8   :  { %6581 = vadd.xlane.f32.xlu0 %v6580_v21 }
0x47d9   :  { %v6577_v62 = vsel %vm68_vm0, %v6575_v40, 0.0 }
0x47da   :  { %6578 = vadd.xlane.f32.xlu1 %v6577_v62 }
0x4861   :  { %v6582_v50 = vpop.xlane.xlu0 %6581 }
0x4862   :  { %v6584_v28 = vmul.f32 0.03125, %v6582_v50 }
0x4863   :  { %v6579_v47 = vpop.xlane.xlu1 %6578 }
0x4864   :  { %v6586_v39 = vadd.f32 1e-12, %v6584_v28  ;;  %v6583_v12 = vmul.f32 0.03125, %v6579_v47 }
0x4866   :  { %8365 = vrsqrt.f32 %v6586_v39  ;;  %v6585_v60 = vadd.f32 1e-12, %v6583_v12 }
0x4868   :  { %8367 = vrsqrt.f32 %v6585_v60 }
0x4873   :  { %v8366_v41 = vpop.eup %8365 }
0x4874   :  { %v6590_v15 = vmul.f32 %v8366_v41, %v6574_v26 }
0x4875   :  { %v8368_v10 = vpop.eup %8367 }
0x4876   :  { %v6596_v22 = vmul.f32 %v6594_v9, %v6590_v15  ;;  %v6589_v23 = vmul.f32 %v8368_v10, %v6573_v24 }
0x4878   :  { %v6602_v56 = vadd.f32 %v6600_v14, %v6596_v22  ;;  %v6595_v7 = vmul.f32 %v6594_v9, %v6589_v23 }
0x487a   :  { %v6604_v57 = vrot.slane %v6602_v56, 7  ;;  %v6601_v54 = vadd.f32 %v6600_v14, %v6595_v7 }
0x487c   :  { %v6607_v48 = vsel %vm6606_vm6, %v6601_v54, %v6604_v57 }
0x487d   :  { %v6609_v45 = vpack.c.bf16 %v6607_v48, %v6607_v48 }
0x487f   :  { %7783 = vmatmul.mubr.msk.bf16.vlgmr.msra.gmra.mxu1 %vm68_vm0, %v6609_v45 }
0x493f   :  { %v6667_v16 = vpop.f32.mrf.mxu1 }
0x4940   :  { %v6668_v37 = vadd.f32 %v6667_v16, %v6617_v49 }
0x4941   :  { %v7784_v53 = vpop.f32.mrf.mxu1 }
0x4942   :  { %8369 = vtanh.f32 %v6668_v37 }
0x4943   :  { %v6670_v13 = vpop.f32.mrf.mxu1 }
0x4945   :  { %v7785_v6 = vpop.f32.mrf.mxu1 }
0x494f   :  { %v8370_v33 = vpop.eup %8369 }
0x4950   :  { %v6678_v8 = vmul.f32 %v8370_v33, %v6677_v19 }
0x4952   :  { %v6680_v63 = vsel %vm6679_vm7, %v6678_v8, 0.0 }
0x4953   :  { %6681 = vadd.xlane.f32.xlu0 %v6680_v63 }
0x49dc   :  { %v6682_v59 = vpop.xlane.xlu0 %6681 }
0x49dd   :  { %v6687_v61 = vadd.f32 %v6686_v5, %v6682_v59 }
0x49df   :  { %v6688_v52 = vmul.f32 0.5, %v6687_v61 }
0x49e1   :  { %8371 = vtanh.f32 %v6688_v52 }
0x49ee   :  { %v8372_v25 = vpop.eup %8371 }
0x49ef   :  { %v6690_v35 = vadd.f32 1.0, %v8372_v25 }
0x49f1   :  { %v6691_v18 = vmul.f32 0.5, %v6690_v35 }
0x49f3   :  { %6693 = vst.msk [vmem:[%s10109_s8] sm:$0x3] %vm6692_vm8, %v6691_v18 }

</bundles_post_ra>
